<compile_context>
chip_gen: v5e
topology: v5e:2x2
jax: 0.10.0
libtpu: 0.0.40
codegen_flags: <defaults>
</compile_context>

<pallas_src>
import functools

import jax
import jax.numpy as jnp
from jax import lax
from jax.experimental import pallas as pl
from jax.experimental.pallas import tpu as pltpu


_VMEM_LIMIT = 32 * 1024 * 1024  # explicit scoped-VMEM budget, safe on v5e/v6e/v7x


def _cparams(sem):
    return pltpu.CompilerParams(dimension_semantics=sem,
                                vmem_limit_bytes=_VMEM_LIMIT)


def _pick_tile(n, per_item_bytes, target=64, budget=8 << 20):
    """Largest divisor Bt of n with Bt <= target, Bt*per_item_bytes <= budget
    and n // Bt >= 2 whenever n >= 2 (so the parallel grid axis feeds both v7x
    TensorCores)."""
    best = 1
    for t in range(1, min(n, target) + 1):
        if n % t:
            continue
        if n >= 2 and n // t < 2:
            break
        if t * per_item_bytes > budget:
            break
        best = t
    return best


# ---------------------------------------------------------------------------
# In-kernel 3x3 conv: 3 matmuls against block-tridiagonal tap matrices.
# ---------------------------------------------------------------------------

def _conv3_taps(y, w_ref):
    """y: (Bt, H, K) f32 lane-dense activation (K = W*Cin).
    w_ref: VMEM ref (3, K, N) bf16 tap matrices (N = W*Cout), one per kh.
    Returns (Bt*H, N) f32.  kw shifts / W padding are folded into the weights;
    kh shifts are two sublane shifts (zero row in / last-or-first row out)."""
    Bt, H, K = y.shape
    zrow = jnp.zeros((Bt, 1, K), jnp.float32)
    ym = jnp.concatenate([zrow, y[:, :H - 1]], axis=1)   # row i sees y[i-1]
    yp = jnp.concatenate([y[:, 1:], zrow], axis=1)       # row i sees y[i+1]
    out = jnp.dot(ym.reshape(Bt * H, K).astype(jnp.bfloat16), w_ref[0],
                  preferred_element_type=jnp.float32)
    out += jnp.dot(y.reshape(Bt * H, K).astype(jnp.bfloat16), w_ref[1],
                   preferred_element_type=jnp.float32)
    out += jnp.dot(yp.reshape(Bt * H, K).astype(jnp.bfloat16), w_ref[2],
                   preferred_element_type=jnp.float32)
    return out


# ---------------------------------------------------------------------------
# ConvGRU, part 1: x-side gate convs hoisted out of the serial time loop.
# ---------------------------------------------------------------------------

def _gru_xgate_kernel(x_ref, w_ref, o_ref):
    Bt, H, _ = x_ref.shape
    N = w_ref.shape[2]
    x = x_ref[...].astype(jnp.float32)
    acc = _conv3_taps(x, w_ref)                    # (Bt*H, 3*W*Chid) f32
    o_ref[...] = acc.reshape(Bt, H, N).astype(jnp.bfloat16)


def gru_x_gates(x, wx):
    """x: (NT, H, W*Cin) bf16; wx: (3, W*Cin, 3*W*Chid) bf16 (gate-major cols).
    Returns (NT, H, 3*W*Chid) bf16."""
    NT, H, WCin = x.shape
    N = wx.shape[-1]
    Bt = _pick_tile(NT, per_item_bytes=4 * H * (WCin + N))
    nt = NT // Bt
    return pl.pallas_call(
        _gru_xgate_kernel,
        out_shape=jax.ShapeDtypeStruct((NT, H, N), jnp.bfloat16),
        grid=(nt,),
        in_specs=[pl.BlockSpec((Bt, H, WCin), lambda n: (n, 0, 0)),
                  pl.BlockSpec(wx.shape, lambda n: (0, 0, 0))],
        out_specs=pl.BlockSpec((Bt, H, N), lambda n: (n, 0, 0)),
        compiler_params=_cparams(("parallel",)),
    )(x, wx)


# ---------------------------------------------------------------------------
# ConvGRU, part 2: serial recurrence.  grid=(b/Bt, T), hidden state in VMEM.
# ---------------------------------------------------------------------------

def _gru_kernel(gx_ref, h0_ref, wzr_ref, wc_ref, o_ref, sum_ref, sq_ref,
                h_state):
    t = pl.program_id(1)
    Bt, H, WC = h0_ref.shape

    @pl.when(t == 0)
    def _():
        h_state[...] = h0_ref[...]

    h = h_state[...]                                       # (Bt, H, WC) f32
    gx = gx_ref[:, 0].astype(jnp.float32)                  # (Bt, H, 3*WC)
    zx = gx[:, :, :WC]
    rx = gx[:, :, WC:2 * WC]
    cx = gx[:, :, 2 * WC:]

    g_zr = _conv3_taps(h, wzr_ref).reshape(Bt, H, 2 * WC)  # h-side z|r convs
    z = jax.nn.sigmoid(zx + g_zr[:, :, :WC])
    r = jax.nn.sigmoid(rx + g_zr[:, :, WC:])
    g_c = _conv3_taps(r * h, wc_ref).reshape(Bt, H, WC)    # candidate conv
    cand = jnp.tanh(cx + g_c)

    h_new = (1.0 - z) * h + z * cand
    h_state[...] = h_new
    o_ref[:, 0] = h_new.astype(jnp.bfloat16)
    # per-(tile, t) BN1 statistics so the wrapper never re-reads the activation
    sum_ref[...] = jnp.sum(h_new, axis=(0, 1), keepdims=True).reshape(1, 1, 1, WC)
    sq_ref[...] = jnp.sum(h_new * h_new, axis=(0, 1), keepdims=True).reshape(1, 1, 1, WC)


def conv_gru(gx_seq, h0, wzr, wc):
    """gx_seq: (b, T, H, 3*W*Chid) bf16; h0: (b, H, W*Chid) f32.
    Returns (h_seq bf16 (b,T,H,W*Chid), per-tile sum, per-tile sumsq)."""
    b, T, H, WC3 = gx_seq.shape
    WC = h0.shape[-1]
    Bt = _pick_tile(b, per_item_bytes=H * WC * 24, target=8)
    nb = b // Bt
    return pl.pallas_call(
        _gru_kernel,
        out_shape=(jax.ShapeDtypeStruct((b, T, H, WC), jnp.bfloat16),
                   jax.ShapeDtypeStruct((nb, T, 1, WC), jnp.float32),
                   jax.ShapeDtypeStruct((nb, T, 1, WC), jnp.float32)),
        grid=(nb, T),
        in_specs=[
            pl.BlockSpec((Bt, 1, H, WC3), lambda i, t: (i, t, 0, 0)),
            pl.BlockSpec((Bt, H, WC), lambda i, t: (i, 0, 0)),
            pl.BlockSpec(wzr.shape, lambda i, t: (0, 0, 0)),   # resident
            pl.BlockSpec(wc.shape, lambda i, t: (0, 0, 0)),    # resident
        ],
        out_specs=(pl.BlockSpec((Bt, 1, H, WC), lambda i, t: (i, t, 0, 0)),
                   pl.BlockSpec((1, 1, 1, WC), lambda i, t: (i, t, 0, 0)),
                   pl.BlockSpec((1, 1, 1, WC), lambda i, t: (i, t, 0, 0))),
        scratch_shapes=[pltpu.VMEM((Bt, H, WC), jnp.float32)],  # hidden state
        compiler_params=_cparams(("parallel", "arbitrary")),
    )(gx_seq, h0, wzr, wc)


# ---------------------------------------------------------------------------
# Residual block kernels: fused CBN(scale/shift) + ReLU + conv3x3 (+ extras).
# ---------------------------------------------------------------------------

def _conv_first_kernel(x_ref, sc_ref, sh_ref, w_ref, wds_ref,
                       o_ref, ds_ref, sum_ref, sq_ref):
    Bt, H, Kin = x_ref.shape
    N = w_ref.shape[2]
    x32 = x_ref[...].astype(jnp.float32)
    y = jnp.maximum(x32 * sc_ref[...] + sh_ref[...], 0.0)
    acc = _conv3_taps(y, w_ref)                            # (Bt*H, N) f32
    o_ref[...] = acc.reshape(Bt, H, N).astype(jnp.bfloat16)
    # 1x1 downsample of the *raw* input (identity path), fused here since x is
    # already resident in VMEM.
    ds = jnp.dot(x_ref[...].reshape(Bt * H, Kin), wds_ref[...],
                 preferred_element_type=jnp.float32)
    ds_ref[...] = ds.reshape(Bt, H, N).astype(jnp.bfloat16)
    # per-tile stats of the conv output for the next conditional BN
    sum_ref[...] = jnp.sum(acc, axis=0, keepdims=True).reshape(1, 1, N)
    sq_ref[...] = jnp.sum(acc * acc, axis=0, keepdims=True).reshape(1, 1, N)


def _conv_mid_kernel(x_ref, sc_ref, sh_ref, w_ref, o_ref, sum_ref, sq_ref):
    Bt, H, _ = x_ref.shape
    N = w_ref.shape[2]
    x32 = x_ref[...].astype(jnp.float32)
    y = jnp.maximum(x32 * sc_ref[...] + sh_ref[...], 0.0)
    acc = _conv3_taps(y, w_ref)
    o_ref[...] = acc.reshape(Bt, H, N).astype(jnp.bfloat16)
    sum_ref[...] = jnp.sum(acc, axis=0, keepdims=True).reshape(1, 1, N)
    sq_ref[...] = jnp.sum(acc * acc, axis=0, keepdims=True).reshape(1, 1, N)


def _conv_last_kernel(x_ref, sc_ref, sh_ref, w_ref, ds_ref, o_ref):
    Bt, H, _ = x_ref.shape
    N = w_ref.shape[2]
    x32 = x_ref[...].astype(jnp.float32)
    y = jnp.maximum(x32 * sc_ref[...] + sh_ref[...], 0.0)
    acc = _conv3_taps(y, w_ref)
    out = jnp.maximum(acc + ds_ref[...].astype(jnp.float32).reshape(Bt * H, N),
                      0.0)
    o_ref[...] = out.reshape(Bt, H, N).astype(jnp.bfloat16)


def conv_first(x, scale, shift, w3, wds):
    NT, H, WCin = x.shape
    N = w3.shape[-1]
    Bt = _pick_tile(NT, per_item_bytes=4 * H * (WCin + 2 * N))
    nt = NT // Bt
    return pl.pallas_call(
        _conv_first_kernel,
        out_shape=(jax.ShapeDtypeStruct((NT, H, N), jnp.bfloat16),
                   jax.ShapeDtypeStruct((NT, H, N), jnp.bfloat16),
                   jax.ShapeDtypeStruct((nt, 1, N), jnp.float32),
                   jax.ShapeDtypeStruct((nt, 1, N), jnp.float32)),
        grid=(nt,),
        in_specs=[pl.BlockSpec((Bt, H, WCin), lambda n: (n, 0, 0)),
                  pl.BlockSpec((Bt, 1, WCin), lambda n: (n, 0, 0)),
                  pl.BlockSpec((Bt, 1, WCin), lambda n: (n, 0, 0)),
                  pl.BlockSpec(w3.shape, lambda n: (0, 0, 0)),
                  pl.BlockSpec(wds.shape, lambda n: (0, 0))],
        out_specs=(pl.BlockSpec((Bt, H, N), lambda n: (n, 0, 0)),
                   pl.BlockSpec((Bt, H, N), lambda n: (n, 0, 0)),
                   pl.BlockSpec((1, 1, N), lambda n: (n, 0, 0)),
                   pl.BlockSpec((1, 1, N), lambda n: (n, 0, 0))),
        compiler_params=_cparams(("parallel",)),
    )(x, scale, shift, w3, wds)


def conv_mid(x, scale, shift, w3):
    NT, H, WCin = x.shape
    N = w3.shape[-1]
    Bt = _pick_tile(NT, per_item_bytes=4 * H * (WCin + N))
    nt = NT // Bt
    return pl.pallas_call(
        _conv_mid_kernel,
        out_shape=(jax.ShapeDtypeStruct((NT, H, N), jnp.bfloat16),
                   jax.ShapeDtypeStruct((nt, 1, N), jnp.float32),
                   jax.ShapeDtypeStruct((nt, 1, N), jnp.float32)),
        grid=(nt,),
        in_specs=[pl.BlockSpec((Bt, H, WCin), lambda n: (n, 0, 0)),
                  pl.BlockSpec((Bt, 1, WCin), lambda n: (n, 0, 0)),
                  pl.BlockSpec((Bt, 1, WCin), lambda n: (n, 0, 0)),
                  pl.BlockSpec(w3.shape, lambda n: (0, 0, 0))],
        out_specs=(pl.BlockSpec((Bt, H, N), lambda n: (n, 0, 0)),
                   pl.BlockSpec((1, 1, N), lambda n: (n, 0, 0)),
                   pl.BlockSpec((1, 1, N), lambda n: (n, 0, 0))),
        compiler_params=_cparams(("parallel",)),
    )(x, scale, shift, w3)


def conv_last(x, scale, shift, w3, ds):
    NT, H, WCin = x.shape
    N = w3.shape[-1]
    Bt = _pick_tile(NT, per_item_bytes=4 * H * (WCin + 2 * N))
    nt = NT // Bt
    return pl.pallas_call(
        _conv_last_kernel,
        out_shape=jax.ShapeDtypeStruct((NT, H, N), jnp.bfloat16),
        grid=(nt,),
        in_specs=[pl.BlockSpec((Bt, H, WCin), lambda n: (n, 0, 0)),
                  pl.BlockSpec((Bt, 1, WCin), lambda n: (n, 0, 0)),
                  pl.BlockSpec((Bt, 1, WCin), lambda n: (n, 0, 0)),
                  pl.BlockSpec(w3.shape, lambda n: (0, 0, 0)),
                  pl.BlockSpec((Bt, H, N), lambda n: (n, 0, 0))],
        out_specs=pl.BlockSpec((Bt, H, N), lambda n: (n, 0, 0)),
        compiler_params=_cparams(("parallel",)),
    )(x, scale, shift, w3, ds)


# ---------------------------------------------------------------------------
# Wrapper glue (pure JAX, mirrors the PyTorch forward structure)
# ---------------------------------------------------------------------------

def _finalize_stats(s_tiles, q_tiles, count, W, C):
    """Per-tile lane-dense sums -> per-channel mean/var (biased, batch stats)."""
    s = jnp.sum(s_tiles.reshape(-1, W, C), axis=(0, 1))
    q = jnp.sum(q_tiles.reshape(-1, W, C), axis=(0, 1))
    mean = s / count
    var = jnp.maximum(q / count - mean * mean, 0.0)
    return mean, var


def _cbn_scale_shift(cond, pg, mean, var, n_frame, W, eps=1e-5):
    """Conditional BN folded into a per-sample scale/shift, tiled to lane-dense
    (b*T, 1, W*C) so it broadcasts directly inside the conv kernels."""
    gamma = 1.0 + cond @ pg['wg'] + pg['bg']              # (b, C)
    beta = cond @ pg['wb'] + pg['bb']
    inv = lax.rsqrt(var + eps)
    scale = gamma * inv                                    # (b, C)
    shift = beta - mean * scale
    scale = jnp.repeat(scale, n_frame, axis=0)             # (b*T, C)
    shift = jnp.repeat(shift, n_frame, axis=0)
    scale = jnp.tile(scale, (1, W))[:, None, :]            # (b*T, 1, W*C)
    shift = jnp.tile(shift, (1, W))[:, None, :]
    return scale, shift


def generator_forward(params, dynamics, noise, n_future):
    """dynamics: (b, dyn_dim, H, W) NCHW f32; noise: (b, noise_dim) or None.
    Returns (b, n_future, C_out, H, W) like the PyTorch Generator."""
    b, c_dyn, H, W = dynamics.shape
    T = n_future
    if noise is None:
        nd0 = params['layers'][0]['gru_wx'].shape[1] // W
        noise = jnp.zeros((b, nd0), jnp.float32)
    cond = noise
    nd = noise.shape[-1]

    # F.interpolate of a 1x1 map (bilinear, align_corners=False) == broadcast,
    # then repeat over the frame axis; handed off lane-dense in bf16.
    cur = jnp.broadcast_to(noise[:, None, None, None, :], (b, T, H, W, nd))
    cur = cur.reshape(b * T, H, W * nd).astype(jnp.bfloat16)
    h0_ld = jnp.transpose(dynamics, (0, 2, 3, 1)).reshape(b, H, W * c_dyn)
    h0_ld = h0_ld.astype(jnp.float32)
    count = float(b * T * H * W)

    for li, lp in enumerate(params['layers']):
        hid = lp['gru_wc'].shape[1] // W          # static, from weight shapes
        out_dim = lp['w1'].shape[2] // W
        h0 = h0_ld if li == 0 else jnp.zeros((b, H, W * hid), jnp.float32)

        # (1) x-side GRU gate convs, hoisted out of the serial time loop.
        gx = gru_x_gates(cur, lp['gru_wx'])                # (bT,H,3*W*hid)
        # (2) serial ConvGRU recurrence (only h-dependent matmuls per step).
        hs, hsum, hsq = conv_gru(gx.reshape(b, T, H, 3 * W * hid), h0,
                                 lp['gru_wzr'], lp['gru_wc'])
        x2 = hs.reshape(b * T, H, W * hid)

        # (3) residual conditional-BN conv block; BN stats come straight from
        #     the producing kernels (no HBM re-read of the activations).
        m1, v1 = _finalize_stats(hsum, hsq, count, W, hid)
        s1, t1 = _cbn_scale_shift(cond, lp['bn1'], m1, v1, T, W)
        out1, ds, sm1, sq1 = conv_first(x2, s1, t1, lp['w1'], lp['wds'])

        m2, v2 = _finalize_stats(sm1, sq1, count, W, out_dim)
        s2, t2 = _cbn_scale_shift(cond, lp['bn2'], m2, v2, T, W)
        out2, sm2, sq2 = conv_mid(out1, s2, t2, lp['w2'])

        m3, v3 = _finalize_stats(sm2, sq2, count, W, out_dim)
        s3, t3 = _cbn_scale_shift(cond, lp['bn3'], m3, v3, T, W)
        cur = conv_last(out2, s3, t3, lp['w3'], ds)        # (bT,H,W*out) bf16

    c_out = params['layers'][-1]['w1'].shape[2] // W
    out = cur.astype(jnp.float32).reshape(b, T, H, W, c_out)
    return jnp.transpose(out, (0, 1, 4, 2, 3))             # (b, T, C, H, W)


# ---------------------------------------------------------------------------
# Deterministic parameter construction (block-tridiagonal tap matrices)
# ---------------------------------------------------------------------------

def spectral_normalize(w, key, n_iter=5):
    """Divide a conv weight (..., Cout) by its spectral norm (power iteration),
    mirroring torch.nn.utils.spectral_norm at init time."""
    mat = w.reshape(-1, w.shape[-1]).T
    u = jax.random.normal(key, (mat.shape[0],), jnp.float32)
    u = u / (jnp.linalg.norm(u) + 1e-12)
    v = mat.T @ u
    for _ in range(n_iter):
        v = mat.T @ u
        v = v / (jnp.linalg.norm(v) + 1e-12)
        u = mat @ v
        u = u / (jnp.linalg.norm(u) + 1e-12)
    sigma = u @ (mat @ v)
    return w / sigma


def _tap_mats_f32(w33, W):
    """(3,3,Cin,Cout) conv weight -> (3, W*Cin, W*Cout) f32 block-tridiagonal
    tap matrices: M_kh[jin*Cin:., j*Cout:.] = w[kh,kw] where jin = j + kw - 1
    (missing blocks == zero padding in W)."""
    cin, cout = w33.shape[2], w33.shape[3]
    mats = []
    for kh in range(3):
        m = jnp.zeros((W * cin, W * cout), jnp.float32)
        for kw in range(3):
            m = m + jnp.kron(jnp.eye(W, k=1 - kw, dtype=jnp.float32),
                             w33[kh, kw])
        mats.append(m)
    return jnp.stack(mats)


def init_params(key, noise_dim, dynamics_dim, layer_dim_base, layer_dims, H, W):
    assert dynamics_dim == layer_dims[-1] * layer_dim_base
    hid = dynamics_dim          # reference keeps hidden_dim = dynamics_dim per layer
    last = noise_dim
    layers = []
    lkeys = jax.random.split(key, len(layer_dims))

    def nrm(k, shape, scale=0.1):
        return scale * jax.random.normal(k, shape, jnp.float32)

    for dim, lk in zip(layer_dims, lkeys):
        out_dim = dim * layer_dim_base
        ks = jax.random.split(lk, 20)
        # --- ConvGRU weights (bias-free; see TODO about assumed formulation) ---
        wzx, wrx, wcx = (nrm(ks[i], (3, 3, last, hid)) for i in range(3))
        wzh, wrh, wch = (nrm(ks[i + 3], (3, 3, hid, hid)) for i in range(3))
        gru_wx = jnp.concatenate([_tap_mats_f32(w, W) for w in (wzx, wrx, wcx)],
                                 axis=-1).astype(jnp.bfloat16)
        gru_wzr = jnp.concatenate([_tap_mats_f32(w, W) for w in (wzh, wrh)],
                                  axis=-1).astype(jnp.bfloat16)
        gru_wc = _tap_mats_f32(wch, W).astype(jnp.bfloat16)

        # --- Residual block convs (spectral-normalized) + conditional BN ---
        w1 = spectral_normalize(nrm(ks[6], (3, 3, hid, out_dim)), ks[7])
        w2 = spectral_normalize(nrm(ks[8], (3, 3, out_dim, out_dim)), ks[9])
        w3 = spectral_normalize(nrm(ks[10], (3, 3, out_dim, out_dim)), ks[11])
        wds = spectral_normalize(nrm(ks[12], (hid, out_dim)), ks[13])

        def cbn(k1, k2, c):
            return {'wg': nrm(k1, (noise_dim, c)),
                    'bg': jnp.zeros((c,), jnp.float32),
                    'wb': nrm(k2, (noise_dim, c)),
                    'bb': jnp.zeros((c,), jnp.float32)}

        layers.append({
            'gru_wx': gru_wx, 'gru_wzr': gru_wzr, 'gru_wc': gru_wc,
            'bn1': cbn(ks[14], ks[15], hid),
            'bn2': cbn(ks[16], ks[17], out_dim),
            'bn3': cbn(ks[18], ks[19], out_dim),
            'w1': _tap_mats_f32(w1, W).astype(jnp.bfloat16),
            'w2': _tap_mats_f32(w2, W).astype(jnp.bfloat16),
            'w3': _tap_mats_f32(w3, W).astype(jnp.bfloat16),
            'wds': jnp.kron(jnp.eye(W, dtype=jnp.float32),
                            wds).astype(jnp.bfloat16),
        })
        last = out_dim
    return {'layers': layers}


# ---------------------------------------------------------------------------

if __name__ == "__main__":
    key = jax.random.PRNGKey(0)
    b, H, W = 2, 8, 8
    noise_dim = 8
    layer_dim_base = 8
    layer_dims = [4, 2]
    dynamics_dim = layer_dims[-1] * layer_dim_base     # 16
    n_future = 2

    pkey, dkey, nkey = jax.random.split(key, 3)
    params = init_params(pkey, noise_dim, dynamics_dim,
                         layer_dim_base, layer_dims, H, W)
    dynamics = jax.random.normal(dkey, (b, dynamics_dim, H, W), jnp.float32)
    noise = jax.random.normal(nkey, (b, noise_dim), jnp.float32)

    fwd = jax.jit(functools.partial(generator_forward, n_future=n_future))
    out = jax.block_until_ready(fwd(params, dynamics, noise))
    assert out.shape == (b, n_future, dynamics_dim, H, W), out.shape
    assert bool(jnp.all(jnp.isfinite(out)))
    print("KERNEL_OK")
</pallas_src>

<mosaic_0001>
module attributes {stable_mosaic.version = 11 : i64} {
  func.func @_gru_xgate_kernel(%arg0: i32, %arg1: memref<2x8x64xbf16, #tpu.memory_space<vmem>>, %arg2: memref<3x64x384xbf16, #tpu.memory_space<vmem>>, %arg3: memref<2x8x384xbf16, #tpu.memory_space<vmem>>) attributes {dimension_semantics = [#tpu.dimension_semantics<parallel>], iteration_bounds = array<i64: 2>, scalar_prefetch = 0 : i64, scratch_operands = 0 : i64, tpu.core_type = #tpu.core_type<tc>, window_params = [{transform_indices = @transform_0, window_bounds = array<i64: 2, 8, 64>}, {pipeline_mode = #tpu.pipeline_mode<synchronous>, transform_indices = @transform_1, window_bounds = array<i64: 3, 64, 384>}, {transform_indices = @transform_2, window_bounds = array<i64: 2, 8, 384>}]} {
    %c0 = arith.constant 0 : index
    %c0_0 = arith.constant 0 : index
    %c0_1 = arith.constant 0 : index
    %0 = vector.load %arg1[%c0, %c0_0, %c0_1] : memref<2x8x64xbf16, #tpu.memory_space<vmem>>, vector<2x8x64xbf16>
    %1 = arith.extf %0 : vector<2x8x64xbf16> to vector<2x8x64xf32>
    %cst = arith.constant 0.000000e+00 : f32
    %2 = vector.broadcast %cst : f32 to vector<2x1x64xf32>
    %3 = vector.extract_strided_slice %1 {offsets = [0, 0, 0], sizes = [2, 7, 64], strides = [1, 1, 1]} : vector<2x8x64xf32> to vector<2x7x64xf32>
    %4 = tpu.concatenate %2, %3 in 1 : vector<2x1x64xf32>, vector<2x7x64xf32> -> vector<2x8x64xf32>
    %5 = vector.extract_strided_slice %1 {offsets = [0, 1, 0], sizes = [2, 7, 64], strides = [1, 1, 1]} : vector<2x8x64xf32> to vector<2x7x64xf32>
    %6 = tpu.concatenate %5, %2 in 1 : vector<2x7x64xf32>, vector<2x1x64xf32> -> vector<2x8x64xf32>
    %7 = vector.shape_cast %4 : vector<2x8x64xf32> to vector<16x64xf32>
    %8 = arith.truncf %7 : vector<16x64xf32> to vector<16x64xbf16>
    %c0_2 = arith.constant 0 : index
    %c0_3 = arith.constant 0 : index
    %c0_4 = arith.constant 0 : index
    %9 = vector.load %arg2[%c0_2, %c0_3, %c0_4] : memref<3x64x384xbf16, #tpu.memory_space<vmem>>, vector<1x64x384xbf16>
    %10 = vector.shape_cast %9 : vector<1x64x384xbf16> to vector<64x384xbf16>
    %cst_5 = arith.constant dense<0.000000e+00> : vector<16x384xf32>
    %11 = tpu.matmul %8, %10, %cst_5 {dimension_numbers = #tpu.dot_dimension_numbers<[1], [0], [0], [1], [0, 0, 1, 1], [], []>} : vector<16x64xbf16>, vector<64x384xbf16>, vector<16x384xf32> -> vector<16x384xf32>
    %12 = vector.shape_cast %1 : vector<2x8x64xf32> to vector<16x64xf32>
    %13 = arith.truncf %12 : vector<16x64xf32> to vector<16x64xbf16>
    %c1 = arith.constant 1 : index
    %c0_6 = arith.constant 0 : index
    %c0_7 = arith.constant 0 : index
    %14 = vector.load %arg2[%c1, %c0_6, %c0_7] : memref<3x64x384xbf16, #tpu.memory_space<vmem>>, vector<1x64x384xbf16>
    %15 = vector.shape_cast %14 : vector<1x64x384xbf16> to vector<64x384xbf16>
    %cst_8 = arith.constant dense<0.000000e+00> : vector<16x384xf32>
    %16 = tpu.matmul %13, %15, %cst_8 {dimension_numbers = #tpu.dot_dimension_numbers<[1], [0], [0], [1], [0, 0, 1, 1], [], []>} : vector<16x64xbf16>, vector<64x384xbf16>, vector<16x384xf32> -> vector<16x384xf32>
    %17 = arith.addf %11, %16 : vector<16x384xf32>
    %18 = vector.shape_cast %6 : vector<2x8x64xf32> to vector<16x64xf32>
    %19 = arith.truncf %18 : vector<16x64xf32> to vector<16x64xbf16>
    %c2 = arith.constant 2 : index
    %c0_9 = arith.constant 0 : index
    %c0_10 = arith.constant 0 : index
    %20 = vector.load %arg2[%c2, %c0_9, %c0_10] : memref<3x64x384xbf16, #tpu.memory_space<vmem>>, vector<1x64x384xbf16>
    %21 = vector.shape_cast %20 : vector<1x64x384xbf16> to vector<64x384xbf16>
    %cst_11 = arith.constant dense<0.000000e+00> : vector<16x384xf32>
    %22 = tpu.matmul %19, %21, %cst_11 {dimension_numbers = #tpu.dot_dimension_numbers<[1], [0], [0], [1], [0, 0, 1, 1], [], []>} : vector<16x64xbf16>, vector<64x384xbf16>, vector<16x384xf32> -> vector<16x384xf32>
    %23 = arith.addf %17, %22 : vector<16x384xf32>
    %24 = vector.shape_cast %23 : vector<16x384xf32> to vector<2x8x384xf32>
    %25 = arith.truncf %24 : vector<2x8x384xf32> to vector<2x8x384xbf16>
    %c0_12 = arith.constant 0 : index
    %c0_13 = arith.constant 0 : index
    %c0_14 = arith.constant 0 : index
    %26 = vector.load %arg3[%c0_12, %c0_13, %c0_14] : memref<2x8x384xbf16, #tpu.memory_space<vmem>>, vector<2x8x384xbf16>
    tpu.vector_store %arg3[%c0_12, %c0_13, %c0_14], %25 {strides = array<i32>} : memref<2x8x384xbf16, #tpu.memory_space<vmem>>, vector<2x8x384xbf16>,
    return
  }
  func.func @transform_0(%arg0: i32) -> (i32, i32, i32) {
    %c0_i32 = arith.constant 0 : i32
    %c0_i32_0 = arith.constant 0 : i32
    %c0_i32_1 = arith.constant 0 : i32
    return %arg0, %c0_i32, %c0_i32_0 : i32, i32, i32
  }
  func.func @transform_1(%arg0: i32) -> (i32, i32, i32) {
    %c0_i32 = arith.constant 0 : i32
    %c0_i32_0 = arith.constant 0 : i32
    %c0_i32_1 = arith.constant 0 : i32
    %c0_i32_2 = arith.constant 0 : i32
    return %c0_i32, %c0_i32_0, %c0_i32_1 : i32, i32, i32
  }
  func.func @transform_2(%arg0: i32) -> (i32, i32, i32) {
    %c0_i32 = arith.constant 0 : i32
    %c0_i32_0 = arith.constant 0 : i32
    %c0_i32_1 = arith.constant 0 : i32
    return %arg0, %c0_i32, %c0_i32_0 : i32, i32, i32
  }
}

module attributes {stable_mosaic.version = 11 : i64} {
  func.func @_gru_kernel(%arg0: i32, %arg1: i32, %arg2: memref<1x1x8x384xbf16, #tpu.memory_space<vmem>>, %arg3: memref<1x8x128xf32, #tpu.memory_space<vmem>>, %arg4: memref<3x128x256xbf16, #tpu.memory_space<vmem>>, %arg5: memref<3x128x128xbf16, #tpu.memory_space<vmem>>, %arg6: memref<1x1x8x128xbf16, #tpu.memory_space<vmem>>, %arg7: memref<1x1x1x128xf32, #tpu.memory_space<vmem>>, %arg8: memref<1x1x1x128xf32, #tpu.memory_space<vmem>>, %arg9: memref<1x8x128xf32, #tpu.memory_space<vmem>>) attributes {dimension_semantics = [#tpu.dimension_semantics<parallel>, #tpu.dimension_semantics<arbitrary>], iteration_bounds = array<i64: 2, 2>, scalar_prefetch = 0 : i64, scratch_operands = 1 : i64, tpu.core_type = #tpu.core_type<tc>, window_params = [{transform_indices = @transform_0, window_bounds = array<i64: 1, 1, 8, 384>}, {transform_indices = @transform_1, window_bounds = array<i64: 1, 8, 128>}, {pipeline_mode = #tpu.pipeline_mode<synchronous>, transform_indices = @transform_2, window_bounds = array<i64: 3, 128, 256>}, {pipeline_mode = #tpu.pipeline_mode<synchronous>, transform_indices = @transform_3, window_bounds = array<i64: 3, 128, 128>}, {transform_indices = @transform_4, window_bounds = array<i64: 1, 1, 8, 128>}, {transform_indices = @transform_5, window_bounds = array<i64: 1, 1, 1, 128>}, {transform_indices = @transform_6, window_bounds = array<i64: 1, 1, 1, 128>}]} {
    %c0_i32 = arith.constant 0 : i32
    %0 = arith.cmpi eq, %arg1, %c0_i32 : i32
    %1 = arith.extui %0 : i1 to i32
    %c0_i32_0 = arith.constant 0 : i32
    %2 = arith.cmpi ne, %1, %c0_i32_0 : i32
    scf.if %2 {
      %c0_50 = arith.constant 0 : index
      %c0_51 = arith.constant 0 : index
      %c0_52 = arith.constant 0 : index
      %92 = vector.load %arg3[%c0_50, %c0_51, %c0_52] : memref<1x8x128xf32, #tpu.memory_space<vmem>>, vector<1x8x128xf32>
      %c0_53 = arith.constant 0 : index
      %c0_54 = arith.constant 0 : index
      %c0_55 = arith.constant 0 : index
      %93 = vector.load %arg9[%c0_53, %c0_54, %c0_55] : memref<1x8x128xf32, #tpu.memory_space<vmem>>, vector<1x8x128xf32>
      tpu.vector_store %arg9[%c0_53, %c0_54, %c0_55], %92 {strides = array<i32>} : memref<1x8x128xf32, #tpu.memory_space<vmem>>, vector<1x8x128xf32>,
    } else {
    }
    %c0 = arith.constant 0 : index
    %c0_1 = arith.constant 0 : index
    %c0_2 = arith.constant 0 : index
    %3 = vector.load %arg9[%c0, %c0_1, %c0_2] : memref<1x8x128xf32, #tpu.memory_space<vmem>>, vector<1x8x128xf32>
    %c0_3 = arith.constant 0 : index
    %c0_4 = arith.constant 0 : index
    %c0_5 = arith.constant 0 : index
    %c0_6 = arith.constant 0 : index
    %4 = vector.load %arg2[%c0_3, %c0_4, %c0_5, %c0_6] : memref<1x1x8x384xbf16, #tpu.memory_space<vmem>>, vector<1x1x8x384xbf16>
    %5 = vector.shape_cast %4 : vector<1x1x8x384xbf16> to vector<1x8x384xbf16>
    %6 = arith.extf %5 : vector<1x8x384xbf16> to vector<1x8x384xf32>
    %7 = vector.extract_strided_slice %6 {offsets = [0, 0, 0], sizes = [1, 8, 128], strides = [1, 1, 1]} : vector<1x8x384xf32> to vector<1x8x128xf32>
    %8 = vector.extract_strided_slice %6 {offsets = [0, 0, 128], sizes = [1, 8, 128], strides = [1, 1, 1]} : vector<1x8x384xf32> to vector<1x8x128xf32>
    %9 = vector.extract_strided_slice %6 {offsets = [0, 0, 256], sizes = [1, 8, 128], strides = [1, 1, 1]} : vector<1x8x384xf32> to vector<1x8x128xf32>
    %cst = arith.constant 0.000000e+00 : f32
    %10 = vector.broadcast %cst : f32 to vector<1x1x128xf32>
    %11 = vector.extract_strided_slice %3 {offsets = [0, 0, 0], sizes = [1, 7, 128], strides = [1, 1, 1]} : vector<1x8x128xf32> to vector<1x7x128xf32>
    %12 = tpu.concatenate %10, %11 in 1 : vector<1x1x128xf32>, vector<1x7x128xf32> -> vector<1x8x128xf32>
    %13 = vector.extract_strided_slice %3 {offsets = [0, 1, 0], sizes = [1, 7, 128], strides = [1, 1, 1]} : vector<1x8x128xf32> to vector<1x7x128xf32>
    %14 = tpu.concatenate %13, %10 in 1 : vector<1x7x128xf32>, vector<1x1x128xf32> -> vector<1x8x128xf32>
    %15 = vector.shape_cast %12 : vector<1x8x128xf32> to vector<8x128xf32>
    %16 = arith.truncf %15 : vector<8x128xf32> to vector<8x128xbf16>
    %c0_7 = arith.constant 0 : index
    %c0_8 = arith.constant 0 : index
    %c0_9 = arith.constant 0 : index
    %17 = vector.load %arg4[%c0_7, %c0_8, %c0_9] : memref<3x128x256xbf16, #tpu.memory_space<vmem>>, vector<1x128x256xbf16>
    %18 = vector.shape_cast %17 : vector<1x128x256xbf16> to vector<128x256xbf16>
    %cst_10 = arith.constant dense<0.000000e+00> : vector<8x256xf32>
    %19 = tpu.matmul %16, %18, %cst_10 {dimension_numbers = #tpu.dot_dimension_numbers<[1], [0], [0], [1], [0, 0, 1, 1], [], []>} : vector<8x128xbf16>, vector<128x256xbf16>, vector<8x256xf32> -> vector<8x256xf32>
    %20 = vector.shape_cast %3 : vector<1x8x128xf32> to vector<8x128xf32>
    %21 = arith.truncf %20 : vector<8x128xf32> to vector<8x128xbf16>
    %c1 = arith.constant 1 : index
    %c0_11 = arith.constant 0 : index
    %c0_12 = arith.constant 0 : index
    %22 = vector.load %arg4[%c1, %c0_11, %c0_12] : memref<3x128x256xbf16, #tpu.memory_space<vmem>>, vector<1x128x256xbf16>
    %23 = vector.shape_cast %22 : vector<1x128x256xbf16> to vector<128x256xbf16>
    %cst_13 = arith.constant dense<0.000000e+00> : vector<8x256xf32>
    %24 = tpu.matmul %21, %23, %cst_13 {dimension_numbers = #tpu.dot_dimension_numbers<[1], [0], [0], [1], [0, 0, 1, 1], [], []>} : vector<8x128xbf16>, vector<128x256xbf16>, vector<8x256xf32> -> vector<8x256xf32>
    %25 = arith.addf %19, %24 : vector<8x256xf32>
    %26 = vector.shape_cast %14 : vector<1x8x128xf32> to vector<8x128xf32>
    %27 = arith.truncf %26 : vector<8x128xf32> to vector<8x128xbf16>
    %c2 = arith.constant 2 : index
    %c0_14 = arith.constant 0 : index
    %c0_15 = arith.constant 0 : index
    %28 = vector.load %arg4[%c2, %c0_14, %c0_15] : memref<3x128x256xbf16, #tpu.memory_space<vmem>>, vector<1x128x256xbf16>
    %29 = vector.shape_cast %28 : vector<1x128x256xbf16> to vector<128x256xbf16>
    %cst_16 = arith.constant dense<0.000000e+00> : vector<8x256xf32>
    %30 = tpu.matmul %27, %29, %cst_16 {dimension_numbers = #tpu.dot_dimension_numbers<[1], [0], [0], [1], [0, 0, 1, 1], [], []>} : vector<8x128xbf16>, vector<128x256xbf16>, vector<8x256xf32> -> vector<8x256xf32>
    %31 = arith.addf %25, %30 : vector<8x256xf32>
    %32 = vector.shape_cast %31 : vector<8x256xf32> to vector<1x8x256xf32>
    %33 = vector.extract_strided_slice %32 {offsets = [0, 0, 0], sizes = [1, 8, 128], strides = [1, 1, 1]} : vector<1x8x256xf32> to vector<1x8x128xf32>
    %34 = arith.addf %7, %33 : vector<1x8x128xf32>
    %35 = arith.negf %34 : vector<1x8x128xf32>
    %36 = math.exp %35 : vector<1x8x128xf32>
    %cst_17 = arith.constant 1.000000e+00 : f32
    %37 = vector.broadcast %cst_17 : f32 to vector<1x8x128xf32>
    %38 = arith.addf %37, %36 : vector<1x8x128xf32>
    %39 = arith.divf %37, %38 : vector<1x8x128xf32>
    %40 = vector.extract_strided_slice %32 {offsets = [0, 0, 128], sizes = [1, 8, 128], strides = [1, 1, 1]} : vector<1x8x256xf32> to vector<1x8x128xf32>
    %41 = arith.addf %8, %40 : vector<1x8x128xf32>
    %42 = arith.negf %41 : vector<1x8x128xf32>
    %43 = math.exp %42 : vector<1x8x128xf32>
    %cst_18 = arith.constant 1.000000e+00 : f32
    %44 = vector.broadcast %cst_18 : f32 to vector<1x8x128xf32>
    %45 = arith.addf %44, %43 : vector<1x8x128xf32>
    %46 = arith.divf %44, %45 : vector<1x8x128xf32>
    %47 = arith.mulf %46, %3 : vector<1x8x128xf32>
    %cst_19 = arith.constant 0.000000e+00 : f32
    %48 = vector.broadcast %cst_19 : f32 to vector<1x1x128xf32>
    %49 = vector.extract_strided_slice %47 {offsets = [0, 0, 0], sizes = [1, 7, 128], strides = [1, 1, 1]} : vector<1x8x128xf32> to vector<1x7x128xf32>
    %50 = tpu.concatenate %48, %49 in 1 : vector<1x1x128xf32>, vector<1x7x128xf32> -> vector<1x8x128xf32>
    %51 = vector.extract_strided_slice %47 {offsets = [0, 1, 0], sizes = [1, 7, 128], strides = [1, 1, 1]} : vector<1x8x128xf32> to vector<1x7x128xf32>
    %52 = tpu.concatenate %51, %48 in 1 : vector<1x7x128xf32>, vector<1x1x128xf32> -> vector<1x8x128xf32>
    %53 = vector.shape_cast %50 : vector<1x8x128xf32> to vector<8x128xf32>
    %54 = arith.truncf %53 : vector<8x128xf32> to vector<8x128xbf16>
    %c0_20 = arith.constant 0 : index
    %c0_21 = arith.constant 0 : index
    %c0_22 = arith.constant 0 : index
    %55 = vector.load %arg5[%c0_20, %c0_21, %c0_22] : memref<3x128x128xbf16, #tpu.memory_space<vmem>>, vector<1x128x128xbf16>
    %56 = vector.shape_cast %55 : vector<1x128x128xbf16> to vector<128x128xbf16>
    %cst_23 = arith.constant dense<0.000000e+00> : vector<8x128xf32>
    %57 = tpu.matmul %54, %56, %cst_23 {dimension_numbers = #tpu.dot_dimension_numbers<[1], [0], [0], [1], [0, 0, 1, 1], [], []>} : vector<8x128xbf16>, vector<128x128xbf16>, vector<8x128xf32> -> vector<8x128xf32>
    %58 = vector.shape_cast %47 : vector<1x8x128xf32> to vector<8x128xf32>
    %59 = arith.truncf %58 : vector<8x128xf32> to vector<8x128xbf16>
    %c1_24 = arith.constant 1 : index
    %c0_25 = arith.constant 0 : index
    %c0_26 = arith.constant 0 : index
    %60 = vector.load %arg5[%c1_24, %c0_25, %c0_26] : memref<3x128x128xbf16, #tpu.memory_space<vmem>>, vector<1x128x128xbf16>
    %61 = vector.shape_cast %60 : vector<1x128x128xbf16> to vector<128x128xbf16>
    %cst_27 = arith.constant dense<0.000000e+00> : vector<8x128xf32>
    %62 = tpu.matmul %59, %61, %cst_27 {dimension_numbers = #tpu.dot_dimension_numbers<[1], [0], [0], [1], [0, 0, 1, 1], [], []>} : vector<8x128xbf16>, vector<128x128xbf16>, vector<8x128xf32> -> vector<8x128xf32>
    %63 = arith.addf %57, %62 : vector<8x128xf32>
    %64 = vector.shape_cast %52 : vector<1x8x128xf32> to vector<8x128xf32>
    %65 = arith.truncf %64 : vector<8x128xf32> to vector<8x128xbf16>
    %c2_28 = arith.constant 2 : index
    %c0_29 = arith.constant 0 : index
    %c0_30 = arith.constant 0 : index
    %66 = vector.load %arg5[%c2_28, %c0_29, %c0_30] : memref<3x128x128xbf16, #tpu.memory_space<vmem>>, vector<1x128x128xbf16>
    %67 = vector.shape_cast %66 : vector<1x128x128xbf16> to vector<128x128xbf16>
    %cst_31 = arith.constant dense<0.000000e+00> : vector<8x128xf32>
    %68 = tpu.matmul %65, %67, %cst_31 {dimension_numbers = #tpu.dot_dimension_numbers<[1], [0], [0], [1], [0, 0, 1, 1], [], []>} : vector<8x128xbf16>, vector<128x128xbf16>, vector<8x128xf32> -> vector<8x128xf32>
    %69 = arith.addf %63, %68 : vector<8x128xf32>
    %70 = vector.shape_cast %69 : vector<8x128xf32> to vector<1x8x128xf32>
    %71 = arith.addf %9, %70 : vector<1x8x128xf32>
    %72 = math.tanh %71 : vector<1x8x128xf32>
    %cst_32 = arith.constant 1.000000e+00 : f32
    %73 = vector.broadcast %cst_32 : f32 to vector<1x8x128xf32>
    %74 = arith.subf %73, %39 : vector<1x8x128xf32>
    %75 = arith.mulf %74, %3 : vector<1x8x128xf32>
    %76 = arith.mulf %39, %72 : vector<1x8x128xf32>
    %77 = arith.addf %75, %76 : vector<1x8x128xf32>
    %c0_33 = arith.constant 0 : index
    %c0_34 = arith.constant 0 : index
    %c0_35 = arith.constant 0 : index
    %78 = vector.load %arg9[%c0_33, %c0_34, %c0_35] : memref<1x8x128xf32, #tpu.memory_space<vmem>>, vector<1x8x128xf32>
    tpu.vector_store %arg9[%c0_33, %c0_34, %c0_35], %77 {strides = array<i32>} : memref<1x8x128xf32, #tpu.memory_space<vmem>>, vector<1x8x128xf32>,
    %79 = arith.truncf %77 : vector<1x8x128xf32> to vector<1x8x128xbf16>
    %c0_36 = arith.constant 0 : index
    %c0_37 = arith.constant 0 : index
    %c0_38 = arith.constant 0 : index
    %c0_39 = arith.constant 0 : index
    %80 = vector.load %arg6[%c0_36, %c0_37, %c0_38, %c0_39] : memref<1x1x8x128xbf16, #tpu.memory_space<vmem>>, vector<1x1x8x128xbf16>
    %81 = vector.shape_cast %80 : vector<1x1x8x128xbf16> to vector<1x8x128xbf16>
    %82 = vector.shape_cast %79 : vector<1x8x128xbf16> to vector<1x1x8x128xbf16>
    tpu.vector_store %arg6[%c0_36, %c0_37, %c0_38, %c0_39], %82 {strides = array<i32>} : memref<1x1x8x128xbf16, #tpu.memory_space<vmem>>, vector<1x1x8x128xbf16>,
    %cst_40 = arith.constant dense<0.000000e+00> : vector<128xf32>
    %83 = vector.multi_reduction <add>, %77, %cst_40 [0, 1] : vector<1x8x128xf32> to vector<128xf32>
    %84 = vector.shape_cast %83 : vector<128xf32> to vector<1x1x128xf32>
    %85 = vector.shape_cast %84 : vector<1x1x128xf32> to vector<1x1x1x128xf32>
    %c0_41 = arith.constant 0 : index
    %c0_42 = arith.constant 0 : index
    %c0_43 = arith.constant 0 : index
    %c0_44 = arith.constant 0 : index
    %86 = vector.load %arg7[%c0_41, %c0_42, %c0_43, %c0_44] : memref<1x1x1x128xf32, #tpu.memory_space<vmem>>, vector<1x1x1x128xf32>
    tpu.vector_store %arg7[%c0_41, %c0_42, %c0_43, %c0_44], %85 {strides = array<i32>} : memref<1x1x1x128xf32, #tpu.memory_space<vmem>>, vector<1x1x1x128xf32>,
    %87 = arith.mulf %77, %77 : vector<1x8x128xf32>
    %cst_45 = arith.constant dense<0.000000e+00> : vector<128xf32>
    %88 = vector.multi_reduction <add>, %87, %cst_45 [0, 1] : vector<1x8x128xf32> to vector<128xf32>
    %89 = vector.shape_cast %88 : vector<128xf32> to vector<1x1x128xf32>
    %90 = vector.shape_cast %89 : vector<1x1x128xf32> to vector<1x1x1x128xf32>
    %c0_46 = arith.constant 0 : index
    %c0_47 = arith.constant 0 : index
    %c0_48 = arith.constant 0 : index
    %c0_49 = arith.constant 0 : index
    %91 = vector.load %arg8[%c0_46, %c0_47, %c0_48, %c0_49] : memref<1x1x1x128xf32, #tpu.memory_space<vmem>>, vector<1x1x1x128xf32>
    tpu.vector_store %arg8[%c0_46, %c0_47, %c0_48, %c0_49], %90 {strides = array<i32>} : memref<1x1x1x128xf32, #tpu.memory_space<vmem>>, vector<1x1x1x128xf32>,
    return
  }
  func.func @transform_0(%arg0: i32, %arg1: i32) -> (i32, i32, i32, i32) {
    %c0_i32 = arith.constant 0 : i32
    %c0_i32_0 = arith.constant 0 : i32
    %c0_i32_1 = arith.constant 0 : i32
    return %arg0, %arg1, %c0_i32, %c0_i32_0 : i32, i32, i32, i32
  }
  func.func @transform_1(%arg0: i32, %arg1: i32) -> (i32, i32, i32) {
    %c0_i32 = arith.constant 0 : i32
    %c0_i32_0 = arith.constant 0 : i32
    %c0_i32_1 = arith.constant 0 : i32
    return %arg0, %c0_i32, %c0_i32_0 : i32, i32, i32
  }
  func.func @transform_2(%arg0: i32, %arg1: i32) -> (i32, i32, i32) {
    %c0_i32 = arith.constant 0 : i32
    %c0_i32_0 = arith.constant 0 : i32
    %c0_i32_1 = arith.constant 0 : i32
    %c0_i32_2 = arith.constant 0 : i32
    return %c0_i32, %c0_i32_0, %c0_i32_1 : i32, i32, i32
  }
  func.func @transform_3(%arg0: i32, %arg1: i32) -> (i32, i32, i32) {
    %c0_i32 = arith.constant 0 : i32
    %c0_i32_0 = arith.constant 0 : i32
    %c0_i32_1 = arith.constant 0 : i32
    %c0_i32_2 = arith.constant 0 : i32
    return %c0_i32, %c0_i32_0, %c0_i32_1 : i32, i32, i32
  }
  func.func @transform_4(%arg0: i32, %arg1: i32) -> (i32, i32, i32, i32) {
    %c0_i32 = arith.constant 0 : i32
    %c0_i32_0 = arith.constant 0 : i32
    %c0_i32_1 = arith.constant 0 : i32
    return %arg0, %arg1, %c0_i32, %c0_i32_0 : i32, i32, i32, i32
  }
  func.func @transform_5(%arg0: i32, %arg1: i32) -> (i32, i32, i32, i32) {
    %c0_i32 = arith.constant 0 : i32
    %c0_i32_0 = arith.constant 0 : i32
    %c0_i32_1 = arith.constant 0 : i32
    return %arg0, %arg1, %c0_i32, %c0_i32_0 : i32, i32, i32, i32
  }
  func.func @transform_6(%arg0: i32, %arg1: i32) -> (i32, i32, i32, i32) {
    %c0_i32 = arith.constant 0 : i32
    %c0_i32_0 = arith.constant 0 : i32
    %c0_i32_1 = arith.constant 0 : i32
    return %arg0, %arg1, %c0_i32, %c0_i32_0 : i32, i32, i32, i32
  }
}

module attributes {stable_mosaic.version = 11 : i64} {
  func.func @_conv_first_kernel(%arg0: i32, %arg1: memref<2x8x128xbf16, #tpu.memory_space<vmem>>, %arg2: memref<2x1x128xf32, #tpu.memory_space<vmem>>, %arg3: memref<2x1x128xf32, #tpu.memory_space<vmem>>, %arg4: memref<3x128x256xbf16, #tpu.memory_space<vmem>>, %arg5: memref<128x256xbf16, #tpu.memory_space<vmem>>, %arg6: memref<2x8x256xbf16, #tpu.memory_space<vmem>>, %arg7: memref<2x8x256xbf16, #tpu.memory_space<vmem>>, %arg8: memref<1x1x256xf32, #tpu.memory_space<vmem>>, %arg9: memref<1x1x256xf32, #tpu.memory_space<vmem>>) attributes {dimension_semantics = [#tpu.dimension_semantics<parallel>], iteration_bounds = array<i64: 2>, scalar_prefetch = 0 : i64, scratch_operands = 0 : i64, tpu.core_type = #tpu.core_type<tc>, window_params = [{transform_indices = @transform_0, window_bounds = array<i64: 2, 8, 128>}, {transform_indices = @transform_1, window_bounds = array<i64: 2, 1, 128>}, {transform_indices = @transform_2, window_bounds = array<i64: 2, 1, 128>}, {pipeline_mode = #tpu.pipeline_mode<synchronous>, transform_indices = @transform_3, window_bounds = array<i64: 3, 128, 256>}, {pipeline_mode = #tpu.pipeline_mode<synchronous>, transform_indices = @transform_4, window_bounds = array<i64: 128, 256>}, {transform_indices = @transform_5, window_bounds = array<i64: 2, 8, 256>}, {transform_indices = @transform_6, window_bounds = array<i64: 2, 8, 256>}, {transform_indices = @transform_7, window_bounds = array<i64: 1, 1, 256>}, {transform_indices = @transform_8, window_bounds = array<i64: 1, 1, 256>}]} {
    %c0 = arith.constant 0 : index
    %c0_0 = arith.constant 0 : index
    %c0_1 = arith.constant 0 : index
    %0 = vector.load %arg1[%c0, %c0_0, %c0_1] : memref<2x8x128xbf16, #tpu.memory_space<vmem>>, vector<2x8x128xbf16>
    %1 = arith.extf %0 : vector<2x8x128xbf16> to vector<2x8x128xf32>
    %c0_2 = arith.constant 0 : index
    %c0_3 = arith.constant 0 : index
    %c0_4 = arith.constant 0 : index
    %2 = vector.load %arg2[%c0_2, %c0_3, %c0_4] : memref<2x1x128xf32, #tpu.memory_space<vmem>>, vector<2x1x128xf32>
    %3 = vector.broadcast %2 : vector<2x1x128xf32> to vector<2x8x128xf32>
    %4 = arith.mulf %1, %3 : vector<2x8x128xf32>
    %c0_5 = arith.constant 0 : index
    %c0_6 = arith.constant 0 : index
    %c0_7 = arith.constant 0 : index
    %5 = vector.load %arg3[%c0_5, %c0_6, %c0_7] : memref<2x1x128xf32, #tpu.memory_space<vmem>>, vector<2x1x128xf32>
    %6 = vector.broadcast %5 : vector<2x1x128xf32> to vector<2x8x128xf32>
    %7 = arith.addf %4, %6 : vector<2x8x128xf32>
    %cst = arith.constant 0.000000e+00 : f32
    %8 = vector.broadcast %cst : f32 to vector<2x8x128xf32>
    %9 = arith.maximumf %7, %8 : vector<2x8x128xf32>
    %cst_8 = arith.constant 0.000000e+00 : f32
    %10 = vector.broadcast %cst_8 : f32 to vector<2x1x128xf32>
    %11 = vector.extract_strided_slice %9 {offsets = [0, 0, 0], sizes = [2, 7, 128], strides = [1, 1, 1]} : vector<2x8x128xf32> to vector<2x7x128xf32>
    %12 = tpu.concatenate %10, %11 in 1 : vector<2x1x128xf32>, vector<2x7x128xf32> -> vector<2x8x128xf32>
    %13 = vector.extract_strided_slice %9 {offsets = [0, 1, 0], sizes = [2, 7, 128], strides = [1, 1, 1]} : vector<2x8x128xf32> to vector<2x7x128xf32>
    %14 = tpu.concatenate %13, %10 in 1 : vector<2x7x128xf32>, vector<2x1x128xf32> -> vector<2x8x128xf32>
    %15 = vector.shape_cast %12 : vector<2x8x128xf32> to vector<16x128xf32>
    %16 = arith.truncf %15 : vector<16x128xf32> to vector<16x128xbf16>
    %c0_9 = arith.constant 0 : index
    %c0_10 = arith.constant 0 : index
    %c0_11 = arith.constant 0 : index
    %17 = vector.load %arg4[%c0_9, %c0_10, %c0_11] : memref<3x128x256xbf16, #tpu.memory_space<vmem>>, vector<1x128x256xbf16>
    %18 = vector.shape_cast %17 : vector<1x128x256xbf16> to vector<128x256xbf16>
    %cst_12 = arith.constant dense<0.000000e+00> : vector<16x256xf32>
    %19 = tpu.matmul %16, %18, %cst_12 {dimension_numbers = #tpu.dot_dimension_numbers<[1], [0], [0], [1], [0, 0, 1, 1], [], []>} : vector<16x128xbf16>, vector<128x256xbf16>, vector<16x256xf32> -> vector<16x256xf32>
    %20 = vector.shape_cast %9 : vector<2x8x128xf32> to vector<16x128xf32>
    %21 = arith.truncf %20 : vector<16x128xf32> to vector<16x128xbf16>
    %c1 = arith.constant 1 : index
    %c0_13 = arith.constant 0 : index
    %c0_14 = arith.constant 0 : index
    %22 = vector.load %arg4[%c1, %c0_13, %c0_14] : memref<3x128x256xbf16, #tpu.memory_space<vmem>>, vector<1x128x256xbf16>
    %23 = vector.shape_cast %22 : vector<1x128x256xbf16> to vector<128x256xbf16>
    %cst_15 = arith.constant dense<0.000000e+00> : vector<16x256xf32>
    %24 = tpu.matmul %21, %23, %cst_15 {dimension_numbers = #tpu.dot_dimension_numbers<[1], [0], [0], [1], [0, 0, 1, 1], [], []>} : vector<16x128xbf16>, vector<128x256xbf16>, vector<16x256xf32> -> vector<16x256xf32>
    %25 = arith.addf %19, %24 : vector<16x256xf32>
    %26 = vector.shape_cast %14 : vector<2x8x128xf32> to vector<16x128xf32>
    %27 = arith.truncf %26 : vector<16x128xf32> to vector<16x128xbf16>
    %c2 = arith.constant 2 : index
    %c0_16 = arith.constant 0 : index
    %c0_17 = arith.constant 0 : index
    %28 = vector.load %arg4[%c2, %c0_16, %c0_17] : memref<3x128x256xbf16, #tpu.memory_space<vmem>>, vector<1x128x256xbf16>
    %29 = vector.shape_cast %28 : vector<1x128x256xbf16> to vector<128x256xbf16>
    %cst_18 = arith.constant dense<0.000000e+00> : vector<16x256xf32>
    %30 = tpu.matmul %27, %29, %cst_18 {dimension_numbers = #tpu.dot_dimension_numbers<[1], [0], [0], [1], [0, 0, 1, 1], [], []>} : vector<16x128xbf16>, vector<128x256xbf16>, vector<16x256xf32> -> vector<16x256xf32>
    %31 = arith.addf %25, %30 : vector<16x256xf32>
    %32 = vector.shape_cast %31 : vector<16x256xf32> to vector<2x8x256xf32>
    %33 = arith.truncf %32 : vector<2x8x256xf32> to vector<2x8x256xbf16>
    %c0_19 = arith.constant 0 : index
    %c0_20 = arith.constant 0 : index
    %c0_21 = arith.constant 0 : index
    %34 = vector.load %arg6[%c0_19, %c0_20, %c0_21] : memref<2x8x256xbf16, #tpu.memory_space<vmem>>, vector<2x8x256xbf16>
    tpu.vector_store %arg6[%c0_19, %c0_20, %c0_21], %33 {strides = array<i32>} : memref<2x8x256xbf16, #tpu.memory_space<vmem>>, vector<2x8x256xbf16>,
    %c0_22 = arith.constant 0 : index
    %c0_23 = arith.constant 0 : index
    %c0_24 = arith.constant 0 : index
    %35 = vector.load %arg1[%c0_22, %c0_23, %c0_24] : memref<2x8x128xbf16, #tpu.memory_space<vmem>>, vector<2x8x128xbf16>
    %36 = vector.shape_cast %35 : vector<2x8x128xbf16> to vector<16x128xbf16>
    %c0_25 = arith.constant 0 : index
    %c0_26 = arith.constant 0 : index
    %37 = vector.load %arg5[%c0_25, %c0_26] : memref<128x256xbf16, #tpu.memory_space<vmem>>, vector<128x256xbf16>
    %cst_27 = arith.constant dense<0.000000e+00> : vector<16x256xf32>
    %38 = tpu.matmul %36, %37, %cst_27 {dimension_numbers = #tpu.dot_dimension_numbers<[1], [0], [0], [1], [0, 0, 1, 1], [], []>} : vector<16x128xbf16>, vector<128x256xbf16>, vector<16x256xf32> -> vector<16x256xf32>
    %39 = vector.shape_cast %38 : vector<16x256xf32> to vector<2x8x256xf32>
    %40 = arith.truncf %39 : vector<2x8x256xf32> to vector<2x8x256xbf16>
    %c0_28 = arith.constant 0 : index
    %c0_29 = arith.constant 0 : index
    %c0_30 = arith.constant 0 : index
    %41 = vector.load %arg7[%c0_28, %c0_29, %c0_30] : memref<2x8x256xbf16, #tpu.memory_space<vmem>>, vector<2x8x256xbf16>
    tpu.vector_store %arg7[%c0_28, %c0_29, %c0_30], %40 {strides = array<i32>} : memref<2x8x256xbf16, #tpu.memory_space<vmem>>, vector<2x8x256xbf16>,
    %cst_31 = arith.constant dense<0.000000e+00> : vector<256xf32>
    %42 = vector.multi_reduction <add>, %31, %cst_31 [0] : vector<16x256xf32> to vector<256xf32>
    %43 = vector.shape_cast %42 : vector<256xf32> to vector<1x256xf32>
    %44 = vector.shape_cast %43 : vector<1x256xf32> to vector<1x1x256xf32>
    %c0_32 = arith.constant 0 : index
    %c0_33 = arith.constant 0 : index
    %c0_34 = arith.constant 0 : index
    %45 = vector.load %arg8[%c0_32, %c0_33, %c0_34] : memref<1x1x256xf32, #tpu.memory_space<vmem>>, vector<1x1x256xf32>
    tpu.vector_store %arg8[%c0_32, %c0_33, %c0_34], %44 {strides = array<i32>} : memref<1x1x256xf32, #tpu.memory_space<vmem>>, vector<1x1x256xf32>,
    %46 = arith.mulf %31, %31 : vector<16x256xf32>
    %cst_35 = arith.constant dense<0.000000e+00> : vector<256xf32>
    %47 = vector.multi_reduction <add>, %46, %cst_35 [0] : vector<16x256xf32> to vector<256xf32>
    %48 = vector.shape_cast %47 : vector<256xf32> to vector<1x256xf32>
    %49 = vector.shape_cast %48 : vector<1x256xf32> to vector<1x1x256xf32>
    %c0_36 = arith.constant 0 : index
    %c0_37 = arith.constant 0 : index
    %c0_38 = arith.constant 0 : index
    %50 = vector.load %arg9[%c0_36, %c0_37, %c0_38] : memref<1x1x256xf32, #tpu.memory_space<vmem>>, vector<1x1x256xf32>
    tpu.vector_store %arg9[%c0_36, %c0_37, %c0_38], %49 {strides = array<i32>} : memref<1x1x256xf32, #tpu.memory_space<vmem>>, vector<1x1x256xf32>,
    return
  }
  func.func @transform_0(%arg0: i32) -> (i32, i32, i32) {
    %c0_i32 = arith.constant 0 : i32
    %c0_i32_0 = arith.constant 0 : i32
    %c0_i32_1 = arith.constant 0 : i32
    return %arg0, %c0_i32, %c0_i32_0 : i32, i32, i32
  }
  func.func @transform_1(%arg0: i32) -> (i32, i32, i32) {
    %c0_i32 = arith.constant 0 : i32
    %c0_i32_0 = arith.constant 0 : i32
    %c0_i32_1 = arith.constant 0 : i32
    return %arg0, %c0_i32, %c0_i32_0 : i32, i32, i32
  }
  func.func @transform_2(%arg0: i32) -> (i32, i32, i32) {
    %c0_i32 = arith.constant 0 : i32
    %c0_i32_0 = arith.constant 0 : i32
    %c0_i32_1 = arith.constant 0 : i32
    return %arg0, %c0_i32, %c0_i32_0 : i32, i32, i32
  }
  func.func @transform_3(%arg0: i32) -> (i32, i32, i32) {
    %c0_i32 = arith.constant 0 : i32
    %c0_i32_0 = arith.constant 0 : i32
    %c0_i32_1 = arith.constant 0 : i32
    %c0_i32_2 = arith.constant 0 : i32
    return %c0_i32, %c0_i32_0, %c0_i32_1 : i32, i32, i32
  }
  func.func @transform_4(%arg0: i32) -> (i32, i32) {
    %c0_i32 = arith.constant 0 : i32
    %c0_i32_0 = arith.constant 0 : i32
    %c0_i32_1 = arith.constant 0 : i32
    return %c0_i32, %c0_i32_0 : i32, i32
  }
  func.func @transform_5(%arg0: i32) -> (i32, i32, i32) {
    %c0_i32 = arith.constant 0 : i32
    %c0_i32_0 = arith.constant 0 : i32
    %c0_i32_1 = arith.constant 0 : i32
    return %arg0, %c0_i32, %c0_i32_0 : i32, i32, i32
  }
  func.func @transform_6(%arg0: i32) -> (i32, i32, i32) {
    %c0_i32 = arith.constant 0 : i32
    %c0_i32_0 = arith.constant 0 : i32
    %c0_i32_1 = arith.constant 0 : i32
    return %arg0, %c0_i32, %c0_i32_0 : i32, i32, i32
  }
  func.func @transform_7(%arg0: i32) -> (i32, i32, i32) {
    %c0_i32 = arith.constant 0 : i32
    %c0_i32_0 = arith.constant 0 : i32
    %c0_i32_1 = arith.constant 0 : i32
    return %arg0, %c0_i32, %c0_i32_0 : i32, i32, i32
  }
  func.func @transform_8(%arg0: i32) -> (i32, i32, i32) {
    %c0_i32 = arith.constant 0 : i32
    %c0_i32_0 = arith.constant 0 : i32
    %c0_i32_1 = arith.constant 0 : i32
    return %arg0, %c0_i32, %c0_i32_0 : i32, i32, i32
  }
}

module attributes {stable_mosaic.version = 11 : i64} {
  func.func @_conv_mid_kernel(%arg0: i32, %arg1: memref<2x8x256xbf16, #tpu.memory_space<vmem>>, %arg2: memref<2x1x256xf32, #tpu.memory_space<vmem>>, %arg3: memref<2x1x256xf32, #tpu.memory_space<vmem>>, %arg4: memref<3x256x256xbf16, #tpu.memory_space<vmem>>, %arg5: memref<2x8x256xbf16, #tpu.memory_space<vmem>>, %arg6: memref<1x1x256xf32, #tpu.memory_space<vmem>>, %arg7: memref<1x1x256xf32, #tpu.memory_space<vmem>>) attributes {dimension_semantics = [#tpu.dimension_semantics<parallel>], iteration_bounds = array<i64: 2>, scalar_prefetch = 0 : i64, scratch_operands = 0 : i64, tpu.core_type = #tpu.core_type<tc>, window_params = [{transform_indices = @transform_0, window_bounds = array<i64: 2, 8, 256>}, {transform_indices = @transform_1, window_bounds = array<i64: 2, 1, 256>}, {transform_indices = @transform_2, window_bounds = array<i64: 2, 1, 256>}, {pipeline_mode = #tpu.pipeline_mode<synchronous>, transform_indices = @transform_3, window_bounds = array<i64: 3, 256, 256>}, {transform_indices = @transform_4, window_bounds = array<i64: 2, 8, 256>}, {transform_indices = @transform_5, window_bounds = array<i64: 1, 1, 256>}, {transform_indices = @transform_6, window_bounds = array<i64: 1, 1, 256>}]} {
    %c0 = arith.constant 0 : index
    %c0_0 = arith.constant 0 : index
    %c0_1 = arith.constant 0 : index
    %0 = vector.load %arg1[%c0, %c0_0, %c0_1] : memref<2x8x256xbf16, #tpu.memory_space<vmem>>, vector<2x8x256xbf16>
    %1 = arith.extf %0 : vector<2x8x256xbf16> to vector<2x8x256xf32>
    %c0_2 = arith.constant 0 : index
    %c0_3 = arith.constant 0 : index
    %c0_4 = arith.constant 0 : index
    %2 = vector.load %arg2[%c0_2, %c0_3, %c0_4] : memref<2x1x256xf32, #tpu.memory_space<vmem>>, vector<2x1x256xf32>
    %3 = vector.broadcast %2 : vector<2x1x256xf32> to vector<2x8x256xf32>
    %4 = arith.mulf %1, %3 : vector<2x8x256xf32>
    %c0_5 = arith.constant 0 : index
    %c0_6 = arith.constant 0 : index
    %c0_7 = arith.constant 0 : index
    %5 = vector.load %arg3[%c0_5, %c0_6, %c0_7] : memref<2x1x256xf32, #tpu.memory_space<vmem>>, vector<2x1x256xf32>
    %6 = vector.broadcast %5 : vector<2x1x256xf32> to vector<2x8x256xf32>
    %7 = arith.addf %4, %6 : vector<2x8x256xf32>
    %cst = arith.constant 0.000000e+00 : f32
    %8 = vector.broadcast %cst : f32 to vector<2x8x256xf32>
    %9 = arith.maximumf %7, %8 : vector<2x8x256xf32>
    %cst_8 = arith.constant 0.000000e+00 : f32
    %10 = vector.broadcast %cst_8 : f32 to vector<2x1x256xf32>
    %11 = vector.extract_strided_slice %9 {offsets = [0, 0, 0], sizes = [2, 7, 256], strides = [1, 1, 1]} : vector<2x8x256xf32> to vector<2x7x256xf32>
    %12 = tpu.concatenate %10, %11 in 1 : vector<2x1x256xf32>, vector<2x7x256xf32> -> vector<2x8x256xf32>
    %13 = vector.extract_strided_slice %9 {offsets = [0, 1, 0], sizes = [2, 7, 256], strides = [1, 1, 1]} : vector<2x8x256xf32> to vector<2x7x256xf32>
    %14 = tpu.concatenate %13, %10 in 1 : vector<2x7x256xf32>, vector<2x1x256xf32> -> vector<2x8x256xf32>
    %15 = vector.shape_cast %12 : vector<2x8x256xf32> to vector<16x256xf32>
    %16 = arith.truncf %15 : vector<16x256xf32> to vector<16x256xbf16>
    %c0_9 = arith.constant 0 : index
    %c0_10 = arith.constant 0 : index
    %c0_11 = arith.constant 0 : index
    %17 = vector.load %arg4[%c0_9, %c0_10, %c0_11] : memref<3x256x256xbf16, #tpu.memory_space<vmem>>, vector<1x256x256xbf16>
    %18 = vector.shape_cast %17 : vector<1x256x256xbf16> to vector<256x256xbf16>
    %cst_12 = arith.constant dense<0.000000e+00> : vector<16x256xf32>
    %19 = tpu.matmul %16, %18, %cst_12 {dimension_numbers = #tpu.dot_dimension_numbers<[1], [0], [0], [1], [0, 0, 1, 1], [], []>} : vector<16x256xbf16>, vector<256x256xbf16>, vector<16x256xf32> -> vector<16x256xf32>
    %20 = vector.shape_cast %9 : vector<2x8x256xf32> to vector<16x256xf32>
    %21 = arith.truncf %20 : vector<16x256xf32> to vector<16x256xbf16>
    %c1 = arith.constant 1 : index
    %c0_13 = arith.constant 0 : index
    %c0_14 = arith.constant 0 : index
    %22 = vector.load %arg4[%c1, %c0_13, %c0_14] : memref<3x256x256xbf16, #tpu.memory_space<vmem>>, vector<1x256x256xbf16>
    %23 = vector.shape_cast %22 : vector<1x256x256xbf16> to vector<256x256xbf16>
    %cst_15 = arith.constant dense<0.000000e+00> : vector<16x256xf32>
    %24 = tpu.matmul %21, %23, %cst_15 {dimension_numbers = #tpu.dot_dimension_numbers<[1], [0], [0], [1], [0, 0, 1, 1], [], []>} : vector<16x256xbf16>, vector<256x256xbf16>, vector<16x256xf32> -> vector<16x256xf32>
    %25 = arith.addf %19, %24 : vector<16x256xf32>
    %26 = vector.shape_cast %14 : vector<2x8x256xf32> to vector<16x256xf32>
    %27 = arith.truncf %26 : vector<16x256xf32> to vector<16x256xbf16>
    %c2 = arith.constant 2 : index
    %c0_16 = arith.constant 0 : index
    %c0_17 = arith.constant 0 : index
    %28 = vector.load %arg4[%c2, %c0_16, %c0_17] : memref<3x256x256xbf16, #tpu.memory_space<vmem>>, vector<1x256x256xbf16>
    %29 = vector.shape_cast %28 : vector<1x256x256xbf16> to vector<256x256xbf16>
    %cst_18 = arith.constant dense<0.000000e+00> : vector<16x256xf32>
    %30 = tpu.matmul %27, %29, %cst_18 {dimension_numbers = #tpu.dot_dimension_numbers<[1], [0], [0], [1], [0, 0, 1, 1], [], []>} : vector<16x256xbf16>, vector<256x256xbf16>, vector<16x256xf32> -> vector<16x256xf32>
    %31 = arith.addf %25, %30 : vector<16x256xf32>
    %32 = vector.shape_cast %31 : vector<16x256xf32> to vector<2x8x256xf32>
    %33 = arith.truncf %32 : vector<2x8x256xf32> to vector<2x8x256xbf16>
    %c0_19 = arith.constant 0 : index
    %c0_20 = arith.constant 0 : index
    %c0_21 = arith.constant 0 : index
    %34 = vector.load %arg5[%c0_19, %c0_20, %c0_21] : memref<2x8x256xbf16, #tpu.memory_space<vmem>>, vector<2x8x256xbf16>
    tpu.vector_store %arg5[%c0_19, %c0_20, %c0_21], %33 {strides = array<i32>} : memref<2x8x256xbf16, #tpu.memory_space<vmem>>, vector<2x8x256xbf16>,
    %cst_22 = arith.constant dense<0.000000e+00> : vector<256xf32>
    %35 = vector.multi_reduction <add>, %31, %cst_22 [0] : vector<16x256xf32> to vector<256xf32>
    %36 = vector.shape_cast %35 : vector<256xf32> to vector<1x256xf32>
    %37 = vector.shape_cast %36 : vector<1x256xf32> to vector<1x1x256xf32>
    %c0_23 = arith.constant 0 : index
    %c0_24 = arith.constant 0 : index
    %c0_25 = arith.constant 0 : index
    %38 = vector.load %arg6[%c0_23, %c0_24, %c0_25] : memref<1x1x256xf32, #tpu.memory_space<vmem>>, vector<1x1x256xf32>
    tpu.vector_store %arg6[%c0_23, %c0_24, %c0_25], %37 {strides = array<i32>} : memref<1x1x256xf32, #tpu.memory_space<vmem>>, vector<1x1x256xf32>,
    %39 = arith.mulf %31, %31 : vector<16x256xf32>
    %cst_26 = arith.constant dense<0.000000e+00> : vector<256xf32>
    %40 = vector.multi_reduction <add>, %39, %cst_26 [0] : vector<16x256xf32> to vector<256xf32>
    %41 = vector.shape_cast %40 : vector<256xf32> to vector<1x256xf32>
    %42 = vector.shape_cast %41 : vector<1x256xf32> to vector<1x1x256xf32>
    %c0_27 = arith.constant 0 : index
    %c0_28 = arith.constant 0 : index
    %c0_29 = arith.constant 0 : index
    %43 = vector.load %arg7[%c0_27, %c0_28, %c0_29] : memref<1x1x256xf32, #tpu.memory_space<vmem>>, vector<1x1x256xf32>
    tpu.vector_store %arg7[%c0_27, %c0_28, %c0_29], %42 {strides = array<i32>} : memref<1x1x256xf32, #tpu.memory_space<vmem>>, vector<1x1x256xf32>,
    return
  }
  func.func @transform_0(%arg0: i32) -> (i32, i32, i32) {
    %c0_i32 = arith.constant 0 : i32
    %c0_i32_0 = arith.constant 0 : i32
    %c0_i32_1 = arith.constant 0 : i32
    return %arg0, %c0_i32, %c0_i32_0 : i32, i32, i32
  }
  func.func @transform_1(%arg0: i32) -> (i32, i32, i32) {
    %c0_i32 = arith.constant 0 : i32
    %c0_i32_0 = arith.constant 0 : i32
    %c0_i32_1 = arith.constant 0 : i32
    return %arg0, %c0_i32, %c0_i32_0 : i32, i32, i32
  }
  func.func @transform_2(%arg0: i32) -> (i32, i32, i32) {
    %c0_i32 = arith.constant 0 : i32
    %c0_i32_0 = arith.constant 0 : i32
    %c0_i32_1 = arith.constant 0 : i32
    return %arg0, %c0_i32, %c0_i32_0 : i32, i32, i32
  }
  func.func @transform_3(%arg0: i32) -> (i32, i32, i32) {
    %c0_i32 = arith.constant 0 : i32
    %c0_i32_0 = arith.constant 0 : i32
    %c0_i32_1 = arith.constant 0 : i32
    %c0_i32_2 = arith.constant 0 : i32
    return %c0_i32, %c0_i32_0, %c0_i32_1 : i32, i32, i32
  }
  func.func @transform_4(%arg0: i32) -> (i32, i32, i32) {
    %c0_i32 = arith.constant 0 : i32
    %c0_i32_0 = arith.constant 0 : i32
    %c0_i32_1 = arith.constant 0 : i32
    return %arg0, %c0_i32, %c0_i32_0 : i32, i32, i32
  }
  func.func @transform_5(%arg0: i32) -> (i32, i32, i32) {
    %c0_i32 = arith.constant 0 : i32
    %c0_i32_0 = arith.constant 0 : i32
    %c0_i32_1 = arith.constant 0 : i32
    return %arg0, %c0_i32, %c0_i32_0 : i32, i32, i32
  }
  func.func @transform_6(%arg0: i32) -> (i32, i32, i32) {
    %c0_i32 = arith.constant 0 : i32
    %c0_i32_0 = arith.constant 0 : i32
    %c0_i32_1 = arith.constant 0 : i32
    return %arg0, %c0_i32, %c0_i32_0 : i32, i32, i32
  }
}

module attributes {stable_mosaic.version = 11 : i64} {
  func.func @_conv_last_kernel(%arg0: i32, %arg1: memref<2x8x256xbf16, #tpu.memory_space<vmem>>, %arg2: memref<2x1x256xf32, #tpu.memory_space<vmem>>, %arg3: memref<2x1x256xf32, #tpu.memory_space<vmem>>, %arg4: memref<3x256x256xbf16, #tpu.memory_space<vmem>>, %arg5: memref<2x8x256xbf16, #tpu.memory_space<vmem>>, %arg6: memref<2x8x256xbf16, #tpu.memory_space<vmem>>) attributes {dimension_semantics = [#tpu.dimension_semantics<parallel>], iteration_bounds = array<i64: 2>, scalar_prefetch = 0 : i64, scratch_operands = 0 : i64, tpu.core_type = #tpu.core_type<tc>, window_params = [{transform_indices = @transform_0, window_bounds = array<i64: 2, 8, 256>}, {transform_indices = @transform_1, window_bounds = array<i64: 2, 1, 256>}, {transform_indices = @transform_2, window_bounds = array<i64: 2, 1, 256>}, {pipeline_mode = #tpu.pipeline_mode<synchronous>, transform_indices = @transform_3, window_bounds = array<i64: 3, 256, 256>}, {transform_indices = @transform_4, window_bounds = array<i64: 2, 8, 256>}, {transform_indices = @transform_5, window_bounds = array<i64: 2, 8, 256>}]} {
    %c0 = arith.constant 0 : index
    %c0_0 = arith.constant 0 : index
    %c0_1 = arith.constant 0 : index
    %0 = vector.load %arg1[%c0, %c0_0, %c0_1] : memref<2x8x256xbf16, #tpu.memory_space<vmem>>, vector<2x8x256xbf16>
    %1 = arith.extf %0 : vector<2x8x256xbf16> to vector<2x8x256xf32>
    %c0_2 = arith.constant 0 : index
    %c0_3 = arith.constant 0 : index
    %c0_4 = arith.constant 0 : index
    %2 = vector.load %arg2[%c0_2, %c0_3, %c0_4] : memref<2x1x256xf32, #tpu.memory_space<vmem>>, vector<2x1x256xf32>
    %3 = vector.broadcast %2 : vector<2x1x256xf32> to vector<2x8x256xf32>
    %4 = arith.mulf %1, %3 : vector<2x8x256xf32>
    %c0_5 = arith.constant 0 : index
    %c0_6 = arith.constant 0 : index
    %c0_7 = arith.constant 0 : index
    %5 = vector.load %arg3[%c0_5, %c0_6, %c0_7] : memref<2x1x256xf32, #tpu.memory_space<vmem>>, vector<2x1x256xf32>
    %6 = vector.broadcast %5 : vector<2x1x256xf32> to vector<2x8x256xf32>
    %7 = arith.addf %4, %6 : vector<2x8x256xf32>
    %cst = arith.constant 0.000000e+00 : f32
    %8 = vector.broadcast %cst : f32 to vector<2x8x256xf32>
    %9 = arith.maximumf %7, %8 : vector<2x8x256xf32>
    %cst_8 = arith.constant 0.000000e+00 : f32
    %10 = vector.broadcast %cst_8 : f32 to vector<2x1x256xf32>
    %11 = vector.extract_strided_slice %9 {offsets = [0, 0, 0], sizes = [2, 7, 256], strides = [1, 1, 1]} : vector<2x8x256xf32> to vector<2x7x256xf32>
    %12 = tpu.concatenate %10, %11 in 1 : vector<2x1x256xf32>, vector<2x7x256xf32> -> vector<2x8x256xf32>
    %13 = vector.extract_strided_slice %9 {offsets = [0, 1, 0], sizes = [2, 7, 256], strides = [1, 1, 1]} : vector<2x8x256xf32> to vector<2x7x256xf32>
    %14 = tpu.concatenate %13, %10 in 1 : vector<2x7x256xf32>, vector<2x1x256xf32> -> vector<2x8x256xf32>
    %15 = vector.shape_cast %12 : vector<2x8x256xf32> to vector<16x256xf32>
    %16 = arith.truncf %15 : vector<16x256xf32> to vector<16x256xbf16>
    %c0_9 = arith.constant 0 : index
    %c0_10 = arith.constant 0 : index
    %c0_11 = arith.constant 0 : index
    %17 = vector.load %arg4[%c0_9, %c0_10, %c0_11] : memref<3x256x256xbf16, #tpu.memory_space<vmem>>, vector<1x256x256xbf16>
    %18 = vector.shape_cast %17 : vector<1x256x256xbf16> to vector<256x256xbf16>
    %cst_12 = arith.constant dense<0.000000e+00> : vector<16x256xf32>
    %19 = tpu.matmul %16, %18, %cst_12 {dimension_numbers = #tpu.dot_dimension_numbers<[1], [0], [0], [1], [0, 0, 1, 1], [], []>} : vector<16x256xbf16>, vector<256x256xbf16>, vector<16x256xf32> -> vector<16x256xf32>
    %20 = vector.shape_cast %9 : vector<2x8x256xf32> to vector<16x256xf32>
    %21 = arith.truncf %20 : vector<16x256xf32> to vector<16x256xbf16>
    %c1 = arith.constant 1 : index
    %c0_13 = arith.constant 0 : index
    %c0_14 = arith.constant 0 : index
    %22 = vector.load %arg4[%c1, %c0_13, %c0_14] : memref<3x256x256xbf16, #tpu.memory_space<vmem>>, vector<1x256x256xbf16>
    %23 = vector.shape_cast %22 : vector<1x256x256xbf16> to vector<256x256xbf16>
    %cst_15 = arith.constant dense<0.000000e+00> : vector<16x256xf32>
    %24 = tpu.matmul %21, %23, %cst_15 {dimension_numbers = #tpu.dot_dimension_numbers<[1], [0], [0], [1], [0, 0, 1, 1], [], []>} : vector<16x256xbf16>, vector<256x256xbf16>, vector<16x256xf32> -> vector<16x256xf32>
    %25 = arith.addf %19, %24 : vector<16x256xf32>
    %26 = vector.shape_cast %14 : vector<2x8x256xf32> to vector<16x256xf32>
    %27 = arith.truncf %26 : vector<16x256xf32> to vector<16x256xbf16>
    %c2 = arith.constant 2 : index
    %c0_16 = arith.constant 0 : index
    %c0_17 = arith.constant 0 : index
    %28 = vector.load %arg4[%c2, %c0_16, %c0_17] : memref<3x256x256xbf16, #tpu.memory_space<vmem>>, vector<1x256x256xbf16>
    %29 = vector.shape_cast %28 : vector<1x256x256xbf16> to vector<256x256xbf16>
    %cst_18 = arith.constant dense<0.000000e+00> : vector<16x256xf32>
    %30 = tpu.matmul %27, %29, %cst_18 {dimension_numbers = #tpu.dot_dimension_numbers<[1], [0], [0], [1], [0, 0, 1, 1], [], []>} : vector<16x256xbf16>, vector<256x256xbf16>, vector<16x256xf32> -> vector<16x256xf32>
    %31 = arith.addf %25, %30 : vector<16x256xf32>
    %c0_19 = arith.constant 0 : index
    %c0_20 = arith.constant 0 : index
    %c0_21 = arith.constant 0 : index
    %32 = vector.load %arg5[%c0_19, %c0_20, %c0_21] : memref<2x8x256xbf16, #tpu.memory_space<vmem>>, vector<2x8x256xbf16>
    %33 = arith.extf %32 : vector<2x8x256xbf16> to vector<2x8x256xf32>
    %34 = vector.shape_cast %33 : vector<2x8x256xf32> to vector<16x256xf32>
    %35 = arith.addf %31, %34 : vector<16x256xf32>
    %cst_22 = arith.constant 0.000000e+00 : f32
    %36 = vector.broadcast %cst_22 : f32 to vector<16x256xf32>
    %37 = arith.maximumf %35, %36 : vector<16x256xf32>
    %38 = vector.shape_cast %37 : vector<16x256xf32> to vector<2x8x256xf32>
    %39 = arith.truncf %38 : vector<2x8x256xf32> to vector<2x8x256xbf16>
    %c0_23 = arith.constant 0 : index
    %c0_24 = arith.constant 0 : index
    %c0_25 = arith.constant 0 : index
    %40 = vector.load %arg6[%c0_23, %c0_24, %c0_25] : memref<2x8x256xbf16, #tpu.memory_space<vmem>>, vector<2x8x256xbf16>
    tpu.vector_store %arg6[%c0_23, %c0_24, %c0_25], %39 {strides = array<i32>} : memref<2x8x256xbf16, #tpu.memory_space<vmem>>, vector<2x8x256xbf16>,
    return
  }
  func.func @transform_0(%arg0: i32) -> (i32, i32, i32) {
    %c0_i32 = arith.constant 0 : i32
    %c0_i32_0 = arith.constant 0 : i32
    %c0_i32_1 = arith.constant 0 : i32
    return %arg0, %c0_i32, %c0_i32_0 : i32, i32, i32
  }
  func.func @transform_1(%arg0: i32) -> (i32, i32, i32) {
    %c0_i32 = arith.constant 0 : i32
    %c0_i32_0 = arith.constant 0 : i32
    %c0_i32_1 = arith.constant 0 : i32
    return %arg0, %c0_i32, %c0_i32_0 : i32, i32, i32
  }
  func.func @transform_2(%arg0: i32) -> (i32, i32, i32) {
    %c0_i32 = arith.constant 0 : i32
    %c0_i32_0 = arith.constant 0 : i32
    %c0_i32_1 = arith.constant 0 : i32
    return %arg0, %c0_i32, %c0_i32_0 : i32, i32, i32
  }
  func.func @transform_3(%arg0: i32) -> (i32, i32, i32) {
    %c0_i32 = arith.constant 0 : i32
    %c0_i32_0 = arith.constant 0 : i32
    %c0_i32_1 = arith.constant 0 : i32
    %c0_i32_2 = arith.constant 0 : i32
    return %c0_i32, %c0_i32_0, %c0_i32_1 : i32, i32, i32
  }
  func.func @transform_4(%arg0: i32) -> (i32, i32, i32) {
    %c0_i32 = arith.constant 0 : i32
    %c0_i32_0 = arith.constant 0 : i32
    %c0_i32_1 = arith.constant 0 : i32
    return %arg0, %c0_i32, %c0_i32_0 : i32, i32, i32
  }
  func.func @transform_5(%arg0: i32) -> (i32, i32, i32) {
    %c0_i32 = arith.constant 0 : i32
    %c0_i32_0 = arith.constant 0 : i32
    %c0_i32_1 = arith.constant 0 : i32
    return %arg0, %c0_i32, %c0_i32_0 : i32, i32, i32
  }
}

module attributes {stable_mosaic.version = 11 : i64} {
  func.func @_conv_first_kernel(%arg0: i32, %arg1: memref<2x8x128xbf16, #tpu.memory_space<vmem>>, %arg2: memref<2x1x128xf32, #tpu.memory_space<vmem>>, %arg3: memref<2x1x128xf32, #tpu.memory_space<vmem>>, %arg4: memref<3x128x128xbf16, #tpu.memory_space<vmem>>, %arg5: memref<128x128xbf16, #tpu.memory_space<vmem>>, %arg6: memref<2x8x128xbf16, #tpu.memory_space<vmem>>, %arg7: memref<2x8x128xbf16, #tpu.memory_space<vmem>>, %arg8: memref<1x1x128xf32, #tpu.memory_space<vmem>>, %arg9: memref<1x1x128xf32, #tpu.memory_space<vmem>>) attributes {dimension_semantics = [#tpu.dimension_semantics<parallel>], iteration_bounds = array<i64: 2>, scalar_prefetch = 0 : i64, scratch_operands = 0 : i64, tpu.core_type = #tpu.core_type<tc>, window_params = [{transform_indices = @transform_0, window_bounds = array<i64: 2, 8, 128>}, {transform_indices = @transform_1, window_bounds = array<i64: 2, 1, 128>}, {transform_indices = @transform_2, window_bounds = array<i64: 2, 1, 128>}, {pipeline_mode = #tpu.pipeline_mode<synchronous>, transform_indices = @transform_3, window_bounds = array<i64: 3, 128, 128>}, {pipeline_mode = #tpu.pipeline_mode<synchronous>, transform_indices = @transform_4, window_bounds = array<i64: 128, 128>}, {transform_indices = @transform_5, window_bounds = array<i64: 2, 8, 128>}, {transform_indices = @transform_6, window_bounds = array<i64: 2, 8, 128>}, {transform_indices = @transform_7, window_bounds = array<i64: 1, 1, 128>}, {transform_indices = @transform_8, window_bounds = array<i64: 1, 1, 128>}]} {
    %c0 = arith.constant 0 : index
    %c0_0 = arith.constant 0 : index
    %c0_1 = arith.constant 0 : index
    %0 = vector.load %arg1[%c0, %c0_0, %c0_1] : memref<2x8x128xbf16, #tpu.memory_space<vmem>>, vector<2x8x128xbf16>
    %1 = arith.extf %0 : vector<2x8x128xbf16> to vector<2x8x128xf32>
    %c0_2 = arith.constant 0 : index
    %c0_3 = arith.constant 0 : index
    %c0_4 = arith.constant 0 : index
    %2 = vector.load %arg2[%c0_2, %c0_3, %c0_4] : memref<2x1x128xf32, #tpu.memory_space<vmem>>, vector<2x1x128xf32>
    %3 = vector.broadcast %2 : vector<2x1x128xf32> to vector<2x8x128xf32>
    %4 = arith.mulf %1, %3 : vector<2x8x128xf32>
    %c0_5 = arith.constant 0 : index
    %c0_6 = arith.constant 0 : index
    %c0_7 = arith.constant 0 : index
    %5 = vector.load %arg3[%c0_5, %c0_6, %c0_7] : memref<2x1x128xf32, #tpu.memory_space<vmem>>, vector<2x1x128xf32>
    %6 = vector.broadcast %5 : vector<2x1x128xf32> to vector<2x8x128xf32>
    %7 = arith.addf %4, %6 : vector<2x8x128xf32>
    %cst = arith.constant 0.000000e+00 : f32
    %8 = vector.broadcast %cst : f32 to vector<2x8x128xf32>
    %9 = arith.maximumf %7, %8 : vector<2x8x128xf32>
    %cst_8 = arith.constant 0.000000e+00 : f32
    %10 = vector.broadcast %cst_8 : f32 to vector<2x1x128xf32>
    %11 = vector.extract_strided_slice %9 {offsets = [0, 0, 0], sizes = [2, 7, 128], strides = [1, 1, 1]} : vector<2x8x128xf32> to vector<2x7x128xf32>
    %12 = tpu.concatenate %10, %11 in 1 : vector<2x1x128xf32>, vector<2x7x128xf32> -> vector<2x8x128xf32>
    %13 = vector.extract_strided_slice %9 {offsets = [0, 1, 0], sizes = [2, 7, 128], strides = [1, 1, 1]} : vector<2x8x128xf32> to vector<2x7x128xf32>
    %14 = tpu.concatenate %13, %10 in 1 : vector<2x7x128xf32>, vector<2x1x128xf32> -> vector<2x8x128xf32>
    %15 = vector.shape_cast %12 : vector<2x8x128xf32> to vector<16x128xf32>
    %16 = arith.truncf %15 : vector<16x128xf32> to vector<16x128xbf16>
    %c0_9 = arith.constant 0 : index
    %c0_10 = arith.constant 0 : index
    %c0_11 = arith.constant 0 : index
    %17 = vector.load %arg4[%c0_9, %c0_10, %c0_11] : memref<3x128x128xbf16, #tpu.memory_space<vmem>>, vector<1x128x128xbf16>
    %18 = vector.shape_cast %17 : vector<1x128x128xbf16> to vector<128x128xbf16>
    %cst_12 = arith.constant dense<0.000000e+00> : vector<16x128xf32>
    %19 = tpu.matmul %16, %18, %cst_12 {dimension_numbers = #tpu.dot_dimension_numbers<[1], [0], [0], [1], [0, 0, 1, 1], [], []>} : vector<16x128xbf16>, vector<128x128xbf16>, vector<16x128xf32> -> vector<16x128xf32>
    %20 = vector.shape_cast %9 : vector<2x8x128xf32> to vector<16x128xf32>
    %21 = arith.truncf %20 : vector<16x128xf32> to vector<16x128xbf16>
    %c1 = arith.constant 1 : index
    %c0_13 = arith.constant 0 : index
    %c0_14 = arith.constant 0 : index
    %22 = vector.load %arg4[%c1, %c0_13, %c0_14] : memref<3x128x128xbf16, #tpu.memory_space<vmem>>, vector<1x128x128xbf16>
    %23 = vector.shape_cast %22 : vector<1x128x128xbf16> to vector<128x128xbf16>
    %cst_15 = arith.constant dense<0.000000e+00> : vector<16x128xf32>
    %24 = tpu.matmul %21, %23, %cst_15 {dimension_numbers = #tpu.dot_dimension_numbers<[1], [0], [0], [1], [0, 0, 1, 1], [], []>} : vector<16x128xbf16>, vector<128x128xbf16>, vector<16x128xf32> -> vector<16x128xf32>
    %25 = arith.addf %19, %24 : vector<16x128xf32>
    %26 = vector.shape_cast %14 : vector<2x8x128xf32> to vector<16x128xf32>
    %27 = arith.truncf %26 : vector<16x128xf32> to vector<16x128xbf16>
    %c2 = arith.constant 2 : index
    %c0_16 = arith.constant 0 : index
    %c0_17 = arith.constant 0 : index
    %28 = vector.load %arg4[%c2, %c0_16, %c0_17] : memref<3x128x128xbf16, #tpu.memory_space<vmem>>, vector<1x128x128xbf16>
    %29 = vector.shape_cast %28 : vector<1x128x128xbf16> to vector<128x128xbf16>
    %cst_18 = arith.constant dense<0.000000e+00> : vector<16x128xf32>
    %30 = tpu.matmul %27, %29, %cst_18 {dimension_numbers = #tpu.dot_dimension_numbers<[1], [0], [0], [1], [0, 0, 1, 1], [], []>} : vector<16x128xbf16>, vector<128x128xbf16>, vector<16x128xf32> -> vector<16x128xf32>
    %31 = arith.addf %25, %30 : vector<16x128xf32>
    %32 = vector.shape_cast %31 : vector<16x128xf32> to vector<2x8x128xf32>
    %33 = arith.truncf %32 : vector<2x8x128xf32> to vector<2x8x128xbf16>
    %c0_19 = arith.constant 0 : index
    %c0_20 = arith.constant 0 : index
    %c0_21 = arith.constant 0 : index
    %34 = vector.load %arg6[%c0_19, %c0_20, %c0_21] : memref<2x8x128xbf16, #tpu.memory_space<vmem>>, vector<2x8x128xbf16>
    tpu.vector_store %arg6[%c0_19, %c0_20, %c0_21], %33 {strides = array<i32>} : memref<2x8x128xbf16, #tpu.memory_space<vmem>>, vector<2x8x128xbf16>,
    %c0_22 = arith.constant 0 : index
    %c0_23 = arith.constant 0 : index
    %c0_24 = arith.constant 0 : index
    %35 = vector.load %arg1[%c0_22, %c0_23, %c0_24] : memref<2x8x128xbf16, #tpu.memory_space<vmem>>, vector<2x8x128xbf16>
    %36 = vector.shape_cast %35 : vector<2x8x128xbf16> to vector<16x128xbf16>
    %c0_25 = arith.constant 0 : index
    %c0_26 = arith.constant 0 : index
    %37 = vector.load %arg5[%c0_25, %c0_26] : memref<128x128xbf16, #tpu.memory_space<vmem>>, vector<128x128xbf16>
    %cst_27 = arith.constant dense<0.000000e+00> : vector<16x128xf32>
    %38 = tpu.matmul %36, %37, %cst_27 {dimension_numbers = #tpu.dot_dimension_numbers<[1], [0], [0], [1], [0, 0, 1, 1], [], []>} : vector<16x128xbf16>, vector<128x128xbf16>, vector<16x128xf32> -> vector<16x128xf32>
    %39 = vector.shape_cast %38 : vector<16x128xf32> to vector<2x8x128xf32>
    %40 = arith.truncf %39 : vector<2x8x128xf32> to vector<2x8x128xbf16>
    %c0_28 = arith.constant 0 : index
    %c0_29 = arith.constant 0 : index
    %c0_30 = arith.constant 0 : index
    %41 = vector.load %arg7[%c0_28, %c0_29, %c0_30] : memref<2x8x128xbf16, #tpu.memory_space<vmem>>, vector<2x8x128xbf16>
    tpu.vector_store %arg7[%c0_28, %c0_29, %c0_30], %40 {strides = array<i32>} : memref<2x8x128xbf16, #tpu.memory_space<vmem>>, vector<2x8x128xbf16>,
    %cst_31 = arith.constant dense<0.000000e+00> : vector<128xf32>
    %42 = vector.multi_reduction <add>, %31, %cst_31 [0] : vector<16x128xf32> to vector<128xf32>
    %43 = vector.shape_cast %42 : vector<128xf32> to vector<1x128xf32>
    %44 = vector.shape_cast %43 : vector<1x128xf32> to vector<1x1x128xf32>
    %c0_32 = arith.constant 0 : index
    %c0_33 = arith.constant 0 : index
    %c0_34 = arith.constant 0 : index
    %45 = vector.load %arg8[%c0_32, %c0_33, %c0_34] : memref<1x1x128xf32, #tpu.memory_space<vmem>>, vector<1x1x128xf32>
    tpu.vector_store %arg8[%c0_32, %c0_33, %c0_34], %44 {strides = array<i32>} : memref<1x1x128xf32, #tpu.memory_space<vmem>>, vector<1x1x128xf32>,
    %46 = arith.mulf %31, %31 : vector<16x128xf32>
    %cst_35 = arith.constant dense<0.000000e+00> : vector<128xf32>
    %47 = vector.multi_reduction <add>, %46, %cst_35 [0] : vector<16x128xf32> to vector<128xf32>
    %48 = vector.shape_cast %47 : vector<128xf32> to vector<1x128xf32>
    %49 = vector.shape_cast %48 : vector<1x128xf32> to vector<1x1x128xf32>
    %c0_36 = arith.constant 0 : index
    %c0_37 = arith.constant 0 : index
    %c0_38 = arith.constant 0 : index
    %50 = vector.load %arg9[%c0_36, %c0_37, %c0_38] : memref<1x1x128xf32, #tpu.memory_space<vmem>>, vector<1x1x128xf32>
    tpu.vector_store %arg9[%c0_36, %c0_37, %c0_38], %49 {strides = array<i32>} : memref<1x1x128xf32, #tpu.memory_space<vmem>>, vector<1x1x128xf32>,
    return
  }
  func.func @transform_0(%arg0: i32) -> (i32, i32, i32) {
    %c0_i32 = arith.constant 0 : i32
    %c0_i32_0 = arith.constant 0 : i32
    %c0_i32_1 = arith.constant 0 : i32
    return %arg0, %c0_i32, %c0_i32_0 : i32, i32, i32
  }
  func.func @transform_1(%arg0: i32) -> (i32, i32, i32) {
    %c0_i32 = arith.constant 0 : i32
    %c0_i32_0 = arith.constant 0 : i32
    %c0_i32_1 = arith.constant 0 : i32
    return %arg0, %c0_i32, %c0_i32_0 : i32, i32, i32
  }
  func.func @transform_2(%arg0: i32) -> (i32, i32, i32) {
    %c0_i32 = arith.constant 0 : i32
    %c0_i32_0 = arith.constant 0 : i32
    %c0_i32_1 = arith.constant 0 : i32
    return %arg0, %c0_i32, %c0_i32_0 : i32, i32, i32
  }
  func.func @transform_3(%arg0: i32) -> (i32, i32, i32) {
    %c0_i32 = arith.constant 0 : i32
    %c0_i32_0 = arith.constant 0 : i32
    %c0_i32_1 = arith.constant 0 : i32
    %c0_i32_2 = arith.constant 0 : i32
    return %c0_i32, %c0_i32_0, %c0_i32_1 : i32, i32, i32
  }
  func.func @transform_4(%arg0: i32) -> (i32, i32) {
    %c0_i32 = arith.constant 0 : i32
    %c0_i32_0 = arith.constant 0 : i32
    %c0_i32_1 = arith.constant 0 : i32
    return %c0_i32, %c0_i32_0 : i32, i32
  }
  func.func @transform_5(%arg0: i32) -> (i32, i32, i32) {
    %c0_i32 = arith.constant 0 : i32
    %c0_i32_0 = arith.constant 0 : i32
    %c0_i32_1 = arith.constant 0 : i32
    return %arg0, %c0_i32, %c0_i32_0 : i32, i32, i32
  }
  func.func @transform_6(%arg0: i32) -> (i32, i32, i32) {
    %c0_i32 = arith.constant 0 : i32
    %c0_i32_0 = arith.constant 0 : i32
    %c0_i32_1 = arith.constant 0 : i32
    return %arg0, %c0_i32, %c0_i32_0 : i32, i32, i32
  }
  func.func @transform_7(%arg0: i32) -> (i32, i32, i32) {
    %c0_i32 = arith.constant 0 : i32
    %c0_i32_0 = arith.constant 0 : i32
    %c0_i32_1 = arith.constant 0 : i32
    return %arg0, %c0_i32, %c0_i32_0 : i32, i32, i32
  }
  func.func @transform_8(%arg0: i32) -> (i32, i32, i32) {
    %c0_i32 = arith.constant 0 : i32
    %c0_i32_0 = arith.constant 0 : i32
    %c0_i32_1 = arith.constant 0 : i32
    return %arg0, %c0_i32, %c0_i32_0 : i32, i32, i32
  }
}

module attributes {stable_mosaic.version = 11 : i64} {
  func.func @_gru_xgate_kernel(%arg0: i32, %arg1: memref<2x8x256xbf16, #tpu.memory_space<vmem>>, %arg2: memref<3x256x384xbf16, #tpu.memory_space<vmem>>, %arg3: memref<2x8x384xbf16, #tpu.memory_space<vmem>>) attributes {dimension_semantics = [#tpu.dimension_semantics<parallel>], iteration_bounds = array<i64: 2>, scalar_prefetch = 0 : i64, scratch_operands = 0 : i64, tpu.core_type = #tpu.core_type<tc>, window_params = [{transform_indices = @transform_0, window_bounds = array<i64: 2, 8, 256>}, {pipeline_mode = #tpu.pipeline_mode<synchronous>, transform_indices = @transform_1, window_bounds = array<i64: 3, 256, 384>}, {transform_indices = @transform_2, window_bounds = array<i64: 2, 8, 384>}]} {
    %c0 = arith.constant 0 : index
    %c0_0 = arith.constant 0 : index
    %c0_1 = arith.constant 0 : index
    %0 = vector.load %arg1[%c0, %c0_0, %c0_1] : memref<2x8x256xbf16, #tpu.memory_space<vmem>>, vector<2x8x256xbf16>
    %1 = arith.extf %0 : vector<2x8x256xbf16> to vector<2x8x256xf32>
    %cst = arith.constant 0.000000e+00 : f32
    %2 = vector.broadcast %cst : f32 to vector<2x1x256xf32>
    %3 = vector.extract_strided_slice %1 {offsets = [0, 0, 0], sizes = [2, 7, 256], strides = [1, 1, 1]} : vector<2x8x256xf32> to vector<2x7x256xf32>
    %4 = tpu.concatenate %2, %3 in 1 : vector<2x1x256xf32>, vector<2x7x256xf32> -> vector<2x8x256xf32>
    %5 = vector.extract_strided_slice %1 {offsets = [0, 1, 0], sizes = [2, 7, 256], strides = [1, 1, 1]} : vector<2x8x256xf32> to vector<2x7x256xf32>
    %6 = tpu.concatenate %5, %2 in 1 : vector<2x7x256xf32>, vector<2x1x256xf32> -> vector<2x8x256xf32>
    %7 = vector.shape_cast %4 : vector<2x8x256xf32> to vector<16x256xf32>
    %8 = arith.truncf %7 : vector<16x256xf32> to vector<16x256xbf16>
    %c0_2 = arith.constant 0 : index
    %c0_3 = arith.constant 0 : index
    %c0_4 = arith.constant 0 : index
    %9 = vector.load %arg2[%c0_2, %c0_3, %c0_4] : memref<3x256x384xbf16, #tpu.memory_space<vmem>>, vector<1x256x384xbf16>
    %10 = vector.shape_cast %9 : vector<1x256x384xbf16> to vector<256x384xbf16>
    %cst_5 = arith.constant dense<0.000000e+00> : vector<16x384xf32>
    %11 = tpu.matmul %8, %10, %cst_5 {dimension_numbers = #tpu.dot_dimension_numbers<[1], [0], [0], [1], [0, 0, 1, 1], [], []>} : vector<16x256xbf16>, vector<256x384xbf16>, vector<16x384xf32> -> vector<16x384xf32>
    %12 = vector.shape_cast %1 : vector<2x8x256xf32> to vector<16x256xf32>
    %13 = arith.truncf %12 : vector<16x256xf32> to vector<16x256xbf16>
    %c1 = arith.constant 1 : index
    %c0_6 = arith.constant 0 : index
    %c0_7 = arith.constant 0 : index
    %14 = vector.load %arg2[%c1, %c0_6, %c0_7] : memref<3x256x384xbf16, #tpu.memory_space<vmem>>, vector<1x256x384xbf16>
    %15 = vector.shape_cast %14 : vector<1x256x384xbf16> to vector<256x384xbf16>
    %cst_8 = arith.constant dense<0.000000e+00> : vector<16x384xf32>
    %16 = tpu.matmul %13, %15, %cst_8 {dimension_numbers = #tpu.dot_dimension_numbers<[1], [0], [0], [1], [0, 0, 1, 1], [], []>} : vector<16x256xbf16>, vector<256x384xbf16>, vector<16x384xf32> -> vector<16x384xf32>
    %17 = arith.addf %11, %16 : vector<16x384xf32>
    %18 = vector.shape_cast %6 : vector<2x8x256xf32> to vector<16x256xf32>
    %19 = arith.truncf %18 : vector<16x256xf32> to vector<16x256xbf16>
    %c2 = arith.constant 2 : index
    %c0_9 = arith.constant 0 : index
    %c0_10 = arith.constant 0 : index
    %20 = vector.load %arg2[%c2, %c0_9, %c0_10] : memref<3x256x384xbf16, #tpu.memory_space<vmem>>, vector<1x256x384xbf16>
    %21 = vector.shape_cast %20 : vector<1x256x384xbf16> to vector<256x384xbf16>
    %cst_11 = arith.constant dense<0.000000e+00> : vector<16x384xf32>
    %22 = tpu.matmul %19, %21, %cst_11 {dimension_numbers = #tpu.dot_dimension_numbers<[1], [0], [0], [1], [0, 0, 1, 1], [], []>} : vector<16x256xbf16>, vector<256x384xbf16>, vector<16x384xf32> -> vector<16x384xf32>
    %23 = arith.addf %17, %22 : vector<16x384xf32>
    %24 = vector.shape_cast %23 : vector<16x384xf32> to vector<2x8x384xf32>
    %25 = arith.truncf %24 : vector<2x8x384xf32> to vector<2x8x384xbf16>
    %c0_12 = arith.constant 0 : index
    %c0_13 = arith.constant 0 : index
    %c0_14 = arith.constant 0 : index
    %26 = vector.load %arg3[%c0_12, %c0_13, %c0_14] : memref<2x8x384xbf16, #tpu.memory_space<vmem>>, vector<2x8x384xbf16>
    tpu.vector_store %arg3[%c0_12, %c0_13, %c0_14], %25 {strides = array<i32>} : memref<2x8x384xbf16, #tpu.memory_space<vmem>>, vector<2x8x384xbf16>,
    return
  }
  func.func @transform_0(%arg0: i32) -> (i32, i32, i32) {
    %c0_i32 = arith.constant 0 : i32
    %c0_i32_0 = arith.constant 0 : i32
    %c0_i32_1 = arith.constant 0 : i32
    return %arg0, %c0_i32, %c0_i32_0 : i32, i32, i32
  }
  func.func @transform_1(%arg0: i32) -> (i32, i32, i32) {
    %c0_i32 = arith.constant 0 : i32
    %c0_i32_0 = arith.constant 0 : i32
    %c0_i32_1 = arith.constant 0 : i32
    %c0_i32_2 = arith.constant 0 : i32
    return %c0_i32, %c0_i32_0, %c0_i32_1 : i32, i32, i32
  }
  func.func @transform_2(%arg0: i32) -> (i32, i32, i32) {
    %c0_i32 = arith.constant 0 : i32
    %c0_i32_0 = arith.constant 0 : i32
    %c0_i32_1 = arith.constant 0 : i32
    return %arg0, %c0_i32, %c0_i32_0 : i32, i32, i32
  }
}

module attributes {stable_mosaic.version = 11 : i64} {
  func.func @_conv_mid_kernel(%arg0: i32, %arg1: memref<2x8x128xbf16, #tpu.memory_space<vmem>>, %arg2: memref<2x1x128xf32, #tpu.memory_space<vmem>>, %arg3: memref<2x1x128xf32, #tpu.memory_space<vmem>>, %arg4: memref<3x128x128xbf16, #tpu.memory_space<vmem>>, %arg5: memref<2x8x128xbf16, #tpu.memory_space<vmem>>, %arg6: memref<1x1x128xf32, #tpu.memory_space<vmem>>, %arg7: memref<1x1x128xf32, #tpu.memory_space<vmem>>) attributes {dimension_semantics = [#tpu.dimension_semantics<parallel>], iteration_bounds = array<i64: 2>, scalar_prefetch = 0 : i64, scratch_operands = 0 : i64, tpu.core_type = #tpu.core_type<tc>, window_params = [{transform_indices = @transform_0, window_bounds = array<i64: 2, 8, 128>}, {transform_indices = @transform_1, window_bounds = array<i64: 2, 1, 128>}, {transform_indices = @transform_2, window_bounds = array<i64: 2, 1, 128>}, {pipeline_mode = #tpu.pipeline_mode<synchronous>, transform_indices = @transform_3, window_bounds = array<i64: 3, 128, 128>}, {transform_indices = @transform_4, window_bounds = array<i64: 2, 8, 128>}, {transform_indices = @transform_5, window_bounds = array<i64: 1, 1, 128>}, {transform_indices = @transform_6, window_bounds = array<i64: 1, 1, 128>}]} {
    %c0 = arith.constant 0 : index
    %c0_0 = arith.constant 0 : index
    %c0_1 = arith.constant 0 : index
    %0 = vector.load %arg1[%c0, %c0_0, %c0_1] : memref<2x8x128xbf16, #tpu.memory_space<vmem>>, vector<2x8x128xbf16>
    %1 = arith.extf %0 : vector<2x8x128xbf16> to vector<2x8x128xf32>
    %c0_2 = arith.constant 0 : index
    %c0_3 = arith.constant 0 : index
    %c0_4 = arith.constant 0 : index
    %2 = vector.load %arg2[%c0_2, %c0_3, %c0_4] : memref<2x1x128xf32, #tpu.memory_space<vmem>>, vector<2x1x128xf32>
    %3 = vector.broadcast %2 : vector<2x1x128xf32> to vector<2x8x128xf32>
    %4 = arith.mulf %1, %3 : vector<2x8x128xf32>
    %c0_5 = arith.constant 0 : index
    %c0_6 = arith.constant 0 : index
    %c0_7 = arith.constant 0 : index
    %5 = vector.load %arg3[%c0_5, %c0_6, %c0_7] : memref<2x1x128xf32, #tpu.memory_space<vmem>>, vector<2x1x128xf32>
    %6 = vector.broadcast %5 : vector<2x1x128xf32> to vector<2x8x128xf32>
    %7 = arith.addf %4, %6 : vector<2x8x128xf32>
    %cst = arith.constant 0.000000e+00 : f32
    %8 = vector.broadcast %cst : f32 to vector<2x8x128xf32>
    %9 = arith.maximumf %7, %8 : vector<2x8x128xf32>
    %cst_8 = arith.constant 0.000000e+00 : f32
    %10 = vector.broadcast %cst_8 : f32 to vector<2x1x128xf32>
    %11 = vector.extract_strided_slice %9 {offsets = [0, 0, 0], sizes = [2, 7, 128], strides = [1, 1, 1]} : vector<2x8x128xf32> to vector<2x7x128xf32>
    %12 = tpu.concatenate %10, %11 in 1 : vector<2x1x128xf32>, vector<2x7x128xf32> -> vector<2x8x128xf32>
    %13 = vector.extract_strided_slice %9 {offsets = [0, 1, 0], sizes = [2, 7, 128], strides = [1, 1, 1]} : vector<2x8x128xf32> to vector<2x7x128xf32>
    %14 = tpu.concatenate %13, %10 in 1 : vector<2x7x128xf32>, vector<2x1x128xf32> -> vector<2x8x128xf32>
    %15 = vector.shape_cast %12 : vector<2x8x128xf32> to vector<16x128xf32>
    %16 = arith.truncf %15 : vector<16x128xf32> to vector<16x128xbf16>
    %c0_9 = arith.constant 0 : index
    %c0_10 = arith.constant 0 : index
    %c0_11 = arith.constant 0 : index
    %17 = vector.load %arg4[%c0_9, %c0_10, %c0_11] : memref<3x128x128xbf16, #tpu.memory_space<vmem>>, vector<1x128x128xbf16>
    %18 = vector.shape_cast %17 : vector<1x128x128xbf16> to vector<128x128xbf16>
    %cst_12 = arith.constant dense<0.000000e+00> : vector<16x128xf32>
    %19 = tpu.matmul %16, %18, %cst_12 {dimension_numbers = #tpu.dot_dimension_numbers<[1], [0], [0], [1], [0, 0, 1, 1], [], []>} : vector<16x128xbf16>, vector<128x128xbf16>, vector<16x128xf32> -> vector<16x128xf32>
    %20 = vector.shape_cast %9 : vector<2x8x128xf32> to vector<16x128xf32>
    %21 = arith.truncf %20 : vector<16x128xf32> to vector<16x128xbf16>
    %c1 = arith.constant 1 : index
    %c0_13 = arith.constant 0 : index
    %c0_14 = arith.constant 0 : index
    %22 = vector.load %arg4[%c1, %c0_13, %c0_14] : memref<3x128x128xbf16, #tpu.memory_space<vmem>>, vector<1x128x128xbf16>
    %23 = vector.shape_cast %22 : vector<1x128x128xbf16> to vector<128x128xbf16>
    %cst_15 = arith.constant dense<0.000000e+00> : vector<16x128xf32>
    %24 = tpu.matmul %21, %23, %cst_15 {dimension_numbers = #tpu.dot_dimension_numbers<[1], [0], [0], [1], [0, 0, 1, 1], [], []>} : vector<16x128xbf16>, vector<128x128xbf16>, vector<16x128xf32> -> vector<16x128xf32>
    %25 = arith.addf %19, %24 : vector<16x128xf32>
    %26 = vector.shape_cast %14 : vector<2x8x128xf32> to vector<16x128xf32>
    %27 = arith.truncf %26 : vector<16x128xf32> to vector<16x128xbf16>
    %c2 = arith.constant 2 : index
    %c0_16 = arith.constant 0 : index
    %c0_17 = arith.constant 0 : index
    %28 = vector.load %arg4[%c2, %c0_16, %c0_17] : memref<3x128x128xbf16, #tpu.memory_space<vmem>>, vector<1x128x128xbf16>
    %29 = vector.shape_cast %28 : vector<1x128x128xbf16> to vector<128x128xbf16>
    %cst_18 = arith.constant dense<0.000000e+00> : vector<16x128xf32>
    %30 = tpu.matmul %27, %29, %cst_18 {dimension_numbers = #tpu.dot_dimension_numbers<[1], [0], [0], [1], [0, 0, 1, 1], [], []>} : vector<16x128xbf16>, vector<128x128xbf16>, vector<16x128xf32> -> vector<16x128xf32>
    %31 = arith.addf %25, %30 : vector<16x128xf32>
    %32 = vector.shape_cast %31 : vector<16x128xf32> to vector<2x8x128xf32>
    %33 = arith.truncf %32 : vector<2x8x128xf32> to vector<2x8x128xbf16>
    %c0_19 = arith.constant 0 : index
    %c0_20 = arith.constant 0 : index
    %c0_21 = arith.constant 0 : index
    %34 = vector.load %arg5[%c0_19, %c0_20, %c0_21] : memref<2x8x128xbf16, #tpu.memory_space<vmem>>, vector<2x8x128xbf16>
    tpu.vector_store %arg5[%c0_19, %c0_20, %c0_21], %33 {strides = array<i32>} : memref<2x8x128xbf16, #tpu.memory_space<vmem>>, vector<2x8x128xbf16>,
    %cst_22 = arith.constant dense<0.000000e+00> : vector<128xf32>
    %35 = vector.multi_reduction <add>, %31, %cst_22 [0] : vector<16x128xf32> to vector<128xf32>
    %36 = vector.shape_cast %35 : vector<128xf32> to vector<1x128xf32>
    %37 = vector.shape_cast %36 : vector<1x128xf32> to vector<1x1x128xf32>
    %c0_23 = arith.constant 0 : index
    %c0_24 = arith.constant 0 : index
    %c0_25 = arith.constant 0 : index
    %38 = vector.load %arg6[%c0_23, %c0_24, %c0_25] : memref<1x1x128xf32, #tpu.memory_space<vmem>>, vector<1x1x128xf32>
    tpu.vector_store %arg6[%c0_23, %c0_24, %c0_25], %37 {strides = array<i32>} : memref<1x1x128xf32, #tpu.memory_space<vmem>>, vector<1x1x128xf32>,
    %39 = arith.mulf %31, %31 : vector<16x128xf32>
    %cst_26 = arith.constant dense<0.000000e+00> : vector<128xf32>
    %40 = vector.multi_reduction <add>, %39, %cst_26 [0] : vector<16x128xf32> to vector<128xf32>
    %41 = vector.shape_cast %40 : vector<128xf32> to vector<1x128xf32>
    %42 = vector.shape_cast %41 : vector<1x128xf32> to vector<1x1x128xf32>
    %c0_27 = arith.constant 0 : index
    %c0_28 = arith.constant 0 : index
    %c0_29 = arith.constant 0 : index
    %43 = vector.load %arg7[%c0_27, %c0_28, %c0_29] : memref<1x1x128xf32, #tpu.memory_space<vmem>>, vector<1x1x128xf32>
    tpu.vector_store %arg7[%c0_27, %c0_28, %c0_29], %42 {strides = array<i32>} : memref<1x1x128xf32, #tpu.memory_space<vmem>>, vector<1x1x128xf32>,
    return
  }
  func.func @transform_0(%arg0: i32) -> (i32, i32, i32) {
    %c0_i32 = arith.constant 0 : i32
    %c0_i32_0 = arith.constant 0 : i32
    %c0_i32_1 = arith.constant 0 : i32
    return %arg0, %c0_i32, %c0_i32_0 : i32, i32, i32
  }
  func.func @transform_1(%arg0: i32) -> (i32, i32, i32) {
    %c0_i32 = arith.constant 0 : i32
    %c0_i32_0 = arith.constant 0 : i32
    %c0_i32_1 = arith.constant 0 : i32
    return %arg0, %c0_i32, %c0_i32_0 : i32, i32, i32
  }
  func.func @transform_2(%arg0: i32) -> (i32, i32, i32) {
    %c0_i32 = arith.constant 0 : i32
    %c0_i32_0 = arith.constant 0 : i32
    %c0_i32_1 = arith.constant 0 : i32
    return %arg0, %c0_i32, %c0_i32_0 : i32, i32, i32
  }
  func.func @transform_3(%arg0: i32) -> (i32, i32, i32) {
    %c0_i32 = arith.constant 0 : i32
    %c0_i32_0 = arith.constant 0 : i32
    %c0_i32_1 = arith.constant 0 : i32
    %c0_i32_2 = arith.constant 0 : i32
    return %c0_i32, %c0_i32_0, %c0_i32_1 : i32, i32, i32
  }
  func.func @transform_4(%arg0: i32) -> (i32, i32, i32) {
    %c0_i32 = arith.constant 0 : i32
    %c0_i32_0 = arith.constant 0 : i32
    %c0_i32_1 = arith.constant 0 : i32
    return %arg0, %c0_i32, %c0_i32_0 : i32, i32, i32
  }
  func.func @transform_5(%arg0: i32) -> (i32, i32, i32) {
    %c0_i32 = arith.constant 0 : i32
    %c0_i32_0 = arith.constant 0 : i32
    %c0_i32_1 = arith.constant 0 : i32
    return %arg0, %c0_i32, %c0_i32_0 : i32, i32, i32
  }
  func.func @transform_6(%arg0: i32) -> (i32, i32, i32) {
    %c0_i32 = arith.constant 0 : i32
    %c0_i32_0 = arith.constant 0 : i32
    %c0_i32_1 = arith.constant 0 : i32
    return %arg0, %c0_i32, %c0_i32_0 : i32, i32, i32
  }
}

module attributes {stable_mosaic.version = 11 : i64} {
  func.func @_conv_last_kernel(%arg0: i32, %arg1: memref<2x8x128xbf16, #tpu.memory_space<vmem>>, %arg2: memref<2x1x128xf32, #tpu.memory_space<vmem>>, %arg3: memref<2x1x128xf32, #tpu.memory_space<vmem>>, %arg4: memref<3x128x128xbf16, #tpu.memory_space<vmem>>, %arg5: memref<2x8x128xbf16, #tpu.memory_space<vmem>>, %arg6: memref<2x8x128xbf16, #tpu.memory_space<vmem>>) attributes {dimension_semantics = [#tpu.dimension_semantics<parallel>], iteration_bounds = array<i64: 2>, scalar_prefetch = 0 : i64, scratch_operands = 0 : i64, tpu.core_type = #tpu.core_type<tc>, window_params = [{transform_indices = @transform_0, window_bounds = array<i64: 2, 8, 128>}, {transform_indices = @transform_1, window_bounds = array<i64: 2, 1, 128>}, {transform_indices = @transform_2, window_bounds = array<i64: 2, 1, 128>}, {pipeline_mode = #tpu.pipeline_mode<synchronous>, transform_indices = @transform_3, window_bounds = array<i64: 3, 128, 128>}, {transform_indices = @transform_4, window_bounds = array<i64: 2, 8, 128>}, {transform_indices = @transform_5, window_bounds = array<i64: 2, 8, 128>}]} {
    %c0 = arith.constant 0 : index
    %c0_0 = arith.constant 0 : index
    %c0_1 = arith.constant 0 : index
    %0 = vector.load %arg1[%c0, %c0_0, %c0_1] : memref<2x8x128xbf16, #tpu.memory_space<vmem>>, vector<2x8x128xbf16>
    %1 = arith.extf %0 : vector<2x8x128xbf16> to vector<2x8x128xf32>
    %c0_2 = arith.constant 0 : index
    %c0_3 = arith.constant 0 : index
    %c0_4 = arith.constant 0 : index
    %2 = vector.load %arg2[%c0_2, %c0_3, %c0_4] : memref<2x1x128xf32, #tpu.memory_space<vmem>>, vector<2x1x128xf32>
    %3 = vector.broadcast %2 : vector<2x1x128xf32> to vector<2x8x128xf32>
    %4 = arith.mulf %1, %3 : vector<2x8x128xf32>
    %c0_5 = arith.constant 0 : index
    %c0_6 = arith.constant 0 : index
    %c0_7 = arith.constant 0 : index
    %5 = vector.load %arg3[%c0_5, %c0_6, %c0_7] : memref<2x1x128xf32, #tpu.memory_space<vmem>>, vector<2x1x128xf32>
    %6 = vector.broadcast %5 : vector<2x1x128xf32> to vector<2x8x128xf32>
    %7 = arith.addf %4, %6 : vector<2x8x128xf32>
    %cst = arith.constant 0.000000e+00 : f32
    %8 = vector.broadcast %cst : f32 to vector<2x8x128xf32>
    %9 = arith.maximumf %7, %8 : vector<2x8x128xf32>
    %cst_8 = arith.constant 0.000000e+00 : f32
    %10 = vector.broadcast %cst_8 : f32 to vector<2x1x128xf32>
    %11 = vector.extract_strided_slice %9 {offsets = [0, 0, 0], sizes = [2, 7, 128], strides = [1, 1, 1]} : vector<2x8x128xf32> to vector<2x7x128xf32>
    %12 = tpu.concatenate %10, %11 in 1 : vector<2x1x128xf32>, vector<2x7x128xf32> -> vector<2x8x128xf32>
    %13 = vector.extract_strided_slice %9 {offsets = [0, 1, 0], sizes = [2, 7, 128], strides = [1, 1, 1]} : vector<2x8x128xf32> to vector<2x7x128xf32>
    %14 = tpu.concatenate %13, %10 in 1 : vector<2x7x128xf32>, vector<2x1x128xf32> -> vector<2x8x128xf32>
    %15 = vector.shape_cast %12 : vector<2x8x128xf32> to vector<16x128xf32>
    %16 = arith.truncf %15 : vector<16x128xf32> to vector<16x128xbf16>
    %c0_9 = arith.constant 0 : index
    %c0_10 = arith.constant 0 : index
    %c0_11 = arith.constant 0 : index
    %17 = vector.load %arg4[%c0_9, %c0_10, %c0_11] : memref<3x128x128xbf16, #tpu.memory_space<vmem>>, vector<1x128x128xbf16>
    %18 = vector.shape_cast %17 : vector<1x128x128xbf16> to vector<128x128xbf16>
    %cst_12 = arith.constant dense<0.000000e+00> : vector<16x128xf32>
    %19 = tpu.matmul %16, %18, %cst_12 {dimension_numbers = #tpu.dot_dimension_numbers<[1], [0], [0], [1], [0, 0, 1, 1], [], []>} : vector<16x128xbf16>, vector<128x128xbf16>, vector<16x128xf32> -> vector<16x128xf32>
    %20 = vector.shape_cast %9 : vector<2x8x128xf32> to vector<16x128xf32>
    %21 = arith.truncf %20 : vector<16x128xf32> to vector<16x128xbf16>
    %c1 = arith.constant 1 : index
    %c0_13 = arith.constant 0 : index
    %c0_14 = arith.constant 0 : index
    %22 = vector.load %arg4[%c1, %c0_13, %c0_14] : memref<3x128x128xbf16, #tpu.memory_space<vmem>>, vector<1x128x128xbf16>
    %23 = vector.shape_cast %22 : vector<1x128x128xbf16> to vector<128x128xbf16>
    %cst_15 = arith.constant dense<0.000000e+00> : vector<16x128xf32>
    %24 = tpu.matmul %21, %23, %cst_15 {dimension_numbers = #tpu.dot_dimension_numbers<[1], [0], [0], [1], [0, 0, 1, 1], [], []>} : vector<16x128xbf16>, vector<128x128xbf16>, vector<16x128xf32> -> vector<16x128xf32>
    %25 = arith.addf %19, %24 : vector<16x128xf32>
    %26 = vector.shape_cast %14 : vector<2x8x128xf32> to vector<16x128xf32>
    %27 = arith.truncf %26 : vector<16x128xf32> to vector<16x128xbf16>
    %c2 = arith.constant 2 : index
    %c0_16 = arith.constant 0 : index
    %c0_17 = arith.constant 0 : index
    %28 = vector.load %arg4[%c2, %c0_16, %c0_17] : memref<3x128x128xbf16, #tpu.memory_space<vmem>>, vector<1x128x128xbf16>
    %29 = vector.shape_cast %28 : vector<1x128x128xbf16> to vector<128x128xbf16>
    %cst_18 = arith.constant dense<0.000000e+00> : vector<16x128xf32>
    %30 = tpu.matmul %27, %29, %cst_18 {dimension_numbers = #tpu.dot_dimension_numbers<[1], [0], [0], [1], [0, 0, 1, 1], [], []>} : vector<16x128xbf16>, vector<128x128xbf16>, vector<16x128xf32> -> vector<16x128xf32>
    %31 = arith.addf %25, %30 : vector<16x128xf32>
    %c0_19 = arith.constant 0 : index
    %c0_20 = arith.constant 0 : index
    %c0_21 = arith.constant 0 : index
    %32 = vector.load %arg5[%c0_19, %c0_20, %c0_21] : memref<2x8x128xbf16, #tpu.memory_space<vmem>>, vector<2x8x128xbf16>
    %33 = arith.extf %32 : vector<2x8x128xbf16> to vector<2x8x128xf32>
    %34 = vector.shape_cast %33 : vector<2x8x128xf32> to vector<16x128xf32>
    %35 = arith.addf %31, %34 : vector<16x128xf32>
    %cst_22 = arith.constant 0.000000e+00 : f32
    %36 = vector.broadcast %cst_22 : f32 to vector<16x128xf32>
    %37 = arith.maximumf %35, %36 : vector<16x128xf32>
    %38 = vector.shape_cast %37 : vector<16x128xf32> to vector<2x8x128xf32>
    %39 = arith.truncf %38 : vector<2x8x128xf32> to vector<2x8x128xbf16>
    %c0_23 = arith.constant 0 : index
    %c0_24 = arith.constant 0 : index
    %c0_25 = arith.constant 0 : index
    %40 = vector.load %arg6[%c0_23, %c0_24, %c0_25] : memref<2x8x128xbf16, #tpu.memory_space<vmem>>, vector<2x8x128xbf16>
    tpu.vector_store %arg6[%c0_23, %c0_24, %c0_25], %39 {strides = array<i32>} : memref<2x8x128xbf16, #tpu.memory_space<vmem>>, vector<2x8x128xbf16>,
    return
  }
  func.func @transform_0(%arg0: i32) -> (i32, i32, i32) {
    %c0_i32 = arith.constant 0 : i32
    %c0_i32_0 = arith.constant 0 : i32
    %c0_i32_1 = arith.constant 0 : i32
    return %arg0, %c0_i32, %c0_i32_0 : i32, i32, i32
  }
  func.func @transform_1(%arg0: i32) -> (i32, i32, i32) {
    %c0_i32 = arith.constant 0 : i32
    %c0_i32_0 = arith.constant 0 : i32
    %c0_i32_1 = arith.constant 0 : i32
    return %arg0, %c0_i32, %c0_i32_0 : i32, i32, i32
  }
  func.func @transform_2(%arg0: i32) -> (i32, i32, i32) {
    %c0_i32 = arith.constant 0 : i32
    %c0_i32_0 = arith.constant 0 : i32
    %c0_i32_1 = arith.constant 0 : i32
    return %arg0, %c0_i32, %c0_i32_0 : i32, i32, i32
  }
  func.func @transform_3(%arg0: i32) -> (i32, i32, i32) {
    %c0_i32 = arith.constant 0 : i32
    %c0_i32_0 = arith.constant 0 : i32
    %c0_i32_1 = arith.constant 0 : i32
    %c0_i32_2 = arith.constant 0 : i32
    return %c0_i32, %c0_i32_0, %c0_i32_1 : i32, i32, i32
  }
  func.func @transform_4(%arg0: i32) -> (i32, i32, i32) {
    %c0_i32 = arith.constant 0 : i32
    %c0_i32_0 = arith.constant 0 : i32
    %c0_i32_1 = arith.constant 0 : i32
    return %arg0, %c0_i32, %c0_i32_0 : i32, i32, i32
  }
  func.func @transform_5(%arg0: i32) -> (i32, i32, i32) {
    %c0_i32 = arith.constant 0 : i32
    %c0_i32_0 = arith.constant 0 : i32
    %c0_i32_1 = arith.constant 0 : i32
    return %arg0, %c0_i32, %c0_i32_0 : i32, i32, i32
  }
}

</mosaic_0001>

<bundles_post_ra>
// kernel: generator_forward.10
= control target key start
LH: loop header
LB: loop body
LE: loop exit
PB: predicated region body
PF: predicated region fallthrough
CT: control target
= control target key end

     0   :  { %7 = vsyncpa [#allocation3], 0  ;;  %s940_s9 = smov 0   ;;  %s997_s0 = inlined_call_operand.vmem [shape: bf16[4,8,64], index: 0, kind: input, shape index: {}]   ;;  %s998_s1 = inlined_call_operand.hbm [shape: bf16[3,64,384], index: 1, kind: input, shape index: {}]   ;;  %s999_s2 = inlined_call_operand.vmem [shape: bf16[4,8,384], index: 2, kind: output, shape index: {}]  }
   0x1 LB: > { %s102_s12 = sshll.u32 %s998_s1, 4  ;;  %s652_s13 = sadd.s32 4294967295, %s920_s9   ;;  %s920_s9 = sphi %s940_s9, %s13_s9   ;;  %s103_s12 = int_to_ptr.hbm [resolvable:$true] %s102_s12 }
   0x2   : > { %p654_p0 = scmp.ge.s32.totalorder %s920_s9, 1  ;;  %p91_p1 = scmp.lt.s32.totalorder %s920_s9, 3 }
   0x3   : > { %p867_p2 = scmp.eq.s32.totalorder %s652_s13, 0  ;;  %s922_s14 = smov [#allocation2]  }
   0x4   : > { %p92_p3 = pnand %p654_p0, %p91_p1  ;;  %s104_s15 = sshll.u32 %s922_s14, 4  ;;  %s105_s15 = int_to_ptr.vmem [resolvable:$true] %s104_s15 }
   0x5   : > { %s923_s16 = smov 192   ;;  %s924_s17 = smov 12  }
   0x6   : > { %p863_p4 = pneg %p92_p3  ;;  %129 = sbr.rel (%p92_p3) target bundleno = 202 (0xca), region = 28 }
   0x8   : > { %p864_p5 = pnand %p867_p2, %p863_p4 }
   0xa   : > { %866 = dma.hbm_to_vmem [thread:$0]  (!%p864_p5), %s103_s12, 4608, %s105_s15, [#allocation3], %s923_s16, %s923_s16, %s924_s17  }
   0xb   : > { %915 = dma.done.wait (%p867_p2), [#allocation3], 4608  }
   0xc   : > { %917 = vsyncadd (%p867_p2), [#allocation3], 4294962688  ;;  %s659_s18 = sshll.u32 %s652_s13, 1  ;;  %v701_v0 = vld [vmem:[#allocation2 + $0xa8] sm:$0xf]  ;;  %vm286_vm0 = vcmask 523264  }
   0xd   : > { %p154_p6 = scmp.lt.s32.totalorder %s659_s18, 3  ;;  %v840_v1 = vld [vmem:[#allocation2 + $0xb0] sm:$0xf0]  ;;  %v839_v2 = vld [vmem:[#allocation2 + $0xac] sm:$0xf]  ;;  %vm177_vm1 = vcmask 1040384  }
   0xe   : > { %v702_v3 = vor.u32 %v840_v1, %v701_v0  ;;  %v703_v4 = vld [vmem:[#allocation2 + $0xb4] sm:$0xf0]  ;;  %v709_v5 = vld [vmem:[#allocation2 + $0xb0] sm:$0xf]  ;;  %v841_v6 = vld [vmem:[#allocation2 + $0xb8] sm:$0xf0] }
   0xf   : > { %s1001_s18 = smov (!%p154_p6, %s659_s18), 3  ;;  %v706_v7 = vor.u32 %v839_v2, %v703_v4  ;;  %v710_v8 = vor.u32 %v841_v6, %v709_v5  ;;  %v752_v9 = vld [vmem:[#allocation2 + $0x48] sm:$0xf]  ;;  %v828_v10 = vld [vmem:[#allocation2 + $0x50] sm:$0xf0]  ;;  %vm184_vm2 = vcmask 1046528  }
  0x10   : > { %s660_s19 = sshll.u32 %s1001_s18, 2  ;;  %v689_v11 = vld [vmem:[#allocation2 + $0x90] sm:$0xf]  ;;  %294 = vmatpush.bf16.msra.mxu0 %v702_v3  ;;  %v753_v12 = vor.u32 %v828_v10, %v752_v9  ;;  %v837_v13 = vld [vmem:[#allocation2 + $0x98] sm:$0xf0]  ;;  %s858_s23 = smul.u32 12, %s1001_s18 }
  0x11   : > { %v836_v14 = vld [vmem:[#allocation2 + $0x94] sm:$0xf]  ;;  %v691_v15 = vld [vmem:[#allocation2 + $0x9c] sm:$0xf0]  ;;  %308 = vmatpush.bf16.msra.mxu1 %v706_v7  ;;  %322 = vmatpush.bf16.msra.mxu2 %v710_v8  ;;  %v690_v16 = vor.u32 %v837_v13, %v689_v11  ;;  %v697_v18 = vld [vmem:[#allocation2 + $0x98] sm:$0xf]  ;;  %s157_s22 = scalar_lea.vmem %s997_s0, %s660_s19 }
  0x12   : > { %v694_v17 = vor.u32 %v836_v14, %v691_v15  ;;  %v838_v19 = vld [vmem:[#allocation2 + $0xa0] sm:$0xf0]  ;;  %v740_v20 = vld [vmem:[#allocation2 + $0x30] sm:$0xf]  ;;  %403 = vmatpush.bf16.msra.mxu3 %v753_v12  ;;  %v825_v22 = vld [vmem:[#allocation2 + $0x38] sm:$0xf0]  ;;  %s164_s26 = scalar_lea.vmem %s999_s2, %s858_s23 }
  0x13   : > { %v698_v21 = vor.u32 %v838_v19, %v697_v18  ;;  %v677_v23 = vld [vmem:[#allocation2 + $0x78] sm:$0xf]  ;;  %v834_v24 = vld [vmem:[#allocation2 + $0x80] sm:$0xf0]  ;;  %v741_v25 = vor.u32 %v825_v22, %v740_v20  ;;  %v833_v26 = vld [vmem:[#allocation2 + $0x7c] sm:$0xf] }
  0x14   : > { %v679_v27 = vld [vmem:[#allocation2 + $0x84] sm:$0xf0]  ;;  %v685_v28 = vld [vmem:[#allocation2 + $0x80] sm:$0xf]  ;;  %295 = vmatpush.bf16.msra.mxu0 %v690_v16  ;;  %v678_v29 = vor.u32 %v834_v24, %v677_v23  ;;  %v835_v30 = vld [vmem:[#allocation2 + $0x88] sm:$0xf0] }
  0x15   : > { %v728_v31 = vld [vmem:[#allocation2 + $0x18] sm:$0xf]  ;;  %v822_v32 = vld [vmem:[#allocation2 + $0x20] sm:$0xf0]  ;;  %309 = vmatpush.bf16.msra.mxu1 %v694_v17  ;;  %323 = vmatpush.bf16.msra.mxu2 %v698_v21  ;;  %v682_v33 = vor.u32 %v833_v26, %v679_v27  ;;  %v686_v34 = vor.u32 %v835_v30, %v685_v28  ;;  %v665_v35 = vld [vmem:[#allocation2 + $0x60] sm:$0xf] }
  0x16   : > { %v831_v36 = vld [vmem:[#allocation2 + $0x68] sm:$0xf0]  ;;  %v830_v37 = vld [vmem:[#allocation2 + $0x64] sm:$0xf]  ;;  %404 = vmatpush.bf16.msra.mxu3 %v741_v25  ;;  %v729_v38 = vor.u32 %v822_v32, %v728_v31  ;;  %v667_v39 = vld [vmem:[#allocation2 + $0x6c] sm:$0xf0] }
  0x17   : > { %v673_v40 = vld [vmem:[#allocation2 + $0x68] sm:$0xf]  ;;  %v832_v41 = vld [vmem:[#allocation2 + $0x70] sm:$0xf0]  ;;  %v716_v42 = vld [vmem:[#allocation2] sm:$0xf]  ;;  %v666_v45 = vor.u32 %v831_v36, %v665_v35  ;;  %v670_v51 = vor.u32 %v830_v37, %v667_v39 }
  0x18   : > { %v819_v43 = vld [vmem:[#allocation2 + $0x8] sm:$0xf0]  ;;  %v959_v44 = vld [vmem:[%s157_s22] sm:$0xff]   ;;  %296 = vmatpush.bf16.msra.mxu0 %v678_v29  ;;  %v754_v49 = vld [vmem:[#allocation2 + $0x54] sm:$0xf0]  ;;  %v674_v52 = vor.u32 %v832_v41, %v673_v40 }
  0x19   : > { %v856_v46 = vunpack.c.l.bf16 %v959_v44  ;;  %v857_v47 = vunpack.c.h.bf16 %v959_v44  ;;  %v827_v48 = vld [vmem:[#allocation2 + $0x4c] sm:$0xf]  ;;  %v760_v50 = vld [vmem:[#allocation2 + $0x50] sm:$0xf]  ;;  %310 = vmatpush.bf16.msra.mxu1 %v682_v33  ;;  %324 = vmatpush.bf16.msra.mxu2 %v686_v34  ;;  %v829_v53 = vld [vmem:[#allocation2 + $0x58] sm:$0xf0]  ;;  %v717_v55 = vor.u32 %v819_v43, %v716_v42 }
  0x1a   : > { %v803_v54 = vld [vmem:[#allocation2 + $0x108] sm:$0xf]  ;;  %405 = vmatpush.bf16.msra.mxu3 %v729_v38  ;;  %v757_v58 = vor.u32 %v827_v48, %v754_v49  ;;  %v852_v59 = vld [vmem:[#allocation2 + $0x110] sm:$0xf0]  ;;  %v851_v60 = vld [vmem:[#allocation2 + $0x10c] sm:$0xf]  ;;  %v761_v61 = vor.u32 %v829_v53, %v760_v50 }
  0x1b   : > { %v173_v56 = vrot.slane %v856_v46, 7  ;;  %v174_v57 = vrot.slane %v857_v47, 7  ;;  %v805_v62 = vld [vmem:[#allocation2 + $0x114] sm:$0xf0]  ;;  %v824_v63 = vld [vmem:[#allocation2 + $0x34] sm:$0xf]  ;;  %v804_v6 = vor.u32 %v852_v59, %v803_v54 }
  0x1c   : > { %v742_v0 = vld [vmem:[#allocation2 + $0x3c] sm:$0xf0]  ;;  %297 = vmatpush.bf16.msra.mxu0 %v666_v45  ;;  %v748_v3 = vld [vmem:[#allocation2 + $0x38] sm:$0xf]  ;;  %v826_v4 = vld [vmem:[#allocation2 + $0x40] sm:$0xf0]  ;;  %v808_v7 = vor.u32 %v851_v60, %v805_v62 }
  0x1d   : > { %v178_v1 = vsel %vm177_vm1, 0.0, %v173_v56  ;;  %v179_v2 = vsel %vm177_vm1, 0.0, %v174_v57  ;;  %311 = vmatpush.bf16.msra.mxu1 %v670_v51  ;;  %325 = vmatpush.bf16.msra.mxu2 %v674_v52  ;;  %v745_v8 = vor.u32 %v824_v63, %v742_v0  ;;  %v791_v9 = vld [vmem:[#allocation2 + $0xf0] sm:$0xf]  ;;  %v849_v10 = vld [vmem:[#allocation2 + $0xf8] sm:$0xf0]  ;;  %v749_v12 = vor.u32 %v826_v4, %v748_v3 }
  0x1e   : > { %v969_v5 = vpack.c.bf16 %v179_v2, %v178_v1  ;;  %406 = vmatpush.bf16.msra.mxu3 %v717_v55  ;;  %v848_v11 = vld [vmem:[#allocation2 + $0xf4] sm:$0xf]  ;;  %v793_v13 = vld [vmem:[#allocation2 + $0xfc] sm:$0xf0]  ;;  %v821_v14 = vld [vmem:[#allocation2 + $0x1c] sm:$0xf]  ;;  %v792_v18 = vor.u32 %v849_v10, %v791_v9 }
  0x1f   : > { %711 = vmatmul.msk.bf16.vlgmr.msra.gmra.mxu0 %vm286_vm0, %v959_v44  ;;  %v730_v15 = vld [vmem:[#allocation2 + $0x24] sm:$0xf0]  ;;  %v736_v16 = vld [vmem:[#allocation2 + $0x20] sm:$0xf]  ;;  %v823_v17 = vld [vmem:[#allocation2 + $0x28] sm:$0xf0]  ;;  %v796_v20 = vor.u32 %v848_v11, %v793_v13 }
  0x20   : > { %417 = vmatpush.bf16.msrb.mxu0 %v757_v58  ;;  %712 = vmatmul.msk.bf16.vlgmr.msra.gmra.mxu1 %vm286_vm0, %v959_v44  ;;  %v779_v19 = vld [vmem:[#allocation2 + $0xd8] sm:$0xf]  ;;  %v733_v21 = vor.u32 %v821_v14, %v730_v15  ;;  %v846_v22 = vld [vmem:[#allocation2 + $0xe0] sm:$0xf0]  ;;  %v845_v23 = vld [vmem:[#allocation2 + $0xdc] sm:$0xf]  ;;  %v737_v25 = vor.u32 %v823_v17, %v736_v16 }
  0x21   : > { %431 = vmatpush.bf16.msrb.mxu1 %v761_v61  ;;  %713 = vmatmul.msk.bf16.vlgmr.msra.gmra.mxu2 %vm286_vm0, %v959_v44  ;;  %v781_v24 = vld [vmem:[#allocation2 + $0xe4] sm:$0xf0]  ;;  %v818_v26 = vld [vmem:[#allocation2 + $0x4] sm:$0xf]  ;;  %v718_v27 = vld [vmem:[#allocation2 + $0xc] sm:$0xf0]  ;;  %v780_v32 = vor.u32 %v846_v22, %v779_v19 }
  0x22   : > { %762 = vmatmul.msk.bf16.vlgmr.msra.gmra.mxu3 %vm286_vm0, %v969_v5  ;;  %530 = vmatpush.bf16.msrb.mxu2 %v804_v6  ;;  %v724_v28 = vld [vmem:[#allocation2 + $0x8] sm:$0xf]  ;;  %v820_v29 = vld [vmem:[#allocation2 + $0x10] sm:$0xf0]  ;;  %v811_v30 = vld [vmem:[#allocation2 + $0x110] sm:$0xf]  ;;  %v784_v35 = vor.u32 %v845_v23, %v781_v24  ;;  %v721_v36 = vor.u32 %v818_v26, %v718_v27 }
  0x23   : > { %544 = vmatpush.bf16.msrb.mxu3 %v808_v7  ;;  %v853_v31 = vld [vmem:[#allocation2 + $0x118] sm:$0xf0]  ;;  %v180_v33 = vrot.slane %v856_v46, 1  ;;  %v181_v34 = vrot.slane %v857_v47, 1  ;;  %v767_v37 = vld [vmem:[#allocation2 + $0xc0] sm:$0xf]  ;;  %v725_v39 = vor.u32 %v820_v29, %v724_v28 }
  0x24   : > { %418 = vmatpush.bf16.msrb.mxu0 %v745_v8  ;;  %v843_v38 = vld [vmem:[#allocation2 + $0xc8] sm:$0xf0]  ;;  %v842_v40 = vld [vmem:[#allocation2 + $0xc4] sm:$0xf]  ;;  %v769_v41 = vld [vmem:[#allocation2 + $0xcc] sm:$0xf0]  ;;  %v812_v42 = vor.u32 %v853_v31, %v811_v30 }
  0x25   : > { %432 = vmatpush.bf16.msrb.mxu1 %v749_v12  ;;  %v768_v43 = vor.u32 %v843_v38, %v767_v37  ;;  %v185_v45 = vsel %vm184_vm2, %v180_v33, 0.0  ;;  %v186_v48 = vsel %vm184_vm2, %v181_v34, 0.0  ;;  %v772_v44 = vor.u32 %v842_v40, %v769_v41  ;;  %v799_v46 = vld [vmem:[#allocation2 + $0xf8] sm:$0xf]  ;;  %v850_v47 = vld [vmem:[#allocation2 + $0x100] sm:$0xf0] }
  0x26   : > { %531 = vmatpush.bf16.msrb.mxu2 %v792_v18  ;;  %v441_v49 = vpack.c.bf16 %v186_v48, %v185_v45  ;;  %v800_v50 = vor.u32 %v850_v47, %v799_v46  ;;  %v787_v51 = vld [vmem:[#allocation2 + $0xe0] sm:$0xf]  ;;  %v847_v52 = vld [vmem:[#allocation2 + $0xe8] sm:$0xf0]  ;;  %v775_v54 = vld [vmem:[#allocation2 + $0xc8] sm:$0xf] }
  0x27   : > { %545 = vmatpush.bf16.msrb.mxu3 %v796_v20  ;;  %v788_v53 = vor.u32 %v847_v52, %v787_v51  ;;  %v844_v55 = vld [vmem:[#allocation2 + $0xd0] sm:$0xf0] }
  0x28   : > { %419 = vmatpush.bf16.msrb.mxu0 %v733_v21  ;;  %v776_v56 = vor.u32 %v844_v55, %v775_v54 }
  0x29   : > { %433 = vmatpush.bf16.msrb.mxu1 %v737_v25 }
  0x2a   : > { %532 = vmatpush.bf16.msrb.mxu2 %v780_v32 }
  0x2b   : > { %546 = vmatpush.bf16.msrb.mxu3 %v784_v35 }
  0x2c   : > { %420 = vmatpush.bf16.msrb.mxu0 %v721_v36 }
  0x2d   : > { %434 = vmatpush.bf16.msrb.mxu1 %v725_v39 }
  0x2e   : > { %533 = vmatpush.bf16.msrb.mxu2 %v768_v43 }
  0x2f   : > { %547 = vmatpush.bf16.msrb.mxu3 %v772_v44  ;;  %763 = vmatmul.msk.bf16.vlgmr.msrb.gmra.mxu0 %vm286_vm0, %v969_v5 }
  0x30   : > { %558 = vmatpush.bf16.msra.mxu0 %v812_v42  ;;  %764 = vmatmul.msk.bf16.vlgmr.msrb.gmra.mxu1 %vm286_vm0, %v969_v5 }
  0x31   : > { %813 = vmatmul.msk.bf16.vlgmr.msrb.gmra.mxu2 %vm286_vm0, %v441_v49 }
  0x32   : > { %814 = vmatmul.msk.bf16.vlgmr.msrb.gmra.mxu3 %vm286_vm0, %v441_v49 }
  0x34   : > { %559 = vmatpush.bf16.msra.mxu0 %v800_v50 }
  0x38   : > { %560 = vmatpush.bf16.msra.mxu0 %v788_v53 }
  0x3c   : > { %561 = vmatpush.bf16.msra.mxu0 %v776_v56 }
  0x3f   : > { %815 = vmatmul.msk.bf16.vlgmr.msra.gmra.mxu0 %vm286_vm0, %v441_v49 }
  0x9c   : > { %v299_v57 = vpop.f32.mrf.mxu0 }
  0x9d   : > { %v313_v58 = vpop.f32.mrf.mxu1 }
  0xa4   : > { %v327_v59 = vpop.f32.mrf.mxu2  ;;  %v301_v61 = vpop.f32.mrf.mxu0 }
  0xa5   : > { %v408_v60 = vpop.f32.mrf.mxu3  ;;  %v315_v62 = vpop.f32.mrf.mxu1 }
  0xa6   : > { %v409_v2 = vadd.f32 %v408_v60, %v299_v57 }
  0xac   : > { %v329_v63 = vpop.f32.mrf.mxu2  ;;  %v422_v1 = vpop.f32.mrf.mxu0 }
  0xad   : > { %v410_v0 = vpop.f32.mrf.mxu3  ;;  %v423_v3 = vadd.f32 %v422_v1, %v313_v58  ;;  %v436_v9 = vpop.f32.mrf.mxu1 }
  0xae   : > { %v411_v11 = vadd.f32 %v410_v0, %v301_v61  ;;  %v437_v12 = vadd.f32 %v436_v9, %v327_v59 }
  0xb4   : > { %v535_v4 = vpop.f32.mrf.mxu2  ;;  %v424_v7 = vpop.f32.mrf.mxu0 }
  0xb5   : > { %v568_v5 = vadd.f32 %v535_v4, %v409_v2  ;;  %v549_v6 = vpop.f32.mrf.mxu3  ;;  %v425_v13 = vadd.f32 %v424_v7, %v315_v62  ;;  %v438_v22 = vpop.f32.mrf.mxu1 }
  0xb6   : > { %v569_v8 = vadd.f32 %v549_v6, %v423_v3  ;;  %v439_v23 = vadd.f32 %v438_v22, %v329_v63 }
  0xb8   : > { %v574_v10 = vpack.c.bf16 %v569_v8, %v568_v5 }
  0xba   : > { %578 = vst [vmem:[%s164_s26] sm:$0xff] %v574_v10 }
  0xbc   : > { %v537_v14 = vpop.f32.mrf.mxu2  ;;  %v563_v17 = vpop.f32.mrf.mxu0 }
  0xbd   : > { %v571_v15 = vadd.f32 %v537_v14, %v411_v11  ;;  %v551_v16 = vpop.f32.mrf.mxu3  ;;  %v570_v19 = vadd.f32 %v563_v17, %v437_v12 }
  0xbe   : > { %v572_v18 = vadd.f32 %v551_v16, %v425_v13 }
  0xbf   : > { %v575_v21 = vpack.c.bf16 %v570_v19, %v570_v19 }
  0xc0   : > { %v576_v20 = vpack.c.bf16 %v572_v18, %v571_v15 }
  0xc1   : > { %579 = vst [vmem:[%s164_s26 + $0x8] sm:$0xf] %v575_v21 }
  0xc2   : > { %580 = vst [vmem:[%s164_s26 + $0xc] sm:$0xff] %v576_v20 }
  0xc4   : > { %v565_v24 = vpop.f32.mrf.mxu0 }
  0xc5   : > { %v573_v25 = vadd.f32 %v565_v24, %v439_v23 }
  0xc7   : > { %v577_v26 = vpack.c.bf16 %v573_v25, %v573_v25 }
  0xc9   : > { %581 = vst [vmem:[%s164_s26 + $0x14] sm:$0xf] %v577_v26 }
  0xca PF: > { %s13_s9 = sadd.s32 1, %s920_s9  }
  0xcb   : > { %p10_p7 = scmp.ge.s32.totalorder %s13_s9, 4  }
  0xcd   :  { %12 = sbr.rel (!%p10_p7) target bundleno = 1 (0x1), region = 65 }
  0xd2   :  { %606 = vsyncpa [#allocation3], 1 }
  0xd3   :  { %608 = vsyncpa [#allocation3 + $0x1], 1 }

// kernel: generator_forward.11
= control target key start
LH: loop header
LB: loop body
LE: loop exit
PB: predicated region body
PF: predicated region fallthrough
CT: control target
= control target key end

     0   :  { %s2088_s0 = inlined_call_operand.vmem [shape: bf16[2,2,8,384], index: 0, kind: input, shape index: {}]   ;;  %s2089_s1 = inlined_call_operand.vmem [shape: f32[2,8,128], index: 1, kind: input, shape index: {}]   ;;  %s2090_s2 = inlined_call_operand.hbm [shape: bf16[3,128,256], index: 2, kind: input, shape index: {}]   ;;  %s2091_s3 = inlined_call_operand.vmem [shape: bf16[3,128,128], index: 3, kind: input, shape index: {}]   ;;  %s2092_s4 = inlined_call_operand.vmem [shape: bf16[2,2,8,128], index: 4, kind: output, shape index: {0}]   ;;  %s2093_s5 = inlined_call_operand.vmem [shape: f32[2,2,1,128], index: 5, kind: output, shape index: {1}]   ;;  %s2094_s6 = inlined_call_operand.vmem [shape: f32[2,2,1,128], index: 6, kind: output, shape index: {2}]  }
   0x1   :  { %2095 = sst [smem:[#allocation6_spill]] %s2090_s2 }
   0x2   :  { %12 = vsyncpa [#allocation4], 0  ;;  %s1867_s21 = smov 0   ;;  %s1869_s22 = smov 0  }
   0x3   :  { %s1871_s23 = smov 0   ;;  %s1873_s24 = smov 0  }
   0x4   :  { %s1875_s25 = smov 0  }
   0x5 LB: > { %s1256_s26 = sadd.s32 4294967295, %s1827_s25   ;;  %s27_s27 = sadd.s32 1, %s1819_s23  ;;  %s1827_s25 = sphi %s1875_s25, %s18_s25   ;;  %s1823_s24 = sphi %s1873_s24, %s2106_s24   ;;  %s1819_s23 = sphi %s1871_s23, %s2105_s23   ;;  %s1815_s22 = sphi %s1869_s22, %s2104_s22   ;;  %s1811_s21 = sphi %s1867_s21, %s2103_s21  }
   0x6   : > { %p28_p0 = scmp.ge.s32.totalorder %s27_s27, 2  ;;  %s30_s28 = sadd.s32 1, %s1823_s24 }
   0x7   : > { %p1258_p1 = scmp.ge.s32.totalorder %s1827_s25, 1  ;;  %p215_p2 = scmp.lt.s32.totalorder %s1827_s25, 5 }
   0x8   : > { %s2108_s27 = smov (%p28_p0, %s27_s27), 0  ;;  %s2110_s28 = smov (!%p28_p0, %s30_s28), %s1823_s24 }
   0x9   : > { %p1900_p3 = pnand %p1258_p1, %p215_p2  ;;  %p32_p4 = scmp.ge.s32.totalorder %s2110_s28, 2 }
   0xa   : > { %p1904_p5 = scmp.eq.s32.totalorder %s1256_s26, 0  ;;  %s2098_s2 = sld [smem:[#allocation6_spill]] }
   0xb   : > { %p1696_p6 = pneg %p1900_p3  ;;  %s2112_s28 = smov (%p32_p4, %s2110_s28), 0 }
   0xc   : > { %s1829_s10 = smov [#allocation3]   ;;  %s1830_s12 = smov 128  }
   0xd   : > { %s228_s11 = sshll.u32 %s1829_s10, 4  ;;  %p1697_p7 = pnand %p1904_p5, %p1696_p6  ;;  %s229_s11 = int_to_ptr.vmem [resolvable:$true] %s228_s11 }
   0xe   : > { %s1831_s13 = smov 8   ;;  %266 = sbr.rel (%p1900_p3) target bundleno = 427 (0x1ab), region = 36 }
  0x10   : > { %s226_s9 = sshll.u32 %s2098_s2, 4  ;;  %s227_s9 = int_to_ptr.hbm [resolvable:$true] %s226_s9 }
  0x11   : > { %1699 = dma.hbm_to_vmem [thread:$0]  (!%p1697_p7), %s227_s9, 6144, %s229_s11, [#allocation4], %s1830_s12, %s1830_s12, %s1831_s13  }
  0x13   : > { %1806 = dma.done.wait (%p1904_p5), [#allocation4], 6144  }
  0x14   : > { %1808 = vsyncadd (%p1904_p5), [#allocation4], 4294961152  ;;  %p322_p8 = scmp.lt.s32.totalorder %s1815_s22, 1  ;;  %p324_p9 = scmp.lt.s32.totalorder %s1811_s21, 1 }
  0x15   : > { %p1269_p10 = scmp.ne.s32.totalorder %s1811_s21, 0 }
  0x16   : > { %s2114_s22 = smov (!%p322_p8, %s1815_s22), 1 }
  0x17   : > { %s325_s14 = scalar_select %p324_p9, %s1811_s21, 1 }
  0x18   : > { %s1691_s15 = smul.u32 6, %s2114_s22  ;;  %s1264_s16 = sshll.u32 %s2114_s22, 3 }
  0x19   : > { %s1690_s17 = smul.u32 3, %s325_s14  ;;  %s334_s20 = scalar_lea.vmem %s2089_s1, %s1264_s16 }
  0x1a   : > { %s1265_s26 = sshll.u32 %s2114_s22, 1  ;;  %360 = sbr.rel (%p1269_p10) target bundleno = 33 (0x21), region = 44 }
  0x1b   : > { %s328_s29 = sadd.s32 %s1691_s15, %s1690_s17  ;;  %s1930_s7 = sadd.s32 %s1265_s26, %s325_s14 }
  0x1c   : > { %s1263_s30 = sshll.u32 %s328_s29, 2  ;;  %s1266_s8 = sshll.u32 %s1930_s7, 2 }
  0x1d   : > { %s1936_s11 = scalar_lea.vmem %s2088_s0, %s1263_s30  ;;  %s1941_s2 = scalar_lea.vmem %s2092_s4, %s1266_s8 }
  0x1e   : > { %s349_s14 = scalar_lea.vmem %s2093_s5, %s1930_s7  ;;  %s356_s18 = scalar_lea.vmem %s2094_s6, %s1930_s7 }
  0x1f   : > { %v361_v0 = vld [vmem:[%s334_s20] sm:$0xff] }
  0x20   : > { %362 = vst [vmem:[#allocation2] sm:$0xff] %v361_v0 }
  0x21 PF: > { %v1648_v1 = vld [vmem:[#allocation3 + $0xf4] sm:$0xf]  ;;  %v1330_v2 = vld [vmem:[#allocation3 + $0xf8] sm:$0xf0]  ;;  %v1646_v3 = vld [vmem:[#allocation3 + $0xe4] sm:$0xf] }
  0x22   : > { %v1333_v4 = vor.u32 %v1648_v1, %v1330_v2  ;;  %v1322_v5 = vld [vmem:[#allocation3 + $0xe8] sm:$0xf0]  ;;  %v1632_v6 = vld [vmem:[#allocation3 + $0x74] sm:$0xf]  ;;  %v1394_v7 = vld [vmem:[#allocation3 + $0x78] sm:$0xf0] }
  0x23   : > { %v1397_v8 = vor.u32 %v1632_v6, %v1394_v7  ;;  %v1630_v9 = vld [vmem:[#allocation3 + $0x64] sm:$0xf]  ;;  %v1325_v10 = vor.u32 %v1646_v3, %v1322_v5  ;;  %v1386_v11 = vld [vmem:[#allocation3 + $0x68] sm:$0xf0]  ;;  %v1644_v12 = vld [vmem:[#allocation3 + $0xd4] sm:$0xf] }
  0x24   : > { %506 = vmatpush.bf16.msra.mxu1 %v1333_v4  ;;  %v1314_v13 = vld [vmem:[#allocation3 + $0xd8] sm:$0xf0]  ;;  %v1389_v14 = vor.u32 %v1630_v9, %v1386_v11  ;;  %v1628_v15 = vld [vmem:[#allocation3 + $0x54] sm:$0xf]  ;;  %v1642_v18 = vld [vmem:[#allocation3 + $0xc4] sm:$0xf] }
  0x25   : > { %612 = vmatpush.bf16.msra.mxu3 %v1397_v8  ;;  %v1378_v16 = vld [vmem:[#allocation3 + $0x58] sm:$0xf0]  ;;  %v1317_v17 = vor.u32 %v1644_v12, %v1314_v13  ;;  %v1306_v19 = vld [vmem:[#allocation3 + $0xc8] sm:$0xf0]  ;;  %v1626_v21 = vld [vmem:[#allocation3 + $0x44] sm:$0xf] }
  0x26   : > { %v1381_v20 = vor.u32 %v1628_v15, %v1378_v16  ;;  %v1370_v22 = vld [vmem:[#allocation3 + $0x48] sm:$0xf0]  ;;  %v1309_v23 = vor.u32 %v1642_v18, %v1306_v19  ;;  %v1640_v24 = vld [vmem:[#allocation3 + $0xb4] sm:$0xf]  ;;  %v1298_v25 = vld [vmem:[#allocation3 + $0xb8] sm:$0xf0] }
  0x27   : > { %v1373_v26 = vor.u32 %v1626_v21, %v1370_v22  ;;  %v1624_v27 = vld [vmem:[#allocation3 + $0x34] sm:$0xf]  ;;  %v1362_v28 = vld [vmem:[#allocation3 + $0x38] sm:$0xf0]  ;;  %v1301_v29 = vor.u32 %v1640_v24, %v1298_v25  ;;  %v1638_v30 = vld [vmem:[#allocation3 + $0xa4] sm:$0xf] }
  0x28   : > { %507 = vmatpush.bf16.msra.mxu1 %v1325_v10  ;;  %v1290_v31 = vld [vmem:[#allocation3 + $0xa8] sm:$0xf0]  ;;  %v1365_v32 = vor.u32 %v1624_v27, %v1362_v28  ;;  %v1622_v33 = vld [vmem:[#allocation3 + $0x24] sm:$0xf]  ;;  %v1636_v36 = vld [vmem:[#allocation3 + $0x94] sm:$0xf] }
  0x29   : > { %613 = vmatpush.bf16.msra.mxu3 %v1389_v14  ;;  %v1354_v34 = vld [vmem:[#allocation3 + $0x28] sm:$0xf0]  ;;  %v1293_v35 = vor.u32 %v1638_v30, %v1290_v31  ;;  %v1282_v37 = vld [vmem:[#allocation3 + $0x98] sm:$0xf0]  ;;  %v1620_v39 = vld [vmem:[#allocation3 + $0x14] sm:$0xf] }
  0x2a   : > { %v1357_v38 = vor.u32 %v1622_v33, %v1354_v34  ;;  %v1346_v40 = vld [vmem:[#allocation3 + $0x18] sm:$0xf0]  ;;  %v1285_v41 = vor.u32 %v1636_v36, %v1282_v37  ;;  %v1634_v42 = vld [vmem:[#allocation3 + $0x84] sm:$0xf]  ;;  %v1274_v43 = vld [vmem:[#allocation3 + $0x88] sm:$0xf0] }
  0x2b   : > { %v1664_v44 = vld [vmem:[#allocation3 + $0x174] sm:$0xf]  ;;  %v1349_v45 = vor.u32 %v1620_v39, %v1346_v40  ;;  %v1952_v46 = vld [vmem:[#allocation2] sm:$0xff]  ;;  %v1618_v48 = vld [vmem:[#allocation3 + $0x4] sm:$0xf]  ;;  %vm372_vm0 = vcmask 1040384   ;;  %v1277_v50 = vor.u32 %v1634_v42, %v1274_v43 }
  0x2c   : > { %508 = vmatpush.bf16.msra.mxu1 %v1317_v17  ;;  %v1468_v47 = vld [vmem:[#allocation3 + $0x178] sm:$0xf0]  ;;  %v1338_v49 = vld [vmem:[#allocation3 + $0x8] sm:$0xf0]  ;;  %v370_v51 = vrot.slane %v1952_v46, 7  ;;  %vm1398_vm1 = vmneg %vm372_vm0  ;;  %v1957_v56 = vpack.c.bf16 %v1952_v46, %v1952_v46  ;;  %vm376_vm3 = vcmask 1046528  }
  0x2d   : > { %614 = vmatpush.bf16.msra.mxu3 %v1381_v20  ;;  %v1471_v52 = vor.u32 %v1664_v44, %v1468_v47  ;;  %v1341_v53 = vor.u32 %v1618_v48, %v1338_v49  ;;  %v1662_v54 = vld [vmem:[#allocation3 + $0x164] sm:$0xf]  ;;  %v1460_v55 = vld [vmem:[#allocation3 + $0x168] sm:$0xf0]  ;;  %v1328_v58 = vld [vmem:[#allocation3 + $0xf0] sm:$0xf] }
  0x2e   : > { %v1959_v57 = vpack.c.bf16 %v370_v51, %v370_v51  ;;  %v1649_v59 = vld [vmem:[#allocation3 + $0xf4] sm:$0xf0]  ;;  %v1320_v60 = vld [vmem:[#allocation3 + $0xe0] sm:$0xf]  ;;  %v1463_v61 = vor.u32 %v1662_v54, %v1460_v55  ;;  %vm1961_vm2 = vmpackc.low %vm1398_vm1, %vm1398_vm1 }
  0x2f   : > { %v1329_v63 = vor.u32 %v1649_v59, %v1328_v58  ;;  %v1647_v0 = vld [vmem:[#allocation3 + $0xe4] sm:$0xf0]  ;;  %v1660_v1 = vld [vmem:[#allocation3 + $0x154] sm:$0xf]  ;;  %v1452_v2 = vld [vmem:[#allocation3 + $0x158] sm:$0xf0] }
  0x30   : > { %509 = vmatpush.bf16.msra.mxu1 %v1309_v23  ;;  %v1321_v3 = vor.u32 %v1647_v0, %v1320_v60  ;;  %v1312_v4 = vld [vmem:[#allocation3 + $0xd0] sm:$0xf]  ;;  %v1645_v5 = vld [vmem:[#allocation3 + $0xd4] sm:$0xf0]  ;;  %v1455_v8 = vor.u32 %v1660_v1, %v1452_v2  ;;  %v1384_v10 = vld [vmem:[#allocation3 + $0x60] sm:$0xf] }
  0x31   : > { %615 = vmatpush.bf16.msra.mxu3 %v1373_v26  ;;  %493 = vmatpush.bf16.msra.mxu0 %v1329_v63  ;;  %v1392_v6 = vld [vmem:[#allocation3 + $0x70] sm:$0xf]  ;;  %v1633_v7 = vld [vmem:[#allocation3 + $0x74] sm:$0xf0]  ;;  %v1631_v11 = vld [vmem:[#allocation3 + $0x64] sm:$0xf0]  ;;  %v1313_v14 = vor.u32 %v1645_v5, %v1312_v4 }
  0x32   : > { %v1393_v9 = vor.u32 %v1633_v7, %v1392_v6  ;;  %v1658_v12 = vld [vmem:[#allocation3 + $0x144] sm:$0xf]  ;;  %v1444_v13 = vld [vmem:[#allocation3 + $0x148] sm:$0xf0]  ;;  %v1304_v15 = vld [vmem:[#allocation3 + $0xc0] sm:$0xf]  ;;  %v1385_v16 = vor.u32 %v1631_v11, %v1384_v10 }
  0x33   : > { %v1643_v17 = vld [vmem:[#allocation3 + $0xc4] sm:$0xf0]  ;;  %v1376_v18 = vld [vmem:[#allocation3 + $0x50] sm:$0xf]  ;;  %v1629_v19 = vld [vmem:[#allocation3 + $0x54] sm:$0xf0]  ;;  %v1447_v20 = vor.u32 %v1658_v12, %v1444_v13 }
  0x34   : > { %510 = vmatpush.bf16.msra.mxu1 %v1301_v29  ;;  %599 = vmatpush.bf16.msra.mxu2 %v1393_v9  ;;  %v1656_v21 = vld [vmem:[#allocation3 + $0x134] sm:$0xf]  ;;  %v1436_v22 = vld [vmem:[#allocation3 + $0x138] sm:$0xf0]  ;;  %v1305_v23 = vor.u32 %v1643_v17, %v1304_v15  ;;  %v1296_v24 = vld [vmem:[#allocation3 + $0xb0] sm:$0xf]  ;;  %v1377_v25 = vor.u32 %v1629_v19, %v1376_v18 }
  0x35   : > { %616 = vmatpush.bf16.msra.mxu3 %v1365_v32  ;;  %494 = vmatpush.bf16.msra.mxu0 %v1321_v3  ;;  %v1641_v26 = vld [vmem:[#allocation3 + $0xb4] sm:$0xf0]  ;;  %v1368_v27 = vld [vmem:[#allocation3 + $0x40] sm:$0xf]  ;;  %v1627_v28 = vld [vmem:[#allocation3 + $0x44] sm:$0xf0]  ;;  %v1439_v29 = vor.u32 %v1656_v21, %v1436_v22 }
  0x36   : > { %v1654_v30 = vld [vmem:[#allocation3 + $0x124] sm:$0xf]  ;;  %v1428_v31 = vld [vmem:[#allocation3 + $0x128] sm:$0xf0]  ;;  %v1297_v32 = vor.u32 %v1641_v26, %v1296_v24  ;;  %v1288_v33 = vld [vmem:[#allocation3 + $0xa0] sm:$0xf]  ;;  %v1369_v34 = vor.u32 %v1627_v28, %v1368_v27 }
  0x37   : > { %v1360_v36 = vld [vmem:[#allocation3 + $0x30] sm:$0xf]  ;;  %v1625_v37 = vld [vmem:[#allocation3 + $0x34] sm:$0xf0]  ;;  %v1652_v39 = vld [vmem:[#allocation3 + $0x114] sm:$0xf] }
  0x38   : > { %511 = vmatpush.bf16.msra.mxu1 %v1293_v35  ;;  %600 = vmatpush.bf16.msra.mxu2 %v1385_v16  ;;  %v1639_v35 = vld [vmem:[#allocation3 + $0xa4] sm:$0xf0]  ;;  %v1420_v40 = vld [vmem:[#allocation3 + $0x118] sm:$0xf0]  ;;  %v1361_v42 = vor.u32 %v1625_v37, %v1360_v36  ;;  %v1280_v43 = vld [vmem:[#allocation3 + $0x90] sm:$0xf] }
  0x39   : > { %617 = vmatpush.bf16.msra.mxu3 %v1357_v38  ;;  %495 = vmatpush.bf16.msra.mxu0 %v1313_v14  ;;  %v1431_v38 = vor.u32 %v1654_v30, %v1428_v31  ;;  %v1637_v44 = vld [vmem:[#allocation3 + $0x94] sm:$0xf0]  ;;  %v1650_v47 = vld [vmem:[#allocation3 + $0x104] sm:$0xf]  ;;  %v1412_v48 = vld [vmem:[#allocation3 + $0x108] sm:$0xf0] }
  0x3a   : > { %v1281_v49 = vor.u32 %v1637_v44, %v1280_v43  ;;  %v1272_v51 = vld [vmem:[#allocation3 + $0x80] sm:$0xf]  ;;  %v1466_v54 = vld [vmem:[#allocation3 + $0x170] sm:$0xf]  ;;  %v1665_v55 = vld [vmem:[#allocation3 + $0x174] sm:$0xf0] }
  0x3b   : > { %v1467_v60 = vor.u32 %v1665_v55, %v1466_v54  ;;  %vm1970_vm4 = vmpackc.low %vm376_vm3, %vm376_vm3  ;;  %v1458_v63 = vld [vmem:[#allocation3 + $0x160] sm:$0xf]  ;;  %v1663_v0 = vld [vmem:[#allocation3 + $0x164] sm:$0xf0] }
  0x3c   : > { %512 = vmatpush.bf16.msra.mxu1 %v1285_v41  ;;  %601 = vmatpush.bf16.msra.mxu2 %v1377_v25  ;;  %v1289_v41 = vor.u32 %v1639_v35, %v1288_v33  ;;  %v1459_v1 = vor.u32 %v1663_v0, %v1458_v63  ;;  %v1450_v2 = vld [vmem:[#allocation3 + $0x150] sm:$0xf]  ;;  %v1661_v3 = vld [vmem:[#allocation3 + $0x154] sm:$0xf0]  ;;  %v1352_v5 = vld [vmem:[#allocation3 + $0x20] sm:$0xf] }
  0x3d   : > { %618 = vmatpush.bf16.msra.mxu3 %v1349_v45  ;;  %496 = vmatpush.bf16.msra.mxu0 %v1305_v23  ;;  %v1423_v45 = vor.u32 %v1652_v39, %v1420_v40  ;;  %v1451_v4 = vor.u32 %v1661_v3, %v1450_v2  ;;  %v1623_v6 = vld [vmem:[#allocation3 + $0x24] sm:$0xf0]  ;;  %v1442_v7 = vld [vmem:[#allocation3 + $0x140] sm:$0xf]  ;;  %v1344_v10 = vld [vmem:[#allocation3 + $0x10] sm:$0xf] }
  0x3e   : > { %v1659_v9 = vld [vmem:[#allocation3 + $0x144] sm:$0xf0]  ;;  %v1621_v11 = vld [vmem:[#allocation3 + $0x14] sm:$0xf0]  ;;  %v1434_v13 = vld [vmem:[#allocation3 + $0x130] sm:$0xf] }
  0x3f   : > { %v1443_v12 = vor.u32 %v1659_v9, %v1442_v7  ;;  %v1657_v14 = vld [vmem:[#allocation3 + $0x134] sm:$0xf0]  ;;  %v1345_v15 = vor.u32 %v1621_v11, %v1344_v10  ;;  %v1619_v17 = vld [vmem:[#allocation3 + $0x4] sm:$0xf0]  ;;  %v1426_v18 = vld [vmem:[#allocation3 + $0x120] sm:$0xf] }
  0x40   : > { %513 = vmatpush.bf16.msra.mxu1 %v1277_v50  ;;  %602 = vmatpush.bf16.msra.mxu2 %v1369_v34  ;;  %v374_v50 = vrot.slane %v1952_v46, 1  ;;  %v1435_v16 = vor.u32 %v1657_v14, %v1434_v13  ;;  %v1418_v21 = vld [vmem:[#allocation3 + $0x110] sm:$0xf]  ;;  %v1653_v22 = vld [vmem:[#allocation3 + $0x114] sm:$0xf0]  ;;  %v1680_v31 = vld [vmem:[%s2091_s3 + $0x70] sm:$0xff] }
  0x41   : > { %619 = vmatpush.bf16.msra.mxu3 %v1341_v53  ;;  %497 = vmatpush.bf16.msra.mxu0 %v1297_v32  ;;  %v1415_v53 = vor.u32 %v1650_v47, %v1412_v48  ;;  %v1419_v24 = vor.u32 %v1653_v22, %v1418_v21  ;;  %v1410_v25 = vld [vmem:[#allocation3 + $0x100] sm:$0xf]  ;;  %v1651_v26 = vld [vmem:[#allocation3 + $0x104] sm:$0xf0]  ;;  %v1673_v30 = vld [vmem:[%s2091_s3 + $0x38] sm:$0xff] }
  0x42   : > { %v1473_v59 = vpack.c.bf16 %v374_v50, %v374_v50  ;;  %v1411_v27 = vor.u32 %v1651_v26, %v1410_v25  ;;  %v1672_v33 = vld [vmem:[%s2091_s3 + $0x30] sm:$0xff]  ;;  %v1679_v36 = vld [vmem:[%s2091_s3 + $0x68] sm:$0xff]  ;;  %v1678_v39 = vld [vmem:[%s2091_s3 + $0x60] sm:$0xff] }
  0x43   : > { %514 = vmatmul.bf16.vlgmr.msra.gmra.mxu1 %v1957_v56  ;;  %v1688_v34 = vld [vmem:[%s2091_s3 + $0xb0] sm:$0xff]  ;;  %v1671_v37 = vld [vmem:[%s2091_s3 + $0x28] sm:$0xff]  ;;  %v1677_v43 = vld [vmem:[%s2091_s3 + $0x58] sm:$0xff] }
  0x44   : > { %736 = vmatpush.bf16.msrb.mxu1 %v1471_v52  ;;  %1407 = vmatmul.msk.bf16.vlgmr.msra.gmra.mxu3 %vm1961_vm2, %v1959_v57  ;;  %v1635_v52 = vld [vmem:[#allocation3 + $0x84] sm:$0xf0]  ;;  %v1669_v44 = vld [vmem:[%s2091_s3 + $0x18] sm:$0xff]  ;;  %v1675_v50 = vld [vmem:[%s2091_s3 + $0x48] sm:$0xff] }
  0x45   : > { %498 = vmatpush.bf16.msra.mxu0 %v1289_v41  ;;  %603 = vmatpush.bf16.msra.mxu2 %v1361_v42  ;;  %v1273_v58 = vor.u32 %v1635_v52, %v1272_v51  ;;  %v1670_v41 = vld [vmem:[%s2091_s3 + $0x20] sm:$0xff]  ;;  %v1676_v47 = vld [vmem:[%s2091_s3 + $0x50] sm:$0xff]  ;;  %v1667_v52 = vld [vmem:[%s2091_s3 + $0x8] sm:$0xff] }
  0x46   : > { %943 = vmatpush.bf16.msrb.mxu3 %v1673_v30  ;;  %v1686_v42 = vld [vmem:[%s2091_s3 + $0xa0] sm:$0xff]  ;;  %v1668_v48 = vld [vmem:[%s2091_s3 + $0x10] sm:$0xff] }
  0x47   : > { %v364_v51 = vld [vmem:[%s1936_s11] sm:$0xff] }
  0x48   : > { %737 = vmatpush.bf16.msrb.mxu1 %v1463_v61  ;;  %v1674_v54 = vld [vmem:[%s2091_s3 + $0x40] sm:$0xff] }
  0x49   : > { %499 = vmatpush.bf16.msra.mxu0 %v1281_v49  ;;  %v1684_v49 = vld [vmem:[%s2091_s3 + $0x90] sm:$0xff]  ;;  %v1682_v63 = vld [vmem:[%s2091_s3 + $0x80] sm:$0xff] }
  0x4a   : > { %944 = vmatpush.bf16.msrb.mxu3 %v1672_v33 }
  0x4c   : > { %738 = vmatpush.bf16.msrb.mxu1 %v1455_v8  ;;  %v1353_v8 = vor.u32 %v1623_v6, %v1352_v5 }
  0x4d   : > { %500 = vmatpush.bf16.msra.mxu0 %v1273_v58  ;;  %v367_v58 = vunpack.c.h.bf16 %v364_v51 }
  0x4e   : > { %604 = vmatpush.bf16.msra.mxu2 %v1353_v8  ;;  %945 = vmatpush.bf16.msrb.mxu3 %v1671_v37  ;;  %v365_v37 = vld [vmem:[%s1936_s11 + $0x8] sm:$0xf] }
  0x50   : > { %739 = vmatpush.bf16.msrb.mxu1 %v1447_v20  ;;  %501 = vmatmul.bf16.vlgmr.msra.gmra.mxu0 %v1957_v56  ;;  %v1336_v56 = vld [vmem:[#allocation3] sm:$0xf]  ;;  %v1655_v20 = vld [vmem:[#allocation3 + $0x124] sm:$0xf0] }
  0x51   : > { %723 = vmatpush.bf16.msrb.mxu0 %v1467_v60  ;;  %v1337_v19 = vor.u32 %v1619_v17, %v1336_v56  ;;  %v1427_v23 = vor.u32 %v1655_v20, %v1426_v18  ;;  %v1666_v60 = vld [vmem:[%s2091_s3] sm:$0xff] }
  0x52   : > { %605 = vmatpush.bf16.msra.mxu2 %v1345_v15  ;;  %946 = vmatpush.bf16.msrb.mxu3 %v1670_v41 }
  0x54   : > { %740 = vmatpush.bf16.msrb.mxu1 %v1439_v29  ;;  %v1681_v29 = vld [vmem:[%s2091_s3 + $0x78] sm:$0xff] }
  0x55   : > { %724 = vmatpush.bf16.msrb.mxu0 %v1459_v1 }
  0x56   : > { %606 = vmatpush.bf16.msra.mxu2 %v1337_v19  ;;  %947 = vmatpush.bf16.msrb.mxu3 %v1669_v44 }
  0x58   : > { %741 = vmatpush.bf16.msrb.mxu1 %v1431_v38  ;;  %v1687_v38 = vld [vmem:[%s2091_s3 + $0xa8] sm:$0xff] }
  0x59   : > { %725 = vmatpush.bf16.msrb.mxu0 %v1451_v4  ;;  %1402 = vmatmul.msk.bf16.vlgmr.msra.gmra.mxu2 %vm1961_vm2, %v1959_v57  ;;  %v1689_v57 = vld [vmem:[%s2091_s3 + $0xb8] sm:$0xff] }
  0x5a   : > { %882 = vmatpush.bf16.msrb.mxu2 %v1681_v29  ;;  %948 = vmatpush.bf16.msrb.mxu3 %v1668_v48 }
  0x5c   : > { %742 = vmatpush.bf16.msrb.mxu1 %v1423_v45  ;;  %v1685_v45 = vld [vmem:[%s2091_s3 + $0x98] sm:$0xff] }
  0x5d   : > { %726 = vmatpush.bf16.msrb.mxu0 %v1443_v12 }
  0x5e   : > { %883 = vmatpush.bf16.msrb.mxu2 %v1680_v31  ;;  %949 = vmatpush.bf16.msrb.mxu3 %v1667_v52 }
  0x60   : > { %743 = vmatpush.bf16.msrb.mxu1 %v1415_v53  ;;  %v1683_v53 = vld [vmem:[%s2091_s3 + $0x88] sm:$0xff] }
  0x61   : > { %727 = vmatpush.bf16.msrb.mxu0 %v1435_v16 }
  0x62   : > { %884 = vmatpush.bf16.msrb.mxu2 %v1679_v36  ;;  %950 = vmatpush.bf16.msrb.mxu3 %v1666_v60 }
  0x63   : > { %1477 = vmatmul.msk.bf16.vlgmr.msrb.gmra.mxu1 %vm1970_vm4, %v1473_v59 }
  0x65   : > { %728 = vmatpush.bf16.msrb.mxu0 %v1427_v23 }
  0x66   : > { %885 = vmatpush.bf16.msrb.mxu2 %v1678_v39 }
  0x69   : > { %729 = vmatpush.bf16.msrb.mxu0 %v1419_v24 }
  0x6a   : > { %886 = vmatpush.bf16.msrb.mxu2 %v1677_v43 }
  0x6d   : > { %730 = vmatpush.bf16.msrb.mxu0 %v1411_v27 }
  0x6e   : > { %887 = vmatpush.bf16.msrb.mxu2 %v1676_v47 }
  0x70   : > { %1474 = vmatmul.msk.bf16.vlgmr.msrb.gmra.mxu0 %vm1970_vm4, %v1473_v59 }
  0x71   : > { %1022 = vmatpush.bf16.msra.mxu0 %v1689_v57 }
  0x72   : > { %888 = vmatpush.bf16.msrb.mxu2 %v1675_v50 }
  0x75   : > { %1023 = vmatpush.bf16.msra.mxu0 %v1688_v34 }
  0x76   : > { %889 = vmatpush.bf16.msrb.mxu2 %v1674_v54 }
  0x79   : > { %1024 = vmatpush.bf16.msra.mxu0 %v1687_v38 }
  0x7d   : > { %1025 = vmatpush.bf16.msra.mxu0 %v1686_v42  ;;  %v368_v42 = vunpack.c.l.bf16 %v365_v37 }
  0x81   : > { %1026 = vmatpush.bf16.msra.mxu0 %v1685_v45 }
  0x85   : > { %1027 = vmatpush.bf16.msra.mxu0 %v1684_v49 }
  0x89   : > { %1028 = vmatpush.bf16.msra.mxu0 %v1683_v53 }
  0x8d   : > { %1029 = vmatpush.bf16.msra.mxu0 %v1682_v63 }
  0xc0   : > { %v515_v28 = vpop.f32.mrf.mxu1 }
  0xc7   : > { %v621_v32 = vpop.f32.mrf.mxu3 }
  0xc8   : > { %v517_v35 = vpop.f32.mrf.mxu1  ;;  %v622_v55 = vadd.f32 %v621_v32, %v515_v28  ;;  %v366_v28 = vunpack.c.l.bf16 %v364_v51 }
  0xcd   : > { %v502_v3 = vpop.f32.mrf.mxu0 }
  0xcf   : > { %v623_v40 = vpop.f32.mrf.mxu3 }
  0xd5   : > { %v504_v7 = vpop.f32.mrf.mxu0 }
  0xdc   : > { %v608_v23 = vpop.f32.mrf.mxu2 }
  0xdd   : > { %v609_v27 = vadd.f32 %v608_v23, %v502_v3 }
  0xe0   : > { %v745_v59 = vpop.f32.mrf.mxu1 }
  0xe1   : > { %v750_v0 = vadd.f32 %v745_v59, %v622_v55 }
  0xe3   : > { %v771_v1 = vadd.f32 %v750_v0, %v367_v58 }
  0xe4   : > { %v610_v25 = vpop.f32.mrf.mxu2 }
  0xe5   : > { %v1479_v2 = vmul.f32 -1.442695, %v771_v1 }
  0xe7   : > { %1745 = vpow2.f32 %v1479_v2 }
  0xe8   : > { %v747_v4 = vpop.f32.mrf.mxu1 }
  0xed   : > { %v1746_v5 = vpop.eup %1745  ;;  %v732_v24 = vpop.f32.mrf.mxu0 }
  0xee   : > { %v775_v6 = vadd.f32 1.0, %v1746_v5  ;;  %v749_v29 = vadd.f32 %v732_v24, %v609_v27 }
  0xf0   : > { %1747 = vrcp.f32 %v775_v6  ;;  %v787_v11 = vand.u32 2147483648, %v775_v6  ;;  %v785_v13 = vand.u32 2147483647, %v775_v6  ;;  %vm781_vm6 = vweird.f32 %v775_v6 }
  0xf1   : > { %v751_v30 = vadd.f32 %v749_v29, %v366_v28 }
  0xf2   : > { %v788_v15 = vor.u32 1.1754944e-38, %v787_v11  ;;  %vm786_vm8 = vcmp.eq.f32.partialorder %v785_v13, 8.507059e+37 }
  0xf3   : > { %v1478_v57 = vmul.f32 -1.442695, %v751_v30 }
  0xf5   : > { %v734_v26 = vpop.f32.mrf.mxu0  ;;  %1749 = vpow2.f32 %v1478_v57 }
  0xf6   : > { %v1748_v8 = vpop.eup %1747 }
  0xf7   : > { %v777_v9 = vmul.f32 %v1748_v8, %v775_v6  ;;  %vm782_vm5 = vweird.f32 %v1748_v8 }
  0xf8   : > { %vm783_vm7 = vmor %vm781_vm6, %vm782_vm5 }
  0xf9   : > { %v778_v10 = vsub.f32 1.0, %v777_v9 }
  0xfb   : > { %v779_v12 = vmul.f32 %v1748_v8, %v778_v10  ;;  %v1750_v31 = vpop.eup %1749 }
  0xfc   : > { %v755_v32 = vadd.f32 1.0, %v1750_v31 }
  0xfd   : > { %v780_v14 = vadd.f32 %v1748_v8, %v779_v12 }
  0xfe   : > { %1751 = vrcp.f32 %v755_v32  ;;  %vm761_vm9 = vweird.f32 %v755_v32  ;;  %v767_v38 = vand.u32 2147483648, %v755_v32  ;;  %v765_v40 = vand.u32 2147483647, %v755_v32 }
  0xff   : > { %v784_v16 = vsel %vm783_vm7, %v1748_v8, %v780_v14 }
 0x100   : > { %v789_v56 = vsel %vm786_vm8, %v788_v15, %v784_v16  ;;  %v768_v45 = vor.u32 1.1754944e-38, %v767_v38  ;;  %vm766_vm12 = vcmp.eq.f32.partialorder %v765_v40, 8.507059e+37 }
 0x101   : > { %v791_v17 = vmul.f32 %v789_v56, %v1952_v46 }
 0x103   : > { %v816_v18 = vpack.c.bf16 %v791_v17, %v791_v17  ;;  %v793_v19 = vrot.slane %v791_v17, 7  ;;  %v796_v20 = vrot.slane %v791_v17, 1 }
 0x104   : > { %v1752_v33 = vpop.eup %1751 }
 0x105   : > { %890 = vmatmul.bf16.vlgmr.msrb.gmra.mxu2 %v816_v18  ;;  %v1563_v21 = vpack.c.bf16 %v793_v19, %v793_v19  ;;  %v1614_v22 = vpack.c.bf16 %v796_v20, %v796_v20  ;;  %v757_v62 = vmul.f32 %v1752_v33, %v755_v32  ;;  %vm762_vm10 = vweird.f32 %v1752_v33 }
 0x106   : > { %vm763_vm11 = vmor %vm761_vm9, %vm762_vm10 }
 0x107   : > { %1564 = vmatmul.msk.bf16.vlgmr.msrb.gmra.mxu3 %vm1961_vm2, %v1563_v21  ;;  %1615 = vmatmul.msk.bf16.vlgmr.msra.gmra.mxu0 %vm1970_vm4, %v1614_v22  ;;  %v758_v34 = vsub.f32 1.0, %v757_v62 }
 0x109   : > { %v759_v61 = vmul.f32 %v1752_v33, %v758_v34 }
 0x10b   : > { %v760_v39 = vadd.f32 %v1752_v33, %v759_v61 }
 0x10d   : > { %v764_v48 = vsel %vm763_vm11, %v1752_v33, %v760_v39 }
 0x10e   : > { %v769_v51 = vsel %vm766_vm12, %v768_v45, %v764_v48 }
 0x10f   : > { %v1038_v53 = vsub.f32 1.0, %v769_v51 }
 0x111   : > { %v1039_v55 = vmul.f32 %v1038_v53, %v1952_v46 }
 0x184   : > { %v1031_v35 = vpop.f32.mrf.mxu0 }
 0x188   : > { %v891_v36 = vpop.f32.mrf.mxu2 }
 0x18a   : > { %v952_v41 = vpop.f32.mrf.mxu3 }
 0x18b   : > { %v953_v43 = vadd.f32 %v952_v41, %v891_v36 }
 0x18c   : > { %v1033_v44 = vpop.f32.mrf.mxu0 }
 0x18d   : > { %v1035_v47 = vadd.f32 %v1031_v35, %v953_v43 }
 0x18f   : > { %v1036_v49 = vadd.f32 %v1035_v47, %v368_v42 }
 0x190   : > { %v893_v50 = vpop.f32.mrf.mxu2 }
 0x191   : > { %1753 = vtanh.f32 %v1036_v49 }
 0x192   : > { %v954_v52 = vpop.f32.mrf.mxu3 }
 0x197   : > { %v1754_v54 = vpop.eup %1753 }
 0x198   : > { %v1040_v58 = vmul.f32 %v1754_v54, %v769_v51 }
 0x19a   : > { %v1041_v59 = vadd.f32 %v1040_v58, %v1039_v55 }
 0x19c   : > { %1042 = vst [vmem:[#allocation2] sm:$0xff] %v1041_v59  ;;  %v1043_v60 = vpack.c.bf16 %v1041_v59, %v1041_v59  ;;  %v1045_v63 = vrot.slane %v1041_v59, 4  ;;  %v1052_v0 = vmul.f32 %v1041_v59, %v1041_v59 }
 0x19e   : > { %1044 = vst [vmem:[%s1941_s2] sm:$0xf] %v1043_v60  ;;  %v1046_v1 = vadd.f32 %v1045_v63, %v1041_v59  ;;  %v1053_v2 = vrot.slane %v1052_v0, 4 }
 0x1a0   : > { %v1047_v3 = vrot.slane %v1046_v1, 2  ;;  %v1054_v4 = vadd.f32 %v1053_v2, %v1052_v0 }
 0x1a2   : > { %v1048_v5 = vadd.f32 %v1047_v3, %v1046_v1  ;;  %v1055_v6 = vrot.slane %v1054_v4, 2 }
 0x1a4   : > { %v1049_v7 = vrot.slane %v1048_v5, 1  ;;  %v1056_v8 = vadd.f32 %v1055_v6, %v1054_v4 }
 0x1a6   : > { %v1050_v9 = vadd.f32 %v1049_v7, %v1048_v5  ;;  %v1057_v10 = vrot.slane %v1056_v8, 1 }
 0x1a8   : > { %1051 = vst [vmem:[%s349_s14] sm:$0x1] %v1050_v9  ;;  %v1058_v46 = vadd.f32 %v1057_v10, %v1056_v8 }
 0x1aa   : > { %1059 = vst [vmem:[%s356_s18] sm:$0x1] %v1058_v46 }
 0x1ab PF: > { %s18_s25 = sadd.s32 1, %s1827_s25   ;;  %s2103_s21 = smov %s1819_s23 }
 0x1ac   : > { %p15_p11 = scmp.ge.s32.totalorder %s18_s25, 6   ;;  %s2104_s22 = smov %s1823_s24 }
 0x1ad   : > { %s2105_s23 = smov %s2108_s27  ;;  %s2106_s24 = smov %s2112_s28 }
 0x1ae   :  { %17 = sbr.rel (!%p15_p11) target bundleno = 5 (0x5), region = 106 }
 0x1b3   :  { %1127 = vsyncpa [#allocation4], 1 }
 0x1b4   :  { %1129 = vsyncpa [#allocation4 + $0x1], 1 }

// kernel: generator_forward.12
= control target key start
LH: loop header
LB: loop body
LE: loop exit
PB: predicated region body
PF: predicated region fallthrough
CT: control target
= control target key end

     0   :  { %14 = vsyncpa [#allocation3], 0  ;;  %s1682_s27 = smov 0   ;;  %s1873_s0 = inlined_call_operand.vmem [shape: bf16[4,8,128], index: 0, kind: input, shape index: {}]   ;;  %s1874_s1 = inlined_call_operand.vmem [shape: f32[4,1,128], index: 1, kind: input, shape index: {}]   ;;  %s1875_s2 = inlined_call_operand.vmem [shape: f32[4,1,128], index: 2, kind: input, shape index: {}]   ;;  %s1876_s3 = inlined_call_operand.hbm [shape: bf16[3,128,256], index: 3, kind: input, shape index: {}]   ;;  %s1877_s4 = inlined_call_operand.vmem [shape: bf16[128,256], index: 4, kind: input, shape index: {}]   ;;  %s1878_s5 = inlined_call_operand.vmem [shape: bf16[4,8,256], index: 5, kind: output, shape index: {0}]   ;;  %s1879_s6 = inlined_call_operand.vmem [shape: bf16[4,8,256], index: 6, kind: output, shape index: {1}]   ;;  %s1880_s7 = inlined_call_operand.vmem [shape: f32[2,1,256], index: 7, kind: output, shape index: {2}]   ;;  %s1881_s8 = inlined_call_operand.vmem [shape: f32[2,1,256], index: 8, kind: output, shape index: {3}]  }
   0x1 LB: > { %s260_s30 = sshll.u32 %s1876_s3, 4  ;;  %s1691_s9 = sadd.s32 4294967295, %s1632_s27   ;;  %s1632_s27 = sphi %s1682_s27, %s20_s27   ;;  %s261_s30 = int_to_ptr.hbm [resolvable:$true] %s260_s30 }
   0x2   : > { %p1201_p0 = scmp.ge.s32.totalorder %s1632_s27, 1  ;;  %p249_p1 = scmp.lt.s32.totalorder %s1632_s27, 3 }
   0x3   : > { %p1575_p2 = scmp.eq.s32.totalorder %s1691_s9, 0  ;;  %s1634_s10 = smov [#allocation2]  }
   0x4   : > { %p250_p3 = pnand %p1201_p0, %p249_p1  ;;  %s262_s11 = sshll.u32 %s1634_s10, 4  ;;  %s263_s11 = int_to_ptr.vmem [resolvable:$true] %s262_s11 }
   0x5   : > { %s1635_s12 = smov 128   ;;  %s1636_s13 = smov 8  }
   0x6   : > { %p1571_p4 = pneg %p250_p3  ;;  %306 = sbr.rel (%p250_p3) target bundleno = 236 (0xec), region = 40 }
   0x8   : > { %p1572_p5 = pnand %p1575_p2, %p1571_p4 }
   0xa   : > { %1574 = dma.hbm_to_vmem [thread:$0]  (!%p1572_p5), %s261_s30, 6144, %s263_s11, [#allocation3], %s1635_s12, %s1635_s12, %s1636_s13  }
   0xb   : > { %1627 = dma.done.wait (%p1575_p2), [#allocation3], 6144  }
   0xc   : > { %1629 = vsyncadd (%p1575_p2), [#allocation3], 4294961152  ;;  %s1206_s14 = sshll.u32 %s1691_s9, 1  ;;  %v1276_v0 = vld [vmem:[#allocation2 + $0xf0] sm:$0xf]  ;;  %vm434_vm0 = vcmask 1040384  }
   0xd   : > { %p1699_p6 = scmp.lt.s32.totalorder %s1206_s14, 3  ;;  %v1529_v1 = vld [vmem:[#allocation2 + $0xf4] sm:$0xf0]  ;;  %v1528_v2 = vld [vmem:[#allocation2 + $0xf4] sm:$0xf]  ;;  %vm1741_vm1 = vmneg %vm434_vm0  ;;  %vm441_vm3 = vcmask 1046528  }
   0xe   : > { %v1277_v3 = vor.u32 %v1529_v1, %v1276_v0  ;;  %v1278_v4 = vld [vmem:[#allocation2 + $0xf8] sm:$0xf0]  ;;  %v1512_v5 = vld [vmem:[#allocation2 + $0x74] sm:$0xf]  ;;  %v1340_v9 = vld [vmem:[#allocation2 + $0x70] sm:$0xf] }
   0xf   : > { %v1342_v6 = vld [vmem:[#allocation2 + $0x78] sm:$0xf0]  ;;  %v1281_v7 = vor.u32 %v1528_v2, %v1278_v4  ;;  %v1513_v10 = vld [vmem:[#allocation2 + $0x74] sm:$0xf0]  ;;  %v1268_v11 = vld [vmem:[#allocation2 + $0xe0] sm:$0xf] }
  0x10   : > { %v1345_v8 = vor.u32 %v1512_v5, %v1342_v6  ;;  %559 = vmatpush.bf16.msra.mxu0 %v1277_v3  ;;  %v1341_v12 = vor.u32 %v1513_v10, %v1340_v9  ;;  %v1527_v13 = vld [vmem:[#allocation2 + $0xe4] sm:$0xf0]  ;;  %v1526_v14 = vld [vmem:[#allocation2 + $0xe4] sm:$0xf]  ;;  %v1270_v15 = vld [vmem:[#allocation2 + $0xe8] sm:$0xf0] }
  0x11   : > { %573 = vmatpush.bf16.msra.mxu1 %v1281_v7  ;;  %v1269_v16 = vor.u32 %v1527_v13, %v1268_v11  ;;  %v1273_v17 = vor.u32 %v1526_v14, %v1270_v15  ;;  %v1510_v18 = vld [vmem:[#allocation2 + $0x64] sm:$0xf]  ;;  %v1334_v19 = vld [vmem:[#allocation2 + $0x68] sm:$0xf0]  ;;  %v1332_v20 = vld [vmem:[#allocation2 + $0x60] sm:$0xf] }
  0x12   : > { %681 = vmatpush.bf16.msra.mxu3 %v1345_v8  ;;  %667 = vmatpush.bf16.msra.mxu2 %v1341_v12  ;;  %v1337_v21 = vor.u32 %v1510_v18, %v1334_v19  ;;  %v1511_v22 = vld [vmem:[#allocation2 + $0x64] sm:$0xf0]  ;;  %v1260_v23 = vld [vmem:[#allocation2 + $0xd0] sm:$0xf]  ;;  %v1525_v24 = vld [vmem:[#allocation2 + $0xd4] sm:$0xf0] }
  0x13   : > { %v1333_v25 = vor.u32 %v1511_v22, %v1332_v20  ;;  %v1524_v26 = vld [vmem:[#allocation2 + $0xd4] sm:$0xf]  ;;  %v1262_v27 = vld [vmem:[#allocation2 + $0xd8] sm:$0xf0]  ;;  %v1261_v29 = vor.u32 %v1525_v24, %v1260_v23  ;;  %v1324_v31 = vld [vmem:[#allocation2 + $0x50] sm:$0xf] }
  0x14   : > { %v1508_v28 = vld [vmem:[#allocation2 + $0x54] sm:$0xf]  ;;  %560 = vmatpush.bf16.msra.mxu0 %v1269_v16  ;;  %v1326_v30 = vld [vmem:[#allocation2 + $0x58] sm:$0xf0]  ;;  %v1509_v32 = vld [vmem:[#allocation2 + $0x54] sm:$0xf0]  ;;  %v1265_v33 = vor.u32 %v1524_v26, %v1262_v27 }
  0x15   : > { %574 = vmatpush.bf16.msra.mxu1 %v1273_v17  ;;  %v1329_v34 = vor.u32 %v1508_v28, %v1326_v30  ;;  %v1252_v35 = vld [vmem:[#allocation2 + $0xc0] sm:$0xf]  ;;  %v1523_v36 = vld [vmem:[#allocation2 + $0xc4] sm:$0xf0]  ;;  %v1522_v37 = vld [vmem:[#allocation2 + $0xc4] sm:$0xf]  ;;  %v1325_v38 = vor.u32 %v1509_v32, %v1324_v31 }
  0x16   : > { %682 = vmatpush.bf16.msra.mxu3 %v1337_v21  ;;  %668 = vmatpush.bf16.msra.mxu2 %v1333_v25  ;;  %v1254_v39 = vld [vmem:[#allocation2 + $0xc8] sm:$0xf0]  ;;  %v1506_v40 = vld [vmem:[#allocation2 + $0x44] sm:$0xf]  ;;  %v1316_v42 = vld [vmem:[#allocation2 + $0x40] sm:$0xf]  ;;  %v1253_v44 = vor.u32 %v1523_v36, %v1252_v35 }
  0x17   : > { %v1318_v41 = vld [vmem:[#allocation2 + $0x48] sm:$0xf0]  ;;  %v1507_v43 = vld [vmem:[#allocation2 + $0x44] sm:$0xf0]  ;;  %s1886_s14 = smov (!%p1699_p6, %s1206_s14), 3  ;;  %v1257_v45 = vor.u32 %v1522_v37, %v1254_v39  ;;  %vm1348_vm2 = vmpackc.low %vm1741_vm1, %vm1741_vm1  ;;  %p394_p7 = scmp.lt.s32.totalorder %s1691_s9, 1 }
  0x18   : > { %561 = vmatpush.bf16.msra.mxu0 %v1261_v29  ;;  %v1321_v46 = vor.u32 %v1506_v40, %v1318_v41  ;;  %v1244_v47 = vld [vmem:[#allocation2 + $0xb0] sm:$0xf]  ;;  %v1521_v48 = vld [vmem:[#allocation2 + $0xb4] sm:$0xf0]  ;;  %v1520_v49 = vld [vmem:[#allocation2 + $0xb4] sm:$0xf]  ;;  %v1317_v50 = vor.u32 %v1507_v43, %v1316_v42  ;;  %s373_s22 = scalar_lea.vmem %s1874_s1, %s1886_s14  ;;  %s378_s25 = scalar_lea.vmem %s1875_s2, %s1886_s14 }
  0x19   : > { %575 = vmatpush.bf16.msra.mxu1 %v1265_v33  ;;  %v1246_v51 = vld [vmem:[#allocation2 + $0xb8] sm:$0xf0]  ;;  %v1504_v52 = vld [vmem:[#allocation2 + $0x34] sm:$0xf]  ;;  %v1308_v54 = vld [vmem:[#allocation2 + $0x30] sm:$0xf]  ;;  %v1245_v56 = vor.u32 %v1521_v48, %v1244_v47 }
  0x1a   : > { %683 = vmatpush.bf16.msra.mxu3 %v1329_v34  ;;  %669 = vmatpush.bf16.msra.mxu2 %v1325_v38  ;;  %v1310_v53 = vld [vmem:[#allocation2 + $0x38] sm:$0xf0]  ;;  %v1505_v55 = vld [vmem:[#allocation2 + $0x34] sm:$0xf0]  ;;  %s1207_s16 = sshll.u32 %s1886_s14, 2  ;;  %v1249_v57 = vor.u32 %v1520_v49, %v1246_v51  ;;  %vm1420_vm4 = vmpackc.low %vm441_vm3, %vm441_vm3  ;;  %s1496_s17 = sshll.u32 %s1886_s14, 3 }
  0x1b   : > { %v1313_v58 = vor.u32 %v1504_v52, %v1310_v53  ;;  %v1236_v59 = vld [vmem:[#allocation2 + $0xa0] sm:$0xf]  ;;  %v1519_v60 = vld [vmem:[#allocation2 + $0xa4] sm:$0xf0]  ;;  %v1518_v61 = vld [vmem:[#allocation2 + $0xa4] sm:$0xf]  ;;  %v1309_v62 = vor.u32 %v1505_v55, %v1308_v54  ;;  %s1713_s19 = scalar_lea.vmem %s1873_s0, %s1207_s16  ;;  %s385_s20 = scalar_lea.vmem %s1878_s5, %s1496_s17 }
  0x1c   : > { %562 = vmatpush.bf16.msra.mxu0 %v1253_v44  ;;  %v1238_v63 = vld [vmem:[#allocation2 + $0xa8] sm:$0xf0]  ;;  %v1502_v0 = vld [vmem:[#allocation2 + $0x24] sm:$0xf]  ;;  %v1300_v2 = vld [vmem:[#allocation2 + $0x20] sm:$0xf]  ;;  %v1237_v4 = vor.u32 %v1519_v60, %v1236_v59  ;;  %s1856_s14 = scalar_lea.vmem %s1879_s6, %s1496_s17 }
  0x1d   : > { %576 = vmatpush.bf16.msra.mxu1 %v1257_v45  ;;  %v1302_v1 = vld [vmem:[#allocation2 + $0x28] sm:$0xf0]  ;;  %v1503_v3 = vld [vmem:[#allocation2 + $0x24] sm:$0xf0]  ;;  %v1228_v5 = vld [vmem:[#allocation2 + $0x90] sm:$0xf]  ;;  %v1241_v7 = vor.u32 %v1518_v61, %v1238_v63 }
  0x1e   : > { %684 = vmatpush.bf16.msra.mxu3 %v1321_v46  ;;  %670 = vmatpush.bf16.msra.mxu2 %v1317_v50  ;;  %v1517_v6 = vld [vmem:[#allocation2 + $0x94] sm:$0xf0]  ;;  %v1305_v8 = vor.u32 %v1502_v0, %v1302_v1  ;;  %v1516_v9 = vld [vmem:[#allocation2 + $0x94] sm:$0xf]  ;;  %v1230_v10 = vld [vmem:[#allocation2 + $0x98] sm:$0xf0]  ;;  %v1301_v12 = vor.u32 %v1503_v3, %v1300_v2 }
  0x1f   : > { %v1500_v11 = vld [vmem:[#allocation2 + $0x14] sm:$0xf]  ;;  %v1294_v13 = vld [vmem:[#allocation2 + $0x18] sm:$0xf0]  ;;  %v1292_v14 = vld [vmem:[#allocation2 + $0x10] sm:$0xf]  ;;  %v1229_v19 = vor.u32 %v1517_v6, %v1228_v5  ;;  %v1233_v27 = vor.u32 %v1516_v9, %v1230_v10 }
  0x20   : > { %563 = vmatpush.bf16.msra.mxu0 %v1245_v56  ;;  %v1501_v15 = vld [vmem:[#allocation2 + $0x14] sm:$0xf0]  ;;  %v1220_v16 = vld [vmem:[#allocation2 + $0x80] sm:$0xf]  ;;  %v1515_v17 = vld [vmem:[#allocation2 + $0x84] sm:$0xf0]  ;;  %v1297_v28 = vor.u32 %v1500_v11, %v1294_v13 }
  0x21   : > { %577 = vmatpush.bf16.msra.mxu1 %v1249_v57  ;;  %v1564_v18 = vld [vmem:[%s1713_s19] sm:$0xff]   ;;  %v1222_v21 = vld [vmem:[#allocation2 + $0x88] sm:$0xf0]  ;;  %v1293_v31 = vor.u32 %v1501_v15, %v1292_v14  ;;  %v1499_v32 = vld [vmem:[#allocation2 + $0x4] sm:$0xf0]  ;;  %v1221_v40 = vor.u32 %v1515_v17, %v1220_v16  ;;  %s1888_s9 = smov (!%p394_p7, %s1691_s9), 1 }
  0x22   : > { %685 = vmatpush.bf16.msra.mxu3 %v1313_v58  ;;  %671 = vmatpush.bf16.msra.mxu2 %v1309_v62  ;;  %v1514_v20 = vld [vmem:[#allocation2 + $0x84] sm:$0xf]  ;;  %v1286_v23 = vld [vmem:[#allocation2 + $0x8] sm:$0xf0]  ;;  %v1565_v24 = vunpack.c.l.bf16 %v1564_v18  ;;  %v1566_v25 = vunpack.c.h.bf16 %v1564_v18  ;;  %v1588_v26 = vld [vmem:[%s373_s22] ss:$0 sm:$0xff] }
  0x23   : > { %v1498_v22 = vld [vmem:[#allocation2 + $0x4] sm:$0xf]  ;;  %v1284_v29 = vld [vmem:[#allocation2] sm:$0xf]  ;;  %v1414_v36 = vld [vmem:[#allocation2 + $0x170] sm:$0xf]  ;;  %v1225_v44 = vor.u32 %v1514_v20, %v1222_v21 }
  0x24   : > { %564 = vmatpush.bf16.msra.mxu0 %v1237_v4  ;;  %v1589_v30 = vld [vmem:[%s373_s22 + $0x1] ss:$0 sm:$0xff]  ;;  %v414_v33 = vmul.f32 %v1588_v26, %v1565_v24  ;;  %v1590_v34 = vld [vmem:[%s378_s25] ss:$0 sm:$0xff]  ;;  %v1545_v37 = vld [vmem:[#allocation2 + $0x174] sm:$0xf0]  ;;  %v1289_v45 = vor.u32 %v1498_v22, %v1286_v23  ;;  %v1285_v50 = vor.u32 %v1499_v32, %v1284_v29 }
  0x25   : > { %578 = vmatpush.bf16.msra.mxu1 %v1241_v7  ;;  %v1591_v35 = vld [vmem:[%s378_s25 + $0x1] ss:$0 sm:$0xff]  ;;  %v1544_v38 = vld [vmem:[#allocation2 + $0x174] sm:$0xf]  ;;  %v415_v39 = vmul.f32 %v1589_v30, %v1566_v25  ;;  %v1416_v41 = vld [vmem:[#allocation2 + $0x178] sm:$0xf0]  ;;  %v1415_v51 = vor.u32 %v1545_v37, %v1414_v36 }
  0x26   : > { %686 = vmatpush.bf16.msra.mxu3 %v1305_v8  ;;  %672 = vmatpush.bf16.msra.mxu2 %v1301_v12  ;;  %v424_v42 = vadd.f32 %v1590_v34, %v414_v33  ;;  %v1488_v43 = vld [vmem:[%s1877_s4 + $0x70] sm:$0xf]  ;;  %v1562_v47 = vld [vmem:[%s1877_s4 + $0x74] sm:$0xf0]  ;;  %v1561_v48 = vld [vmem:[%s1877_s4 + $0x74] sm:$0xf]  ;;  %v1419_v55 = vor.u32 %v1544_v38, %v1416_v41 }
  0x27   : > { %v425_v46 = vadd.f32 %v1591_v35, %v415_v39  ;;  %v1490_v49 = vld [vmem:[%s1877_s4 + $0x78] sm:$0xf0]  ;;  %v1406_v53 = vld [vmem:[#allocation2 + $0x160] sm:$0xf]  ;;  %v1543_v54 = vld [vmem:[#allocation2 + $0x164] sm:$0xf0]  ;;  %v1489_v60 = vor.u32 %v1562_v47, %v1488_v43 }
  0x28   : > { %565 = vmatpush.bf16.msra.mxu0 %v1229_v19  ;;  %v1736_v52 = vmax.f32 %v424_v42, 0.0  ;;  %v1542_v58 = vld [vmem:[#allocation2 + $0x164] sm:$0xf]  ;;  %v1408_v59 = vld [vmem:[#allocation2 + $0x168] sm:$0xf0]  ;;  %v1493_v62 = vor.u32 %v1561_v48, %v1490_v49  ;;  %v1407_v5 = vor.u32 %v1543_v54, %v1406_v53  ;;  %s1216_s23 = sshll.u32 %s1888_s9, 1 }
  0x29   : > { %579 = vmatpush.bf16.msra.mxu1 %v1233_v27  ;;  %v1738_v56 = vmax.f32 %v425_v46, 0.0  ;;  %v1480_v63 = vld [vmem:[%s1877_s4 + $0x60] sm:$0xf]  ;;  %v1560_v0 = vld [vmem:[%s1877_s4 + $0x64] sm:$0xf0]  ;;  %v1411_v7 = vor.u32 %v1542_v58, %v1408_v59  ;;  %s397_s26 = scalar_lea.vmem %s1880_s7, %s1216_s23  ;;  %s401_s30 = scalar_lea.vmem %s1881_s8, %s1216_s23 }
  0x2a   : > { %687 = vmatpush.bf16.msra.mxu3 %v1297_v28  ;;  %673 = vmatpush.bf16.msra.mxu2 %v1293_v31  ;;  %v430_v61 = vrot.slane %v1736_v52, 7  ;;  %v1559_v3 = vld [vmem:[%s1877_s4 + $0x64] sm:$0xf]  ;;  %v1482_v4 = vld [vmem:[%s1877_s4 + $0x68] sm:$0xf0]  ;;  %v1481_v12 = vor.u32 %v1560_v0, %v1480_v63 }
  0x2b   : > { %v431_v1 = vrot.slane %v1738_v56, 7  ;;  %v461_v2 = vpack.c.bf16 %v1738_v56, %v1736_v52  ;;  %v1398_v8 = vld [vmem:[#allocation2 + $0x150] sm:$0xf]  ;;  %v1541_v9 = vld [vmem:[#allocation2 + $0x154] sm:$0xf0]  ;;  %v1485_v13 = vor.u32 %v1559_v3, %v1482_v4 }
  0x2c   : > { %566 = vmatpush.bf16.msra.mxu0 %v1221_v40  ;;  %v1540_v10 = vld [vmem:[#allocation2 + $0x154] sm:$0xf]  ;;  %v1400_v11 = vld [vmem:[#allocation2 + $0x158] sm:$0xf0]  ;;  %v1472_v14 = vld [vmem:[%s1877_s4 + $0x50] sm:$0xf]  ;;  %v1399_v18 = vor.u32 %v1541_v9, %v1398_v8 }
  0x2d   : > { %580 = vmatpush.bf16.msra.mxu1 %v1225_v44  ;;  %v1349_v6 = vpack.c.bf16 %v431_v1, %v430_v61  ;;  %v1558_v15 = vld [vmem:[%s1877_s4 + $0x54] sm:$0xf0]  ;;  %v1557_v16 = vld [vmem:[%s1877_s4 + $0x54] sm:$0xf]  ;;  %v1474_v17 = vld [vmem:[%s1877_s4 + $0x58] sm:$0xf0]  ;;  %v1403_v19 = vor.u32 %v1540_v10, %v1400_v11 }
  0x2e   : > { %688 = vmatpush.bf16.msra.mxu3 %v1289_v45  ;;  %674 = vmatpush.bf16.msra.mxu2 %v1285_v50  ;;  %v1390_v20 = vld [vmem:[#allocation2 + $0x140] sm:$0xf]  ;;  %v1539_v21 = vld [vmem:[#allocation2 + $0x144] sm:$0xf0]  ;;  %v1538_v22 = vld [vmem:[#allocation2 + $0x144] sm:$0xf]  ;;  %v1473_v24 = vor.u32 %v1558_v15, %v1472_v14  ;;  %v1477_v25 = vor.u32 %v1557_v16, %v1474_v17 }
  0x2f   : > { %567 = vmatmul.bf16.vlgmr.msra.gmra.mxu0 %v461_v2  ;;  %v1392_v23 = vld [vmem:[#allocation2 + $0x148] sm:$0xf0]  ;;  %v1464_v26 = vld [vmem:[%s1877_s4 + $0x40] sm:$0xf]  ;;  %v1556_v27 = vld [vmem:[%s1877_s4 + $0x44] sm:$0xf0]  ;;  %v1391_v30 = vor.u32 %v1539_v21, %v1390_v20 }
  0x30   : > { %793 = vmatpush.bf16.msrb.mxu0 %v1415_v51  ;;  %581 = vmatmul.bf16.vlgmr.msra.gmra.mxu1 %v461_v2  ;;  %v1555_v28 = vld [vmem:[%s1877_s4 + $0x44] sm:$0xf]  ;;  %v1466_v29 = vld [vmem:[%s1877_s4 + $0x48] sm:$0xf0]  ;;  %v1395_v31 = vor.u32 %v1538_v22, %v1392_v23  ;;  %v1382_v32 = vld [vmem:[#allocation2 + $0x130] sm:$0xf]  ;;  %v1465_v36 = vor.u32 %v1556_v27, %v1464_v26 }
  0x31   : > { %807 = vmatpush.bf16.msrb.mxu1 %v1419_v55  ;;  %1355 = vmatmul.msk.bf16.vlgmr.msra.gmra.mxu3 %vm1348_vm2, %v1349_v6  ;;  %v1537_v33 = vld [vmem:[#allocation2 + $0x134] sm:$0xf0]  ;;  %v1536_v34 = vld [vmem:[#allocation2 + $0x134] sm:$0xf]  ;;  %v1384_v35 = vld [vmem:[#allocation2 + $0x138] sm:$0xf0]  ;;  %v1469_v37 = vor.u32 %v1555_v28, %v1466_v29 }
  0x32   : > { %933 = vmatpush.bf16.msrb.mxu2 %v1489_v60  ;;  %947 = vmatpush.bf16.msrb.mxu3 %v1493_v62  ;;  %v1456_v38 = vld [vmem:[%s1877_s4 + $0x30] sm:$0xf]  ;;  %v1554_v39 = vld [vmem:[%s1877_s4 + $0x34] sm:$0xf0]  ;;  %v1553_v40 = vld [vmem:[%s1877_s4 + $0x34] sm:$0xf]  ;;  %v1383_v42 = vor.u32 %v1537_v33, %v1382_v32  ;;  %v1387_v43 = vor.u32 %v1536_v34, %v1384_v35 }
  0x33   : > { %1350 = vmatmul.msk.bf16.vlgmr.msra.gmra.mxu2 %vm1348_vm2, %v1349_v6  ;;  %v1458_v41 = vld [vmem:[%s1877_s4 + $0x38] sm:$0xf0]  ;;  %v1374_v44 = vld [vmem:[#allocation2 + $0x120] sm:$0xf]  ;;  %v1535_v45 = vld [vmem:[#allocation2 + $0x124] sm:$0xf0]  ;;  %v1457_v48 = vor.u32 %v1554_v39, %v1456_v38 }
  0x34   : > { %794 = vmatpush.bf16.msrb.mxu0 %v1407_v5  ;;  %v1534_v46 = vld [vmem:[#allocation2 + $0x124] sm:$0xf]  ;;  %v1376_v47 = vld [vmem:[#allocation2 + $0x128] sm:$0xf0]  ;;  %v1461_v49 = vor.u32 %v1553_v40, %v1458_v41  ;;  %v1448_v50 = vld [vmem:[%s1877_s4 + $0x20] sm:$0xf]  ;;  %v1375_v55 = vor.u32 %v1535_v45, %v1374_v44 }
  0x35   : > { %808 = vmatpush.bf16.msrb.mxu1 %v1411_v7  ;;  %v1552_v51 = vld [vmem:[%s1877_s4 + $0x24] sm:$0xf0]  ;;  %v1551_v53 = vld [vmem:[%s1877_s4 + $0x24] sm:$0xf]  ;;  %v1450_v54 = vld [vmem:[%s1877_s4 + $0x28] sm:$0xf0]  ;;  %v1379_v57 = vor.u32 %v1534_v46, %v1376_v47 }
  0x36   : > { %934 = vmatpush.bf16.msrb.mxu2 %v1481_v12  ;;  %948 = vmatpush.bf16.msrb.mxu3 %v1485_v13  ;;  %v1366_v58 = vld [vmem:[#allocation2 + $0x110] sm:$0xf]  ;;  %v1533_v59 = vld [vmem:[#allocation2 + $0x114] sm:$0xf0]  ;;  %v1532_v60 = vld [vmem:[#allocation2 + $0x114] sm:$0xf]  ;;  %v1449_v62 = vor.u32 %v1552_v51, %v1448_v50  ;;  %v1453_v63 = vor.u32 %v1551_v53, %v1450_v54 }
  0x37   : > { %v1368_v61 = vld [vmem:[#allocation2 + $0x118] sm:$0xf0]  ;;  %v1440_v0 = vld [vmem:[%s1877_s4 + $0x10] sm:$0xf]  ;;  %v1550_v1 = vld [vmem:[%s1877_s4 + $0x14] sm:$0xf0]  ;;  %v1367_v4 = vor.u32 %v1533_v59, %v1366_v58 }
  0x38   : > { %795 = vmatpush.bf16.msrb.mxu0 %v1399_v18  ;;  %v1549_v2 = vld [vmem:[%s1877_s4 + $0x14] sm:$0xf]  ;;  %v1442_v3 = vld [vmem:[%s1877_s4 + $0x18] sm:$0xf0]  ;;  %v1371_v5 = vor.u32 %v1532_v60, %v1368_v61  ;;  %v1358_v6 = vld [vmem:[#allocation2 + $0x100] sm:$0xf]  ;;  %v1441_v12 = vor.u32 %v1550_v1, %v1440_v0 }
  0x39   : > { %809 = vmatpush.bf16.msrb.mxu1 %v1403_v19  ;;  %v1531_v7 = vld [vmem:[#allocation2 + $0x104] sm:$0xf0]  ;;  %v437_v8 = vrot.slane %v1736_v52, 1  ;;  %v438_v9 = vrot.slane %v1738_v56, 1  ;;  %v1530_v10 = vld [vmem:[#allocation2 + $0x104] sm:$0xf]  ;;  %v1445_v13 = vor.u32 %v1549_v2, %v1442_v3 }
  0x3a   : > { %935 = vmatpush.bf16.msrb.mxu2 %v1473_v24  ;;  %949 = vmatpush.bf16.msrb.mxu3 %v1477_v25  ;;  %v1360_v11 = vld [vmem:[#allocation2 + $0x108] sm:$0xf0]  ;;  %v1432_v14 = vld [vmem:[%s1877_s4] sm:$0xf]  ;;  %v1548_v15 = vld [vmem:[%s1877_s4 + $0x4] sm:$0xf0]  ;;  %v1359_v16 = vor.u32 %v1531_v7, %v1358_v6 }
  0x3b   : > { %v1547_v52 = vld [vmem:[%s1877_s4 + $0x4] sm:$0xf]  ;;  %v1434_v56 = vld [vmem:[%s1877_s4 + $0x8] sm:$0xf0]  ;;  %v1363_v17 = vor.u32 %v1530_v10, %v1360_v11  ;;  %v1433_v18 = vor.u32 %v1548_v15, %v1432_v14  ;;  %v1421_v20 = vpack.c.bf16 %v438_v9, %v437_v8 }
  0x3c   : > { %796 = vmatpush.bf16.msrb.mxu0 %v1391_v30  ;;  %v1437_v19 = vor.u32 %v1547_v52, %v1434_v56  ;;  %v1546_v21 = vld [vmem:[%s1713_s19] sm:$0xff] }
  0x3d   : > { %810 = vmatpush.bf16.msrb.mxu1 %v1395_v31 }
  0x3e   : > { %936 = vmatpush.bf16.msrb.mxu2 %v1465_v36  ;;  %950 = vmatpush.bf16.msrb.mxu3 %v1469_v37 }
  0x40   : > { %797 = vmatpush.bf16.msrb.mxu0 %v1383_v42 }
  0x41   : > { %811 = vmatpush.bf16.msrb.mxu1 %v1387_v43 }
  0x42   : > { %937 = vmatpush.bf16.msrb.mxu2 %v1457_v48  ;;  %951 = vmatpush.bf16.msrb.mxu3 %v1461_v49 }
  0x44   : > { %798 = vmatpush.bf16.msrb.mxu0 %v1375_v55 }
  0x45   : > { %812 = vmatpush.bf16.msrb.mxu1 %v1379_v57 }
  0x46   : > { %938 = vmatpush.bf16.msrb.mxu2 %v1449_v62  ;;  %952 = vmatpush.bf16.msrb.mxu3 %v1453_v63 }
  0x48   : > { %799 = vmatpush.bf16.msrb.mxu0 %v1367_v4 }
  0x49   : > { %813 = vmatpush.bf16.msrb.mxu1 %v1371_v5 }
  0x4a   : > { %939 = vmatpush.bf16.msrb.mxu2 %v1441_v12  ;;  %953 = vmatpush.bf16.msrb.mxu3 %v1445_v13  ;;  %v984_v13 = vlaneseq }
  0x4c   : > { %800 = vmatpush.bf16.msrb.mxu0 %v1359_v16  ;;  %vm986_vm5 = vcmp.lt.s32.totalorder %v984_v13, 256 }
  0x4d   : > { %814 = vmatpush.bf16.msrb.mxu1 %v1363_v17 }
  0x4e   : > { %940 = vmatpush.bf16.msrb.mxu2 %v1433_v18  ;;  %954 = vmatpush.bf16.msrb.mxu3 %v1437_v19 }
  0x4f   : > { %1422 = vmatmul.msk.bf16.vlgmr.msrb.gmra.mxu0 %vm1420_vm4, %v1421_v20 }
  0x50   : > { %1425 = vmatmul.msk.bf16.vlgmr.msrb.gmra.mxu1 %vm1420_vm4, %v1421_v20 }
  0x51   : > { %941 = vmatmul.bf16.vlgmr.msrb.gmra.mxu2 %v1546_v21  ;;  %955 = vmatmul.bf16.vlgmr.msrb.gmra.mxu3 %v1546_v21 }
  0xac   : > { %v568_v22 = vpop.f32.mrf.mxu0 }
  0xad   : > { %v582_v23 = vpop.f32.mrf.mxu1 }
  0xb4   : > { %v690_v25 = vpop.f32.mrf.mxu3  ;;  %v570_v26 = vpop.f32.mrf.mxu0 }
  0xb5   : > { %v584_v27 = vpop.f32.mrf.mxu1  ;;  %v691_v29 = vadd.f32 %v690_v25, %v582_v23 }
  0xb6   : > { %v676_v24 = vpop.f32.mrf.mxu2 }
  0xb7   : > { %v677_v28 = vadd.f32 %v676_v24, %v568_v22 }
  0xbc   : > { %v692_v32 = vpop.f32.mrf.mxu3 }
  0xbd   : > { %v693_v38 = vadd.f32 %v692_v32, %v584_v27 }
  0xbe   : > { %v678_v30 = vpop.f32.mrf.mxu2 }
  0xbf   : > { %v679_v37 = vadd.f32 %v678_v30, %v570_v26 }
  0xcc   : > { %v802_v31 = vpop.f32.mrf.mxu0 }
  0xcd   : > { %v821_v33 = vadd.f32 %v802_v31, %v677_v28  ;;  %v816_v34 = vpop.f32.mrf.mxu1 }
  0xce   : > { %v822_v35 = vadd.f32 %v816_v34, %v691_v29 }
  0xcf   : > { %v989_v46 = vmul.f32 %v821_v33, %v821_v33 }
  0xd0   : > { %v825_v36 = vpack.c.bf16 %v822_v35, %v821_v33  ;;  %v990_v49 = vmul.f32 %v822_v35, %v822_v35 }
  0xd2   : > { %827 = vst [vmem:[%s385_s20] sm:$0xff] %v825_v36 }
  0xd4   : > { %v804_v39 = vpop.f32.mrf.mxu0  ;;  %v942_v40 = vpop.f32.mrf.mxu2 }
  0xd5   : > { %v823_v41 = vadd.f32 %v804_v39, %v679_v37  ;;  %v818_v42 = vpop.f32.mrf.mxu1  ;;  %v956_v43 = vpop.f32.mrf.mxu3 }
  0xd6   : > { %v824_v44 = vadd.f32 %v818_v42, %v693_v38  ;;  %v961_v45 = vpack.c.bf16 %v956_v43, %v942_v40 }
  0xd7   : > { %v965_v47 = vadd.f32 %v823_v41, %v821_v33  ;;  %v991_v48 = vmul.f32 %v823_v41, %v823_v41 }
  0xd8   : > { %v826_v50 = vpack.c.bf16 %v824_v44, %v823_v41  ;;  %v972_v51 = vadd.f32 %v824_v44, %v822_v35  ;;  %v992_v53 = vmul.f32 %v824_v44, %v824_v44  ;;  %963 = vst [vmem:[%s1856_s14] sm:$0xff] %v961_v45 }
  0xd9   : > { %v966_v54 = vrot.slane %v965_v47, 4  ;;  %v993_v55 = vadd.f32 %v991_v48, %v989_v46 }
  0xda   : > { %v973_v57 = vrot.slane %v972_v51, 4  ;;  %v1000_v58 = vadd.f32 %v992_v53, %v990_v49  ;;  %828 = vst [vmem:[%s385_s20 + $0x8] sm:$0xff] %v826_v50 }
  0xdb   : > { %v967_v59 = vadd.f32 %v966_v54, %v965_v47  ;;  %v994_v60 = vrot.slane %v993_v55, 4 }
  0xdc   : > { %v974_v61 = vadd.f32 %v973_v57, %v972_v51  ;;  %v1001_v62 = vrot.slane %v1000_v58, 4  ;;  %v944_v63 = vpop.f32.mrf.mxu2 }
  0xdd   : > { %v968_v0 = vrot.slane %v967_v59, 2  ;;  %v995_v1 = vadd.f32 %v994_v60, %v993_v55  ;;  %v958_v2 = vpop.f32.mrf.mxu3 }
  0xde   : > { %v975_v3 = vrot.slane %v974_v61, 2  ;;  %v1002_v4 = vadd.f32 %v1001_v62, %v1000_v58  ;;  %v962_v5 = vpack.c.bf16 %v958_v2, %v944_v63 }
  0xdf   : > { %v969_v6 = vadd.f32 %v968_v0, %v967_v59  ;;  %v996_v7 = vrot.slane %v995_v1, 2 }
  0xe0   : > { %v976_v8 = vadd.f32 %v975_v3, %v974_v61  ;;  %v1003_v9 = vrot.slane %v1002_v4, 2  ;;  %964 = vst [vmem:[%s1856_s14 + $0x8] sm:$0xff] %v962_v5 }
  0xe1   : > { %v997_v10 = vadd.f32 %v996_v7, %v995_v1  ;;  %v970_v11 = vrot.slane %v969_v6, 1 }
  0xe2   : > { %v977_v12 = vrot.slane %v976_v8, 1  ;;  %v1004_v14 = vadd.f32 %v1003_v9, %v1002_v4 }
  0xe3   : > { %v998_v15 = vrot.slane %v997_v10, 1  ;;  %v971_v16 = vadd.f32 %v970_v11, %v969_v6 }
  0xe4   : > { %v978_v52 = vadd.f32 %v977_v12, %v976_v8  ;;  %v1005_v56 = vrot.slane %v1004_v14, 1 }
  0xe5   : > { %v999_v19 = vadd.f32 %v998_v15, %v997_v10 }
  0xe6   : > { %v981_v17 = vrot.slane %v978_v52, 7  ;;  %v1006_v18 = vadd.f32 %v1005_v56, %v1004_v14 }
  0xe8   : > { %v982_v20 = vsel %vm434_vm0, %v971_v16, %v981_v17  ;;  %v1009_v21 = vrot.slane %v1006_v18, 7 }
  0xe9   : > { %988 = vst.msk [vmem:[%s397_s26] sm:$0x3] %vm986_vm5, %v982_v20 }
  0xea   : > { %v1010_v22 = vsel %vm434_vm0, %v999_v19, %v1009_v21 }
  0xeb   : > { %1012 = vst.msk [vmem:[%s401_s30] sm:$0x3] %vm986_vm5, %v1010_v22 }
  0xec PF: > { %s20_s27 = sadd.s32 1, %s1632_s27  }
  0xed   : > { %p17_p8 = scmp.ge.s32.totalorder %s20_s27, 4  }
  0xef   :  { %19 = sbr.rel (!%p17_p8) target bundleno = 1 (0x1), region = 119 }
  0xf4   :  { %1084 = vsyncpa [#allocation3], 1 }
  0xf5   :  { %1086 = vsyncpa [#allocation3 + $0x1], 1 }

// kernel: generator_forward.13
= control target key start
LH: loop header
LB: loop body
LE: loop exit
PB: predicated region body
PF: predicated region fallthrough
CT: control target
= control target key end

     0   :  { %12 = vsyncpa [#allocation3], 0  ;;  %s2014_s21 = smov 0   ;;  %s2109_s0 = inlined_call_operand.vmem [shape: bf16[4,8,256], index: 0, kind: input, shape index: {}]   ;;  %s2110_s1 = inlined_call_operand.vmem [shape: f32[4,1,256], index: 1, kind: input, shape index: {}]   ;;  %s2111_s2 = inlined_call_operand.vmem [shape: f32[4,1,256], index: 2, kind: input, shape index: {}]   ;;  %s2112_s3 = inlined_call_operand.hbm [shape: bf16[3,256,256], index: 3, kind: input, shape index: {}]   ;;  %s2113_s4 = inlined_call_operand.vmem [shape: bf16[4,8,256], index: 4, kind: output, shape index: {0}]   ;;  %s2114_s5 = inlined_call_operand.vmem [shape: f32[2,1,256], index: 5, kind: output, shape index: {1}]   ;;  %s2115_s6 = inlined_call_operand.vmem [shape: f32[2,1,256], index: 6, kind: output, shape index: {2}]  }
   0x1 LB: > { %s211_s24 = sshll.u32 %s2112_s3, 4  ;;  %s2023_s25 = sadd.s32 4294967295, %s1974_s21   ;;  %s1974_s21 = sphi %s2014_s21, %s18_s21   ;;  %s212_s24 = int_to_ptr.hbm [resolvable:$true] %s211_s24 }
   0x2   : > { %p1380_p0 = scmp.ge.s32.totalorder %s1974_s21, 1  ;;  %p200_p1 = scmp.lt.s32.totalorder %s1974_s21, 3 }
   0x3   : > { %p1921_p2 = scmp.eq.s32.totalorder %s2023_s25, 0  ;;  %s1976_s26 = smov [#allocation2]  }
   0x4   : > { %p201_p3 = pnand %p1380_p0, %p200_p1  ;;  %s213_s27 = sshll.u32 %s1976_s26, 4  ;;  %s214_s27 = int_to_ptr.vmem [resolvable:$true] %s213_s27 }
   0x5   : > { %s1977_s28 = smov 128   ;;  %s1978_s29 = smov 8  }
   0x6   : > { %p1917_p4 = pneg %p201_p3  ;;  %257 = sbr.rel (%p201_p3) target bundleno = 277 (0x115), region = 36 }
   0x8   : > { %p1918_p5 = pnand %p1921_p2, %p1917_p4 }
   0xa   : > { %1920 = dma.hbm_to_vmem [thread:$0]  (!%p1918_p5), %s212_s24, 12288, %s214_s27, [#allocation3], %s1977_s28, %s1977_s28, %s1978_s29  }
   0xb   : > { %1969 = dma.done.wait (%p1921_p2), [#allocation3], 12288  }
   0xc   : > { %1971 = vsyncadd (%p1921_p2), [#allocation3], 4294955008  ;;  %v1455_v0 = vld [vmem:[#allocation2 + $0x170] sm:$0xf]  ;;  %v1864_v1 = vld [vmem:[#allocation2 + $0x174] sm:$0xf0] }
   0xd   : > { %v1519_v2 = vld [vmem:[#allocation2 + $0x1f0] sm:$0xf]  ;;  %v1456_v3 = vor.u32 %v1864_v1, %v1455_v0  ;;  %v1880_v4 = vld [vmem:[#allocation2 + $0x1f4] sm:$0xf0]  ;;  %v1863_v5 = vld [vmem:[#allocation2 + $0x174] sm:$0xf] }
   0xe   : > { %v1457_v6 = vld [vmem:[#allocation2 + $0x178] sm:$0xf0]  ;;  %v1520_v7 = vor.u32 %v1880_v4, %v1519_v2  ;;  %v1879_v9 = vld [vmem:[#allocation2 + $0x1f4] sm:$0xf]  ;;  %v1447_v11 = vld [vmem:[#allocation2 + $0x160] sm:$0xf] }
   0xf   : > { %v1460_v8 = vor.u32 %v1863_v5, %v1457_v6  ;;  %v1521_v10 = vld [vmem:[#allocation2 + $0x1f8] sm:$0xf0]  ;;  %643 = vmatpush.bf16.msra.mxu0 %v1456_v3  ;;  %v1862_v13 = vld [vmem:[#allocation2 + $0x164] sm:$0xf0]  ;;  %v1511_v14 = vld [vmem:[#allocation2 + $0x1e0] sm:$0xf] }
  0x10   : > { %v1524_v12 = vor.u32 %v1879_v9, %v1521_v10  ;;  %v1878_v15 = vld [vmem:[#allocation2 + $0x1e4] sm:$0xf0]  ;;  %657 = vmatpush.bf16.msra.mxu1 %v1520_v7  ;;  %v1448_v16 = vor.u32 %v1862_v13, %v1447_v11  ;;  %v1861_v18 = vld [vmem:[#allocation2 + $0x164] sm:$0xf]  ;;  %v1449_v19 = vld [vmem:[#allocation2 + $0x168] sm:$0xf0] }
  0x11   : > { %671 = vmatpush.bf16.msra.mxu2 %v1460_v8  ;;  %v1512_v17 = vor.u32 %v1878_v15, %v1511_v14  ;;  %v1877_v20 = vld [vmem:[#allocation2 + $0x1e4] sm:$0xf]  ;;  %v1452_v21 = vor.u32 %v1861_v18, %v1449_v19  ;;  %v1513_v22 = vld [vmem:[#allocation2 + $0x1e8] sm:$0xf0]  ;;  %v1439_v23 = vld [vmem:[#allocation2 + $0x150] sm:$0xf] }
  0x12   : > { %685 = vmatpush.bf16.msra.mxu3 %v1524_v12  ;;  %v1860_v24 = vld [vmem:[#allocation2 + $0x154] sm:$0xf0]  ;;  %v1516_v25 = vor.u32 %v1877_v20, %v1513_v22  ;;  %v1503_v26 = vld [vmem:[#allocation2 + $0x1d0] sm:$0xf]  ;;  %v1859_v28 = vld [vmem:[#allocation2 + $0x154] sm:$0xf] }
  0x13   : > { %v1876_v27 = vld [vmem:[#allocation2 + $0x1d4] sm:$0xf0]  ;;  %644 = vmatpush.bf16.msra.mxu0 %v1448_v16  ;;  %v1440_v29 = vor.u32 %v1860_v24, %v1439_v23  ;;  %v1441_v30 = vld [vmem:[#allocation2 + $0x158] sm:$0xf0]  ;;  %v1875_v31 = vld [vmem:[#allocation2 + $0x1d4] sm:$0xf] }
  0x14   : > { %v1505_v32 = vld [vmem:[#allocation2 + $0x1d8] sm:$0xf0]  ;;  %658 = vmatpush.bf16.msra.mxu1 %v1512_v17  ;;  %v1504_v33 = vor.u32 %v1876_v27, %v1503_v26  ;;  %v1444_v34 = vor.u32 %v1859_v28, %v1441_v30  ;;  %v1431_v35 = vld [vmem:[#allocation2 + $0x140] sm:$0xf]  ;;  %v1858_v36 = vld [vmem:[#allocation2 + $0x144] sm:$0xf0] }
  0x15   : > { %672 = vmatpush.bf16.msra.mxu2 %v1452_v21  ;;  %v1495_v37 = vld [vmem:[#allocation2 + $0x1c0] sm:$0xf]  ;;  %v1508_v38 = vor.u32 %v1875_v31, %v1505_v32  ;;  %v1874_v39 = vld [vmem:[#allocation2 + $0x1c4] sm:$0xf0]  ;;  %v1857_v40 = vld [vmem:[#allocation2 + $0x144] sm:$0xf]  ;;  %v1432_v44 = vor.u32 %v1858_v36, %v1431_v35 }
  0x16   : > { %686 = vmatpush.bf16.msra.mxu3 %v1516_v25  ;;  %v1433_v41 = vld [vmem:[#allocation2 + $0x148] sm:$0xf0]  ;;  %v1873_v42 = vld [vmem:[#allocation2 + $0x1c4] sm:$0xf]  ;;  %s1385_s30 = sshll.u32 %s2023_s25, 1  ;;  %v1496_v45 = vor.u32 %v1874_v39, %v1495_v37  ;;  %vm396_vm0 = vcmask 1040384  }
  0x17   : > { %v1497_v43 = vld [vmem:[#allocation2 + $0x1c8] sm:$0xf0]  ;;  %645 = vmatpush.bf16.msra.mxu0 %v1440_v29  ;;  %v1436_v46 = vor.u32 %v1857_v40, %v1433_v41  ;;  %v1423_v47 = vld [vmem:[#allocation2 + $0x130] sm:$0xf]  ;;  %v1856_v48 = vld [vmem:[#allocation2 + $0x134] sm:$0xf0] }
  0x18   : > { %659 = vmatpush.bf16.msra.mxu1 %v1504_v33  ;;  %v1487_v49 = vld [vmem:[#allocation2 + $0x1b0] sm:$0xf]  ;;  %v1500_v50 = vor.u32 %v1873_v42, %v1497_v43  ;;  %v1872_v51 = vld [vmem:[#allocation2 + $0x1b4] sm:$0xf0]  ;;  %v1855_v52 = vld [vmem:[#allocation2 + $0x134] sm:$0xf]  ;;  %v1424_v56 = vor.u32 %v1856_v48, %v1423_v47 }
  0x19   : > { %673 = vmatpush.bf16.msra.mxu2 %v1444_v34  ;;  %v1425_v53 = vld [vmem:[#allocation2 + $0x138] sm:$0xf0]  ;;  %v1871_v54 = vld [vmem:[#allocation2 + $0x1b4] sm:$0xf]  ;;  %p2031_p6 = scmp.lt.s32.totalorder %s1385_s30, 3  ;;  %v1488_v57 = vor.u32 %v1872_v51, %v1487_v49  ;;  %vm1653_vm1 = vmneg %vm396_vm0  ;;  %vm409_vm3 = vcmask 1046528  }
  0x1a   : > { %687 = vmatpush.bf16.msra.mxu3 %v1508_v38  ;;  %v1489_v55 = vld [vmem:[#allocation2 + $0x1b8] sm:$0xf0]  ;;  %v1428_v58 = vor.u32 %v1855_v52, %v1425_v53  ;;  %v1415_v59 = vld [vmem:[#allocation2 + $0x120] sm:$0xf]  ;;  %v1854_v60 = vld [vmem:[#allocation2 + $0x124] sm:$0xf0] }
  0x1b   : > { %646 = vmatpush.bf16.msra.mxu0 %v1432_v44  ;;  %v1479_v61 = vld [vmem:[#allocation2 + $0x1a0] sm:$0xf]  ;;  %v1492_v62 = vor.u32 %v1871_v54, %v1489_v55  ;;  %v1870_v63 = vld [vmem:[#allocation2 + $0x1a4] sm:$0xf0]  ;;  %v1853_v0 = vld [vmem:[#allocation2 + $0x124] sm:$0xf]  ;;  %v1416_v4 = vor.u32 %v1854_v60, %v1415_v59 }
  0x1c   : > { %660 = vmatpush.bf16.msra.mxu1 %v1496_v45  ;;  %v1417_v1 = vld [vmem:[#allocation2 + $0x128] sm:$0xf0]  ;;  %v1869_v2 = vld [vmem:[#allocation2 + $0x1a4] sm:$0xf]  ;;  %s2120_s30 = smov (!%p2031_p6, %s1385_s30), 3  ;;  %v1480_v5 = vor.u32 %v1870_v63, %v1479_v61  ;;  %vm2075_vm2 = vmpackc.low %vm1653_vm1, %vm1653_vm1  ;;  %p334_p7 = scmp.lt.s32.totalorder %s2023_s25, 1 }
  0x1d   : > { %674 = vmatpush.bf16.msra.mxu2 %v1436_v46  ;;  %v1481_v3 = vld [vmem:[#allocation2 + $0x1a8] sm:$0xf0]  ;;  %v1420_v6 = vor.u32 %v1853_v0, %v1417_v1  ;;  %v1407_v7 = vld [vmem:[#allocation2 + $0x110] sm:$0xf]  ;;  %v1852_v8 = vld [vmem:[#allocation2 + $0x114] sm:$0xf0] }
  0x1e   : > { %688 = vmatpush.bf16.msra.mxu3 %v1500_v50  ;;  %v1471_v9 = vld [vmem:[#allocation2 + $0x190] sm:$0xf]  ;;  %v1484_v10 = vor.u32 %v1869_v2, %v1481_v3  ;;  %v1868_v11 = vld [vmem:[#allocation2 + $0x194] sm:$0xf0]  ;;  %v1851_v12 = vld [vmem:[#allocation2 + $0x114] sm:$0xf]  ;;  %v1408_v16 = vor.u32 %v1852_v8, %v1407_v7 }
  0x1f   : > { %647 = vmatpush.bf16.msra.mxu0 %v1424_v56  ;;  %v1409_v13 = vld [vmem:[#allocation2 + $0x118] sm:$0xf0]  ;;  %v1867_v14 = vld [vmem:[#allocation2 + $0x194] sm:$0xf]  ;;  %v1399_v17 = vld [vmem:[#allocation2 + $0x100] sm:$0xf]  ;;  %v1472_v19 = vor.u32 %v1868_v11, %v1471_v9 }
  0x20   : > { %661 = vmatpush.bf16.msra.mxu1 %v1488_v57  ;;  %v1473_v15 = vld [vmem:[#allocation2 + $0x198] sm:$0xf0]  ;;  %v1850_v18 = vld [vmem:[#allocation2 + $0x104] sm:$0xf0]  ;;  %s1815_s8 = sshll.u32 %s2120_s30, 3  ;;  %s1389_s9 = sshll.u32 %s2120_s30, 1  ;;  %v1412_v20 = vor.u32 %v1851_v12, %v1409_v13  ;;  %vm1801_vm4 = vmpackc.low %vm409_vm3, %vm409_vm3 }
  0x21   : > { %675 = vmatpush.bf16.msra.mxu2 %v1428_v58  ;;  %v1463_v21 = vld [vmem:[#allocation2 + $0x180] sm:$0xf]  ;;  %v1866_v22 = vld [vmem:[#allocation2 + $0x184] sm:$0xf0]  ;;  %v1849_v23 = vld [vmem:[#allocation2 + $0x104] sm:$0xf]  ;;  %v1476_v24 = vor.u32 %v1867_v14, %v1473_v15  ;;  %v1400_v31 = vor.u32 %v1850_v18, %v1399_v17  ;;  %s313_s12 = scalar_lea.vmem %s2109_s0, %s1815_s8  ;;  %s319_s15 = scalar_lea.vmem %s2110_s1, %s1389_s9 }
  0x22   : > { %689 = vmatpush.bf16.msra.mxu3 %v1492_v62  ;;  %v1401_v25 = vld [vmem:[#allocation2 + $0x108] sm:$0xf0]  ;;  %v1865_v26 = vld [vmem:[#allocation2 + $0x184] sm:$0xf]  ;;  %v1583_v28 = vld [vmem:[#allocation2 + $0x70] sm:$0xf]  ;;  %v1464_v35 = vor.u32 %v1866_v22, %v1463_v21  ;;  %s325_s18 = scalar_lea.vmem %s2111_s2, %s1389_s9  ;;  %s332_s22 = scalar_lea.vmem %s2113_s4, %s1815_s8 }
  0x23   : > { %648 = vmatpush.bf16.msra.mxu0 %v1416_v4  ;;  %v1465_v27 = vld [vmem:[#allocation2 + $0x188] sm:$0xf0]  ;;  %v1832_v29 = vld [vmem:[#allocation2 + $0x74] sm:$0xf0]  ;;  %v1647_v30 = vld [vmem:[#allocation2 + $0xf0] sm:$0xf]  ;;  %v1404_v36 = vor.u32 %v1849_v23, %v1401_v25 }
  0x24   : > { %662 = vmatpush.bf16.msra.mxu1 %v1480_v5  ;;  %v1848_v32 = vld [vmem:[#allocation2 + $0xf4] sm:$0xf0]  ;;  %v1831_v33 = vld [vmem:[#allocation2 + $0x74] sm:$0xf]  ;;  %v1585_v34 = vld [vmem:[#allocation2 + $0x78] sm:$0xf0]  ;;  %v1468_v40 = vor.u32 %v1865_v26, %v1465_v27  ;;  %v1584_v41 = vor.u32 %v1832_v29, %v1583_v28 }
  0x25   : > { %676 = vmatpush.bf16.msra.mxu2 %v1420_v6  ;;  %v1847_v37 = vld [vmem:[#allocation2 + $0xf4] sm:$0xf]  ;;  %v1649_v38 = vld [vmem:[#allocation2 + $0xf8] sm:$0xf0]  ;;  %v1575_v39 = vld [vmem:[#allocation2 + $0x60] sm:$0xf]  ;;  %v1648_v45 = vor.u32 %v1848_v32, %v1647_v30  ;;  %v1588_v46 = vor.u32 %v1831_v33, %v1585_v34 }
  0x26   : > { %690 = vmatpush.bf16.msra.mxu3 %v1484_v10  ;;  %v1830_v42 = vld [vmem:[#allocation2 + $0x64] sm:$0xf0]  ;;  %v1639_v43 = vld [vmem:[#allocation2 + $0xe0] sm:$0xf]  ;;  %v1829_v47 = vld [vmem:[#allocation2 + $0x64] sm:$0xf]  ;;  %v1652_v49 = vor.u32 %v1847_v37, %v1649_v38 }
  0x27   : > { %649 = vmatpush.bf16.msra.mxu0 %v1408_v16  ;;  %v1846_v44 = vld [vmem:[#allocation2 + $0xe4] sm:$0xf0]  ;;  %v1577_v48 = vld [vmem:[#allocation2 + $0x68] sm:$0xf0]  ;;  %v1845_v50 = vld [vmem:[#allocation2 + $0xe4] sm:$0xf]  ;;  %v1576_v52 = vor.u32 %v1830_v42, %v1575_v39 }
  0x28   : > { %663 = vmatpush.bf16.msra.mxu1 %v1472_v19  ;;  %v1641_v51 = vld [vmem:[#allocation2 + $0xe8] sm:$0xf0]  ;;  %v1640_v53 = vor.u32 %v1846_v44, %v1639_v43  ;;  %v1567_v54 = vld [vmem:[#allocation2 + $0x50] sm:$0xf]  ;;  %v1828_v55 = vld [vmem:[#allocation2 + $0x54] sm:$0xf0]  ;;  %v1580_v60 = vor.u32 %v1829_v47, %v1577_v48 }
  0x29   : > { %677 = vmatpush.bf16.msra.mxu2 %v1412_v20  ;;  %v1631_v56 = vld [vmem:[#allocation2 + $0xd0] sm:$0xf]  ;;  %v342_v57 = vld [vmem:[%s313_s12] sm:$0xff]  ;;  %v343_v58 = vld [vmem:[%s313_s12 + $0x8] sm:$0xff]  ;;  %v1644_v2 = vor.u32 %v1845_v50, %v1641_v51  ;;  %v1568_v17 = vor.u32 %v1828_v55, %v1567_v54  ;;  %s2122_s25 = smov (!%p334_p7, %s2023_s25), 1 }
  0x2a   : > { %691 = vmatpush.bf16.msra.mxu3 %v1476_v24  ;;  %v348_v59 = vld [vmem:[%s319_s15] sm:$0x3]  ;;  %v344_v61 = vunpack.c.l.bf16 %v342_v57  ;;  %v346_v62 = vunpack.c.l.bf16 %v343_v58  ;;  %v349_v63 = vld [vmem:[%s319_s15 + $0x2] sm:$0x3]  ;;  %v1844_v3 = vld [vmem:[#allocation2 + $0xd4] sm:$0xf0]  ;;  %v345_v7 = vunpack.c.h.bf16 %v342_v57  ;;  %v347_v12 = vunpack.c.h.bf16 %v343_v58 }
  0x2b   : > { %650 = vmatpush.bf16.msra.mxu0 %v1400_v31  ;;  %v352_v0 = vperm.slane %v348_v59, 0  ;;  %v364_v1 = vld [vmem:[%s325_s18] sm:$0x3]  ;;  %v354_v4 = vperm.slane %v349_v63, 0  ;;  %v365_v5 = vld [vmem:[%s325_s18 + $0x2] sm:$0x3]  ;;  %v1632_v18 = vor.u32 %v1844_v3, %v1631_v56 }
  0x2c   : > { %664 = vmatpush.bf16.msra.mxu1 %v1464_v35  ;;  %v368_v6 = vperm.slane %v364_v1, 0  ;;  %v1827_v8 = vld [vmem:[#allocation2 + $0x54] sm:$0xf]  ;;  %v1569_v9 = vld [vmem:[#allocation2 + $0x58] sm:$0xf0]  ;;  %v370_v11 = vperm.slane %v365_v5, 0 }
  0x2d   : > { %678 = vmatpush.bf16.msra.mxu2 %v1404_v36  ;;  %v360_v10 = vmul.f32 %v352_v0, %v344_v61  ;;  %v353_v13 = vperm.slane %v348_v59, 1  ;;  %v1843_v14 = vld [vmem:[#allocation2 + $0xd4] sm:$0xf]  ;;  %v1633_v15 = vld [vmem:[#allocation2 + $0xd8] sm:$0xf0]  ;;  %v362_v16 = vmul.f32 %v354_v4, %v346_v62  ;;  %v355_v22 = vperm.slane %v349_v63, 1 }
  0x2e   : > { %692 = vmatpush.bf16.msra.mxu3 %v1468_v40  ;;  %v1559_v19 = vld [vmem:[#allocation2 + $0x40] sm:$0xf]  ;;  %v1826_v20 = vld [vmem:[#allocation2 + $0x44] sm:$0xf0]  ;;  %v1572_v23 = vor.u32 %v1827_v8, %v1569_v9  ;;  %v369_v28 = vperm.slane %v364_v1, 1  ;;  %v1636_v29 = vor.u32 %v1843_v14, %v1633_v15  ;;  %v371_v34 = vperm.slane %v365_v5, 1 }
  0x2f   : > { %859 = vmatpush.bf16.msrb.mxu0 %v1584_v41  ;;  %v376_v21 = vadd.f32 %v368_v6, %v360_v10  ;;  %v1623_v24 = vld [vmem:[#allocation2 + $0xc0] sm:$0xf]  ;;  %v1842_v25 = vld [vmem:[#allocation2 + $0xc4] sm:$0xf0]  ;;  %v378_v26 = vadd.f32 %v370_v11, %v362_v16  ;;  %v361_v27 = vmul.f32 %v353_v13, %v345_v7  ;;  %v1825_v30 = vld [vmem:[#allocation2 + $0x44] sm:$0xf]  ;;  %v363_v33 = vmul.f32 %v355_v22, %v347_v12 }
  0x30   : > { %873 = vmatpush.bf16.msrb.mxu1 %v1648_v45  ;;  %v1561_v31 = vld [vmem:[#allocation2 + $0x48] sm:$0xf0]  ;;  %v1841_v35 = vld [vmem:[#allocation2 + $0xc4] sm:$0xf]  ;;  %v1560_v39 = vor.u32 %v1826_v20, %v1559_v19  ;;  %v1551_v40 = vld [vmem:[#allocation2 + $0x30] sm:$0xf]  ;;  %v1624_v43 = vor.u32 %v1842_v25, %v1623_v24 }
  0x31   : > { %887 = vmatpush.bf16.msrb.mxu2 %v1588_v46  ;;  %v2058_v32 = vmax.f32 %v376_v21, 0.0  ;;  %v1625_v36 = vld [vmem:[#allocation2 + $0xc8] sm:$0xf0]  ;;  %v2060_v37 = vmax.f32 %v378_v26, 0.0  ;;  %v377_v38 = vadd.f32 %v369_v28, %v361_v27  ;;  %v1824_v41 = vld [vmem:[#allocation2 + $0x34] sm:$0xf0]  ;;  %v379_v42 = vadd.f32 %v371_v34, %v363_v33 }
  0x32   : > { %901 = vmatpush.bf16.msrb.mxu3 %v1652_v49  ;;  %v1564_v44 = vor.u32 %v1825_v30, %v1561_v31  ;;  %v1615_v46 = vld [vmem:[#allocation2 + $0xb0] sm:$0xf]  ;;  %v1840_v47 = vld [vmem:[#allocation2 + $0xb4] sm:$0xf0]  ;;  %v1628_v49 = vor.u32 %v1841_v35, %v1625_v36  ;;  %v1823_v50 = vld [vmem:[#allocation2 + $0x34] sm:$0xf]  ;;  %v1552_v55 = vor.u32 %v1824_v41, %v1551_v40 }
  0x33   : > { %860 = vmatpush.bf16.msrb.mxu0 %v1576_v52  ;;  %v448_v45 = vpack.c.bf16 %v2060_v37, %v2058_v32  ;;  %v2064_v48 = vmax.f32 %v377_v38, 0.0  ;;  %v1553_v51 = vld [vmem:[#allocation2 + $0x38] sm:$0xf0]  ;;  %v2066_v52 = vmax.f32 %v379_v42, 0.0  ;;  %v1616_v57 = vor.u32 %v1840_v47, %v1615_v46  ;;  %v1543_v59 = vld [vmem:[#allocation2 + $0x20] sm:$0xf] }
  0x34   : > { %874 = vmatpush.bf16.msrb.mxu1 %v1640_v53  ;;  %v1839_v53 = vld [vmem:[#allocation2 + $0xb4] sm:$0xf]  ;;  %v1617_v54 = vld [vmem:[#allocation2 + $0xb8] sm:$0xf0]  ;;  %v1556_v58 = vor.u32 %v1823_v50, %v1553_v51  ;;  %v1607_v61 = vld [vmem:[#allocation2 + $0xa0] sm:$0xf] }
  0x35   : > { %888 = vmatpush.bf16.msrb.mxu2 %v1580_v60  ;;  %651 = vmatmul.bf16.vlgmr.msra.gmra.mxu0 %v448_v45  ;;  %v449_v56 = vpack.c.bf16 %v2066_v52, %v2064_v48  ;;  %v1822_v60 = vld [vmem:[#allocation2 + $0x24] sm:$0xf0]  ;;  %v1620_v62 = vor.u32 %v1839_v53, %v1617_v54  ;;  %v1821_v0 = vld [vmem:[#allocation2 + $0x24] sm:$0xf]  ;;  %v1545_v1 = vld [vmem:[#allocation2 + $0x28] sm:$0xf0] }
  0x36   : > { %902 = vmatpush.bf16.msrb.mxu3 %v1644_v2  ;;  %679 = vmatmul.bf16.vlgmr.msra.gmra.mxu2 %v448_v45  ;;  %v1838_v63 = vld [vmem:[#allocation2 + $0xa4] sm:$0xf0]  ;;  %v1837_v2 = vld [vmem:[#allocation2 + $0xa4] sm:$0xf]  ;;  %v1609_v3 = vld [vmem:[#allocation2 + $0xa8] sm:$0xf0]  ;;  %v1544_v4 = vor.u32 %v1822_v60, %v1543_v59  ;;  %v1548_v6 = vor.u32 %v1821_v0, %v1545_v1 }
  0x37   : > { %861 = vmatpush.bf16.msrb.mxu0 %v1568_v17  ;;  %665 = vmatmul.bf16.vlgmr.msra.gmra.mxu1 %v449_v56  ;;  %v1608_v5 = vor.u32 %v1838_v63, %v1607_v61  ;;  %v1535_v7 = vld [vmem:[#allocation2 + $0x10] sm:$0xf]  ;;  %v1820_v8 = vld [vmem:[#allocation2 + $0x14] sm:$0xf0]  ;;  %v1612_v10 = vor.u32 %v1837_v2, %v1609_v3  ;;  %v1819_v12 = vld [vmem:[#allocation2 + $0x14] sm:$0xf] }
  0x38   : > { %875 = vmatpush.bf16.msrb.mxu1 %v1632_v18  ;;  %693 = vmatmul.bf16.vlgmr.msra.gmra.mxu3 %v449_v56  ;;  %v1599_v9 = vld [vmem:[#allocation2 + $0x90] sm:$0xf]  ;;  %v1836_v11 = vld [vmem:[#allocation2 + $0x94] sm:$0xf0]  ;;  %v1537_v13 = vld [vmem:[#allocation2 + $0x18] sm:$0xf0]  ;;  %v1536_v16 = vor.u32 %v1820_v8, %v1535_v7 }
  0x39   : > { %889 = vmatpush.bf16.msrb.mxu2 %v1572_v23  ;;  %v1835_v14 = vld [vmem:[#allocation2 + $0x94] sm:$0xf]  ;;  %v1601_v15 = vld [vmem:[#allocation2 + $0x98] sm:$0xf0]  ;;  %v1527_v17 = vld [vmem:[#allocation2] sm:$0xf]  ;;  %v1600_v21 = vor.u32 %v1836_v11, %v1599_v9  ;;  %v1540_v22 = vor.u32 %v1819_v12, %v1537_v13 }
  0x3a   : > { %903 = vmatpush.bf16.msrb.mxu3 %v1636_v29  ;;  %v1818_v18 = vld [vmem:[#allocation2 + $0x4] sm:$0xf0]  ;;  %v388_v19 = vrot.slane %v2058_v32, 7  ;;  %v390_v20 = vrot.slane %v2060_v37, 7  ;;  %v1591_v23 = vld [vmem:[#allocation2 + $0x80] sm:$0xf]  ;;  %v1604_v26 = vor.u32 %v1835_v14, %v1601_v15 }
  0x3b   : > { %862 = vmatpush.bf16.msrb.mxu0 %v1560_v39  ;;  %v1834_v24 = vld [vmem:[#allocation2 + $0x84] sm:$0xf0]  ;;  %v1817_v25 = vld [vmem:[#allocation2 + $0x4] sm:$0xf]  ;;  %v1529_v27 = vld [vmem:[#allocation2 + $0x8] sm:$0xf0]  ;;  %v1528_v34 = vor.u32 %v1818_v18, %v1527_v17 }
  0x3c   : > { %876 = vmatpush.bf16.msrb.mxu1 %v1624_v43  ;;  %v1833_v28 = vld [vmem:[#allocation2 + $0x84] sm:$0xf]  ;;  %v1593_v29 = vld [vmem:[#allocation2 + $0x88] sm:$0xf0]  ;;  %v1731_v30 = vld [vmem:[#allocation2 + $0x270] sm:$0xf]  ;;  %v1592_v39 = vor.u32 %v1834_v24, %v1591_v23  ;;  %v1532_v40 = vor.u32 %v1817_v25, %v1529_v27 }
  0x3d   : > { %890 = vmatpush.bf16.msrb.mxu2 %v1564_v44  ;;  %v1896_v31 = vld [vmem:[#allocation2 + $0x274] sm:$0xf0]  ;;  %v1795_v33 = vld [vmem:[#allocation2 + $0x2f0] sm:$0xf]  ;;  %v1895_v36 = vld [vmem:[#allocation2 + $0x274] sm:$0xf]  ;;  %v1596_v45 = vor.u32 %v1833_v28, %v1593_v29 }
  0x3e   : > { %904 = vmatpush.bf16.msrb.mxu3 %v1628_v49  ;;  %v1912_v35 = vld [vmem:[#allocation2 + $0x2f4] sm:$0xf0]  ;;  %v1733_v38 = vld [vmem:[#allocation2 + $0x278] sm:$0xf0]  ;;  %v1911_v41 = vld [vmem:[#allocation2 + $0x2f4] sm:$0xf]  ;;  %v1732_v46 = vor.u32 %v1896_v31, %v1731_v30 }
  0x3f   : > { %863 = vmatpush.bf16.msrb.mxu0 %v1552_v55  ;;  %v1797_v42 = vld [vmem:[#allocation2 + $0x2f8] sm:$0xf0]  ;;  %v389_v43 = vrot.slane %v2064_v48, 7  ;;  %v391_v44 = vrot.slane %v2066_v52, 7  ;;  %v1796_v47 = vor.u32 %v1912_v35, %v1795_v33  ;;  %v1736_v49 = vor.u32 %v1895_v36, %v1733_v38  ;;  %v1723_v50 = vld [vmem:[#allocation2 + $0x260] sm:$0xf] }
  0x40   : > { %877 = vmatpush.bf16.msrb.mxu1 %v1616_v57  ;;  %v1894_v51 = vld [vmem:[#allocation2 + $0x264] sm:$0xf0]  ;;  %v1787_v53 = vld [vmem:[#allocation2 + $0x2e0] sm:$0xf]  ;;  %v1800_v54 = vor.u32 %v1911_v41, %v1797_v42  ;;  %v1656_v55 = vpack.c.bf16 %v390_v20, %v388_v19  ;;  %v1893_v57 = vld [vmem:[#allocation2 + $0x264] sm:$0xf] }
  0x41   : > { %891 = vmatpush.bf16.msrb.mxu2 %v1556_v58  ;;  %v1910_v56 = vld [vmem:[#allocation2 + $0x2e4] sm:$0xf0]  ;;  %v1725_v58 = vld [vmem:[#allocation2 + $0x268] sm:$0xf0]  ;;  %v1661_v60 = vpack.c.bf16 %v391_v44, %v389_v43  ;;  %v1909_v61 = vld [vmem:[#allocation2 + $0x2e4] sm:$0xf]  ;;  %v1724_v63 = vor.u32 %v1894_v51, %v1723_v50 }
  0x42   : > { %905 = vmatpush.bf16.msrb.mxu3 %v1620_v62  ;;  %v1789_v62 = vld [vmem:[#allocation2 + $0x2e8] sm:$0xf0]  ;;  %v1788_v0 = vor.u32 %v1910_v56, %v1787_v53  ;;  %v1728_v1 = vor.u32 %v1893_v57, %v1725_v58  ;;  %v1715_v2 = vld [vmem:[#allocation2 + $0x250] sm:$0xf]  ;;  %v1892_v3 = vld [vmem:[#allocation2 + $0x254] sm:$0xf0] }
  0x43   : > { %864 = vmatpush.bf16.msrb.mxu0 %v1544_v4  ;;  %v1779_v4 = vld [vmem:[#allocation2 + $0x2d0] sm:$0xf]  ;;  %v1891_v7 = vld [vmem:[#allocation2 + $0x254] sm:$0xf]  ;;  %v1717_v8 = vld [vmem:[#allocation2 + $0x258] sm:$0xf0]  ;;  %v1716_v11 = vor.u32 %v1892_v3, %v1715_v2 }
  0x44   : > { %878 = vmatpush.bf16.msrb.mxu1 %v1608_v5  ;;  %v1792_v5 = vor.u32 %v1909_v61, %v1789_v62  ;;  %v1907_v9 = vld [vmem:[#allocation2 + $0x2d4] sm:$0xf]  ;;  %v1720_v13 = vor.u32 %v1891_v7, %v1717_v8  ;;  %v1707_v14 = vld [vmem:[#allocation2 + $0x240] sm:$0xf]  ;;  %v1890_v15 = vld [vmem:[#allocation2 + $0x244] sm:$0xf0] }
  0x45   : > { %892 = vmatpush.bf16.msrb.mxu2 %v1548_v6  ;;  %v1908_v6 = vld [vmem:[#allocation2 + $0x2d4] sm:$0xf0]  ;;  %v1906_v18 = vld [vmem:[#allocation2 + $0x2c4] sm:$0xf0]  ;;  %v1889_v19 = vld [vmem:[#allocation2 + $0x244] sm:$0xf]  ;;  %v1708_v23 = vor.u32 %v1890_v15, %v1707_v14 }
  0x46   : > { %906 = vmatpush.bf16.msrb.mxu3 %v1612_v10  ;;  %v1781_v10 = vld [vmem:[#allocation2 + $0x2d8] sm:$0xf0]  ;;  %v1780_v12 = vor.u32 %v1908_v6, %v1779_v4  ;;  %v1709_v20 = vld [vmem:[#allocation2 + $0x248] sm:$0xf0]  ;;  %v1888_v27 = vld [vmem:[#allocation2 + $0x234] sm:$0xf0] }
  0x47   : > { %865 = vmatpush.bf16.msrb.mxu0 %v1536_v16  ;;  %v1771_v16 = vld [vmem:[#allocation2 + $0x2c0] sm:$0xf]  ;;  %v1784_v17 = vor.u32 %v1907_v9, %v1781_v10  ;;  %v1712_v25 = vor.u32 %v1889_v19, %v1709_v20  ;;  %v1763_v28 = vld [vmem:[#allocation2 + $0x2b0] sm:$0xf]  ;;  %v1904_v30 = vld [vmem:[#allocation2 + $0x2b4] sm:$0xf0] }
  0x48   : > { %879 = vmatpush.bf16.msrb.mxu1 %v1600_v21  ;;  %v1905_v21 = vld [vmem:[#allocation2 + $0x2c4] sm:$0xf]  ;;  %v1772_v24 = vor.u32 %v1906_v18, %v1771_v16  ;;  %v1887_v31 = vld [vmem:[#allocation2 + $0x234] sm:$0xf]  ;;  %v1701_v33 = vld [vmem:[#allocation2 + $0x238] sm:$0xf0]  ;;  %v1764_v38 = vor.u32 %v1904_v30, %v1763_v28 }
  0x49   : > { %893 = vmatpush.bf16.msrb.mxu2 %v1540_v22  ;;  %v1773_v22 = vld [vmem:[#allocation2 + $0x2c8] sm:$0xf0]  ;;  %v1765_v35 = vld [vmem:[#allocation2 + $0x2b8] sm:$0xf0]  ;;  %v1886_v41 = vld [vmem:[#allocation2 + $0x224] sm:$0xf0] }
  0x4a   : > { %907 = vmatpush.bf16.msrb.mxu3 %v1604_v26  ;;  %v1699_v26 = vld [vmem:[#allocation2 + $0x230] sm:$0xf]  ;;  %v1776_v29 = vor.u32 %v1905_v21, %v1773_v22  ;;  %v1755_v42 = vld [vmem:[#allocation2 + $0x2a0] sm:$0xf]  ;;  %v1902_v44 = vld [vmem:[#allocation2 + $0x2a4] sm:$0xf0] }
  0x4b   : > { %866 = vmatpush.bf16.msrb.mxu0 %v1528_v34  ;;  %v1903_v34 = vld [vmem:[#allocation2 + $0x2b4] sm:$0xf]  ;;  %v1700_v36 = vor.u32 %v1888_v27, %v1699_v26  ;;  %v1756_v51 = vor.u32 %v1902_v44, %v1755_v42  ;;  %v1747_v56 = vld [vmem:[#allocation2 + $0x290] sm:$0xf]  ;;  %v1900_v58 = vld [vmem:[#allocation2 + $0x294] sm:$0xf0] }
  0x4c   : > { %880 = vmatpush.bf16.msrb.mxu1 %v1592_v39  ;;  %v1704_v39 = vor.u32 %v1887_v31, %v1701_v33  ;;  %v1768_v43 = vor.u32 %v1903_v34, %v1765_v35  ;;  %v1883_v59 = vld [vmem:[#allocation2 + $0x214] sm:$0xf]  ;;  %v1749_v62 = vld [vmem:[#allocation2 + $0x298] sm:$0xf0]  ;;  %v1675_v2 = vld [vmem:[#allocation2 + $0x200] sm:$0xf] }
  0x4d   : > { %894 = vmatpush.bf16.msrb.mxu2 %v1532_v40  ;;  %v1691_v40 = vld [vmem:[#allocation2 + $0x220] sm:$0xf]  ;;  %v1899_v61 = vld [vmem:[#allocation2 + $0x294] sm:$0xf]  ;;  %v1882_v3 = vld [vmem:[#allocation2 + $0x204] sm:$0xf0] }
  0x4e   : > { %908 = vmatpush.bf16.msrb.mxu3 %v1596_v45  ;;  %1657 = vmatmul.msk.bf16.vlgmr.msrb.gmra.mxu0 %vm2075_vm2, %v1656_v55  ;;  %v1885_v45 = vld [vmem:[#allocation2 + $0x224] sm:$0xf]  ;;  %v1692_v50 = vor.u32 %v1886_v41, %v1691_v40  ;;  %v1739_v4 = vld [vmem:[#allocation2 + $0x280] sm:$0xf]  ;;  %v1898_v6 = vld [vmem:[#allocation2 + $0x284] sm:$0xf0]  ;;  %v1676_v15 = vor.u32 %v1882_v3, %v1675_v2 }
  0x4f   : > { %1110 = vmatpush.bf16.msra.mxu0 %v1732_v46  ;;  %1662 = vmatmul.msk.bf16.vlgmr.msrb.gmra.mxu1 %vm2075_vm2, %v1661_v60  ;;  %v1693_v46 = vld [vmem:[#allocation2 + $0x228] sm:$0xf0]  ;;  %v1881_v7 = vld [vmem:[#allocation2 + $0x204] sm:$0xf]  ;;  %v401_v9 = vrot.slane %v2058_v32, 1  ;;  %v403_v10 = vrot.slane %v2060_v37, 1  ;;  %v1740_v16 = vor.u32 %v1898_v6, %v1739_v4 }
  0x50   : > { %1124 = vmatpush.bf16.msra.mxu1 %v1796_v47  ;;  %1667 = vmatmul.msk.bf16.vlgmr.msrb.gmra.mxu2 %vm2075_vm2, %v1656_v55  ;;  %v1901_v47 = vld [vmem:[#allocation2 + $0x2a4] sm:$0xf]  ;;  %v1696_v53 = vor.u32 %v1885_v45, %v1693_v46  ;;  %v1884_v55 = vld [vmem:[#allocation2 + $0x214] sm:$0xf0]  ;;  %v1677_v8 = vld [vmem:[#allocation2 + $0x208] sm:$0xf0] }
  0x51   : > { %1138 = vmatpush.bf16.msra.mxu2 %v1736_v49  ;;  %1672 = vmatmul.msk.bf16.vlgmr.msrb.gmra.mxu3 %vm2075_vm2, %v1661_v60  ;;  %v1757_v49 = vld [vmem:[#allocation2 + $0x2a8] sm:$0xf0]  ;;  %v1685_v60 = vld [vmem:[#allocation2 + $0x218] sm:$0xf0]  ;;  %v404_v14 = vrot.slane %v2066_v52, 1  ;;  %v1802_v19 = vpack.c.bf16 %v403_v10, %v401_v9  ;;  %s1395_s23 = sshll.u32 %s2122_s25, 1 }
  0x52   : > { %1152 = vmatpush.bf16.msra.mxu3 %v1800_v54  ;;  %v1683_v54 = vld [vmem:[#allocation2 + $0x210] sm:$0xf]  ;;  %v1760_v57 = vor.u32 %v1901_v47, %v1757_v49  ;;  %s337_s27 = scalar_lea.vmem %s2114_s5, %s1395_s23  ;;  %s341_s30 = scalar_lea.vmem %s2115_s6, %s1395_s23 }
  0x53   : > { %1111 = vmatpush.bf16.msra.mxu0 %v1724_v63  ;;  %v1684_v63 = vor.u32 %v1884_v55, %v1683_v54 }
  0x54   : > { %1125 = vmatpush.bf16.msra.mxu1 %v1788_v0  ;;  %v1748_v0 = vor.u32 %v1900_v58, %v1747_v56 }
  0x55   : > { %1139 = vmatpush.bf16.msra.mxu2 %v1728_v1  ;;  %v1688_v1 = vor.u32 %v1883_v59, %v1685_v60 }
  0x56   : > { %1153 = vmatpush.bf16.msra.mxu3 %v1792_v5  ;;  %v1752_v5 = vor.u32 %v1899_v61, %v1749_v62 }
  0x57   : > { %1112 = vmatpush.bf16.msra.mxu0 %v1716_v11  ;;  %v1897_v11 = vld [vmem:[#allocation2 + $0x284] sm:$0xf] }
  0x58   : > { %1126 = vmatpush.bf16.msra.mxu1 %v1780_v12  ;;  %v1741_v12 = vld [vmem:[#allocation2 + $0x288] sm:$0xf0] }
  0x59   : > { %1140 = vmatpush.bf16.msra.mxu2 %v1720_v13  ;;  %v402_v13 = vrot.slane %v2064_v48, 1  ;;  %v1744_v18 = vor.u32 %v1897_v11, %v1741_v12 }
  0x5a   : > { %1154 = vmatpush.bf16.msra.mxu3 %v1784_v17  ;;  %v1680_v17 = vor.u32 %v1881_v7, %v1677_v8 }
  0x5b   : > { %1113 = vmatpush.bf16.msra.mxu0 %v1708_v23  ;;  %v1805_v32 = vpack.c.bf16 %v404_v14, %v402_v13 }
  0x5c   : > { %1127 = vmatpush.bf16.msra.mxu1 %v1772_v24 }
  0x5d   : > { %1141 = vmatpush.bf16.msra.mxu2 %v1712_v25 }
  0x5e   : > { %1155 = vmatpush.bf16.msra.mxu3 %v1776_v29 }
  0x5f   : > { %1114 = vmatpush.bf16.msra.mxu0 %v1700_v36 }
  0x60   : > { %1128 = vmatpush.bf16.msra.mxu1 %v1764_v38 }
  0x61   : > { %1142 = vmatpush.bf16.msra.mxu2 %v1704_v39 }
  0x62   : > { %1156 = vmatpush.bf16.msra.mxu3 %v1768_v43 }
  0x63   : > { %1115 = vmatpush.bf16.msra.mxu0 %v1692_v50 }
  0x64   : > { %1129 = vmatpush.bf16.msra.mxu1 %v1756_v51 }
  0x65   : > { %1143 = vmatpush.bf16.msra.mxu2 %v1696_v53 }
  0x66   : > { %1157 = vmatpush.bf16.msra.mxu3 %v1760_v57 }
  0x67   : > { %1116 = vmatpush.bf16.msra.mxu0 %v1684_v63 }
  0x68   : > { %1130 = vmatpush.bf16.msra.mxu1 %v1748_v0 }
  0x69   : > { %1144 = vmatpush.bf16.msra.mxu2 %v1688_v1 }
  0x6a   : > { %1158 = vmatpush.bf16.msra.mxu3 %v1752_v5 }
  0x6b   : > { %1117 = vmatpush.bf16.msra.mxu0 %v1676_v15 }
  0x6c   : > { %1131 = vmatpush.bf16.msra.mxu1 %v1740_v16 }
  0x6d   : > { %1145 = vmatpush.bf16.msra.mxu2 %v1680_v17 }
  0x6e   : > { %1159 = vmatpush.bf16.msra.mxu3 %v1744_v18  ;;  %1803 = vmatmul.msk.bf16.vlgmr.msra.gmra.mxu0 %vm1801_vm4, %v1802_v19 }
  0x6f   : > { %1806 = vmatmul.msk.bf16.vlgmr.msra.gmra.mxu1 %vm1801_vm4, %v1805_v32 }
  0x70   : > { %1809 = vmatmul.msk.bf16.vlgmr.msra.gmra.mxu2 %vm1801_vm4, %v1802_v19 }
  0x71   : > { %1812 = vmatmul.msk.bf16.vlgmr.msra.gmra.mxu3 %vm1801_vm4, %v1805_v32 }
  0xb2   : > { %v652_v37 = vpop.f32.mrf.mxu0 }
  0xb4   : > { %v666_v48 = vpop.f32.mrf.mxu1 }
  0xb5   : > { %v667_v33 = vadd.f32 %v666_v48, %v652_v37 }
  0xb9   : > { %v680_v52 = vpop.f32.mrf.mxu2 }
  0xba   : > { %v654_v21 = vpop.f32.mrf.mxu0 }
  0xbb   : > { %v694_v20 = vpop.f32.mrf.mxu3 }
  0xbc   : > { %v668_v22 = vpop.f32.mrf.mxu1  ;;  %v695_v36 = vadd.f32 %v694_v20, %v680_v52 }
  0xbd   : > { %v669_v39 = vadd.f32 %v668_v22, %v654_v21 }
  0xc1   : > { %v682_v23 = vpop.f32.mrf.mxu2 }
  0xc3   : > { %v696_v24 = vpop.f32.mrf.mxu3 }
  0xc4   : > { %v697_v56 = vadd.f32 %v696_v24, %v682_v23  ;;  %v1193_v24 = vlaneseq }
  0xc6   : > { %vm1195_vm5 = vcmp.lt.s32.totalorder %v1193_v24, 256 }
  0xcb   : > { %v868_v25 = vpop.f32.mrf.mxu0 }
  0xcc   : > { %v882_v26 = vpop.f32.mrf.mxu1  ;;  %v869_v40 = vadd.f32 %v868_v25, %v667_v33 }
  0xce   : > { %v883_v45 = vadd.f32 %v882_v26, %v869_v40 }
  0xd3   : > { %v896_v27 = vpop.f32.mrf.mxu2  ;;  %v870_v29 = vpop.f32.mrf.mxu0 }
  0xd4   : > { %v910_v28 = vpop.f32.mrf.mxu3  ;;  %v884_v30 = vpop.f32.mrf.mxu1  ;;  %v897_v41 = vadd.f32 %v896_v27, %v695_v36  ;;  %v871_v42 = vadd.f32 %v870_v29, %v669_v39 }
  0xd6   : > { %v911_v49 = vadd.f32 %v910_v28, %v897_v41  ;;  %v885_v53 = vadd.f32 %v884_v30, %v871_v42 }
  0xdb   : > { %v898_v31 = vpop.f32.mrf.mxu2 }
  0xdc   : > { %v912_v34 = vpop.f32.mrf.mxu3  ;;  %v899_v59 = vadd.f32 %v898_v31, %v697_v56 }
  0xde   : > { %v913_v4 = vadd.f32 %v912_v34, %v899_v59 }
  0xeb   : > { %v1119_v35 = vpop.f32.mrf.mxu0 }
  0xec   : > { %v1133_v38 = vpop.f32.mrf.mxu1 }
  0xed   : > { %v1134_v43 = vadd.f32 %v1133_v38, %v1119_v35 }
  0xef   : > { %v1166_v54 = vadd.f32 %v1134_v43, %v883_v45 }
  0xf1   : > { %v1198_v61 = vmul.f32 %v1166_v54, %v1166_v54 }
  0xf3   : > { %v1147_v44 = vpop.f32.mrf.mxu2  ;;  %v1121_v47 = vpop.f32.mrf.mxu0 }
  0xf4   : > { %v1161_v46 = vpop.f32.mrf.mxu3  ;;  %v1135_v51 = vpop.f32.mrf.mxu1 }
  0xf5   : > { %v1162_v50 = vadd.f32 %v1161_v46, %v1147_v44  ;;  %v1136_v55 = vadd.f32 %v1135_v51, %v1121_v47 }
  0xf7   : > { %v1167_v57 = vadd.f32 %v1162_v50, %v911_v49  ;;  %v1168_v58 = vadd.f32 %v1136_v55, %v885_v53 }
  0xf9   : > { %v1170_v60 = vpack.c.bf16 %v1167_v57, %v1166_v54  ;;  %v1174_v62 = vadd.f32 %v1168_v58, %v1166_v54  ;;  %v1200_v63 = vmul.f32 %v1168_v58, %v1168_v58  ;;  %v1199_v9 = vmul.f32 %v1167_v57, %v1167_v57 }
  0xfb   : > { %1172 = vst [vmem:[%s332_s22] sm:$0xff] %v1170_v60  ;;  %v1149_v0 = vpop.f32.mrf.mxu2  ;;  %v1175_v1 = vrot.slane %v1174_v62, 4  ;;  %v1202_v2 = vadd.f32 %v1200_v63, %v1198_v61 }
  0xfc   : > { %v1163_v3 = vpop.f32.mrf.mxu3 }
  0xfd   : > { %v1164_v5 = vadd.f32 %v1163_v3, %v1149_v0  ;;  %v1203_v6 = vrot.slane %v1202_v2, 4  ;;  %v1176_v7 = vadd.f32 %v1175_v1, %v1174_v62 }
  0xff   : > { %v1169_v8 = vadd.f32 %v1164_v5, %v913_v4  ;;  %v1204_v10 = vadd.f32 %v1203_v6, %v1202_v2  ;;  %v1177_v14 = vrot.slane %v1176_v7, 2 }
 0x101   : > { %v1171_v11 = vpack.c.bf16 %v1169_v8, %v1168_v58  ;;  %v1181_v12 = vadd.f32 %v1169_v8, %v1167_v57  ;;  %v1201_v13 = vmul.f32 %v1169_v8, %v1169_v8  ;;  %v1205_v17 = vrot.slane %v1204_v10, 2 }
 0x102   : > { %v1178_v32 = vadd.f32 %v1177_v14, %v1176_v7 }
 0x103   : > { %1173 = vst [vmem:[%s332_s22 + $0x8] sm:$0xff] %v1171_v11  ;;  %v1182_v15 = vrot.slane %v1181_v12, 4  ;;  %v1209_v16 = vadd.f32 %v1201_v13, %v1199_v9  ;;  %v1206_v52 = vadd.f32 %v1205_v17, %v1204_v10 }
 0x104   : > { %v1179_v22 = vrot.slane %v1178_v32, 1 }
 0x105   : > { %v1183_v18 = vadd.f32 %v1182_v15, %v1181_v12  ;;  %v1210_v19 = vrot.slane %v1209_v16, 4  ;;  %v1207_v26 = vrot.slane %v1206_v52, 1 }
 0x106   : > { %v1180_v29 = vadd.f32 %v1179_v22, %v1178_v32 }
 0x107   : > { %v1184_v37 = vrot.slane %v1183_v18, 2  ;;  %v1211_v48 = vadd.f32 %v1210_v19, %v1209_v16  ;;  %v1208_v33 = vadd.f32 %v1207_v26, %v1206_v52 }
 0x109   : > { %v1185_v20 = vadd.f32 %v1184_v37, %v1183_v18  ;;  %v1212_v21 = vrot.slane %v1211_v48, 2 }
 0x10b   : > { %v1186_v23 = vrot.slane %v1185_v20, 1  ;;  %v1213_v25 = vadd.f32 %v1212_v21, %v1211_v48 }
 0x10d   : > { %v1187_v27 = vadd.f32 %v1186_v23, %v1185_v20  ;;  %v1214_v28 = vrot.slane %v1213_v25, 1 }
 0x10f   : > { %v1190_v30 = vrot.slane %v1187_v27, 7  ;;  %v1215_v31 = vadd.f32 %v1214_v28, %v1213_v25 }
 0x111   : > { %v1191_v34 = vsel %vm396_vm0, %v1180_v29, %v1190_v30  ;;  %v1218_v35 = vrot.slane %v1215_v31, 7 }
 0x112   : > { %1197 = vst.msk [vmem:[%s337_s27] sm:$0x3] %vm1195_vm5, %v1191_v34 }
 0x113   : > { %v1219_v36 = vsel %vm396_vm0, %v1208_v33, %v1218_v35 }
 0x114   : > { %1221 = vst.msk [vmem:[%s341_s30] sm:$0x3] %vm1195_vm5, %v1219_v36 }
 0x115 PF: > { %s18_s21 = sadd.s32 1, %s1974_s21  }
 0x116   : > { %p15_p8 = scmp.ge.s32.totalorder %s18_s21, 4  }
 0x118   :  { %17 = sbr.rel (!%p15_p8) target bundleno = 1 (0x1), region = 103 }
 0x11d   :  { %1274 = vsyncpa [#allocation3], 1 }
 0x11e   :  { %1276 = vsyncpa [#allocation3 + $0x1], 1 }

// kernel: generator_forward.14
= control target key start
LH: loop header
LB: loop body
LE: loop exit
PB: predicated region body
PF: predicated region fallthrough
CT: control target
= control target key end

     0   :  { %10 = vsyncpa [#allocation3], 0  ;;  %s1904_s18 = smov 0   ;;  %s1989_s0 = inlined_call_operand.vmem [shape: bf16[4,8,256], index: 0, kind: input, shape index: {}]   ;;  %s1990_s1 = inlined_call_operand.vmem [shape: f32[4,1,256], index: 1, kind: input, shape index: {}]   ;;  %s1991_s2 = inlined_call_operand.vmem [shape: f32[4,1,256], index: 2, kind: input, shape index: {}]   ;;  %s1992_s3 = inlined_call_operand.hbm [shape: bf16[3,256,256], index: 3, kind: input, shape index: {}]   ;;  %s1993_s4 = inlined_call_operand.vmem [shape: bf16[4,8,256], index: 4, kind: input, shape index: {}]   ;;  %s1994_s5 = inlined_call_operand.vmem [shape: bf16[4,8,256], index: 5, kind: output, shape index: {}]  }
   0x1 LB: > { %s183_s21 = sshll.u32 %s1992_s3, 4  ;;  %s1271_s22 = sadd.s32 4294967295, %s1869_s18   ;;  %s1869_s18 = sphi %s1904_s18, %s16_s18   ;;  %s184_s21 = int_to_ptr.hbm [resolvable:$true] %s183_s21 }
   0x2   : > { %p1273_p0 = scmp.ge.s32.totalorder %s1869_s18, 1  ;;  %p172_p1 = scmp.lt.s32.totalorder %s1869_s18, 3 }
   0x3   : > { %p1816_p2 = scmp.eq.s32.totalorder %s1271_s22, 0  ;;  %s1871_s23 = smov [#allocation2]  }
   0x4   : > { %p173_p3 = pnand %p1273_p0, %p172_p1  ;;  %s185_s24 = sshll.u32 %s1871_s23, 4  ;;  %s186_s24 = int_to_ptr.vmem [resolvable:$true] %s185_s24 }
   0x5   : > { %s1872_s25 = smov 128   ;;  %s1873_s26 = smov 8  }
   0x6   : > { %p1812_p4 = pneg %p173_p3  ;;  %239 = sbr.rel (%p173_p3) target bundleno = 264 (0x108), region = 40 }
   0x8   : > { %p1813_p5 = pnand %p1816_p2, %p1812_p4 }
   0xa   : > { %1815 = dma.hbm_to_vmem [thread:$0]  (!%p1813_p5), %s184_s21, 12288, %s186_s24, [#allocation3], %s1872_s25, %s1872_s25, %s1873_s26  }
   0xb   : > { %1864 = dma.done.wait (%p1816_p2), [#allocation3], 12288  }
   0xc   : > { %1866 = vsyncadd (%p1816_p2), [#allocation3], 4294955008  ;;  %v1349_v0 = vld [vmem:[#allocation2 + $0x170] sm:$0xf]  ;;  %v1759_v1 = vld [vmem:[#allocation2 + $0x174] sm:$0xf0] }
   0xd   : > { %v1413_v2 = vld [vmem:[#allocation2 + $0x1f0] sm:$0xf]  ;;  %v1350_v3 = vor.u32 %v1759_v1, %v1349_v0  ;;  %v1775_v4 = vld [vmem:[#allocation2 + $0x1f4] sm:$0xf0]  ;;  %v1758_v5 = vld [vmem:[#allocation2 + $0x174] sm:$0xf] }
   0xe   : > { %v1351_v6 = vld [vmem:[#allocation2 + $0x178] sm:$0xf0]  ;;  %v1414_v7 = vor.u32 %v1775_v4, %v1413_v2  ;;  %v1774_v9 = vld [vmem:[#allocation2 + $0x1f4] sm:$0xf]  ;;  %v1341_v11 = vld [vmem:[#allocation2 + $0x160] sm:$0xf] }
   0xf   : > { %v1354_v8 = vor.u32 %v1758_v5, %v1351_v6  ;;  %v1415_v10 = vld [vmem:[#allocation2 + $0x1f8] sm:$0xf0]  ;;  %620 = vmatpush.bf16.msra.mxu0 %v1350_v3  ;;  %v1757_v13 = vld [vmem:[#allocation2 + $0x164] sm:$0xf0]  ;;  %v1405_v14 = vld [vmem:[#allocation2 + $0x1e0] sm:$0xf] }
  0x10   : > { %v1418_v12 = vor.u32 %v1774_v9, %v1415_v10  ;;  %v1773_v15 = vld [vmem:[#allocation2 + $0x1e4] sm:$0xf0]  ;;  %634 = vmatpush.bf16.msra.mxu1 %v1414_v7  ;;  %v1342_v16 = vor.u32 %v1757_v13, %v1341_v11  ;;  %v1756_v18 = vld [vmem:[#allocation2 + $0x164] sm:$0xf]  ;;  %v1343_v19 = vld [vmem:[#allocation2 + $0x168] sm:$0xf0] }
  0x11   : > { %648 = vmatpush.bf16.msra.mxu2 %v1354_v8  ;;  %v1406_v17 = vor.u32 %v1773_v15, %v1405_v14  ;;  %v1772_v20 = vld [vmem:[#allocation2 + $0x1e4] sm:$0xf]  ;;  %v1346_v21 = vor.u32 %v1756_v18, %v1343_v19  ;;  %v1407_v22 = vld [vmem:[#allocation2 + $0x1e8] sm:$0xf0]  ;;  %v1333_v23 = vld [vmem:[#allocation2 + $0x150] sm:$0xf] }
  0x12   : > { %662 = vmatpush.bf16.msra.mxu3 %v1418_v12  ;;  %v1755_v24 = vld [vmem:[#allocation2 + $0x154] sm:$0xf0]  ;;  %v1410_v25 = vor.u32 %v1772_v20, %v1407_v22  ;;  %v1397_v26 = vld [vmem:[#allocation2 + $0x1d0] sm:$0xf]  ;;  %v1754_v28 = vld [vmem:[#allocation2 + $0x154] sm:$0xf] }
  0x13   : > { %v1771_v27 = vld [vmem:[#allocation2 + $0x1d4] sm:$0xf0]  ;;  %621 = vmatpush.bf16.msra.mxu0 %v1342_v16  ;;  %v1334_v29 = vor.u32 %v1755_v24, %v1333_v23  ;;  %v1335_v30 = vld [vmem:[#allocation2 + $0x158] sm:$0xf0]  ;;  %v1770_v31 = vld [vmem:[#allocation2 + $0x1d4] sm:$0xf] }
  0x14   : > { %v1399_v32 = vld [vmem:[#allocation2 + $0x1d8] sm:$0xf0]  ;;  %635 = vmatpush.bf16.msra.mxu1 %v1406_v17  ;;  %v1398_v33 = vor.u32 %v1771_v27, %v1397_v26  ;;  %v1338_v34 = vor.u32 %v1754_v28, %v1335_v30  ;;  %v1325_v35 = vld [vmem:[#allocation2 + $0x140] sm:$0xf]  ;;  %v1753_v36 = vld [vmem:[#allocation2 + $0x144] sm:$0xf0] }
  0x15   : > { %649 = vmatpush.bf16.msra.mxu2 %v1346_v21  ;;  %v1389_v37 = vld [vmem:[#allocation2 + $0x1c0] sm:$0xf]  ;;  %v1402_v38 = vor.u32 %v1770_v31, %v1399_v32  ;;  %v1769_v39 = vld [vmem:[#allocation2 + $0x1c4] sm:$0xf0]  ;;  %v1752_v40 = vld [vmem:[#allocation2 + $0x144] sm:$0xf]  ;;  %v1326_v44 = vor.u32 %v1753_v36, %v1325_v35 }
  0x16   : > { %663 = vmatpush.bf16.msra.mxu3 %v1410_v25  ;;  %v1327_v41 = vld [vmem:[#allocation2 + $0x148] sm:$0xf0]  ;;  %v1768_v42 = vld [vmem:[#allocation2 + $0x1c4] sm:$0xf]  ;;  %s1919_s27 = sshll.u32 %s1271_s22, 1  ;;  %v1390_v45 = vor.u32 %v1769_v39, %v1389_v37  ;;  %vm373_vm0 = vcmask 1040384  }
  0x17   : > { %v1391_v43 = vld [vmem:[#allocation2 + $0x1c8] sm:$0xf0]  ;;  %622 = vmatpush.bf16.msra.mxu0 %v1334_v29  ;;  %v1330_v46 = vor.u32 %v1752_v40, %v1327_v41  ;;  %v1317_v47 = vld [vmem:[#allocation2 + $0x130] sm:$0xf]  ;;  %v1751_v48 = vld [vmem:[#allocation2 + $0x134] sm:$0xf0] }
  0x18   : > { %636 = vmatpush.bf16.msra.mxu1 %v1398_v33  ;;  %v1381_v49 = vld [vmem:[#allocation2 + $0x1b0] sm:$0xf]  ;;  %v1394_v50 = vor.u32 %v1768_v42, %v1391_v43  ;;  %v1767_v51 = vld [vmem:[#allocation2 + $0x1b4] sm:$0xf0]  ;;  %v1750_v52 = vld [vmem:[#allocation2 + $0x134] sm:$0xf]  ;;  %v1318_v56 = vor.u32 %v1751_v48, %v1317_v47 }
  0x19   : > { %650 = vmatpush.bf16.msra.mxu2 %v1338_v34  ;;  %v1319_v53 = vld [vmem:[#allocation2 + $0x138] sm:$0xf0]  ;;  %v1766_v54 = vld [vmem:[#allocation2 + $0x1b4] sm:$0xf]  ;;  %p287_p6 = scmp.lt.s32.totalorder %s1919_s27, 3  ;;  %v1382_v57 = vor.u32 %v1767_v51, %v1381_v49  ;;  %vm1547_vm1 = vmneg %vm373_vm0  ;;  %vm386_vm3 = vcmask 1046528  }
  0x1a   : > { %664 = vmatpush.bf16.msra.mxu3 %v1402_v38  ;;  %v1383_v55 = vld [vmem:[#allocation2 + $0x1b8] sm:$0xf0]  ;;  %v1322_v58 = vor.u32 %v1750_v52, %v1319_v53  ;;  %v1309_v59 = vld [vmem:[#allocation2 + $0x120] sm:$0xf]  ;;  %v1749_v60 = vld [vmem:[#allocation2 + $0x124] sm:$0xf0] }
  0x1b   : > { %623 = vmatpush.bf16.msra.mxu0 %v1326_v44  ;;  %v1373_v61 = vld [vmem:[#allocation2 + $0x1a0] sm:$0xf]  ;;  %v1386_v62 = vor.u32 %v1766_v54, %v1383_v55  ;;  %v1765_v63 = vld [vmem:[#allocation2 + $0x1a4] sm:$0xf0]  ;;  %v1748_v0 = vld [vmem:[#allocation2 + $0x124] sm:$0xf]  ;;  %v1310_v4 = vor.u32 %v1749_v60, %v1309_v59 }
  0x1c   : > { %637 = vmatpush.bf16.msra.mxu1 %v1390_v45  ;;  %v1311_v1 = vld [vmem:[#allocation2 + $0x128] sm:$0xf0]  ;;  %v1764_v2 = vld [vmem:[#allocation2 + $0x1a4] sm:$0xf]  ;;  %s1998_s27 = smov (!%p287_p6, %s1919_s27), 3  ;;  %v1374_v5 = vor.u32 %v1765_v63, %v1373_v61  ;;  %vm1962_vm2 = vmpackc.low %vm1547_vm1, %vm1547_vm1 }
  0x1d   : > { %651 = vmatpush.bf16.msra.mxu2 %v1330_v46  ;;  %v1375_v3 = vld [vmem:[#allocation2 + $0x1a8] sm:$0xf0]  ;;  %v1314_v6 = vor.u32 %v1748_v0, %v1311_v1  ;;  %v1301_v7 = vld [vmem:[#allocation2 + $0x110] sm:$0xf]  ;;  %v1747_v8 = vld [vmem:[#allocation2 + $0x114] sm:$0xf0] }
  0x1e   : > { %665 = vmatpush.bf16.msra.mxu3 %v1394_v50  ;;  %v1365_v9 = vld [vmem:[#allocation2 + $0x190] sm:$0xf]  ;;  %v1378_v10 = vor.u32 %v1764_v2, %v1375_v3  ;;  %v1763_v11 = vld [vmem:[#allocation2 + $0x194] sm:$0xf0]  ;;  %v1746_v12 = vld [vmem:[#allocation2 + $0x114] sm:$0xf]  ;;  %v1302_v16 = vor.u32 %v1747_v8, %v1301_v7 }
  0x1f   : > { %624 = vmatpush.bf16.msra.mxu0 %v1318_v56  ;;  %v1303_v13 = vld [vmem:[#allocation2 + $0x118] sm:$0xf0]  ;;  %v1762_v14 = vld [vmem:[#allocation2 + $0x194] sm:$0xf]  ;;  %v1293_v17 = vld [vmem:[#allocation2 + $0x100] sm:$0xf]  ;;  %v1366_v19 = vor.u32 %v1763_v11, %v1365_v9 }
  0x20   : > { %638 = vmatpush.bf16.msra.mxu1 %v1382_v57  ;;  %v1367_v15 = vld [vmem:[#allocation2 + $0x198] sm:$0xf0]  ;;  %v1745_v18 = vld [vmem:[#allocation2 + $0x104] sm:$0xf0]  ;;  %s1928_s28 = sshll.u32 %s1998_s27, 3  ;;  %s1282_s29 = sshll.u32 %s1998_s27, 1  ;;  %v1306_v20 = vor.u32 %v1746_v12, %v1303_v13  ;;  %vm1695_vm4 = vmpackc.low %vm386_vm3, %vm386_vm3 }
  0x21   : > { %652 = vmatpush.bf16.msra.mxu2 %v1322_v58  ;;  %v1357_v21 = vld [vmem:[#allocation2 + $0x180] sm:$0xf]  ;;  %v1761_v22 = vld [vmem:[#allocation2 + $0x184] sm:$0xf0]  ;;  %v1744_v23 = vld [vmem:[#allocation2 + $0x104] sm:$0xf]  ;;  %v1370_v24 = vor.u32 %v1762_v14, %v1367_v15  ;;  %v1294_v31 = vor.u32 %v1745_v18, %v1293_v17  ;;  %s291_s7 = scalar_lea.vmem %s1989_s0, %s1928_s28  ;;  %s297_s10 = scalar_lea.vmem %s1990_s1, %s1282_s29 }
  0x22   : > { %666 = vmatpush.bf16.msra.mxu3 %v1386_v62  ;;  %v1295_v25 = vld [vmem:[#allocation2 + $0x108] sm:$0xf0]  ;;  %v1760_v26 = vld [vmem:[#allocation2 + $0x184] sm:$0xf]  ;;  %v1477_v28 = vld [vmem:[#allocation2 + $0x70] sm:$0xf]  ;;  %v1358_v35 = vor.u32 %v1761_v22, %v1357_v21  ;;  %s303_s13 = scalar_lea.vmem %s1991_s2, %s1282_s29  ;;  %s310_s16 = scalar_lea.vmem %s1993_s4, %s1928_s28 }
  0x23   : > { %625 = vmatpush.bf16.msra.mxu0 %v1310_v4  ;;  %v1359_v27 = vld [vmem:[#allocation2 + $0x188] sm:$0xf0]  ;;  %v1727_v29 = vld [vmem:[#allocation2 + $0x74] sm:$0xf0]  ;;  %v1541_v30 = vld [vmem:[#allocation2 + $0xf0] sm:$0xf]  ;;  %v1298_v36 = vor.u32 %v1744_v23, %v1295_v25  ;;  %s317_s20 = scalar_lea.vmem %s1994_s5, %s1928_s28 }
  0x24   : > { %639 = vmatpush.bf16.msra.mxu1 %v1374_v5  ;;  %v1743_v32 = vld [vmem:[#allocation2 + $0xf4] sm:$0xf0]  ;;  %v1726_v33 = vld [vmem:[#allocation2 + $0x74] sm:$0xf]  ;;  %v1479_v34 = vld [vmem:[#allocation2 + $0x78] sm:$0xf0]  ;;  %v1362_v40 = vor.u32 %v1760_v26, %v1359_v27  ;;  %v1478_v41 = vor.u32 %v1727_v29, %v1477_v28 }
  0x25   : > { %653 = vmatpush.bf16.msra.mxu2 %v1314_v6  ;;  %v1742_v37 = vld [vmem:[#allocation2 + $0xf4] sm:$0xf]  ;;  %v1543_v38 = vld [vmem:[#allocation2 + $0xf8] sm:$0xf0]  ;;  %v1469_v39 = vld [vmem:[#allocation2 + $0x60] sm:$0xf]  ;;  %v1542_v45 = vor.u32 %v1743_v32, %v1541_v30  ;;  %v1482_v46 = vor.u32 %v1726_v33, %v1479_v34 }
  0x26   : > { %667 = vmatpush.bf16.msra.mxu3 %v1378_v10  ;;  %v1725_v42 = vld [vmem:[#allocation2 + $0x64] sm:$0xf0]  ;;  %v1533_v43 = vld [vmem:[#allocation2 + $0xe0] sm:$0xf]  ;;  %v1724_v47 = vld [vmem:[#allocation2 + $0x64] sm:$0xf]  ;;  %v1546_v49 = vor.u32 %v1742_v37, %v1543_v38 }
  0x27   : > { %626 = vmatpush.bf16.msra.mxu0 %v1302_v16  ;;  %v1741_v44 = vld [vmem:[#allocation2 + $0xe4] sm:$0xf0]  ;;  %v1471_v48 = vld [vmem:[#allocation2 + $0x68] sm:$0xf0]  ;;  %v1740_v50 = vld [vmem:[#allocation2 + $0xe4] sm:$0xf]  ;;  %v1470_v52 = vor.u32 %v1725_v42, %v1469_v39 }
  0x28   : > { %640 = vmatpush.bf16.msra.mxu1 %v1366_v19  ;;  %v1535_v51 = vld [vmem:[#allocation2 + $0xe8] sm:$0xf0]  ;;  %v1534_v53 = vor.u32 %v1741_v44, %v1533_v43  ;;  %v1461_v54 = vld [vmem:[#allocation2 + $0x50] sm:$0xf]  ;;  %v1723_v55 = vld [vmem:[#allocation2 + $0x54] sm:$0xf0]  ;;  %v1474_v60 = vor.u32 %v1724_v47, %v1471_v48 }
  0x29   : > { %654 = vmatpush.bf16.msra.mxu2 %v1306_v20  ;;  %v1525_v56 = vld [vmem:[#allocation2 + $0xd0] sm:$0xf]  ;;  %v319_v57 = vld [vmem:[%s291_s7] sm:$0xff]  ;;  %v320_v58 = vld [vmem:[%s291_s7 + $0x8] sm:$0xff]  ;;  %v1538_v2 = vor.u32 %v1740_v50, %v1535_v51  ;;  %v1462_v17 = vor.u32 %v1723_v55, %v1461_v54 }
  0x2a   : > { %668 = vmatpush.bf16.msra.mxu3 %v1370_v24  ;;  %v325_v59 = vld [vmem:[%s297_s10] sm:$0x3]  ;;  %v321_v61 = vunpack.c.l.bf16 %v319_v57  ;;  %v323_v62 = vunpack.c.l.bf16 %v320_v58  ;;  %v326_v63 = vld [vmem:[%s297_s10 + $0x2] sm:$0x3]  ;;  %v1739_v3 = vld [vmem:[#allocation2 + $0xd4] sm:$0xf0]  ;;  %v322_v7 = vunpack.c.h.bf16 %v319_v57  ;;  %v324_v12 = vunpack.c.h.bf16 %v320_v58 }
  0x2b   : > { %627 = vmatpush.bf16.msra.mxu0 %v1294_v31  ;;  %v329_v0 = vperm.slane %v325_v59, 0  ;;  %v341_v1 = vld [vmem:[%s303_s13] sm:$0x3]  ;;  %v331_v4 = vperm.slane %v326_v63, 0  ;;  %v342_v5 = vld [vmem:[%s303_s13 + $0x2] sm:$0x3]  ;;  %v1526_v18 = vor.u32 %v1739_v3, %v1525_v56 }
  0x2c   : > { %641 = vmatpush.bf16.msra.mxu1 %v1358_v35  ;;  %v345_v6 = vperm.slane %v341_v1, 0  ;;  %v1722_v8 = vld [vmem:[#allocation2 + $0x54] sm:$0xf]  ;;  %v1463_v9 = vld [vmem:[#allocation2 + $0x58] sm:$0xf0]  ;;  %v347_v11 = vperm.slane %v342_v5, 0 }
  0x2d   : > { %655 = vmatpush.bf16.msra.mxu2 %v1298_v36  ;;  %v337_v10 = vmul.f32 %v329_v0, %v321_v61  ;;  %v330_v13 = vperm.slane %v325_v59, 1  ;;  %v1738_v14 = vld [vmem:[#allocation2 + $0xd4] sm:$0xf]  ;;  %v1527_v15 = vld [vmem:[#allocation2 + $0xd8] sm:$0xf0]  ;;  %v339_v16 = vmul.f32 %v331_v4, %v323_v62  ;;  %v332_v22 = vperm.slane %v326_v63, 1 }
  0x2e   : > { %669 = vmatpush.bf16.msra.mxu3 %v1362_v40  ;;  %v1453_v19 = vld [vmem:[#allocation2 + $0x40] sm:$0xf]  ;;  %v1721_v20 = vld [vmem:[#allocation2 + $0x44] sm:$0xf0]  ;;  %v1466_v23 = vor.u32 %v1722_v8, %v1463_v9  ;;  %v346_v28 = vperm.slane %v341_v1, 1  ;;  %v1530_v29 = vor.u32 %v1738_v14, %v1527_v15  ;;  %v348_v34 = vperm.slane %v342_v5, 1 }
  0x2f   : > { %836 = vmatpush.bf16.msrb.mxu0 %v1478_v41  ;;  %v353_v21 = vadd.f32 %v345_v6, %v337_v10  ;;  %v1517_v24 = vld [vmem:[#allocation2 + $0xc0] sm:$0xf]  ;;  %v1737_v25 = vld [vmem:[#allocation2 + $0xc4] sm:$0xf0]  ;;  %v355_v26 = vadd.f32 %v347_v11, %v339_v16  ;;  %v338_v27 = vmul.f32 %v330_v13, %v322_v7  ;;  %v1720_v30 = vld [vmem:[#allocation2 + $0x44] sm:$0xf]  ;;  %v340_v33 = vmul.f32 %v332_v22, %v324_v12 }
  0x30   : > { %850 = vmatpush.bf16.msrb.mxu1 %v1542_v45  ;;  %v1455_v31 = vld [vmem:[#allocation2 + $0x48] sm:$0xf0]  ;;  %v1736_v35 = vld [vmem:[#allocation2 + $0xc4] sm:$0xf]  ;;  %v1454_v39 = vor.u32 %v1721_v20, %v1453_v19  ;;  %v1445_v40 = vld [vmem:[#allocation2 + $0x30] sm:$0xf]  ;;  %v1518_v43 = vor.u32 %v1737_v25, %v1517_v24 }
  0x31   : > { %864 = vmatpush.bf16.msrb.mxu2 %v1482_v46  ;;  %v1945_v32 = vmax.f32 %v353_v21, 0.0  ;;  %v1519_v36 = vld [vmem:[#allocation2 + $0xc8] sm:$0xf0]  ;;  %v1947_v37 = vmax.f32 %v355_v26, 0.0  ;;  %v354_v38 = vadd.f32 %v346_v28, %v338_v27  ;;  %v1719_v41 = vld [vmem:[#allocation2 + $0x34] sm:$0xf0]  ;;  %v356_v42 = vadd.f32 %v348_v34, %v340_v33 }
  0x32   : > { %878 = vmatpush.bf16.msrb.mxu3 %v1546_v49  ;;  %v1458_v44 = vor.u32 %v1720_v30, %v1455_v31  ;;  %v1509_v46 = vld [vmem:[#allocation2 + $0xb0] sm:$0xf]  ;;  %v1735_v47 = vld [vmem:[#allocation2 + $0xb4] sm:$0xf0]  ;;  %v1522_v49 = vor.u32 %v1736_v35, %v1519_v36  ;;  %v1718_v50 = vld [vmem:[#allocation2 + $0x34] sm:$0xf]  ;;  %v1446_v55 = vor.u32 %v1719_v41, %v1445_v40 }
  0x33   : > { %837 = vmatpush.bf16.msrb.mxu0 %v1470_v52  ;;  %v425_v45 = vpack.c.bf16 %v1947_v37, %v1945_v32  ;;  %v1951_v48 = vmax.f32 %v354_v38, 0.0  ;;  %v1447_v51 = vld [vmem:[#allocation2 + $0x38] sm:$0xf0]  ;;  %v1953_v52 = vmax.f32 %v356_v42, 0.0  ;;  %v1510_v57 = vor.u32 %v1735_v47, %v1509_v46  ;;  %v1437_v59 = vld [vmem:[#allocation2 + $0x20] sm:$0xf] }
  0x34   : > { %851 = vmatpush.bf16.msrb.mxu1 %v1534_v53  ;;  %v1734_v53 = vld [vmem:[#allocation2 + $0xb4] sm:$0xf]  ;;  %v1511_v54 = vld [vmem:[#allocation2 + $0xb8] sm:$0xf0]  ;;  %v1450_v58 = vor.u32 %v1718_v50, %v1447_v51  ;;  %v1501_v61 = vld [vmem:[#allocation2 + $0xa0] sm:$0xf] }
  0x35   : > { %865 = vmatpush.bf16.msrb.mxu2 %v1474_v60  ;;  %628 = vmatmul.bf16.vlgmr.msra.gmra.mxu0 %v425_v45  ;;  %v426_v56 = vpack.c.bf16 %v1953_v52, %v1951_v48  ;;  %v1717_v60 = vld [vmem:[#allocation2 + $0x24] sm:$0xf0]  ;;  %v1514_v62 = vor.u32 %v1734_v53, %v1511_v54  ;;  %v1716_v0 = vld [vmem:[#allocation2 + $0x24] sm:$0xf]  ;;  %v1439_v1 = vld [vmem:[#allocation2 + $0x28] sm:$0xf0] }
  0x36   : > { %879 = vmatpush.bf16.msrb.mxu3 %v1538_v2  ;;  %656 = vmatmul.bf16.vlgmr.msra.gmra.mxu2 %v425_v45  ;;  %v1733_v63 = vld [vmem:[#allocation2 + $0xa4] sm:$0xf0]  ;;  %v1732_v2 = vld [vmem:[#allocation2 + $0xa4] sm:$0xf]  ;;  %v1503_v3 = vld [vmem:[#allocation2 + $0xa8] sm:$0xf0]  ;;  %v1438_v4 = vor.u32 %v1717_v60, %v1437_v59  ;;  %v1442_v6 = vor.u32 %v1716_v0, %v1439_v1 }
  0x37   : > { %838 = vmatpush.bf16.msrb.mxu0 %v1462_v17  ;;  %642 = vmatmul.bf16.vlgmr.msra.gmra.mxu1 %v426_v56  ;;  %v1502_v5 = vor.u32 %v1733_v63, %v1501_v61  ;;  %v1429_v7 = vld [vmem:[#allocation2 + $0x10] sm:$0xf]  ;;  %v1715_v8 = vld [vmem:[#allocation2 + $0x14] sm:$0xf0]  ;;  %v1506_v10 = vor.u32 %v1732_v2, %v1503_v3  ;;  %v1714_v12 = vld [vmem:[#allocation2 + $0x14] sm:$0xf] }
  0x38   : > { %852 = vmatpush.bf16.msrb.mxu1 %v1526_v18  ;;  %670 = vmatmul.bf16.vlgmr.msra.gmra.mxu3 %v426_v56  ;;  %v1493_v9 = vld [vmem:[#allocation2 + $0x90] sm:$0xf]  ;;  %v1731_v11 = vld [vmem:[#allocation2 + $0x94] sm:$0xf0]  ;;  %v1431_v13 = vld [vmem:[#allocation2 + $0x18] sm:$0xf0]  ;;  %v1430_v16 = vor.u32 %v1715_v8, %v1429_v7 }
  0x39   : > { %866 = vmatpush.bf16.msrb.mxu2 %v1466_v23  ;;  %v1730_v14 = vld [vmem:[#allocation2 + $0x94] sm:$0xf]  ;;  %v1495_v15 = vld [vmem:[#allocation2 + $0x98] sm:$0xf0]  ;;  %v1421_v17 = vld [vmem:[#allocation2] sm:$0xf]  ;;  %v1494_v21 = vor.u32 %v1731_v11, %v1493_v9  ;;  %v1434_v22 = vor.u32 %v1714_v12, %v1431_v13 }
  0x3a   : > { %880 = vmatpush.bf16.msrb.mxu3 %v1530_v29  ;;  %v1713_v18 = vld [vmem:[#allocation2 + $0x4] sm:$0xf0]  ;;  %v365_v19 = vrot.slane %v1945_v32, 7  ;;  %v367_v20 = vrot.slane %v1947_v37, 7  ;;  %v1485_v23 = vld [vmem:[#allocation2 + $0x80] sm:$0xf]  ;;  %v1498_v26 = vor.u32 %v1730_v14, %v1495_v15 }
  0x3b   : > { %839 = vmatpush.bf16.msrb.mxu0 %v1454_v39  ;;  %v1729_v24 = vld [vmem:[#allocation2 + $0x84] sm:$0xf0]  ;;  %v1712_v25 = vld [vmem:[#allocation2 + $0x4] sm:$0xf]  ;;  %v1423_v27 = vld [vmem:[#allocation2 + $0x8] sm:$0xf0]  ;;  %v1422_v34 = vor.u32 %v1713_v18, %v1421_v17 }
  0x3c   : > { %853 = vmatpush.bf16.msrb.mxu1 %v1518_v43  ;;  %v1728_v28 = vld [vmem:[#allocation2 + $0x84] sm:$0xf]  ;;  %v1487_v29 = vld [vmem:[#allocation2 + $0x88] sm:$0xf0]  ;;  %v1625_v30 = vld [vmem:[#allocation2 + $0x270] sm:$0xf]  ;;  %v1486_v39 = vor.u32 %v1729_v24, %v1485_v23  ;;  %v1426_v40 = vor.u32 %v1712_v25, %v1423_v27 }
  0x3d   : > { %867 = vmatpush.bf16.msrb.mxu2 %v1458_v44  ;;  %v1791_v31 = vld [vmem:[#allocation2 + $0x274] sm:$0xf0]  ;;  %v1689_v33 = vld [vmem:[#allocation2 + $0x2f0] sm:$0xf]  ;;  %v1790_v36 = vld [vmem:[#allocation2 + $0x274] sm:$0xf]  ;;  %v1490_v45 = vor.u32 %v1728_v28, %v1487_v29 }
  0x3e   : > { %881 = vmatpush.bf16.msrb.mxu3 %v1522_v49  ;;  %v1807_v35 = vld [vmem:[#allocation2 + $0x2f4] sm:$0xf0]  ;;  %v1627_v38 = vld [vmem:[#allocation2 + $0x278] sm:$0xf0]  ;;  %v1806_v41 = vld [vmem:[#allocation2 + $0x2f4] sm:$0xf]  ;;  %v1626_v46 = vor.u32 %v1791_v31, %v1625_v30 }
  0x3f   : > { %840 = vmatpush.bf16.msrb.mxu0 %v1446_v55  ;;  %v1691_v42 = vld [vmem:[#allocation2 + $0x2f8] sm:$0xf0]  ;;  %v366_v43 = vrot.slane %v1951_v48, 7  ;;  %v368_v44 = vrot.slane %v1953_v52, 7  ;;  %v1690_v47 = vor.u32 %v1807_v35, %v1689_v33  ;;  %v1630_v49 = vor.u32 %v1790_v36, %v1627_v38  ;;  %v1617_v50 = vld [vmem:[#allocation2 + $0x260] sm:$0xf] }
  0x40   : > { %854 = vmatpush.bf16.msrb.mxu1 %v1510_v57  ;;  %v1789_v51 = vld [vmem:[#allocation2 + $0x264] sm:$0xf0]  ;;  %v1681_v53 = vld [vmem:[#allocation2 + $0x2e0] sm:$0xf]  ;;  %v1694_v54 = vor.u32 %v1806_v41, %v1691_v42  ;;  %v1550_v55 = vpack.c.bf16 %v367_v20, %v365_v19  ;;  %v1788_v57 = vld [vmem:[#allocation2 + $0x264] sm:$0xf] }
  0x41   : > { %868 = vmatpush.bf16.msrb.mxu2 %v1450_v58  ;;  %v1805_v56 = vld [vmem:[#allocation2 + $0x2e4] sm:$0xf0]  ;;  %v1619_v58 = vld [vmem:[#allocation2 + $0x268] sm:$0xf0]  ;;  %v1555_v60 = vpack.c.bf16 %v368_v44, %v366_v43  ;;  %v1804_v61 = vld [vmem:[#allocation2 + $0x2e4] sm:$0xf]  ;;  %v1618_v63 = vor.u32 %v1789_v51, %v1617_v50 }
  0x42   : > { %882 = vmatpush.bf16.msrb.mxu3 %v1514_v62  ;;  %v1683_v62 = vld [vmem:[#allocation2 + $0x2e8] sm:$0xf0]  ;;  %v1682_v0 = vor.u32 %v1805_v56, %v1681_v53  ;;  %v1622_v1 = vor.u32 %v1788_v57, %v1619_v58  ;;  %v1609_v2 = vld [vmem:[#allocation2 + $0x250] sm:$0xf]  ;;  %v1787_v3 = vld [vmem:[#allocation2 + $0x254] sm:$0xf0] }
  0x43   : > { %841 = vmatpush.bf16.msrb.mxu0 %v1438_v4  ;;  %v1673_v4 = vld [vmem:[#allocation2 + $0x2d0] sm:$0xf]  ;;  %v1786_v7 = vld [vmem:[#allocation2 + $0x254] sm:$0xf]  ;;  %v1611_v8 = vld [vmem:[#allocation2 + $0x258] sm:$0xf0]  ;;  %v1610_v11 = vor.u32 %v1787_v3, %v1609_v2 }
  0x44   : > { %855 = vmatpush.bf16.msrb.mxu1 %v1502_v5  ;;  %v1686_v5 = vor.u32 %v1804_v61, %v1683_v62  ;;  %v1802_v9 = vld [vmem:[#allocation2 + $0x2d4] sm:$0xf]  ;;  %v1614_v13 = vor.u32 %v1786_v7, %v1611_v8  ;;  %v1601_v14 = vld [vmem:[#allocation2 + $0x240] sm:$0xf]  ;;  %v1785_v15 = vld [vmem:[#allocation2 + $0x244] sm:$0xf0] }
  0x45   : > { %869 = vmatpush.bf16.msrb.mxu2 %v1442_v6  ;;  %v1803_v6 = vld [vmem:[#allocation2 + $0x2d4] sm:$0xf0]  ;;  %v1801_v18 = vld [vmem:[#allocation2 + $0x2c4] sm:$0xf0]  ;;  %v1784_v19 = vld [vmem:[#allocation2 + $0x244] sm:$0xf]  ;;  %v1602_v23 = vor.u32 %v1785_v15, %v1601_v14 }
  0x46   : > { %883 = vmatpush.bf16.msrb.mxu3 %v1506_v10  ;;  %v1675_v10 = vld [vmem:[#allocation2 + $0x2d8] sm:$0xf0]  ;;  %v1674_v12 = vor.u32 %v1803_v6, %v1673_v4  ;;  %v1603_v20 = vld [vmem:[#allocation2 + $0x248] sm:$0xf0]  ;;  %v1783_v27 = vld [vmem:[#allocation2 + $0x234] sm:$0xf0] }
  0x47   : > { %842 = vmatpush.bf16.msrb.mxu0 %v1430_v16  ;;  %v1665_v16 = vld [vmem:[#allocation2 + $0x2c0] sm:$0xf]  ;;  %v1678_v17 = vor.u32 %v1802_v9, %v1675_v10  ;;  %v1606_v25 = vor.u32 %v1784_v19, %v1603_v20  ;;  %v1657_v28 = vld [vmem:[#allocation2 + $0x2b0] sm:$0xf]  ;;  %v1799_v30 = vld [vmem:[#allocation2 + $0x2b4] sm:$0xf0] }
  0x48   : > { %856 = vmatpush.bf16.msrb.mxu1 %v1494_v21  ;;  %v1800_v21 = vld [vmem:[#allocation2 + $0x2c4] sm:$0xf]  ;;  %v1666_v24 = vor.u32 %v1801_v18, %v1665_v16  ;;  %v1782_v31 = vld [vmem:[#allocation2 + $0x234] sm:$0xf]  ;;  %v1595_v33 = vld [vmem:[#allocation2 + $0x238] sm:$0xf0]  ;;  %v1658_v38 = vor.u32 %v1799_v30, %v1657_v28 }
  0x49   : > { %870 = vmatpush.bf16.msrb.mxu2 %v1434_v22  ;;  %v1667_v22 = vld [vmem:[#allocation2 + $0x2c8] sm:$0xf0]  ;;  %v1659_v35 = vld [vmem:[#allocation2 + $0x2b8] sm:$0xf0]  ;;  %v1781_v41 = vld [vmem:[#allocation2 + $0x224] sm:$0xf0] }
  0x4a   : > { %884 = vmatpush.bf16.msrb.mxu3 %v1498_v26  ;;  %v1593_v26 = vld [vmem:[#allocation2 + $0x230] sm:$0xf]  ;;  %v1670_v29 = vor.u32 %v1800_v21, %v1667_v22  ;;  %v1649_v42 = vld [vmem:[#allocation2 + $0x2a0] sm:$0xf]  ;;  %v1797_v44 = vld [vmem:[#allocation2 + $0x2a4] sm:$0xf0] }
  0x4b   : > { %843 = vmatpush.bf16.msrb.mxu0 %v1422_v34  ;;  %v1798_v34 = vld [vmem:[#allocation2 + $0x2b4] sm:$0xf]  ;;  %v1594_v36 = vor.u32 %v1783_v27, %v1593_v26  ;;  %v1650_v51 = vor.u32 %v1797_v44, %v1649_v42  ;;  %v1641_v56 = vld [vmem:[#allocation2 + $0x290] sm:$0xf]  ;;  %v1795_v58 = vld [vmem:[#allocation2 + $0x294] sm:$0xf0] }
  0x4c   : > { %857 = vmatpush.bf16.msrb.mxu1 %v1486_v39  ;;  %v1598_v39 = vor.u32 %v1782_v31, %v1595_v33  ;;  %v1662_v43 = vor.u32 %v1798_v34, %v1659_v35  ;;  %v1778_v59 = vld [vmem:[#allocation2 + $0x214] sm:$0xf]  ;;  %v1643_v62 = vld [vmem:[#allocation2 + $0x298] sm:$0xf0]  ;;  %v1569_v2 = vld [vmem:[#allocation2 + $0x200] sm:$0xf] }
  0x4d   : > { %871 = vmatpush.bf16.msrb.mxu2 %v1426_v40  ;;  %v1585_v40 = vld [vmem:[#allocation2 + $0x220] sm:$0xf]  ;;  %v1794_v61 = vld [vmem:[#allocation2 + $0x294] sm:$0xf]  ;;  %v1777_v3 = vld [vmem:[#allocation2 + $0x204] sm:$0xf0] }
  0x4e   : > { %885 = vmatpush.bf16.msrb.mxu3 %v1490_v45  ;;  %1551 = vmatmul.msk.bf16.vlgmr.msrb.gmra.mxu0 %vm1962_vm2, %v1550_v55  ;;  %v1780_v45 = vld [vmem:[#allocation2 + $0x224] sm:$0xf]  ;;  %v1586_v50 = vor.u32 %v1781_v41, %v1585_v40  ;;  %v1633_v4 = vld [vmem:[#allocation2 + $0x280] sm:$0xf]  ;;  %v1793_v6 = vld [vmem:[#allocation2 + $0x284] sm:$0xf0]  ;;  %v1570_v15 = vor.u32 %v1777_v3, %v1569_v2 }
  0x4f   : > { %1087 = vmatpush.bf16.msra.mxu0 %v1626_v46  ;;  %1556 = vmatmul.msk.bf16.vlgmr.msrb.gmra.mxu1 %vm1962_vm2, %v1555_v60  ;;  %v1587_v46 = vld [vmem:[#allocation2 + $0x228] sm:$0xf0]  ;;  %v1776_v7 = vld [vmem:[#allocation2 + $0x204] sm:$0xf]  ;;  %v378_v9 = vrot.slane %v1945_v32, 1  ;;  %v380_v10 = vrot.slane %v1947_v37, 1  ;;  %v1634_v16 = vor.u32 %v1793_v6, %v1633_v4 }
  0x50   : > { %1101 = vmatpush.bf16.msra.mxu1 %v1690_v47  ;;  %1561 = vmatmul.msk.bf16.vlgmr.msrb.gmra.mxu2 %vm1962_vm2, %v1550_v55  ;;  %v1796_v47 = vld [vmem:[#allocation2 + $0x2a4] sm:$0xf]  ;;  %v1590_v53 = vor.u32 %v1780_v45, %v1587_v46  ;;  %v1779_v55 = vld [vmem:[#allocation2 + $0x214] sm:$0xf0]  ;;  %v1571_v8 = vld [vmem:[#allocation2 + $0x208] sm:$0xf0] }
  0x51   : > { %1115 = vmatpush.bf16.msra.mxu2 %v1630_v49  ;;  %1566 = vmatmul.msk.bf16.vlgmr.msrb.gmra.mxu3 %vm1962_vm2, %v1555_v60  ;;  %v1651_v49 = vld [vmem:[#allocation2 + $0x2a8] sm:$0xf0]  ;;  %v1579_v60 = vld [vmem:[#allocation2 + $0x218] sm:$0xf0]  ;;  %v381_v14 = vrot.slane %v1953_v52, 1  ;;  %v1696_v19 = vpack.c.bf16 %v380_v10, %v378_v9  ;;  %v1147_v41 = vld [vmem:[%s310_s16] sm:$0xff] }
  0x52   : > { %1129 = vmatpush.bf16.msra.mxu3 %v1694_v54  ;;  %v1577_v54 = vld [vmem:[#allocation2 + $0x210] sm:$0xf]  ;;  %v1654_v57 = vor.u32 %v1796_v47, %v1651_v49  ;;  %v1149_v46 = vunpack.c.l.bf16 %v1147_v41 }
  0x53   : > { %1088 = vmatpush.bf16.msra.mxu0 %v1618_v63  ;;  %v1578_v63 = vor.u32 %v1779_v55, %v1577_v54  ;;  %v1150_v55 = vunpack.c.h.bf16 %v1147_v41 }
  0x54   : > { %1102 = vmatpush.bf16.msra.mxu1 %v1682_v0  ;;  %v1642_v0 = vor.u32 %v1795_v58, %v1641_v56 }
  0x55   : > { %1116 = vmatpush.bf16.msra.mxu2 %v1622_v1  ;;  %v1582_v1 = vor.u32 %v1778_v59, %v1579_v60 }
  0x56   : > { %1130 = vmatpush.bf16.msra.mxu3 %v1686_v5  ;;  %v1646_v5 = vor.u32 %v1794_v61, %v1643_v62  ;;  %v1148_v61 = vld [vmem:[%s310_s16 + $0x8] sm:$0xff] }
  0x57   : > { %1089 = vmatpush.bf16.msra.mxu0 %v1610_v11  ;;  %v1792_v11 = vld [vmem:[#allocation2 + $0x284] sm:$0xf]  ;;  %v1151_v4 = vunpack.c.l.bf16 %v1148_v61  ;;  %v1152_v10 = vunpack.c.h.bf16 %v1148_v61 }
  0x58   : > { %1103 = vmatpush.bf16.msra.mxu1 %v1674_v12  ;;  %v1635_v12 = vld [vmem:[#allocation2 + $0x288] sm:$0xf0] }
  0x59   : > { %1117 = vmatpush.bf16.msra.mxu2 %v1614_v13  ;;  %v379_v13 = vrot.slane %v1951_v48, 1  ;;  %v1638_v18 = vor.u32 %v1792_v11, %v1635_v12 }
  0x5a   : > { %1131 = vmatpush.bf16.msra.mxu3 %v1678_v17  ;;  %v1574_v17 = vor.u32 %v1776_v7, %v1571_v8 }
  0x5b   : > { %1090 = vmatpush.bf16.msra.mxu0 %v1602_v23  ;;  %v1699_v32 = vpack.c.bf16 %v381_v14, %v379_v13 }
  0x5c   : > { %1104 = vmatpush.bf16.msra.mxu1 %v1666_v24 }
  0x5d   : > { %1118 = vmatpush.bf16.msra.mxu2 %v1606_v25 }
  0x5e   : > { %1132 = vmatpush.bf16.msra.mxu3 %v1670_v29 }
  0x5f   : > { %1091 = vmatpush.bf16.msra.mxu0 %v1594_v36 }
  0x60   : > { %1105 = vmatpush.bf16.msra.mxu1 %v1658_v38 }
  0x61   : > { %1119 = vmatpush.bf16.msra.mxu2 %v1598_v39 }
  0x62   : > { %1133 = vmatpush.bf16.msra.mxu3 %v1662_v43 }
  0x63   : > { %1092 = vmatpush.bf16.msra.mxu0 %v1586_v50 }
  0x64   : > { %1106 = vmatpush.bf16.msra.mxu1 %v1650_v51 }
  0x65   : > { %1120 = vmatpush.bf16.msra.mxu2 %v1590_v53 }
  0x66   : > { %1134 = vmatpush.bf16.msra.mxu3 %v1654_v57 }
  0x67   : > { %1093 = vmatpush.bf16.msra.mxu0 %v1578_v63 }
  0x68   : > { %1107 = vmatpush.bf16.msra.mxu1 %v1642_v0 }
  0x69   : > { %1121 = vmatpush.bf16.msra.mxu2 %v1582_v1 }
  0x6a   : > { %1135 = vmatpush.bf16.msra.mxu3 %v1646_v5 }
  0x6b   : > { %1094 = vmatpush.bf16.msra.mxu0 %v1570_v15 }
  0x6c   : > { %1108 = vmatpush.bf16.msra.mxu1 %v1634_v16 }
  0x6d   : > { %1122 = vmatpush.bf16.msra.mxu2 %v1574_v17 }
  0x6e   : > { %1136 = vmatpush.bf16.msra.mxu3 %v1638_v18  ;;  %1697 = vmatmul.msk.bf16.vlgmr.msra.gmra.mxu0 %vm1695_vm4, %v1696_v19 }
  0x6f   : > { %1700 = vmatmul.msk.bf16.vlgmr.msra.gmra.mxu1 %vm1695_vm4, %v1699_v32 }
  0x70   : > { %1703 = vmatmul.msk.bf16.vlgmr.msra.gmra.mxu2 %vm1695_vm4, %v1696_v19 }
  0x71   : > { %1706 = vmatmul.msk.bf16.vlgmr.msra.gmra.mxu3 %vm1695_vm4, %v1699_v32 }
  0xb2   : > { %v629_v37 = vpop.f32.mrf.mxu0 }
  0xb4   : > { %v643_v48 = vpop.f32.mrf.mxu1 }
  0xb5   : > { %v644_v31 = vadd.f32 %v643_v48, %v629_v37 }
  0xb9   : > { %v657_v52 = vpop.f32.mrf.mxu2 }
  0xba   : > { %v631_v21 = vpop.f32.mrf.mxu0 }
  0xbb   : > { %v671_v20 = vpop.f32.mrf.mxu3 }
  0xbc   : > { %v645_v22 = vpop.f32.mrf.mxu1  ;;  %v672_v36 = vadd.f32 %v671_v20, %v657_v52 }
  0xbd   : > { %v646_v44 = vadd.f32 %v645_v22, %v631_v21 }
  0xc1   : > { %v659_v23 = vpop.f32.mrf.mxu2 }
  0xc3   : > { %v673_v24 = vpop.f32.mrf.mxu3 }
  0xc4   : > { %v674_v57 = vadd.f32 %v673_v24, %v659_v23 }
  0xcb   : > { %v845_v25 = vpop.f32.mrf.mxu0 }
  0xcc   : > { %v859_v26 = vpop.f32.mrf.mxu1  ;;  %v846_v38 = vadd.f32 %v845_v25, %v644_v31 }
  0xce   : > { %v860_v42 = vadd.f32 %v859_v26, %v846_v38 }
  0xd3   : > { %v873_v27 = vpop.f32.mrf.mxu2  ;;  %v847_v29 = vpop.f32.mrf.mxu0 }
  0xd4   : > { %v887_v28 = vpop.f32.mrf.mxu3  ;;  %v861_v30 = vpop.f32.mrf.mxu1  ;;  %v874_v43 = vadd.f32 %v873_v27, %v672_v36  ;;  %v848_v51 = vadd.f32 %v847_v29, %v646_v44 }
  0xd6   : > { %v888_v53 = vadd.f32 %v887_v28, %v874_v43  ;;  %v862_v62 = vadd.f32 %v861_v30, %v848_v51 }
  0xdb   : > { %v875_v33 = vpop.f32.mrf.mxu2 }
  0xdc   : > { %v889_v34 = vpop.f32.mrf.mxu3  ;;  %v876_v63 = vadd.f32 %v875_v33, %v674_v57 }
  0xde   : > { %v890_v7 = vadd.f32 %v889_v34, %v876_v63 }
  0xeb   : > { %v1096_v35 = vpop.f32.mrf.mxu0 }
  0xec   : > { %v1110_v39 = vpop.f32.mrf.mxu1 }
  0xed   : > { %v1111_v40 = vadd.f32 %v1110_v39, %v1096_v35 }
  0xef   : > { %v1143_v45 = vadd.f32 %v1111_v40, %v860_v42 }
  0xf1   : > { %v1153_v58 = vadd.f32 %v1149_v46, %v1143_v45 }
  0xf3   : > { %v1124_v47 = vpop.f32.mrf.mxu2  ;;  %v1098_v50 = vpop.f32.mrf.mxu0  ;;  %v1157_v1 = vmax.f32 %v1153_v58, 0.0 }
  0xf4   : > { %v1138_v49 = vpop.f32.mrf.mxu3  ;;  %v1112_v56 = vpop.f32.mrf.mxu1 }
  0xf5   : > { %v1139_v54 = vadd.f32 %v1138_v49, %v1124_v47  ;;  %v1113_v60 = vadd.f32 %v1112_v56, %v1098_v50 }
  0xf7   : > { %v1144_v59 = vadd.f32 %v1139_v54, %v888_v53  ;;  %v1145_v3 = vadd.f32 %v1113_v60, %v862_v62 }
  0xf9   : > { %v1154_v0 = vadd.f32 %v1150_v55, %v1144_v59  ;;  %v1155_v11 = vadd.f32 %v1151_v4, %v1145_v3 }
  0xfb   : > { %v1158_v2 = vmax.f32 %v1154_v0, 0.0  ;;  %v1126_v5 = vpop.f32.mrf.mxu2  ;;  %v1159_v14 = vmax.f32 %v1155_v11, 0.0 }
  0xfc   : > { %v1140_v6 = vpop.f32.mrf.mxu3 }
  0xfd   : > { %v1161_v8 = vpack.c.bf16 %v1158_v2, %v1157_v1  ;;  %v1141_v9 = vadd.f32 %v1140_v6, %v1126_v5 }
  0xff   : > { %1163 = vst [vmem:[%s317_s20] sm:$0xff] %v1161_v8  ;;  %v1146_v12 = vadd.f32 %v1141_v9, %v890_v7 }
 0x101   : > { %v1156_v13 = vadd.f32 %v1152_v10, %v1146_v12 }
 0x103   : > { %v1160_v15 = vmax.f32 %v1156_v13, 0.0 }
 0x105   : > { %v1162_v16 = vpack.c.bf16 %v1160_v15, %v1159_v14 }
 0x107   : > { %1164 = vst [vmem:[%s317_s20 + $0x8] sm:$0xff] %v1162_v16 }
 0x108 PF: > { %s16_s18 = sadd.s32 1, %s1869_s18  }
 0x109   : > { %p13_p7 = scmp.ge.s32.totalorder %s16_s18, 4  }
 0x10b   :  { %15 = sbr.rel (!%p13_p7) target bundleno = 1 (0x1), region = 86 }
 0x110   :  { %1189 = vsyncpa [#allocation3], 1 }
 0x111   :  { %1191 = vsyncpa [#allocation3 + $0x1], 1 }

// kernel: generator_forward.17
= control target key start
LH: loop header
LB: loop body
LE: loop exit
PB: predicated region body
PF: predicated region fallthrough
CT: control target
= control target key end

     0   :  { %s1229_s27 = smov 0   ;;  %s1371_s0 = inlined_call_operand.vmem [shape: bf16[4,8,128], index: 0, kind: input, shape index: {}]   ;;  %s1372_s1 = inlined_call_operand.vmem [shape: f32[4,1,128], index: 1, kind: input, shape index: {}]   ;;  %s1373_s2 = inlined_call_operand.vmem [shape: f32[4,1,128], index: 2, kind: input, shape index: {}]   ;;  %s1374_s3 = inlined_call_operand.vmem [shape: bf16[3,128,128], index: 3, kind: input, shape index: {}]   ;;  %s1375_s4 = inlined_call_operand.vmem [shape: bf16[128,128], index: 4, kind: input, shape index: {}]   ;;  %s1376_s5 = inlined_call_operand.vmem [shape: bf16[4,8,128], index: 5, kind: output, shape index: {0}]   ;;  %s1377_s6 = inlined_call_operand.vmem [shape: bf16[4,8,128], index: 6, kind: output, shape index: {1}]   ;;  %s1378_s7 = inlined_call_operand.vmem [shape: f32[2,1,128], index: 7, kind: output, shape index: {2}]   ;;  %s1379_s8 = inlined_call_operand.vmem [shape: f32[2,1,128], index: 8, kind: output, shape index: {3}]  }
   0x1 LB: > { %s1235_s28 = sadd.s32 4294967295, %s1182_s27   ;;  %p934_p0 = scmp.ge.s32.totalorder %s1182_s27, 1  ;;  %s1182_s27 = sphi %s1229_s27, %s19_s27  }
   0x2   : > { %p290_p1 = scmp.lt.s32.totalorder %s1182_s27, 3 }
   0x4   : > { %p291_p2 = pnand %p934_p0, %p290_p1 }
   0x5   : > { %s935_s13 = sshll.u32 (!%p291_p2), %s1235_s28, 1  ;;  %p371_p4 = scmp.lt.s32.totalorder (!%p291_p2), %s1235_s28, 1 }
   0x6   : > { %294 = sbr.rel (%p291_p2) target bundleno = 204 (0xcc), region = 40  ;;  %p344_p3 = scmp.lt.s32.totalorder (!%p291_p2), %s935_s13, 3 }
   0xb   : > { %v1132_v0 = vld [vmem:[%s1374_s3 + $0x78] sm:$0xff]  ;;  %v1131_v3 = vld [vmem:[%s1374_s3 + $0x70] sm:$0xff]  ;;  %s1381_s13 = smov (!%p344_p3, %s935_s13), 3  ;;  %v1130_v8 = vld [vmem:[%s1374_s3 + $0x68] sm:$0xff]  ;;  %vm409_vm0 = vcmask 1040384   ;;  %vm416_vm2 = vcmask 1046528  }
   0xc   : > { %v1124_v1 = vld [vmem:[%s1374_s3 + $0x38] sm:$0xff]  ;;  %502 = vmatpush.bf16.msra.mxu0 %v1132_v0  ;;  %v1123_v4 = vld [vmem:[%s1374_s3 + $0x30] sm:$0xff]  ;;  %s1264_s24 = sshll.u32 %s1381_s13, 2  ;;  %v1122_v9 = vld [vmem:[%s1374_s3 + $0x28] sm:$0xff]  ;;  %s352_s19 = scalar_lea.vmem %s1372_s1, %s1381_s13 }
   0xd   : > { %v1140_v2 = vld [vmem:[%s1374_s3 + $0xb8] sm:$0xff]  ;;  %564 = vmatpush.bf16.msra.mxu1 %v1124_v1  ;;  %v1139_v5 = vld [vmem:[%s1374_s3 + $0xb0] sm:$0xff]  ;;  %v1138_v10 = vld [vmem:[%s1374_s3 + $0xa8] sm:$0xff]  ;;  %s1279_s14 = scalar_lea.vmem %s1371_s0, %s1264_s24  ;;  %s357_s9 = scalar_lea.vmem %s1373_s2, %s1381_s13 }
   0xe   : > { %644 = vmatpush.bf16.msra.mxu2 %v1140_v2  ;;  %v1149_v6 = vld [vmem:[%s1375_s4 + $0x38] sm:$0xff]  ;;  %v1148_v7 = vld [vmem:[%s1375_s4 + $0x30] sm:$0xff]  ;;  %v1129_v11 = vld [vmem:[%s1374_s3 + $0x60] sm:$0xff]  ;;  %s369_s12 = scalar_lea.vmem %s1377_s6, %s1264_s24  ;;  %s1383_s28 = smov (!%p371_p4, %s1235_s28), 1 }
   0xf   : > { %736 = vmatpush.bf16.msra.mxu3 %v1149_v6  ;;  %v1121_v12 = vld [vmem:[%s1374_s3 + $0x20] sm:$0xff]  ;;  %v1147_v14 = vld [vmem:[%s1375_s4 + $0x28] sm:$0xff]  ;;  %v1128_v25 = vld [vmem:[%s1374_s3 + $0x58] sm:$0xff]  ;;  %s376_s18 = scalar_lea.vmem %s1379_s8, %s1383_s28 }
  0x10   : > { %503 = vmatpush.bf16.msra.mxu0 %v1131_v3  ;;  %v1137_v13 = vld [vmem:[%s1374_s3 + $0xa0] sm:$0xff]  ;;  %v1120_v26 = vld [vmem:[%s1374_s3 + $0x18] sm:$0xff]  ;;  %v1127_v31 = vld [vmem:[%s1374_s3 + $0x50] sm:$0xff] }
  0x11   : > { %565 = vmatpush.bf16.msra.mxu1 %v1123_v4  ;;  %v1151_v15 = vld [vmem:[%s1279_s14] sm:$0xff]   ;;  %v1136_v27 = vld [vmem:[%s1374_s3 + $0x98] sm:$0xff]  ;;  %v1119_v32 = vld [vmem:[%s1374_s3 + $0x10] sm:$0xff] }
  0x12   : > { %645 = vmatpush.bf16.msra.mxu2 %v1139_v5  ;;  %v1152_v16 = vunpack.c.l.bf16 %v1151_v15  ;;  %v1153_v17 = vunpack.c.h.bf16 %v1151_v15  ;;  %v1172_v18 = vld [vmem:[%s352_s19] ss:$0 sm:$0xff]  ;;  %v1173_v19 = vld [vmem:[%s352_s19 + $0x1] ss:$0 sm:$0xff]  ;;  %v1145_v28 = vld [vmem:[%s1375_s4 + $0x18] sm:$0xff] }
  0x13   : > { %737 = vmatpush.bf16.msra.mxu3 %v1148_v7  ;;  %v1146_v20 = vld [vmem:[%s1375_s4 + $0x20] sm:$0xff]  ;;  %v1135_v33 = vld [vmem:[%s1374_s3 + $0x90] sm:$0xff]  ;;  %v1126_v37 = vld [vmem:[%s1374_s3 + $0x48] sm:$0xff] }
  0x14   : > { %504 = vmatpush.bf16.msra.mxu0 %v1130_v8  ;;  %v389_v21 = vmul.f32 %v1172_v18, %v1152_v16  ;;  %v390_v22 = vmul.f32 %v1173_v19, %v1153_v17  ;;  %v1174_v23 = vld [vmem:[%s357_s9] ss:$0 sm:$0xff]  ;;  %v1175_v24 = vld [vmem:[%s357_s9 + $0x1] ss:$0 sm:$0xff]  ;;  %v1144_v34 = vld [vmem:[%s1375_s4 + $0x10] sm:$0xff] }
  0x15   : > { %566 = vmatpush.bf16.msra.mxu1 %v1122_v9  ;;  %v1118_v38 = vld [vmem:[%s1374_s3 + $0x8] sm:$0xff]  ;;  %v1125_v43 = vld [vmem:[%s1374_s3 + $0x40] sm:$0xff]  ;;  %vm1023_vm1 = vmneg %vm409_vm0 }
  0x16   : > { %646 = vmatpush.bf16.msra.mxu2 %v1138_v10  ;;  %v399_v29 = vadd.f32 %v1174_v23, %v389_v21  ;;  %v400_v30 = vadd.f32 %v1175_v24, %v390_v22  ;;  %v1134_v39 = vld [vmem:[%s1374_s3 + $0x88] sm:$0xff]  ;;  %v1117_v44 = vld [vmem:[%s1374_s3] sm:$0xff]  ;;  %vm1025_vm3 = vmpackc.low %vm1023_vm1, %vm1023_vm1 }
  0x17   : > { %738 = vmatpush.bf16.msra.mxu3 %v1147_v14  ;;  %v1143_v42 = vld [vmem:[%s1375_s4 + $0x8] sm:$0xff]  ;;  %v1133_v47 = vld [vmem:[%s1374_s3 + $0x80] sm:$0xff]  ;;  %vm1076_vm4 = vmpackc.low %vm416_vm2, %vm416_vm2 }
  0x18   : > { %505 = vmatpush.bf16.msra.mxu0 %v1129_v11  ;;  %v401_v35 = vmax.f32 %v399_v29, 0.0  ;;  %v402_v36 = vmax.f32 %v400_v30, 0.0  ;;  %v1142_v51 = vld [vmem:[%s1375_s4] sm:$0xff] }
  0x19   : > { %567 = vmatpush.bf16.msra.mxu1 %v1121_v12  ;;  %v1141_v52 = vld [vmem:[%s1279_s14] sm:$0xff]  ;;  %s363_s14 = scalar_lea.vmem %s1376_s5, %s1264_s24  ;;  %s373_s24 = scalar_lea.vmem %s1378_s7, %s1383_s28 }
  0x1a   : > { %647 = vmatpush.bf16.msra.mxu2 %v1137_v13  ;;  %v405_v40 = vrot.slane %v401_v35, 7  ;;  %v406_v41 = vrot.slane %v402_v36, 7  ;;  %v412_v45 = vrot.slane %v401_v35, 1  ;;  %v413_v46 = vrot.slane %v402_v36, 1 }
  0x1b   : > { %739 = vmatpush.bf16.msra.mxu3 %v1146_v20  ;;  %v436_v48 = vpack.c.bf16 %v402_v36, %v401_v35 }
  0x1c   : > { %506 = vmatpush.bf16.msra.mxu0 %v1128_v25  ;;  %v1026_v49 = vpack.c.bf16 %v406_v41, %v405_v40  ;;  %v1077_v50 = vpack.c.bf16 %v413_v46, %v412_v45 }
  0x1d   : > { %568 = vmatpush.bf16.msra.mxu1 %v1120_v26 }
  0x1e   : > { %648 = vmatpush.bf16.msra.mxu2 %v1136_v27 }
  0x1f   : > { %740 = vmatpush.bf16.msra.mxu3 %v1145_v28 }
  0x20   : > { %507 = vmatpush.bf16.msra.mxu0 %v1127_v31 }
  0x21   : > { %569 = vmatpush.bf16.msra.mxu1 %v1119_v32 }
  0x22   : > { %649 = vmatpush.bf16.msra.mxu2 %v1135_v33 }
  0x23   : > { %741 = vmatpush.bf16.msra.mxu3 %v1144_v34 }
  0x24   : > { %508 = vmatpush.bf16.msra.mxu0 %v1126_v37 }
  0x25   : > { %570 = vmatpush.bf16.msra.mxu1 %v1118_v38 }
  0x26   : > { %650 = vmatpush.bf16.msra.mxu2 %v1134_v39 }
  0x27   : > { %742 = vmatpush.bf16.msra.mxu3 %v1143_v42 }
  0x28   : > { %509 = vmatpush.bf16.msra.mxu0 %v1125_v43 }
  0x29   : > { %571 = vmatpush.bf16.msra.mxu1 %v1117_v44 }
  0x2a   : > { %651 = vmatpush.bf16.msra.mxu2 %v1133_v47 }
  0x2b   : > { %510 = vmatmul.bf16.vlgmr.msra.gmra.mxu0 %v436_v48  ;;  %743 = vmatpush.bf16.msra.mxu3 %v1142_v51 }
  0x2c   : > { %1027 = vmatmul.msk.bf16.vlgmr.msra.gmra.mxu1 %vm1025_vm3, %v1026_v49 }
  0x2d   : > { %1078 = vmatmul.msk.bf16.vlgmr.msra.gmra.mxu2 %vm1076_vm4, %v1077_v50 }
  0x2e   : > { %744 = vmatmul.bf16.vlgmr.msra.gmra.mxu3 %v1141_v52 }
  0xa8   : > { %v511_v53 = vpop.f32.mrf.mxu0 }
  0xa9   : > { %v573_v54 = vpop.f32.mrf.mxu1 }
  0xaa   : > { %v574_v56 = vadd.f32 %v573_v54, %v511_v53 }
  0xb0   : > { %v653_v55 = vpop.f32.mrf.mxu2  ;;  %v513_v58 = vpop.f32.mrf.mxu0 }
  0xb1   : > { %v745_v57 = vpop.f32.mrf.mxu3  ;;  %v575_v59 = vpop.f32.mrf.mxu1  ;;  %v658_v60 = vadd.f32 %v653_v55, %v574_v56 }
  0xb2   : > { %v576_v61 = vadd.f32 %v575_v59, %v513_v58 }
  0xb3   : > { %v762_v0 = vmul.f32 %v658_v60, %v658_v60 }
  0xb8   : > { %v655_v62 = vpop.f32.mrf.mxu2 }
  0xb9   : > { %v659_v63 = vadd.f32 %v655_v62, %v576_v61  ;;  %v747_v4 = vpop.f32.mrf.mxu3 }
  0xba   : > { %v1162_v5 = vpack.c.bf16 %v747_v4, %v745_v57 }
  0xbb   : > { %v1157_v1 = vpack.c.bf16 %v659_v63, %v658_v60  ;;  %v754_v2 = vadd.f32 %v659_v63, %v658_v60  ;;  %v763_v3 = vmul.f32 %v659_v63, %v659_v63 }
  0xbc   : > { %1163 = vst [vmem:[%s369_s12] sm:$0xff] %v1162_v5  }
  0xbd   : > { %1158 = vst [vmem:[%s363_s14] sm:$0xff] %v1157_v1   ;;  %v755_v6 = vrot.slane %v754_v2, 4  ;;  %v764_v7 = vadd.f32 %v763_v3, %v762_v0 }
  0xbf   : > { %v756_v8 = vadd.f32 %v755_v6, %v754_v2  ;;  %v765_v9 = vrot.slane %v764_v7, 4 }
  0xc1   : > { %v757_v10 = vrot.slane %v756_v8, 2  ;;  %v766_v11 = vadd.f32 %v765_v9, %v764_v7 }
  0xc3   : > { %v758_v12 = vadd.f32 %v757_v10, %v756_v8  ;;  %v767_v13 = vrot.slane %v766_v11, 2 }
  0xc5   : > { %v759_v14 = vrot.slane %v758_v12, 1  ;;  %v768_v15 = vadd.f32 %v767_v13, %v766_v11 }
  0xc7   : > { %v760_v16 = vadd.f32 %v759_v14, %v758_v12  ;;  %v769_v17 = vrot.slane %v768_v15, 1 }
  0xc9   : > { %761 = vst [vmem:[%s373_s24] sm:$0x1] %v760_v16  ;;  %v770_v18 = vadd.f32 %v769_v17, %v768_v15 }
  0xcb   : > { %771 = vst [vmem:[%s376_s18] sm:$0x1] %v770_v18 }
  0xcc PF: > { %s19_s27 = sadd.s32 1, %s1182_s27  }
  0xcd   : > { %p16_p5 = scmp.ge.s32.totalorder %s19_s27, 4  }
  0xcf   :  { %18 = sbr.rel (!%p16_p5) target bundleno = 1 (0x1), region = 114 }

// kernel: generator_forward.15
= control target key start
LH: loop header
LB: loop body
LE: loop exit
PB: predicated region body
PF: predicated region fallthrough
CT: control target
= control target key end

     0   :  { %7 = vsyncpa [#allocation3], 0  ;;  %s2374_s9 = smov 0   ;;  %s2499_s0 = inlined_call_operand.vmem [shape: bf16[4,8,256], index: 0, kind: input, shape index: {}]   ;;  %s2500_s1 = inlined_call_operand.hbm [shape: bf16[3,256,384], index: 1, kind: input, shape index: {}]   ;;  %s2501_s2 = inlined_call_operand.vmem [shape: bf16[4,8,384], index: 2, kind: output, shape index: {}]  }
   0x1 LB: > { %s102_s12 = sshll.u32 %s2500_s1, 4  ;;  %s1509_s13 = sadd.s32 4294967295, %s2354_s9   ;;  %s2354_s9 = sphi %s2374_s9, %s13_s9   ;;  %s103_s12 = int_to_ptr.hbm [resolvable:$true] %s102_s12 }
   0x2   : > { %p1511_p0 = scmp.ge.s32.totalorder %s2354_s9, 1  ;;  %p91_p1 = scmp.lt.s32.totalorder %s2354_s9, 3 }
   0x3   : > { %p2301_p2 = scmp.eq.s32.totalorder %s1509_s13, 0  ;;  %s2356_s14 = smov [#allocation2]  }
   0x4   : > { %p92_p3 = pnand %p1511_p0, %p91_p1  ;;  %s104_s15 = sshll.u32 %s2356_s14, 4  ;;  %s105_s15 = int_to_ptr.vmem [resolvable:$true] %s104_s15 }
   0x5   : > { %s2357_s16 = smov 192   ;;  %s2358_s17 = smov 12  }
   0x6   : > { %p2297_p4 = pneg %p92_p3  ;;  %130 = sbr.rel (%p92_p3) target bundleno = 316 (0x13c), region = 28 }
   0x8   : > { %p2298_p5 = pnand %p2301_p2, %p2297_p4 }
   0xa   : > { %2300 = dma.hbm_to_vmem [thread:$0]  (!%p2298_p5), %s103_s12, 18432, %s105_s15, [#allocation3], %s2357_s16, %s2357_s16, %s2358_s17  }
   0xb   : > { %2349 = dma.done.wait (%p2301_p2), [#allocation3], 18432  }
   0xc   : > { %2351 = vsyncadd (%p2301_p2), [#allocation3], 4294948864  ;;  %v1607_v0 = vld [vmem:[#allocation2 + $0x228] sm:$0xf]  ;;  %v2218_v1 = vld [vmem:[#allocation2 + $0x230] sm:$0xf0] }
   0xd   : > { %v1703_v2 = vld [vmem:[#allocation2 + $0x2e8] sm:$0xf]  ;;  %v1608_v3 = vor.u32 %v2218_v1, %v1607_v0  ;;  %v2242_v4 = vld [vmem:[#allocation2 + $0x2f0] sm:$0xf0]  ;;  %v2217_v5 = vld [vmem:[#allocation2 + $0x22c] sm:$0xf] }
   0xe   : > { %v1609_v6 = vld [vmem:[#allocation2 + $0x234] sm:$0xf0]  ;;  %v1704_v7 = vor.u32 %v2242_v4, %v1703_v2  ;;  %v2241_v9 = vld [vmem:[#allocation2 + $0x2ec] sm:$0xf]  ;;  %v1595_v11 = vld [vmem:[#allocation2 + $0x210] sm:$0xf] }
   0xf   : > { %v1612_v8 = vor.u32 %v2217_v5, %v1609_v6  ;;  %v1705_v10 = vld [vmem:[#allocation2 + $0x2f4] sm:$0xf0]  ;;  %594 = vmatpush.bf16.msra.mxu0 %v1608_v3  ;;  %v2215_v13 = vld [vmem:[#allocation2 + $0x218] sm:$0xf0]  ;;  %v1691_v14 = vld [vmem:[#allocation2 + $0x2d0] sm:$0xf] }
  0x10   : > { %v1708_v12 = vor.u32 %v2241_v9, %v1705_v10  ;;  %v2239_v15 = vld [vmem:[#allocation2 + $0x2d8] sm:$0xf0]  ;;  %608 = vmatpush.bf16.msra.mxu1 %v1704_v7  ;;  %v1596_v16 = vor.u32 %v2215_v13, %v1595_v11  ;;  %v2214_v18 = vld [vmem:[#allocation2 + $0x214] sm:$0xf]  ;;  %v1597_v19 = vld [vmem:[#allocation2 + $0x21c] sm:$0xf0] }
  0x11   : > { %622 = vmatpush.bf16.msra.mxu2 %v1612_v8  ;;  %v1692_v17 = vor.u32 %v2239_v15, %v1691_v14  ;;  %v2238_v20 = vld [vmem:[#allocation2 + $0x2d4] sm:$0xf]  ;;  %v1600_v21 = vor.u32 %v2214_v18, %v1597_v19  ;;  %v1693_v22 = vld [vmem:[#allocation2 + $0x2dc] sm:$0xf0]  ;;  %v1583_v23 = vld [vmem:[#allocation2 + $0x1f8] sm:$0xf] }
  0x12   : > { %636 = vmatpush.bf16.msra.mxu3 %v1708_v12  ;;  %v2212_v24 = vld [vmem:[#allocation2 + $0x200] sm:$0xf0]  ;;  %v1696_v25 = vor.u32 %v2238_v20, %v1693_v22  ;;  %v1679_v26 = vld [vmem:[#allocation2 + $0x2b8] sm:$0xf]  ;;  %v2211_v28 = vld [vmem:[#allocation2 + $0x1fc] sm:$0xf] }
  0x13   : > { %v2236_v27 = vld [vmem:[#allocation2 + $0x2c0] sm:$0xf0]  ;;  %595 = vmatpush.bf16.msra.mxu0 %v1596_v16  ;;  %v1584_v29 = vor.u32 %v2212_v24, %v1583_v23  ;;  %v1585_v30 = vld [vmem:[#allocation2 + $0x204] sm:$0xf0]  ;;  %v2235_v31 = vld [vmem:[#allocation2 + $0x2bc] sm:$0xf] }
  0x14   : > { %v1681_v32 = vld [vmem:[#allocation2 + $0x2c4] sm:$0xf0]  ;;  %609 = vmatpush.bf16.msra.mxu1 %v1692_v17  ;;  %v1680_v33 = vor.u32 %v2236_v27, %v1679_v26  ;;  %v1588_v34 = vor.u32 %v2211_v28, %v1585_v30  ;;  %v1571_v35 = vld [vmem:[#allocation2 + $0x1e0] sm:$0xf]  ;;  %v2209_v36 = vld [vmem:[#allocation2 + $0x1e8] sm:$0xf0] }
  0x15   : > { %623 = vmatpush.bf16.msra.mxu2 %v1600_v21  ;;  %v1667_v37 = vld [vmem:[#allocation2 + $0x2a0] sm:$0xf]  ;;  %v1684_v38 = vor.u32 %v2235_v31, %v1681_v32  ;;  %v2233_v39 = vld [vmem:[#allocation2 + $0x2a8] sm:$0xf0]  ;;  %v2208_v40 = vld [vmem:[#allocation2 + $0x1e4] sm:$0xf]  ;;  %v1572_v44 = vor.u32 %v2209_v36, %v1571_v35 }
  0x16   : > { %637 = vmatpush.bf16.msra.mxu3 %v1696_v25  ;;  %v1573_v41 = vld [vmem:[#allocation2 + $0x1ec] sm:$0xf0]  ;;  %v2232_v42 = vld [vmem:[#allocation2 + $0x2a4] sm:$0xf]  ;;  %s2389_s18 = sshll.u32 %s1509_s13, 1  ;;  %v1668_v45 = vor.u32 %v2233_v39, %v1667_v37  ;;  %vm187_vm0 = vcmask 1040384  }
  0x17   : > { %v1669_v43 = vld [vmem:[#allocation2 + $0x2ac] sm:$0xf0]  ;;  %596 = vmatpush.bf16.msra.mxu0 %v1584_v29  ;;  %v1576_v46 = vor.u32 %v2208_v40, %v1573_v41  ;;  %v1559_v47 = vld [vmem:[#allocation2 + $0x1c8] sm:$0xf]  ;;  %v2206_v48 = vld [vmem:[#allocation2 + $0x1d0] sm:$0xf0] }
  0x18   : > { %610 = vmatpush.bf16.msra.mxu1 %v1680_v33  ;;  %v1655_v49 = vld [vmem:[#allocation2 + $0x288] sm:$0xf]  ;;  %v1672_v50 = vor.u32 %v2232_v42, %v1669_v43  ;;  %v2230_v51 = vld [vmem:[#allocation2 + $0x290] sm:$0xf0]  ;;  %v2205_v52 = vld [vmem:[#allocation2 + $0x1cc] sm:$0xf]  ;;  %v1560_v56 = vor.u32 %v2206_v48, %v1559_v47 }
  0x19   : > { %624 = vmatpush.bf16.msra.mxu2 %v1588_v34  ;;  %v1561_v53 = vld [vmem:[#allocation2 + $0x1d4] sm:$0xf0]  ;;  %v2229_v54 = vld [vmem:[#allocation2 + $0x28c] sm:$0xf]  ;;  %p156_p6 = scmp.lt.s32.totalorder %s2389_s18, 3  ;;  %v1656_v57 = vor.u32 %v2230_v51, %v1655_v49  ;;  %vm1905_vm1 = vmneg %vm187_vm0  ;;  %vm200_vm3 = vcmask 1046528  }
  0x1a   : > { %638 = vmatpush.bf16.msra.mxu3 %v1684_v38  ;;  %v1657_v55 = vld [vmem:[#allocation2 + $0x294] sm:$0xf0]  ;;  %v1564_v58 = vor.u32 %v2205_v52, %v1561_v53  ;;  %v1547_v59 = vld [vmem:[#allocation2 + $0x1b0] sm:$0xf]  ;;  %v2203_v60 = vld [vmem:[#allocation2 + $0x1b8] sm:$0xf0] }
  0x1b   : > { %597 = vmatpush.bf16.msra.mxu0 %v1572_v44  ;;  %v1643_v61 = vld [vmem:[#allocation2 + $0x270] sm:$0xf]  ;;  %v1660_v62 = vor.u32 %v2229_v54, %v1657_v55  ;;  %v2227_v63 = vld [vmem:[#allocation2 + $0x278] sm:$0xf0]  ;;  %v2202_v0 = vld [vmem:[#allocation2 + $0x1b4] sm:$0xf]  ;;  %v1548_v4 = vor.u32 %v2203_v60, %v1547_v59 }
  0x1c   : > { %611 = vmatpush.bf16.msra.mxu1 %v1668_v45  ;;  %v1549_v1 = vld [vmem:[#allocation2 + $0x1bc] sm:$0xf0]  ;;  %v2226_v2 = vld [vmem:[#allocation2 + $0x274] sm:$0xf]  ;;  %s2507_s18 = smov (!%p156_p6, %s2389_s18), 3  ;;  %v1644_v5 = vor.u32 %v2227_v63, %v1643_v61  ;;  %vm2430_vm2 = vmpackc.low %vm1905_vm1, %vm1905_vm1 }
  0x1d   : > { %625 = vmatpush.bf16.msra.mxu2 %v1576_v46  ;;  %v1645_v3 = vld [vmem:[#allocation2 + $0x27c] sm:$0xf0]  ;;  %v1552_v6 = vor.u32 %v2202_v0, %v1549_v1  ;;  %v1535_v7 = vld [vmem:[#allocation2 + $0x198] sm:$0xf]  ;;  %v2200_v8 = vld [vmem:[#allocation2 + $0x1a0] sm:$0xf0] }
  0x1e   : > { %639 = vmatpush.bf16.msra.mxu3 %v1672_v50  ;;  %v1631_v9 = vld [vmem:[#allocation2 + $0x258] sm:$0xf]  ;;  %v1648_v10 = vor.u32 %v2226_v2, %v1645_v3  ;;  %v2224_v11 = vld [vmem:[#allocation2 + $0x260] sm:$0xf0]  ;;  %v2199_v12 = vld [vmem:[#allocation2 + $0x19c] sm:$0xf]  ;;  %v1536_v16 = vor.u32 %v2200_v8, %v1535_v7 }
  0x1f   : > { %598 = vmatpush.bf16.msra.mxu0 %v1560_v56  ;;  %v1537_v13 = vld [vmem:[#allocation2 + $0x1a4] sm:$0xf0]  ;;  %v2223_v14 = vld [vmem:[#allocation2 + $0x25c] sm:$0xf]  ;;  %v1523_v17 = vld [vmem:[#allocation2 + $0x180] sm:$0xf]  ;;  %v1632_v19 = vor.u32 %v2224_v11, %v1631_v9 }
  0x20   : > { %612 = vmatpush.bf16.msra.mxu1 %v1656_v57  ;;  %v1633_v15 = vld [vmem:[#allocation2 + $0x264] sm:$0xf0]  ;;  %v2197_v18 = vld [vmem:[#allocation2 + $0x188] sm:$0xf0]  ;;  %s2147_s19 = sshll.u32 %s2507_s18, 3  ;;  %v1540_v20 = vor.u32 %v2199_v12, %v1537_v13  ;;  %vm2464_vm4 = vmpackc.low %vm200_vm3, %vm200_vm3  ;;  %s2292_s23 = smul.u32 12, %s2507_s18 }
  0x21   : > { %626 = vmatpush.bf16.msra.mxu2 %v1564_v58  ;;  %v1619_v21 = vld [vmem:[#allocation2 + $0x240] sm:$0xf]  ;;  %v2221_v22 = vld [vmem:[#allocation2 + $0x248] sm:$0xf0]  ;;  %v2196_v23 = vld [vmem:[#allocation2 + $0x184] sm:$0xf]  ;;  %v1636_v24 = vor.u32 %v2223_v14, %v1633_v15  ;;  %v1524_v31 = vor.u32 %v2197_v18, %v1523_v17  ;;  %s160_s22 = scalar_lea.vmem %s2499_s0, %s2147_s19 }
  0x22   : > { %640 = vmatpush.bf16.msra.mxu3 %v1660_v62  ;;  %v1525_v25 = vld [vmem:[#allocation2 + $0x18c] sm:$0xf0]  ;;  %v2220_v26 = vld [vmem:[#allocation2 + $0x244] sm:$0xf]  ;;  %v2219_v29 = vld [vmem:[#allocation2 + $0x238] sm:$0xf0]  ;;  %v1620_v35 = vor.u32 %v2221_v22, %v1619_v21  ;;  %s2490_s26 = scalar_lea.vmem %s2501_s2, %s2292_s23 }
  0x23   : > { %599 = vmatpush.bf16.msra.mxu0 %v1548_v4  ;;  %v1621_v27 = vld [vmem:[#allocation2 + $0x24c] sm:$0xf0]  ;;  %v2243_v32 = vld [vmem:[#allocation2 + $0x2f8] sm:$0xf0]  ;;  %v1799_v33 = vld [vmem:[#allocation2 + $0xa8] sm:$0xf]  ;;  %v1528_v36 = vor.u32 %v2196_v23, %v1525_v25 }
  0x24   : > { %613 = vmatpush.bf16.msra.mxu1 %v1644_v5  ;;  %v1615_v28 = vld [vmem:[#allocation2 + $0x230] sm:$0xf]  ;;  %v2170_v34 = vld [vmem:[#allocation2 + $0xb0] sm:$0xf0]  ;;  %v1895_v37 = vld [vmem:[#allocation2 + $0x168] sm:$0xf]  ;;  %v1624_v39 = vor.u32 %v2220_v26, %v1621_v27 }
  0x25   : > { %627 = vmatpush.bf16.msra.mxu2 %v1552_v6  ;;  %v1711_v30 = vld [vmem:[#allocation2 + $0x2f0] sm:$0xf]  ;;  %v2194_v38 = vld [vmem:[#allocation2 + $0x170] sm:$0xf0]  ;;  %v1616_v40 = vor.u32 %v2219_v29, %v1615_v28  ;;  %v1603_v41 = vld [vmem:[#allocation2 + $0x218] sm:$0xf]  ;;  %v1800_v44 = vor.u32 %v2170_v34, %v1799_v33 }
  0x26   : > { %641 = vmatpush.bf16.msra.mxu3 %v1648_v10  ;;  %v2216_v42 = vld [vmem:[#allocation2 + $0x220] sm:$0xf0]  ;;  %v1712_v43 = vor.u32 %v2243_v32, %v1711_v30  ;;  %v1699_v45 = vld [vmem:[#allocation2 + $0x2d8] sm:$0xf]  ;;  %v1896_v47 = vor.u32 %v2194_v38, %v1895_v37  ;;  %v1787_v48 = vld [vmem:[#allocation2 + $0x90] sm:$0xf] }
  0x27   : > { %600 = vmatpush.bf16.msra.mxu0 %v1536_v16  ;;  %v2240_v46 = vld [vmem:[#allocation2 + $0x2e0] sm:$0xf0]  ;;  %v2167_v49 = vld [vmem:[#allocation2 + $0x98] sm:$0xf0]  ;;  %v1883_v50 = vld [vmem:[#allocation2 + $0x150] sm:$0xf]  ;;  %v1604_v51 = vor.u32 %v2216_v42, %v1603_v41 }
  0x28   : > { %614 = vmatpush.bf16.msra.mxu1 %v1632_v19  ;;  %v2191_v52 = vld [vmem:[#allocation2 + $0x158] sm:$0xf0]  ;;  %v169_v53 = vld [vmem:[%s160_s22] sm:$0xff]  ;;  %v170_v54 = vld [vmem:[%s160_s22 + $0x8] sm:$0xff]  ;;  %v1700_v59 = vor.u32 %v2240_v46, %v1699_v45  ;;  %v1788_v60 = vor.u32 %v2167_v49, %v1787_v48 }
  0x29   : > { %628 = vmatpush.bf16.msra.mxu2 %v1540_v20  ;;  %v2403_v55 = vunpack.c.l.bf16 %v169_v53  ;;  %v2405_v56 = vunpack.c.l.bf16 %v170_v54  ;;  %v2407_v57 = vunpack.c.h.bf16 %v169_v53  ;;  %v2409_v58 = vunpack.c.h.bf16 %v170_v54  ;;  %v1591_v61 = vld [vmem:[#allocation2 + $0x200] sm:$0xf]  ;;  %v2213_v62 = vld [vmem:[#allocation2 + $0x208] sm:$0xf0]  ;;  %v1775_v2 = vld [vmem:[#allocation2 + $0x78] sm:$0xf] }
  0x2a   : > { %642 = vmatpush.bf16.msra.mxu3 %v1636_v24  ;;  %v1687_v63 = vld [vmem:[#allocation2 + $0x2c0] sm:$0xf]  ;;  %v1884_v0 = vor.u32 %v2191_v52, %v1883_v50  ;;  %v2237_v1 = vld [vmem:[#allocation2 + $0x2c8] sm:$0xf0]  ;;  %v2164_v3 = vld [vmem:[#allocation2 + $0x80] sm:$0xf0]  ;;  %v1592_v8 = vor.u32 %v2213_v62, %v1591_v61 }
  0x2b   : > { %601 = vmatpush.bf16.msra.mxu0 %v1524_v31  ;;  %v2413_v4 = vpack.c.bf16 %v2405_v56, %v2403_v55  ;;  %v1871_v5 = vld [vmem:[#allocation2 + $0x138] sm:$0xf]  ;;  %v2188_v6 = vld [vmem:[#allocation2 + $0x140] sm:$0xf0]  ;;  %v2417_v7 = vpack.c.bf16 %v2409_v58, %v2407_v57  ;;  %v1688_v9 = vor.u32 %v2237_v1, %v1687_v63  ;;  %v1776_v10 = vor.u32 %v2164_v3, %v1775_v2  ;;  %v1579_v11 = vld [vmem:[#allocation2 + $0x1e8] sm:$0xf] }
  0x2c   : > { %615 = vmatpush.bf16.msra.mxu1 %v1620_v35  ;;  %v2210_v12 = vld [vmem:[#allocation2 + $0x1f0] sm:$0xf0]  ;;  %v1675_v13 = vld [vmem:[#allocation2 + $0x2a8] sm:$0xf]  ;;  %v1872_v14 = vor.u32 %v2188_v6, %v1871_v5  ;;  %v1763_v16 = vld [vmem:[#allocation2 + $0x60] sm:$0xf] }
  0x2d   : > { %629 = vmatpush.bf16.msra.mxu2 %v1528_v36  ;;  %v2234_v15 = vld [vmem:[#allocation2 + $0x2b0] sm:$0xf0]  ;;  %v2161_v17 = vld [vmem:[#allocation2 + $0x68] sm:$0xf0]  ;;  %v1859_v18 = vld [vmem:[#allocation2 + $0x120] sm:$0xf]  ;;  %v1580_v20 = vor.u32 %v2210_v12, %v1579_v11 }
  0x2e   : > { %643 = vmatpush.bf16.msra.mxu3 %v1624_v39  ;;  %602 = vmatmul.bf16.vlgmr.msra.gmra.mxu0 %v2413_v4  ;;  %v2185_v19 = vld [vmem:[#allocation2 + $0x128] sm:$0xf0]  ;;  %v1676_v21 = vor.u32 %v2234_v15, %v1675_v13  ;;  %v1764_v22 = vor.u32 %v2161_v17, %v1763_v16  ;;  %v1567_v23 = vld [vmem:[#allocation2 + $0x1d0] sm:$0xf]  ;;  %v2207_v24 = vld [vmem:[#allocation2 + $0x1d8] sm:$0xf0] }
  0x2f   : > { %650 = vmatpush.bf16.msrb.mxu0 %v1616_v40  ;;  %616 = vmatmul.bf16.vlgmr.msra.gmra.mxu1 %v2417_v7  ;;  %v1663_v25 = vld [vmem:[#allocation2 + $0x290] sm:$0xf]  ;;  %v1860_v26 = vor.u32 %v2185_v19, %v1859_v18  ;;  %v2231_v27 = vld [vmem:[#allocation2 + $0x298] sm:$0xf0]  ;;  %v1751_v28 = vld [vmem:[#allocation2 + $0x48] sm:$0xf]  ;;  %v1568_v32 = vor.u32 %v2207_v24, %v1567_v23 }
  0x30   : > { %664 = vmatpush.bf16.msrb.mxu1 %v1712_v43  ;;  %630 = vmatmul.bf16.vlgmr.msra.gmra.mxu2 %v2413_v4  ;;  %v2158_v29 = vld [vmem:[#allocation2 + $0x50] sm:$0xf0]  ;;  %v1847_v30 = vld [vmem:[#allocation2 + $0x108] sm:$0xf]  ;;  %v1664_v33 = vor.u32 %v2231_v27, %v1663_v25  ;;  %v1555_v35 = vld [vmem:[#allocation2 + $0x1b8] sm:$0xf] }
  0x31   : > { %934 = vmatpush.bf16.msrb.mxu2 %v1800_v44  ;;  %644 = vmatmul.bf16.vlgmr.msra.gmra.mxu3 %v2417_v7  ;;  %v2182_v31 = vld [vmem:[#allocation2 + $0x110] sm:$0xf0]  ;;  %v1752_v34 = vor.u32 %v2158_v29, %v1751_v28  ;;  %v2204_v36 = vld [vmem:[#allocation2 + $0x1c0] sm:$0xf0]  ;;  %v1651_v37 = vld [vmem:[#allocation2 + $0x278] sm:$0xf] }
  0x32   : > { %948 = vmatpush.bf16.msrb.mxu3 %v1896_v47  ;;  %v1848_v38 = vor.u32 %v2182_v31, %v1847_v30  ;;  %v2228_v39 = vld [vmem:[#allocation2 + $0x280] sm:$0xf0]  ;;  %v1739_v40 = vld [vmem:[#allocation2 + $0x30] sm:$0xf]  ;;  %v2155_v41 = vld [vmem:[#allocation2 + $0x38] sm:$0xf0]  ;;  %v1556_v44 = vor.u32 %v2204_v36, %v1555_v35 }
  0x33   : > { %651 = vmatpush.bf16.msrb.mxu0 %v1604_v51  ;;  %v1835_v42 = vld [vmem:[#allocation2 + $0xf0] sm:$0xf]  ;;  %v2179_v43 = vld [vmem:[#allocation2 + $0xf8] sm:$0xf0]  ;;  %v1652_v45 = vor.u32 %v2228_v39, %v1651_v37  ;;  %v1740_v46 = vor.u32 %v2155_v41, %v1739_v40  ;;  %v1543_v47 = vld [vmem:[#allocation2 + $0x1a0] sm:$0xf] }
  0x34   : > { %665 = vmatpush.bf16.msrb.mxu1 %v1700_v59  ;;  %v2201_v48 = vld [vmem:[#allocation2 + $0x1a8] sm:$0xf0]  ;;  %v1639_v49 = vld [vmem:[#allocation2 + $0x260] sm:$0xf]  ;;  %v1836_v50 = vor.u32 %v2179_v43, %v1835_v42  ;;  %v1727_v52 = vld [vmem:[#allocation2 + $0x18] sm:$0xf] }
  0x35   : > { %935 = vmatpush.bf16.msrb.mxu2 %v1788_v60  ;;  %v2225_v51 = vld [vmem:[#allocation2 + $0x268] sm:$0xf0]  ;;  %v2152_v53 = vld [vmem:[#allocation2 + $0x20] sm:$0xf0]  ;;  %v1823_v54 = vld [vmem:[#allocation2 + $0xd8] sm:$0xf]  ;;  %v1544_v60 = vor.u32 %v2201_v48, %v1543_v47 }
  0x36   : > { %949 = vmatpush.bf16.msrb.mxu3 %v1884_v0  ;;  %v2176_v59 = vld [vmem:[#allocation2 + $0xe0] sm:$0xf0]  ;;  %v1531_v61 = vld [vmem:[#allocation2 + $0x188] sm:$0xf]  ;;  %v2198_v62 = vld [vmem:[#allocation2 + $0x190] sm:$0xf0]  ;;  %v1640_v0 = vor.u32 %v2225_v51, %v1639_v49  ;;  %v1728_v1 = vor.u32 %v2152_v53, %v1727_v52 }
  0x37   : > { %652 = vmatpush.bf16.msrb.mxu0 %v1592_v8  ;;  %v1627_v63 = vld [vmem:[#allocation2 + $0x248] sm:$0xf]  ;;  %v2222_v2 = vld [vmem:[#allocation2 + $0x250] sm:$0xf0]  ;;  %v1715_v3 = vld [vmem:[#allocation2] sm:$0xf]  ;;  %v1824_v6 = vor.u32 %v2176_v59, %v1823_v54 }
  0x38   : > { %666 = vmatpush.bf16.msrb.mxu1 %v1688_v9  ;;  %v2149_v5 = vld [vmem:[#allocation2 + $0x8] sm:$0xf0]  ;;  %v1811_v8 = vld [vmem:[#allocation2 + $0xc0] sm:$0xf]  ;;  %v1801_v11 = vld [vmem:[#allocation2 + $0xb4] sm:$0xf0]  ;;  %v1628_v19 = vor.u32 %v2222_v2, %v1627_v63 }
  0x39   : > { %936 = vmatpush.bf16.msrb.mxu2 %v1776_v10  ;;  %v2173_v9 = vld [vmem:[#allocation2 + $0xc8] sm:$0xf0]  ;;  %v1897_v13 = vld [vmem:[#allocation2 + $0x174] sm:$0xf0]  ;;  %v1807_v15 = vld [vmem:[#allocation2 + $0xb0] sm:$0xf] }
  0x3a   : > { %950 = vmatpush.bf16.msrb.mxu3 %v1872_v14  ;;  %v2169_v10 = vld [vmem:[#allocation2 + $0xac] sm:$0xf]  ;;  %v1532_v14 = vor.u32 %v2198_v62, %v1531_v61  ;;  %v2171_v16 = vld [vmem:[#allocation2 + $0xb8] sm:$0xf0]  ;;  %v179_v17 = vrot.slane %v2403_v55, 7  ;;  %v181_v18 = vrot.slane %v2405_v56, 7  ;;  %v1812_v25 = vor.u32 %v2173_v9, %v1811_v8 }
  0x3b   : > { %653 = vmatpush.bf16.msrb.mxu0 %v1580_v20  ;;  %v2193_v12 = vld [vmem:[#allocation2 + $0x16c] sm:$0xf]  ;;  %v1716_v20 = vor.u32 %v2149_v5, %v1715_v3  ;;  %v180_v23 = vrot.slane %v2407_v57, 7  ;;  %v182_v24 = vrot.slane %v2409_v58, 7  ;;  %v1808_v28 = vor.u32 %v2171_v16, %v1807_v15  ;;  %v2166_v29 = vld [vmem:[#allocation2 + $0x94] sm:$0xf] }
  0x3c   : > { %667 = vmatpush.bf16.msrb.mxu1 %v1676_v21  ;;  %v1903_v21 = vld [vmem:[#allocation2 + $0x170] sm:$0xf]  ;;  %v1900_v27 = vor.u32 %v2193_v12, %v1897_v13  ;;  %v1789_v30 = vld [vmem:[#allocation2 + $0x9c] sm:$0xf0]  ;;  %v2190_v31 = vld [vmem:[#allocation2 + $0x154] sm:$0xf] }
  0x3d   : > { %937 = vmatpush.bf16.msrb.mxu2 %v1764_v22  ;;  %v2195_v22 = vld [vmem:[#allocation2 + $0x178] sm:$0xf0]  ;;  %v1795_v35 = vld [vmem:[#allocation2 + $0x98] sm:$0xf]  ;;  %v2168_v36 = vld [vmem:[#allocation2 + $0xa0] sm:$0xf0]  ;;  %v1792_v41 = vor.u32 %v2166_v29, %v1789_v30 }
  0x3e   : > { %951 = vmatpush.bf16.msrb.mxu3 %v1860_v26  ;;  %v1804_v26 = vor.u32 %v2169_v10, %v1801_v11  ;;  %v1891_v39 = vld [vmem:[#allocation2 + $0x158] sm:$0xf]  ;;  %v2192_v40 = vld [vmem:[#allocation2 + $0x160] sm:$0xf0]  ;;  %v1796_v43 = vor.u32 %v2168_v36, %v1795_v35  ;;  %v1873_v48 = vld [vmem:[#allocation2 + $0x144] sm:$0xf0] }
  0x3f   : > { %654 = vmatpush.bf16.msrb.mxu0 %v1568_v32  ;;  %v1904_v32 = vor.u32 %v2195_v22, %v1903_v21  ;;  %v1892_v47 = vor.u32 %v2192_v40, %v1891_v39  ;;  %v1783_v49 = vld [vmem:[#allocation2 + $0x80] sm:$0xf]  ;;  %v2189_v52 = vld [vmem:[#allocation2 + $0x148] sm:$0xf0]  ;;  %v1765_v61 = vld [vmem:[#allocation2 + $0x6c] sm:$0xf0] }
  0x40   : > { %668 = vmatpush.bf16.msrb.mxu1 %v1664_v33  ;;  %v2428_v33 = vpack.c.bf16 %v181_v18, %v179_v17  ;;  %v1879_v51 = vld [vmem:[#allocation2 + $0x140] sm:$0xf]  ;;  %v2184_v62 = vld [vmem:[#allocation2 + $0x124] sm:$0xf]  ;;  %v2162_v2 = vld [vmem:[#allocation2 + $0x70] sm:$0xf0] }
  0x41   : > { %938 = vmatpush.bf16.msrb.mxu2 %v1752_v34  ;;  %v1885_v34 = vld [vmem:[#allocation2 + $0x15c] sm:$0xf0]  ;;  %v1880_v63 = vor.u32 %v2189_v52, %v1879_v51  ;;  %v1867_v3 = vld [vmem:[#allocation2 + $0x128] sm:$0xf]  ;;  %v2186_v5 = vld [vmem:[#allocation2 + $0x130] sm:$0xf0] }
  0x42   : > { %952 = vmatpush.bf16.msrb.mxu3 %v1848_v38  ;;  %v2434_v38 = vpack.c.bf16 %v182_v24, %v180_v23  ;;  %v1888_v42 = vor.u32 %v2190_v31, %v1885_v34  ;;  %v2157_v8 = vld [vmem:[#allocation2 + $0x4c] sm:$0xf]  ;;  %v1753_v9 = vld [vmem:[#allocation2 + $0x54] sm:$0xf0]  ;;  %v1868_v11 = vor.u32 %v2186_v5, %v1867_v3  ;;  %v1759_v13 = vld [vmem:[#allocation2 + $0x50] sm:$0xf] }
  0x43   : > { %655 = vmatpush.bf16.msrb.mxu0 %v1556_v44  ;;  %v2163_v44 = vld [vmem:[#allocation2 + $0x7c] sm:$0xf]  ;;  %v2181_v10 = vld [vmem:[#allocation2 + $0x10c] sm:$0xf]  ;;  %v1849_v12 = vld [vmem:[#allocation2 + $0x114] sm:$0xf0]  ;;  %v1756_v17 = vor.u32 %v2157_v8, %v1753_v9 }
  0x44   : > { %669 = vmatpush.bf16.msrb.mxu1 %v1652_v45  ;;  %v1777_v45 = vld [vmem:[#allocation2 + $0x84] sm:$0xf0]  ;;  %v1855_v15 = vld [vmem:[#allocation2 + $0x110] sm:$0xf]  ;;  %v2183_v16 = vld [vmem:[#allocation2 + $0x118] sm:$0xf0]  ;;  %v1852_v18 = vor.u32 %v2181_v10, %v1849_v12 }
  0x45   : > { %939 = vmatpush.bf16.msrb.mxu2 %v1740_v46  ;;  %v2187_v46 = vld [vmem:[#allocation2 + $0x13c] sm:$0xf]  ;;  %v1780_v53 = vor.u32 %v2163_v44, %v1777_v45  ;;  %v1741_v21 = vld [vmem:[#allocation2 + $0x3c] sm:$0xf0]  ;;  %v2178_v22 = vld [vmem:[#allocation2 + $0xf4] sm:$0xf]  ;;  %v1856_v23 = vor.u32 %v2183_v16, %v1855_v15 }
  0x46   : > { %953 = vmatpush.bf16.msrb.mxu3 %v1836_v50  ;;  %v2165_v50 = vld [vmem:[#allocation2 + $0x88] sm:$0xf0]  ;;  %v1876_v54 = vor.u32 %v2187_v46, %v1873_v48  ;;  %v1837_v24 = vld [vmem:[#allocation2 + $0xfc] sm:$0xf0]  ;;  %v1729_v34 = vld [vmem:[#allocation2 + $0x24] sm:$0xf0] }
  0x47   : > { %656 = vmatpush.bf16.msrb.mxu0 %v1544_v60  ;;  %v1784_v59 = vor.u32 %v2165_v50, %v1783_v49  ;;  %v2160_v60 = vld [vmem:[#allocation2 + $0x64] sm:$0xf]  ;;  %v1840_v30 = vor.u32 %v2178_v22, %v1837_v24  ;;  %v2175_v35 = vld [vmem:[#allocation2 + $0xdc] sm:$0xf]  ;;  %v1825_v39 = vld [vmem:[#allocation2 + $0xe4] sm:$0xf0] }
  0x48   : > { %670 = vmatpush.bf16.msrb.mxu1 %v1640_v0  ;;  %v1861_v0 = vld [vmem:[#allocation2 + $0x12c] sm:$0xf0]  ;;  %v1735_v40 = vld [vmem:[#allocation2 + $0x20] sm:$0xf]  ;;  %v192_v44 = vrot.slane %v2403_v55, 1  ;;  %v194_v45 = vrot.slane %v2405_v56, 1  ;;  %v1828_v49 = vor.u32 %v2175_v35, %v1825_v39 }
  0x49   : > { %940 = vmatpush.bf16.msrb.mxu2 %v1728_v1  ;;  %v1771_v1 = vld [vmem:[#allocation2 + $0x68] sm:$0xf]  ;;  %v1717_v48 = vld [vmem:[#allocation2 + $0xc] sm:$0xf0]  ;;  %v2172_v51 = vld [vmem:[#allocation2 + $0xc4] sm:$0xf] }
  0x4a   : > { %954 = vmatpush.bf16.msrb.mxu3 %v1824_v6  ;;  %v1864_v6 = vor.u32 %v2184_v62, %v1861_v0  ;;  %v1813_v52 = vld [vmem:[#allocation2 + $0xcc] sm:$0xf0]  ;;  %v2021_v62 = vld [vmem:[#allocation2 + $0x3a8] sm:$0xf]  ;;  %v2266_v55 = vld [vmem:[#allocation2 + $0x3b0] sm:$0xf0] }
  0x4b   : > { %657 = vmatpush.bf16.msrb.mxu0 %v1532_v14  ;;  %v2159_v14 = vld [vmem:[#allocation2 + $0x58] sm:$0xf0]  ;;  %v2290_v0 = vld [vmem:[#allocation2 + $0x470] sm:$0xf0]  ;;  %v193_v3 = vrot.slane %v2407_v57, 1  ;;  %v195_v5 = vrot.slane %v2409_v58, 1  ;;  %v2022_v10 = vor.u32 %v2266_v55, %v2021_v62 }
  0x4c   : > { %671 = vmatpush.bf16.msrb.mxu1 %v1628_v19  ;;  %v1760_v19 = vor.u32 %v2159_v14, %v1759_v13  ;;  %v2119_v8 = vld [vmem:[#allocation2 + $0x474] sm:$0xf0]  ;;  %v2009_v13 = vld [vmem:[#allocation2 + $0x390] sm:$0xf]  ;;  %v2263_v14 = vld [vmem:[#allocation2 + $0x398] sm:$0xf0] }
  0x4d   : > { %941 = vmatpush.bf16.msrb.mxu2 %v1716_v20  ;;  %v2154_v20 = vld [vmem:[#allocation2 + $0x34] sm:$0xf]  ;;  %v2105_v15 = vld [vmem:[#allocation2 + $0x450] sm:$0xf]  ;;  %v2010_v22 = vor.u32 %v2263_v14, %v2009_v13  ;;  %v2045_v13 = vld [vmem:[#allocation2 + $0x3d8] sm:$0xf] }
  0x4e   : > { %955 = vmatpush.bf16.msrb.mxu3 %v1812_v25  ;;  %658 = vmatmul.bf16.vlgmr.msrb.gmra.mxu0 %v2413_v4  ;;  %v1768_v4 = vor.u32 %v2160_v60, %v1765_v61  ;;  %v1747_v25 = vld [vmem:[#allocation2 + $0x38] sm:$0xf]  ;;  %v1744_v29 = vor.u32 %v2154_v20, %v1741_v21  ;;  %v1819_v60 = vld [vmem:[#allocation2 + $0xc8] sm:$0xf]  ;;  %v2174_v61 = vld [vmem:[#allocation2 + $0xd0] sm:$0xf0]  ;;  %v2448_v20 = vpack.c.bf16 %v194_v45, %v192_v44 }
  0x4f   : > { %962 = vmatpush.bf16.msra.mxu0 %v1804_v26  ;;  %672 = vmatmul.bf16.vlgmr.msrb.gmra.mxu1 %v2417_v7  ;;  %v1772_v7 = vor.u32 %v2162_v2, %v1771_v1  ;;  %v2156_v26 = vld [vmem:[#allocation2 + $0x40] sm:$0xf0]  ;;  %v2265_v1 = vld [vmem:[#allocation2 + $0x3ac] sm:$0xf]  ;;  %v2023_v2 = vld [vmem:[#allocation2 + $0x3b4] sm:$0xf0]  ;;  %v1820_v9 = vor.u32 %v2174_v61, %v1819_v60  ;;  %v2450_v21 = vpack.c.bf16 %v195_v5, %v193_v3 }
  0x50   : > { %976 = vmatpush.bf16.msra.mxu1 %v1900_v27  ;;  %1909 = vmatmul.msk.bf16.vlgmr.msrb.gmra.mxu2 %vm2430_vm2, %v2428_v33  ;;  %v1843_v27 = vld [vmem:[#allocation2 + $0xf8] sm:$0xf]  ;;  %v1748_v31 = vor.u32 %v2156_v26, %v1747_v25  ;;  %v2026_v12 = vor.u32 %v2265_v1, %v2023_v2  ;;  %v2262_v57 = vld [vmem:[#allocation2 + $0x394] sm:$0xf]  ;;  %v2260_v26 = vld [vmem:[#allocation2 + $0x380] sm:$0xf0] }
  0x51   : > { %990 = vmatpush.bf16.msra.mxu2 %v1808_v28  ;;  %1914 = vmatmul.msk.bf16.vlgmr.msrb.gmra.mxu3 %vm2430_vm2, %v2434_v38  ;;  %v2180_v28 = vld [vmem:[#allocation2 + $0x100] sm:$0xf0]  ;;  %v2286_v58 = vld [vmem:[#allocation2 + $0x454] sm:$0xf]  ;;  %v1997_v25 = vld [vmem:[#allocation2 + $0x378] sm:$0xf] }
  0x52   : > { %1004 = vmatpush.bf16.msra.mxu3 %v1904_v32  ;;  %v2151_v32 = vld [vmem:[#allocation2 + $0x1c] sm:$0xf]  ;;  %v1844_v36 = vor.u32 %v2180_v28, %v1843_v27  ;;  %v2093_v27 = vld [vmem:[#allocation2 + $0x438] sm:$0xf]  ;;  %v1998_v35 = vor.u32 %v2260_v26, %v1997_v25  ;;  %v2256_v44 = vld [vmem:[#allocation2 + $0x364] sm:$0xf] }
  0x53   : > { %963 = vmatpush.bf16.msra.mxu0 %v1792_v41  ;;  %v2153_v41 = vld [vmem:[#allocation2 + $0x28] sm:$0xf0]  ;;  %v1732_v46 = vor.u32 %v2151_v32, %v1729_v34  ;;  %v2283_v32 = vld [vmem:[#allocation2 + $0x43c] sm:$0xf]  ;;  %v2095_v34 = vld [vmem:[#allocation2 + $0x444] sm:$0xf0] }
  0x54   : > { %977 = vmatpush.bf16.msra.mxu1 %v1888_v42  ;;  %v1831_v42 = vld [vmem:[#allocation2 + $0xe0] sm:$0xf]  ;;  %v1736_v50 = vor.u32 %v2153_v41, %v1735_v40  ;;  %v2257_v41 = vld [vmem:[#allocation2 + $0x368] sm:$0xf0]  ;;  %v1987_v45 = vld [vmem:[#allocation2 + $0x36c] sm:$0xf0] }
  0x55   : > { %991 = vmatpush.bf16.msra.mxu2 %v1796_v43  ;;  %v2177_v43 = vld [vmem:[#allocation2 + $0xe8] sm:$0xf0]  ;;  %v1985_v40 = vld [vmem:[#allocation2 + $0x360] sm:$0xf]  ;;  %v2071_v61 = vld [vmem:[#allocation2 + $0x414] sm:$0xf0] }
  0x56   : > { %1005 = vmatpush.bf16.msra.mxu3 %v1892_v47  ;;  %v2148_v47 = vld [vmem:[#allocation2 + $0x4] sm:$0xf]  ;;  %v2277_v60 = vld [vmem:[#allocation2 + $0x40c] sm:$0xf]  ;;  %v2057_v1 = vld [vmem:[#allocation2 + $0x3f0] sm:$0xf] }
  0x57   : > { %964 = vmatpush.bf16.msra.mxu0 %v1780_v53  ;;  %v1723_v53 = vld [vmem:[#allocation2 + $0x8] sm:$0xf]  ;;  %v1720_v56 = vor.u32 %v2148_v47, %v1717_v48  ;;  %v2083_v47 = vld [vmem:[#allocation2 + $0x42c] sm:$0xf0]  ;;  %v1986_v48 = vor.u32 %v2257_v41, %v1985_v40  ;;  %v2074_v2 = vor.u32 %v2277_v60, %v2071_v61  ;;  %v2275_v3 = vld [vmem:[#allocation2 + $0x3f8] sm:$0xf0] }
  0x58   : > { %978 = vmatpush.bf16.msra.mxu1 %v1876_v54  ;;  %v1832_v54 = vor.u32 %v2177_v43, %v1831_v42  ;;  %v2081_v42 = vld [vmem:[#allocation2 + $0x420] sm:$0xf]  ;;  %v2281_v43 = vld [vmem:[#allocation2 + $0x428] sm:$0xf0]  ;;  %v2250_v5 = vld [vmem:[#allocation2 + $0x334] sm:$0xf] }
  0x59   : > { %992 = vmatpush.bf16.msra.mxu2 %v1784_v59  ;;  %v2150_v59 = vld [vmem:[#allocation2 + $0x10] sm:$0xf0]  ;;  %v2082_v37 = vor.u32 %v2281_v43, %v2081_v42  ;;  %v2033_v25 = vld [vmem:[#allocation2 + $0x3c0] sm:$0xf]  ;;  %v2269_v26 = vld [vmem:[#allocation2 + $0x3c8] sm:$0xf0] }
  0x5a   : > { %1006 = vmatpush.bf16.msra.mxu3 %v1880_v63  ;;  %v2117_v63 = vld [vmem:[#allocation2 + $0x468] sm:$0xf]  ;;  %v2034_v40 = vor.u32 %v2269_v26, %v2033_v25  ;;  %v2258_v60 = vld [vmem:[#allocation2 + $0x370] sm:$0xf0] }
  0x5b   : > { %965 = vmatpush.bf16.msra.mxu0 %v1768_v4  ;;  %v1816_v4 = vor.u32 %v2172_v51, %v1813_v52  ;;  %v2069_v51 = vld [vmem:[#allocation2 + $0x408] sm:$0xf] }
  0x5c   : > { %979 = vmatpush.bf16.msra.mxu1 %v1864_v6  ;;  %v1724_v6 = vor.u32 %v2150_v59, %v1723_v53  ;;  %v2278_v53 = vld [vmem:[#allocation2 + $0x410] sm:$0xf0]  ;;  %v1975_v59 = vld [vmem:[#allocation2 + $0x354] sm:$0xf0]  ;;  %v2089_v61 = vld [vmem:[#allocation2 + $0x428] sm:$0xf] }
  0x5d   : > { %993 = vmatpush.bf16.msra.mxu2 %v1772_v7  ;;  %v2289_v7 = vld [vmem:[#allocation2 + $0x46c] sm:$0xf]  ;;  %v2070_v55 = vor.u32 %v2278_v53, %v2069_v51  ;;  %v2101_v51 = vld [vmem:[#allocation2 + $0x440] sm:$0xf] }
  0x5e   : > { %1007 = vmatpush.bf16.msra.mxu3 %v1868_v11  ;;  %v2118_v11 = vor.u32 %v2290_v0, %v2117_v63  ;;  %v2122_v16 = vor.u32 %v2289_v7, %v2119_v8  ;;  %v2251_v0 = vld [vmem:[#allocation2 + $0x338] sm:$0xf0]  ;;  %v2059_v7 = vld [vmem:[#allocation2 + $0x3fc] sm:$0xf0] }
  0x5f   : > { %966 = vmatpush.bf16.msra.mxu0 %v1756_v17  ;;  %v2287_v17 = vld [vmem:[#allocation2 + $0x458] sm:$0xf0] }
  0x60   : > { %980 = vmatpush.bf16.msra.mxu1 %v1852_v18  ;;  %v2011_v18 = vld [vmem:[#allocation2 + $0x39c] sm:$0xf0] }
  0x61   : > { %994 = vmatpush.bf16.msra.mxu2 %v1760_v19  ;;  %v2107_v19 = vld [vmem:[#allocation2 + $0x45c] sm:$0xf0]  ;;  %v2014_v24 = vor.u32 %v2262_v57, %v2011_v18  ;;  %v2271_v57 = vld [vmem:[#allocation2 + $0x3dc] sm:$0xf]  ;;  %v2047_v18 = vld [vmem:[#allocation2 + $0x3e4] sm:$0xf0] }
  0x62   : > { %1008 = vmatpush.bf16.msra.mxu3 %v1856_v23  ;;  %v2106_v23 = vor.u32 %v2287_v17, %v2105_v15  ;;  %v2110_v28 = vor.u32 %v2286_v58, %v2107_v19  ;;  %v2272_v15 = vld [vmem:[#allocation2 + $0x3e0] sm:$0xf0]  ;;  %v1951_v17 = vld [vmem:[#allocation2 + $0x324] sm:$0xf0]  ;;  %v1937_v19 = vld [vmem:[#allocation2 + $0x300] sm:$0xf] }
  0x63   : > { %967 = vmatpush.bf16.msra.mxu0 %v1744_v29  ;;  %v2284_v29 = vld [vmem:[#allocation2 + $0x440] sm:$0xf0] }
  0x64   : > { %981 = vmatpush.bf16.msra.mxu1 %v1840_v30  ;;  %v2259_v30 = vld [vmem:[#allocation2 + $0x37c] sm:$0xf] }
  0x65   : > { %995 = vmatpush.bf16.msra.mxu2 %v1748_v31  ;;  %v1999_v31 = vld [vmem:[#allocation2 + $0x384] sm:$0xf0] }
  0x66   : > { %1009 = vmatpush.bf16.msra.mxu3 %v1844_v36  ;;  %v2094_v36 = vor.u32 %v2284_v29, %v2093_v27  ;;  %v2002_v39 = vor.u32 %v2259_v30, %v1999_v31  ;;  %v2050_v27 = vor.u32 %v2271_v57, %v2047_v18  ;;  %v1939_v29 = vld [vmem:[#allocation2 + $0x30c] sm:$0xf0]  ;;  %v2268_v30 = vld [vmem:[#allocation2 + $0x3c4] sm:$0xf]  ;;  %v2246_v57 = vld [vmem:[#allocation2 + $0x310] sm:$0xf0] }
  0x67   : > { %968 = vmatpush.bf16.msra.mxu0 %v1732_v46  ;;  %v2280_v46 = vld [vmem:[#allocation2 + $0x424] sm:$0xf]  ;;  %v2035_v31 = vld [vmem:[#allocation2 + $0x3cc] sm:$0xf0]  ;;  %v2041_v18 = vld [vmem:[#allocation2 + $0x3c8] sm:$0xf] }
  0x68   : > { %982 = vmatpush.bf16.msra.mxu1 %v1828_v49  ;;  %v1973_v49 = vld [vmem:[#allocation2 + $0x348] sm:$0xf]  ;;  %v2086_v52 = vor.u32 %v2280_v46, %v2083_v47  ;;  %v2038_v42 = vor.u32 %v2268_v30, %v2035_v31  ;;  %v2113_v47 = vld [vmem:[#allocation2 + $0x458] sm:$0xf] }
  0x69   : > { %996 = vmatpush.bf16.msra.mxu2 %v1736_v50  ;;  %v2254_v50 = vld [vmem:[#allocation2 + $0x350] sm:$0xf0] }
  0x6a   : > { %1010 = vmatpush.bf16.msra.mxu3 %v1832_v54  ;;  %v2253_v54 = vld [vmem:[#allocation2 + $0x34c] sm:$0xf]  ;;  %v1974_v62 = vor.u32 %v2254_v50, %v1973_v49  ;;  %v2005_v49 = vld [vmem:[#allocation2 + $0x380] sm:$0xf] }
  0x6b   : > { %969 = vmatpush.bf16.msra.mxu0 %v1720_v56  ;;  %v1978_v63 = vor.u32 %v2253_v54, %v1975_v59  ;;  %v1961_v56 = vld [vmem:[#allocation2 + $0x330] sm:$0xf]  ;;  %v2261_v50 = vld [vmem:[#allocation2 + $0x388] sm:$0xf0]  ;;  %v1993_v59 = vld [vmem:[#allocation2 + $0x368] sm:$0xf] }
  0x6c   : > { %983 = vmatpush.bf16.msra.mxu1 %v1816_v4  ;;  %v1963_v4 = vld [vmem:[#allocation2 + $0x33c] sm:$0xf0]  ;;  %v1962_v8 = vor.u32 %v2251_v0, %v1961_v56  ;;  %v2006_v53 = vor.u32 %v2261_v50, %v2005_v49  ;;  %v1981_v56 = vld [vmem:[#allocation2 + $0x350] sm:$0xf]  ;;  %v2255_v0 = vld [vmem:[#allocation2 + $0x358] sm:$0xf0] }
  0x6d   : > { %997 = vmatpush.bf16.msra.mxu2 %v1724_v6  ;;  %v2274_v6 = vld [vmem:[#allocation2 + $0x3f4] sm:$0xf] }
  0x6e   : > { %1011 = vmatpush.bf16.msra.mxu3 %v1820_v9  ;;  %1919 = vmatmul.msk.bf16.vlgmr.msra.gmra.mxu0 %vm2430_vm2, %v2428_v33  ;;  %v2058_v9 = vor.u32 %v2275_v3, %v2057_v1  ;;  %v2062_v14 = vor.u32 %v2274_v6, %v2059_v7  ;;  %v2077_v1 = vld [vmem:[#allocation2 + $0x410] sm:$0xf]  ;;  %v1982_v3 = vor.u32 %v2255_v0, %v1981_v56  ;;  %v2252_v6 = vld [vmem:[#allocation2 + $0x340] sm:$0xf0]  ;;  %v2065_v7 = vld [vmem:[#allocation2 + $0x3f8] sm:$0xf] }
  0x6f   : > { %1341 = vmatpush.bf16.msrb.mxu0 %v2022_v10  ;;  %1924 = vmatmul.msk.bf16.vlgmr.msra.gmra.mxu1 %vm2430_vm2, %v2434_v38  ;;  %v1966_v10 = vor.u32 %v2250_v5, %v1963_v4  ;;  %v1969_v4 = vld [vmem:[#allocation2 + $0x338] sm:$0xf] }
  0x70   : > { %1355 = vmatpush.bf16.msrb.mxu1 %v2118_v11  ;;  %1929 = vmatmul.msk.bf16.vlgmr.msra.gmra.mxu2 %vm2430_vm2, %v2428_v33  ;;  %v2098_v33 = vor.u32 %v2283_v32, %v2095_v34  ;;  %v1949_v11 = vld [vmem:[#allocation2 + $0x318] sm:$0xf]  ;;  %v2029_v32 = vld [vmem:[#allocation2 + $0x3b0] sm:$0xf]  ;;  %v2267_v34 = vld [vmem:[#allocation2 + $0x3b8] sm:$0xf0] }
  0x71   : > { %1369 = vmatpush.bf16.msrb.mxu2 %v2026_v12  ;;  %1934 = vmatmul.msk.bf16.vlgmr.msra.gmra.mxu3 %vm2430_vm2, %v2434_v38  ;;  %v1990_v38 = vor.u32 %v2256_v44, %v1987_v45  ;;  %v2248_v12 = vld [vmem:[#allocation2 + $0x320] sm:$0xf0]  ;;  %v2017_v44 = vld [vmem:[#allocation2 + $0x398] sm:$0xf] }
  0x72   : > { %1383 = vmatpush.bf16.msrb.mxu3 %v2122_v16  ;;  %v2247_v16 = vld [vmem:[#allocation2 + $0x31c] sm:$0xf]  ;;  %v1950_v58 = vor.u32 %v2248_v12, %v1949_v11  ;;  %v2264_v45 = vld [vmem:[#allocation2 + $0x3a0] sm:$0xf0]  ;;  %v1957_v11 = vld [vmem:[#allocation2 + $0x320] sm:$0xf] }
  0x73   : > { %1342 = vmatpush.bf16.msrb.mxu0 %v2010_v22  ;;  %v2046_v22 = vor.u32 %v2272_v15, %v2045_v13  ;;  %v2249_v12 = vld [vmem:[#allocation2 + $0x328] sm:$0xf0]  ;;  %v2053_v13 = vld [vmem:[#allocation2 + $0x3e0] sm:$0xf] }
  0x74   : > { %1356 = vmatpush.bf16.msrb.mxu1 %v2106_v23  ;;  %v1954_v23 = vor.u32 %v2247_v16, %v1951_v17  ;;  %v1958_v15 = vor.u32 %v2249_v12, %v1957_v11  ;;  %v1945_v17 = vld [vmem:[#allocation2 + $0x308] sm:$0xf] }
  0x75   : > { %1370 = vmatpush.bf16.msrb.mxu2 %v2014_v24  ;;  %v2245_v24 = vld [vmem:[#allocation2 + $0x308] sm:$0xf0] }
  0x76   : > { %1384 = vmatpush.bf16.msrb.mxu3 %v2110_v28  ;;  %v2244_v28 = vld [vmem:[#allocation2 + $0x304] sm:$0xf] }
  0x77   : > { %1343 = vmatpush.bf16.msrb.mxu0 %v1998_v35  ;;  %v1938_v35 = vor.u32 %v2245_v24, %v1937_v19  ;;  %v1942_v41 = vor.u32 %v2244_v28, %v1939_v29  ;;  %v1946_v19 = vor.u32 %v2246_v57, %v1945_v17 }
  0x78   : > { %1357 = vmatpush.bf16.msrb.mxu1 %v2094_v36  ;;  %v2125_v36 = vld [vmem:[#allocation2 + $0x470] sm:$0xf] }
  0x79   : > { %1371 = vmatpush.bf16.msrb.mxu2 %v2002_v39  ;;  %v2291_v39 = vld [vmem:[#allocation2 + $0x478] sm:$0xf0] }
  0x7a   : > { %1385 = vmatpush.bf16.msrb.mxu3 %v2098_v33  ;;  %v2030_v33 = vor.u32 %v2267_v34, %v2029_v32  ;;  %v2126_v43 = vor.u32 %v2291_v39, %v2125_v36 }
  0x7b   : > { %1344 = vmatpush.bf16.msrb.mxu0 %v1986_v48  ;;  %v2288_v48 = vld [vmem:[#allocation2 + $0x460] sm:$0xf0] }
  0x7c   : > { %1358 = vmatpush.bf16.msrb.mxu1 %v2082_v37  ;;  %v2018_v37 = vor.u32 %v2264_v45, %v2017_v44 }
  0x7d   : > { %1372 = vmatpush.bf16.msrb.mxu2 %v1990_v38  ;;  %v2114_v38 = vor.u32 %v2288_v48, %v2113_v47 }
  0x7e   : > { %1386 = vmatpush.bf16.msrb.mxu3 %v2086_v52  ;;  %v2285_v52 = vld [vmem:[#allocation2 + $0x448] sm:$0xf0] }
  0x7f   : > { %1345 = vmatpush.bf16.msrb.mxu0 %v1974_v62  ;;  %v2102_v54 = vor.u32 %v2285_v52, %v2101_v51  ;;  %v2282_v62 = vld [vmem:[#allocation2 + $0x430] sm:$0xf0] }
  0x80   : > { %1359 = vmatpush.bf16.msrb.mxu1 %v2070_v55  ;;  %v1994_v55 = vor.u32 %v2258_v60, %v1993_v59 }
  0x81   : > { %1373 = vmatpush.bf16.msrb.mxu2 %v1978_v63  ;;  %v2090_v63 = vor.u32 %v2282_v62, %v2089_v61 }
  0x82   : > { %1387 = vmatpush.bf16.msrb.mxu3 %v2074_v2  ;;  %v2279_v2 = vld [vmem:[#allocation2 + $0x418] sm:$0xf0] }
  0x83   : > { %1346 = vmatpush.bf16.msrb.mxu0 %v1962_v8  ;;  %v2078_v5 = vor.u32 %v2279_v2, %v2077_v1  ;;  %v2276_v8 = vld [vmem:[#allocation2 + $0x400] sm:$0xf0] }
  0x84   : > { %1360 = vmatpush.bf16.msrb.mxu1 %v2058_v9  ;;  %v1970_v9 = vor.u32 %v2252_v6, %v1969_v4 }
  0x85   : > { %1374 = vmatpush.bf16.msrb.mxu2 %v1966_v10  ;;  %v2066_v10 = vor.u32 %v2276_v8, %v2065_v7 }
  0x86   : > { %1388 = vmatpush.bf16.msrb.mxu3 %v2062_v14  ;;  %v2273_v14 = vld [vmem:[#allocation2 + $0x3e8] sm:$0xf0] }
  0x87   : > { %1347 = vmatpush.bf16.msrb.mxu0 %v1950_v58  ;;  %v2054_v16 = vor.u32 %v2273_v14, %v2053_v13  ;;  %v2270_v58 = vld [vmem:[#allocation2 + $0x3d0] sm:$0xf0] }
  0x88   : > { %1361 = vmatpush.bf16.msrb.mxu1 %v2046_v22  ;;  %v2042_v22 = vor.u32 %v2270_v58, %v2041_v18 }
  0x89   : > { %1375 = vmatpush.bf16.msrb.mxu2 %v1954_v23 }
  0x8a   : > { %1389 = vmatpush.bf16.msrb.mxu3 %v2050_v27 }
  0x8b   : > { %1348 = vmatpush.bf16.msrb.mxu0 %v1938_v35 }
  0x8c   : > { %1362 = vmatpush.bf16.msrb.mxu1 %v2034_v40 }
  0x8d   : > { %1376 = vmatpush.bf16.msrb.mxu2 %v1942_v41 }
  0x8e   : > { %1390 = vmatpush.bf16.msrb.mxu3 %v2038_v42  ;;  %2129 = vmatmul.msk.bf16.vlgmr.msrb.gmra.mxu0 %vm2464_vm4, %v2448_v20 }
  0x8f   : > { %1397 = vmatpush.bf16.msra.mxu0 %v2030_v33  ;;  %2132 = vmatmul.msk.bf16.vlgmr.msrb.gmra.mxu1 %vm2464_vm4, %v2450_v21 }
  0x90   : > { %1411 = vmatpush.bf16.msra.mxu1 %v2126_v43  ;;  %2135 = vmatmul.msk.bf16.vlgmr.msrb.gmra.mxu2 %vm2464_vm4, %v2448_v20 }
  0x91   : > { %2138 = vmatmul.msk.bf16.vlgmr.msrb.gmra.mxu3 %vm2464_vm4, %v2450_v21 }
  0x93   : > { %1398 = vmatpush.bf16.msra.mxu0 %v2018_v37 }
  0x94   : > { %1412 = vmatpush.bf16.msra.mxu1 %v2114_v38 }
  0x97   : > { %1399 = vmatpush.bf16.msra.mxu0 %v2006_v53 }
  0x98   : > { %1413 = vmatpush.bf16.msra.mxu1 %v2102_v54 }
  0x9b   : > { %1400 = vmatpush.bf16.msra.mxu0 %v1994_v55 }
  0x9c   : > { %1414 = vmatpush.bf16.msra.mxu1 %v2090_v63 }
  0x9f   : > { %1401 = vmatpush.bf16.msra.mxu0 %v1982_v3 }
  0xa0   : > { %1415 = vmatpush.bf16.msra.mxu1 %v2078_v5 }
  0xa3   : > { %1402 = vmatpush.bf16.msra.mxu0 %v1970_v9 }
  0xa4   : > { %1416 = vmatpush.bf16.msra.mxu1 %v2066_v10 }
  0xa7   : > { %1403 = vmatpush.bf16.msra.mxu0 %v1958_v15 }
  0xa8   : > { %1417 = vmatpush.bf16.msra.mxu1 %v2054_v16 }
  0xab   : > { %1404 = vmatpush.bf16.msra.mxu0 %v1946_v19  ;;  %v603_v23 = vpop.f32.mrf.mxu0 }
  0xac   : > { %1418 = vmatpush.bf16.msra.mxu1 %v2042_v22  ;;  %v617_v24 = vpop.f32.mrf.mxu1 }
  0xad   : > { %v618_v38 = vadd.f32 %v617_v24, %v603_v23 }
  0xae   : > { %2141 = vmatmul.msk.bf16.vlgmr.msra.gmra.mxu0 %vm2464_vm4, %v2448_v20 }
  0xaf   : > { %2144 = vmatmul.msk.bf16.vlgmr.msra.gmra.mxu1 %vm2464_vm4, %v2450_v21 }
  0xb3   : > { %v631_v25 = vpop.f32.mrf.mxu2  ;;  %v605_v27 = vpop.f32.mrf.mxu0 }
  0xb4   : > { %v645_v26 = vpop.f32.mrf.mxu3  ;;  %v619_v28 = vpop.f32.mrf.mxu1 }
  0xb5   : > { %v646_v47 = vadd.f32 %v645_v26, %v631_v25  ;;  %v620_v61 = vadd.f32 %v619_v28, %v605_v27 }
  0xbb   : > { %v633_v29 = vpop.f32.mrf.mxu2 }
  0xbc   : > { %v647_v30 = vpop.f32.mrf.mxu3 }
  0xbd   : > { %v648_v62 = vadd.f32 %v647_v30, %v633_v29 }
  0xcb   : > { %v659_v31 = vpop.f32.mrf.mxu0 }
  0xcc   : > { %v673_v32 = vpop.f32.mrf.mxu1 }
  0xcd   : > { %v674_v13 = vadd.f32 %v673_v32, %v659_v31 }
  0xd3   : > { %v943_v34 = vpop.f32.mrf.mxu2  ;;  %v661_v36 = vpop.f32.mrf.mxu0 }
  0xd4   : > { %v957_v35 = vpop.f32.mrf.mxu3  ;;  %v675_v39 = vpop.f32.mrf.mxu1  ;;  %v944_v49 = vadd.f32 %v943_v34, %v618_v38 }
  0xd5   : > { %v676_v18 = vadd.f32 %v675_v39, %v661_v36 }
  0xd6   : > { %v958_v54 = vadd.f32 %v957_v35, %v944_v49 }
  0xdb   : > { %v945_v40 = vpop.f32.mrf.mxu2 }
  0xdc   : > { %v959_v20 = vpop.f32.mrf.mxu3  ;;  %v946_v1 = vadd.f32 %v945_v40, %v620_v61 }
  0xde   : > { %v960_v7 = vadd.f32 %v959_v20, %v946_v1 }
  0xeb   : > { %v971_v41 = vpop.f32.mrf.mxu0 }
  0xec   : > { %v985_v42 = vpop.f32.mrf.mxu1  ;;  %v972_v50 = vadd.f32 %v971_v41, %v646_v47 }
  0xee   : > { %v986_v59 = vadd.f32 %v985_v42, %v972_v50 }
  0xf3   : > { %v999_v21 = vpop.f32.mrf.mxu2  ;;  %v973_v43 = vpop.f32.mrf.mxu0 }
  0xf4   : > { %v1013_v33 = vpop.f32.mrf.mxu3  ;;  %v987_v44 = vpop.f32.mrf.mxu1  ;;  %v974_v2 = vadd.f32 %v973_v43, %v648_v62  ;;  %v1000_v14 = vadd.f32 %v999_v21, %v674_v13 }
  0xf6   : > { %v988_v8 = vadd.f32 %v987_v44, %v974_v2  ;;  %v1014_v17 = vadd.f32 %v1013_v33, %v1000_v14 }
  0xfb   : > { %v1001_v45 = vpop.f32.mrf.mxu2 }
  0xfc   : > { %v1015_v46 = vpop.f32.mrf.mxu3  ;;  %v1002_v19 = vadd.f32 %v1001_v45, %v676_v18 }
  0xfe   : > { %v1016_v25 = vadd.f32 %v1015_v46, %v1002_v19 }
 0x10b   : > { %v1350_v48 = vpop.f32.mrf.mxu0 }
 0x10c   : > { %v1364_v37 = vpop.f32.mrf.mxu1 }
 0x10d   : > { %v1365_v51 = vadd.f32 %v1364_v37, %v1350_v48 }
 0x10f   : > { %v1425_v55 = vadd.f32 %v1365_v51, %v958_v54 }
 0x113   : > { %v1378_v52 = vpop.f32.mrf.mxu2  ;;  %v1352_v56 = vpop.f32.mrf.mxu0 }
 0x114   : > { %v1392_v53 = vpop.f32.mrf.mxu3  ;;  %v1366_v0 = vpop.f32.mrf.mxu1 }
 0x115   : > { %v1393_v60 = vadd.f32 %v1392_v53, %v1378_v52  ;;  %v1367_v5 = vadd.f32 %v1366_v0, %v1352_v56 }
 0x117   : > { %v1426_v63 = vadd.f32 %v1393_v60, %v986_v59  ;;  %v1428_v10 = vadd.f32 %v1367_v5, %v960_v7 }
 0x119   : > { %v1431_v3 = vpack.c.bf16 %v1426_v63, %v1425_v55 }
 0x11b   : > { %1435 = vst [vmem:[%s2490_s26] sm:$0xff] %v1431_v3  ;;  %v1380_v4 = vpop.f32.mrf.mxu2 }
 0x11c   : > { %v1394_v6 = vpop.f32.mrf.mxu3 }
 0x11d   : > { %v1395_v9 = vadd.f32 %v1394_v6, %v1380_v4 }
 0x11f   : > { %v1429_v11 = vadd.f32 %v1395_v9, %v988_v8 }
 0x121   : > { %v1433_v12 = vpack.c.bf16 %v1429_v11, %v1428_v10 }
 0x123   : > { %1437 = vst [vmem:[%s2490_s26 + $0xc] sm:$0xff] %v1433_v12 }
 0x12b   : > { %v1406_v15 = vpop.f32.mrf.mxu0 }
 0x12c   : > { %v1420_v16 = vpop.f32.mrf.mxu1 }
 0x12d   : > { %v1421_v57 = vadd.f32 %v1420_v16, %v1406_v15 }
 0x12f   : > { %v1427_v58 = vadd.f32 %v1421_v57, %v1014_v17 }
 0x131   : > { %v1432_v22 = vpack.c.bf16 %v1427_v58, %v1427_v58 }
 0x133   : > { %1436 = vst [vmem:[%s2490_s26 + $0x8] sm:$0xf] %v1432_v22  ;;  %v1408_v23 = vpop.f32.mrf.mxu0 }
 0x134   : > { %v1422_v24 = vpop.f32.mrf.mxu1 }
 0x135   : > { %v1423_v26 = vadd.f32 %v1422_v24, %v1408_v23 }
 0x137   : > { %v1430_v27 = vadd.f32 %v1423_v26, %v1016_v25 }
 0x139   : > { %v1434_v28 = vpack.c.bf16 %v1430_v27, %v1430_v27 }
 0x13b   : > { %1438 = vst [vmem:[%s2490_s26 + $0x14] sm:$0xf] %v1434_v28 }
 0x13c PF: > { %s13_s9 = sadd.s32 1, %s2354_s9  }
 0x13d   : > { %p10_p7 = scmp.ge.s32.totalorder %s13_s9, 4  }
 0x13f   :  { %12 = sbr.rel (!%p10_p7) target bundleno = 1 (0x1), region = 65 }
 0x144   :  { %1463 = vsyncpa [#allocation3], 1 }
 0x145   :  { %1465 = vsyncpa [#allocation3 + $0x1], 1 }

// kernel: generator_forward.18
= control target key start
LH: loop header
LB: loop body
LE: loop exit
PB: predicated region body
PF: predicated region fallthrough
CT: control target
= control target key end

     0   :  { %s976_s21 = smov 0   ;;  %s1091_s0 = inlined_call_operand.vmem [shape: bf16[4,8,128], index: 0, kind: input, shape index: {}]   ;;  %s1092_s1 = inlined_call_operand.vmem [shape: f32[4,1,128], index: 1, kind: input, shape index: {}]   ;;  %s1093_s2 = inlined_call_operand.vmem [shape: f32[4,1,128], index: 2, kind: input, shape index: {}]   ;;  %s1094_s3 = inlined_call_operand.vmem [shape: bf16[3,128,128], index: 3, kind: input, shape index: {}]   ;;  %s1095_s4 = inlined_call_operand.vmem [shape: bf16[4,8,128], index: 4, kind: output, shape index: {0}]   ;;  %s1096_s5 = inlined_call_operand.vmem [shape: f32[2,1,128], index: 5, kind: output, shape index: {1}]   ;;  %s1097_s6 = inlined_call_operand.vmem [shape: f32[2,1,128], index: 6, kind: output, shape index: {2}]  }
   0x1 LB: > { %s982_s22 = sadd.s32 4294967295, %s939_s21   ;;  %p743_p0 = scmp.ge.s32.totalorder %s939_s21, 1  ;;  %s939_s21 = sphi %s976_s21, %s17_s21  }
   0x2   : > { %p238_p1 = scmp.lt.s32.totalorder %s939_s21, 3 }
   0x4   : > { %p239_p2 = pnand %p743_p0, %p238_p1 }
   0x5   : > { %s744_s29 = sshll.u32 (!%p239_p2), %s982_s22, 1  ;;  %p304_p4 = scmp.lt.s32.totalorder (!%p239_p2), %s982_s22, 1 }
   0x6   : > { %242 = sbr.rel (%p239_p2) target bundleno = 204 (0xcc), region = 36  ;;  %p283_p3 = scmp.lt.s32.totalorder (!%p239_p2), %s744_s29, 3 }
   0xb   : > { %v903_v0 = vld [vmem:[%s1094_s3 + $0x78] sm:$0xff]  ;;  %v902_v3 = vld [vmem:[%s1094_s3 + $0x70] sm:$0xff]  ;;  %s1099_s29 = smov (!%p283_p3, %s744_s29), 3  ;;  %v901_v6 = vld [vmem:[%s1094_s3 + $0x68] sm:$0xff]  ;;  %vm342_vm0 = vcmask 1040384   ;;  %vm349_vm2 = vcmask 1046528  }
   0xc   : > { %v895_v1 = vld [vmem:[%s1094_s3 + $0x38] sm:$0xff]  ;;  %435 = vmatpush.bf16.msra.mxu0 %v903_v0  ;;  %v894_v4 = vld [vmem:[%s1094_s3 + $0x30] sm:$0xff]  ;;  %s745_s12 = sshll.u32 %s1099_s29, 2  ;;  %v893_v7 = vld [vmem:[%s1094_s3 + $0x28] sm:$0xff]  ;;  %s291_s24 = scalar_lea.vmem %s1092_s1, %s1099_s29 }
   0xd   : > { %v911_v2 = vld [vmem:[%s1094_s3 + $0xb8] sm:$0xff]  ;;  %497 = vmatpush.bf16.msra.mxu1 %v895_v1  ;;  %v910_v5 = vld [vmem:[%s1094_s3 + $0xb0] sm:$0xff]  ;;  %s286_s19 = scalar_lea.vmem %s1091_s0, %s745_s12  ;;  %v909_v8 = vld [vmem:[%s1094_s3 + $0xa8] sm:$0xff]  ;;  %s296_s30 = scalar_lea.vmem %s1093_s2, %s1099_s29 }
   0xe   : > { %577 = vmatpush.bf16.msra.mxu2 %v911_v2  ;;  %v913_v9 = vld [vmem:[%s286_s19] sm:$0xff]   ;;  %v899_v21 = vld [vmem:[%s1094_s3 + $0x58] sm:$0xff]  ;;  %v898_v26 = vld [vmem:[%s1094_s3 + $0x50] sm:$0xff]  ;;  %s302_s20 = scalar_lea.vmem %s1095_s4, %s745_s12  ;;  %s1101_s22 = smov (!%p304_p4, %s982_s22), 1 }
   0xf   : > { %v914_v10 = vunpack.c.l.bf16 %v913_v9  ;;  %v915_v11 = vunpack.c.h.bf16 %v913_v9  ;;  %v929_v12 = vld [vmem:[%s291_s24] ss:$0 sm:$0xff]  ;;  %v930_v13 = vld [vmem:[%s291_s24 + $0x1] ss:$0 sm:$0xff]  ;;  %v891_v22 = vld [vmem:[%s1094_s3 + $0x18] sm:$0xff]  ;;  %s306_s12 = scalar_lea.vmem %s1096_s5, %s1101_s22  ;;  %s309_s26 = scalar_lea.vmem %s1097_s6, %s1101_s22 }
  0x10   : > { %436 = vmatpush.bf16.msra.mxu0 %v902_v3  ;;  %v900_v14 = vld [vmem:[%s1094_s3 + $0x60] sm:$0xff]  ;;  %v907_v23 = vld [vmem:[%s1094_s3 + $0x98] sm:$0xff]  ;;  %v890_v27 = vld [vmem:[%s1094_s3 + $0x10] sm:$0xff] }
  0x11   : > { %498 = vmatpush.bf16.msra.mxu1 %v894_v4  ;;  %v892_v15 = vld [vmem:[%s1094_s3 + $0x20] sm:$0xff]  ;;  %v322_v17 = vmul.f32 %v929_v12, %v914_v10  ;;  %v323_v18 = vmul.f32 %v930_v13, %v915_v11  ;;  %v906_v28 = vld [vmem:[%s1094_s3 + $0x90] sm:$0xff]  ;;  %v897_v31 = vld [vmem:[%s1094_s3 + $0x48] sm:$0xff] }
  0x12   : > { %578 = vmatpush.bf16.msra.mxu2 %v910_v5  ;;  %v908_v16 = vld [vmem:[%s1094_s3 + $0xa0] sm:$0xff]  ;;  %v889_v32 = vld [vmem:[%s1094_s3 + $0x8] sm:$0xff]  ;;  %vm830_vm1 = vmneg %vm342_vm0 }
  0x13   : > { %v931_v19 = vld [vmem:[%s296_s30] ss:$0 sm:$0xff]  ;;  %v932_v20 = vld [vmem:[%s296_s30 + $0x1] ss:$0 sm:$0xff]  ;;  %v905_v33 = vld [vmem:[%s1094_s3 + $0x88] sm:$0xff] }
  0x14   : > { %437 = vmatpush.bf16.msra.mxu0 %v901_v6  ;;  %v332_v24 = vadd.f32 %v931_v19, %v322_v17  ;;  %v333_v25 = vadd.f32 %v932_v20, %v323_v18  ;;  %v896_v36 = vld [vmem:[%s1094_s3 + $0x40] sm:$0xff]  ;;  %vm832_vm3 = vmpackc.low %vm830_vm1, %vm830_vm1 }
  0x15   : > { %499 = vmatpush.bf16.msra.mxu1 %v893_v7  ;;  %v888_v37 = vld [vmem:[%s1094_s3] sm:$0xff]  ;;  %vm883_vm4 = vmpackc.low %vm349_vm2, %vm349_vm2 }
  0x16   : > { %579 = vmatpush.bf16.msra.mxu2 %v909_v8  ;;  %v334_v29 = vmax.f32 %v332_v24, 0.0  ;;  %v335_v30 = vmax.f32 %v333_v25, 0.0  ;;  %v904_v40 = vld [vmem:[%s1094_s3 + $0x80] sm:$0xff] }
  0x18   : > { %438 = vmatpush.bf16.msra.mxu0 %v900_v14  ;;  %v338_v34 = vrot.slane %v334_v29, 7  ;;  %v339_v35 = vrot.slane %v335_v30, 7  ;;  %v345_v38 = vrot.slane %v334_v29, 1  ;;  %v346_v39 = vrot.slane %v335_v30, 1 }
  0x19   : > { %500 = vmatpush.bf16.msra.mxu1 %v892_v15  ;;  %v369_v41 = vpack.c.bf16 %v335_v30, %v334_v29 }
  0x1a   : > { %580 = vmatpush.bf16.msra.mxu2 %v908_v16  ;;  %v833_v42 = vpack.c.bf16 %v339_v35, %v338_v34  ;;  %v884_v43 = vpack.c.bf16 %v346_v39, %v345_v38 }
  0x1c   : > { %439 = vmatpush.bf16.msra.mxu0 %v899_v21 }
  0x1d   : > { %501 = vmatpush.bf16.msra.mxu1 %v891_v22 }
  0x1e   : > { %581 = vmatpush.bf16.msra.mxu2 %v907_v23 }
  0x20   : > { %440 = vmatpush.bf16.msra.mxu0 %v898_v26 }
  0x21   : > { %502 = vmatpush.bf16.msra.mxu1 %v890_v27 }
  0x22   : > { %582 = vmatpush.bf16.msra.mxu2 %v906_v28 }
  0x24   : > { %441 = vmatpush.bf16.msra.mxu0 %v897_v31 }
  0x25   : > { %503 = vmatpush.bf16.msra.mxu1 %v889_v32 }
  0x26   : > { %583 = vmatpush.bf16.msra.mxu2 %v905_v33 }
  0x28   : > { %442 = vmatpush.bf16.msra.mxu0 %v896_v36 }
  0x29   : > { %504 = vmatpush.bf16.msra.mxu1 %v888_v37 }
  0x2a   : > { %584 = vmatpush.bf16.msra.mxu2 %v904_v40 }
  0x2b   : > { %443 = vmatmul.bf16.vlgmr.msra.gmra.mxu0 %v369_v41 }
  0x2c   : > { %834 = vmatmul.msk.bf16.vlgmr.msra.gmra.mxu1 %vm832_vm3, %v833_v42 }
  0x2d   : > { %885 = vmatmul.msk.bf16.vlgmr.msra.gmra.mxu2 %vm883_vm4, %v884_v43 }
  0xa8   : > { %v444_v44 = vpop.f32.mrf.mxu0 }
  0xa9   : > { %v506_v45 = vpop.f32.mrf.mxu1 }
  0xaa   : > { %v507_v47 = vadd.f32 %v506_v45, %v444_v44 }
  0xb0   : > { %v586_v46 = vpop.f32.mrf.mxu2  ;;  %v446_v48 = vpop.f32.mrf.mxu0 }
  0xb1   : > { %v508_v49 = vpop.f32.mrf.mxu1  ;;  %v591_v50 = vadd.f32 %v586_v46, %v507_v47 }
  0xb2   : > { %v509_v51 = vadd.f32 %v508_v49, %v446_v48 }
  0xb3   : > { %v605_v54 = vmul.f32 %v591_v50, %v591_v50 }
  0xb8   : > { %v588_v52 = vpop.f32.mrf.mxu2 }
  0xb9   : > { %v592_v53 = vadd.f32 %v588_v52, %v509_v51 }
  0xbb   : > { %v919_v55 = vpack.c.bf16 %v592_v53, %v591_v50  ;;  %v597_v56 = vadd.f32 %v592_v53, %v591_v50  ;;  %v606_v57 = vmul.f32 %v592_v53, %v592_v53 }
  0xbd   : > { %920 = vst [vmem:[%s302_s20] sm:$0xff] %v919_v55   ;;  %v598_v58 = vrot.slane %v597_v56, 4  ;;  %v607_v59 = vadd.f32 %v606_v57, %v605_v54 }
  0xbf   : > { %v599_v60 = vadd.f32 %v598_v58, %v597_v56  ;;  %v608_v61 = vrot.slane %v607_v59, 4 }
  0xc1   : > { %v600_v62 = vrot.slane %v599_v60, 2  ;;  %v609_v63 = vadd.f32 %v608_v61, %v607_v59 }
  0xc3   : > { %v601_v0 = vadd.f32 %v600_v62, %v599_v60  ;;  %v610_v1 = vrot.slane %v609_v63, 2 }
  0xc5   : > { %v602_v2 = vrot.slane %v601_v0, 1  ;;  %v611_v3 = vadd.f32 %v610_v1, %v609_v63 }
  0xc7   : > { %v603_v4 = vadd.f32 %v602_v2, %v601_v0  ;;  %v612_v5 = vrot.slane %v611_v3, 1 }
  0xc9   : > { %604 = vst [vmem:[%s306_s12] sm:$0x1] %v603_v4  ;;  %v613_v6 = vadd.f32 %v612_v5, %v611_v3 }
  0xcb   : > { %614 = vst [vmem:[%s309_s26] sm:$0x1] %v613_v6 }
  0xcc PF: > { %s17_s21 = sadd.s32 1, %s939_s21  }
  0xcd   : > { %p14_p5 = scmp.ge.s32.totalorder %s17_s21, 4  }
  0xcf   :  { %16 = sbr.rel (!%p14_p5) target bundleno = 1 (0x1), region = 98 }

// kernel: generator_forward.19
= control target key start
LH: loop header
LB: loop body
LE: loop exit
PB: predicated region body
PF: predicated region fallthrough
CT: control target
= control target key end

     0   :  { %s907_s18 = smov 0   ;;  %s1010_s0 = inlined_call_operand.vmem [shape: bf16[4,8,128], index: 0, kind: input, shape index: {}]   ;;  %s1011_s1 = inlined_call_operand.vmem [shape: f32[4,1,128], index: 1, kind: input, shape index: {}]   ;;  %s1012_s2 = inlined_call_operand.vmem [shape: f32[4,1,128], index: 2, kind: input, shape index: {}]   ;;  %s1013_s3 = inlined_call_operand.vmem [shape: bf16[3,128,128], index: 3, kind: input, shape index: {}]   ;;  %s1014_s4 = inlined_call_operand.vmem [shape: bf16[4,8,128], index: 4, kind: input, shape index: {}]   ;;  %s1015_s5 = inlined_call_operand.vmem [shape: bf16[4,8,128], index: 5, kind: output, shape index: {}]  }
   0x1 LB: > { %s669_s19 = sadd.s32 4294967295, %s875_s18   ;;  %p673_p0 = scmp.ge.s32.totalorder %s875_s18, 1  ;;  %s875_s18 = sphi %s907_s18, %s15_s18  }
   0x2   : > { %p219_p1 = scmp.lt.s32.totalorder %s875_s18, 3 }
   0x4   : > { %p220_p2 = pnand %p673_p0, %p219_p1 }
   0x5   : > { %s674_s26 = sshll.u32 (!%p220_p2), %s669_s19, 1 }
   0x6   : > { %223 = sbr.rel (%p220_p2) target bundleno = 194 (0xc2), region = 40  ;;  %p261_p3 = scmp.lt.s32.totalorder (!%p220_p2), %s674_s26, 3 }
   0xb   : > { %v835_v0 = vld [vmem:[%s1013_s3 + $0x78] sm:$0xff]  ;;  %v834_v3 = vld [vmem:[%s1013_s3 + $0x70] sm:$0xff]  ;;  %s1017_s26 = smov (!%p261_p3, %s674_s26), 3  ;;  %v833_v6 = vld [vmem:[%s1013_s3 + $0x68] sm:$0xff]  ;;  %vm320_vm0 = vcmask 1040384   ;;  %vm327_vm2 = vcmask 1046528  }
   0xc   : > { %v827_v1 = vld [vmem:[%s1013_s3 + $0x38] sm:$0xff]  ;;  %413 = vmatpush.bf16.msra.mxu0 %v835_v0  ;;  %v826_v4 = vld [vmem:[%s1013_s3 + $0x30] sm:$0xff]  ;;  %s933_s8 = sshll.u32 %s1017_s26, 2  ;;  %v825_v7 = vld [vmem:[%s1013_s3 + $0x28] sm:$0xff]  ;;  %s269_s19 = scalar_lea.vmem %s1011_s1, %s1017_s26 }
   0xd   : > { %v843_v2 = vld [vmem:[%s1013_s3 + $0xb8] sm:$0xff]  ;;  %475 = vmatpush.bf16.msra.mxu1 %v827_v1  ;;  %v842_v5 = vld [vmem:[%s1013_s3 + $0xb0] sm:$0xff]  ;;  %s264_s15 = scalar_lea.vmem %s1010_s0, %s933_s8  ;;  %v841_v8 = vld [vmem:[%s1013_s3 + $0xa8] sm:$0xff]  ;;  %s274_s24 = scalar_lea.vmem %s1012_s2, %s1017_s26 }
   0xe   : > { %555 = vmatpush.bf16.msra.mxu2 %v843_v2  ;;  %v845_v9 = vld [vmem:[%s264_s15] sm:$0xff]   ;;  %v831_v21 = vld [vmem:[%s1013_s3 + $0x58] sm:$0xff]  ;;  %v830_v26 = vld [vmem:[%s1013_s3 + $0x50] sm:$0xff]  ;;  %s280_s10 = scalar_lea.vmem %s1014_s4, %s933_s8  ;;  %s286_s13 = scalar_lea.vmem %s1015_s5, %s933_s8 }
   0xf   : > { %v846_v10 = vunpack.c.l.bf16 %v845_v9  ;;  %v847_v11 = vunpack.c.h.bf16 %v845_v9  ;;  %v865_v12 = vld [vmem:[%s269_s19] ss:$0 sm:$0xff]  ;;  %v866_v13 = vld [vmem:[%s269_s19 + $0x1] ss:$0 sm:$0xff]  ;;  %v823_v22 = vld [vmem:[%s1013_s3 + $0x18] sm:$0xff] }
  0x10   : > { %414 = vmatpush.bf16.msra.mxu0 %v834_v3  ;;  %v832_v14 = vld [vmem:[%s1013_s3 + $0x60] sm:$0xff]  ;;  %v839_v23 = vld [vmem:[%s1013_s3 + $0x98] sm:$0xff]  ;;  %v822_v27 = vld [vmem:[%s1013_s3 + $0x10] sm:$0xff] }
  0x11   : > { %476 = vmatpush.bf16.msra.mxu1 %v826_v4  ;;  %v824_v15 = vld [vmem:[%s1013_s3 + $0x20] sm:$0xff]  ;;  %v300_v17 = vmul.f32 %v865_v12, %v846_v10  ;;  %v301_v18 = vmul.f32 %v866_v13, %v847_v11  ;;  %v838_v28 = vld [vmem:[%s1013_s3 + $0x90] sm:$0xff]  ;;  %v829_v31 = vld [vmem:[%s1013_s3 + $0x48] sm:$0xff] }
  0x12   : > { %556 = vmatpush.bf16.msra.mxu2 %v842_v5  ;;  %v840_v16 = vld [vmem:[%s1013_s3 + $0xa0] sm:$0xff]  ;;  %v821_v32 = vld [vmem:[%s1013_s3 + $0x8] sm:$0xff]  ;;  %vm762_vm1 = vmneg %vm320_vm0 }
  0x13   : > { %v867_v19 = vld [vmem:[%s274_s24] ss:$0 sm:$0xff]  ;;  %v868_v20 = vld [vmem:[%s274_s24 + $0x1] ss:$0 sm:$0xff]  ;;  %v837_v33 = vld [vmem:[%s1013_s3 + $0x88] sm:$0xff] }
  0x14   : > { %415 = vmatpush.bf16.msra.mxu0 %v833_v6  ;;  %v310_v24 = vadd.f32 %v867_v19, %v300_v17  ;;  %v311_v25 = vadd.f32 %v868_v20, %v301_v18  ;;  %v828_v36 = vld [vmem:[%s1013_s3 + $0x40] sm:$0xff]  ;;  %vm764_vm3 = vmpackc.low %vm762_vm1, %vm762_vm1 }
  0x15   : > { %477 = vmatpush.bf16.msra.mxu1 %v825_v7  ;;  %v820_v37 = vld [vmem:[%s1013_s3] sm:$0xff]  ;;  %vm815_vm4 = vmpackc.low %vm327_vm2, %vm327_vm2 }
  0x16   : > { %557 = vmatpush.bf16.msra.mxu2 %v841_v8  ;;  %v312_v29 = vmax.f32 %v310_v24, 0.0  ;;  %v313_v30 = vmax.f32 %v311_v25, 0.0  ;;  %v836_v40 = vld [vmem:[%s1013_s3 + $0x80] sm:$0xff] }
  0x17   : > { %v849_v48 = vld [vmem:[%s280_s10] sm:$0xff]  }
  0x18   : > { %416 = vmatpush.bf16.msra.mxu0 %v832_v14  ;;  %v316_v34 = vrot.slane %v312_v29, 7  ;;  %v317_v35 = vrot.slane %v313_v30, 7  ;;  %v323_v38 = vrot.slane %v312_v29, 1  ;;  %v324_v39 = vrot.slane %v313_v30, 1 }
  0x19   : > { %478 = vmatpush.bf16.msra.mxu1 %v824_v15  ;;  %v347_v41 = vpack.c.bf16 %v313_v30, %v312_v29  ;;  %v850_v52 = vunpack.c.l.bf16 %v849_v48  ;;  %v851_v54 = vunpack.c.h.bf16 %v849_v48 }
  0x1a   : > { %558 = vmatpush.bf16.msra.mxu2 %v840_v16  ;;  %v765_v42 = vpack.c.bf16 %v317_v35, %v316_v34  ;;  %v816_v43 = vpack.c.bf16 %v324_v39, %v323_v38 }
  0x1c   : > { %417 = vmatpush.bf16.msra.mxu0 %v831_v21 }
  0x1d   : > { %479 = vmatpush.bf16.msra.mxu1 %v823_v22 }
  0x1e   : > { %559 = vmatpush.bf16.msra.mxu2 %v839_v23 }
  0x20   : > { %418 = vmatpush.bf16.msra.mxu0 %v830_v26 }
  0x21   : > { %480 = vmatpush.bf16.msra.mxu1 %v822_v27 }
  0x22   : > { %560 = vmatpush.bf16.msra.mxu2 %v838_v28 }
  0x24   : > { %419 = vmatpush.bf16.msra.mxu0 %v829_v31 }
  0x25   : > { %481 = vmatpush.bf16.msra.mxu1 %v821_v32 }
  0x26   : > { %561 = vmatpush.bf16.msra.mxu2 %v837_v33 }
  0x28   : > { %420 = vmatpush.bf16.msra.mxu0 %v828_v36 }
  0x29   : > { %482 = vmatpush.bf16.msra.mxu1 %v820_v37 }
  0x2a   : > { %562 = vmatpush.bf16.msra.mxu2 %v836_v40 }
  0x2b   : > { %421 = vmatmul.bf16.vlgmr.msra.gmra.mxu0 %v347_v41 }
  0x2c   : > { %766 = vmatmul.msk.bf16.vlgmr.msra.gmra.mxu1 %vm764_vm3, %v765_v42 }
  0x2d   : > { %817 = vmatmul.msk.bf16.vlgmr.msra.gmra.mxu2 %vm815_vm4, %v816_v43 }
  0xa8   : > { %v422_v44 = vpop.f32.mrf.mxu0 }
  0xa9   : > { %v484_v45 = vpop.f32.mrf.mxu1 }
  0xaa   : > { %v485_v47 = vadd.f32 %v484_v45, %v422_v44 }
  0xb0   : > { %v564_v46 = vpop.f32.mrf.mxu2  ;;  %v424_v49 = vpop.f32.mrf.mxu0 }
  0xb1   : > { %v486_v50 = vpop.f32.mrf.mxu1  ;;  %v569_v51 = vadd.f32 %v564_v46, %v485_v47 }
  0xb2   : > { %v487_v53 = vadd.f32 %v486_v50, %v424_v49 }
  0xb3   : > { %v575_v56 = vadd.f32 %v850_v52, %v569_v51 }
  0xb5   : > { %v577_v59 = vmax.f32 %v575_v56, 0.0 }
  0xb8   : > { %v566_v55 = vpop.f32.mrf.mxu2 }
  0xb9   : > { %v570_v57 = vadd.f32 %v566_v55, %v487_v53 }
  0xbb   : > { %v576_v58 = vadd.f32 %v851_v54, %v570_v57 }
  0xbd   : > { %v578_v60 = vmax.f32 %v576_v58, 0.0 }
  0xbf   : > { %v855_v61 = vpack.c.bf16 %v578_v60, %v577_v59 }
  0xc1   : > { %856 = vst [vmem:[%s286_s13] sm:$0xff] %v855_v61  }
  0xc2 PF: > { %s15_s18 = sadd.s32 1, %s875_s18  }
  0xc3   : > { %p12_p4 = scmp.ge.s32.totalorder %s15_s18, 4  }
  0xc5   :  { %14 = sbr.rel (!%p12_p4) target bundleno = 1 (0x1), region = 81 }

</bundles_post_ra>
